<compile_context>
chip_gen: v7x
topology: tpu7x:2x2x1
jax: 0.10.0
libtpu: 0.0.40
codegen_flags: <defaults>
</compile_context>

<pallas_src>
import jax
import jax.numpy as jnp
from jax import lax
from jax.experimental import pallas as pl
from jax.experimental.pallas import tpu as pltpu


def relu_conv_bn(x_nchw, w_oihw, gamma, beta, *, stride=1, padding=1, eps=1e-5):
    N, Cin, H, W = x_nchw.shape
    Cout, Cin_w, KH, KW = w_oihw.shape
    assert Cin == Cin_w

    Hp, Wp = H + 2 * padding, W + 2 * padding
    Ho = (Hp - KH) // stride + 1
    Wo = (Wp - KW) // stride + 1
    M2 = N * Ho * Wo          # im2col rows
    K2 = KH * KW * Cin        # im2col contraction depth
    inv_count = 1.0 / float(M2)

    # ---- glue: layout only (NCHW -> NHWC, spatial zero-pad, OIHW -> flat 2-D slab) ----
    x_nhwc = jnp.transpose(x_nchw, (0, 2, 3, 1)).astype(jnp.float32)          # (N,H,W,Cin)
    xp = jnp.pad(x_nhwc, ((0, 0), (padding, padding), (padding, padding), (0, 0)))
    # OIHW -> HWIO -> (KH*KW*Cin, Cout): row order (kh, kw, cin) matches the patch layout.
    w2d = jnp.transpose(w_oihw, (2, 3, 1, 0)).astype(jnp.float32).reshape(K2, Cout)
    g2 = gamma.reshape(1, Cout).astype(jnp.float32)
    b2 = beta.reshape(1, Cout).astype(jnp.float32)

    def fused_kernel(x_ref, w_ref, g_ref, b_ref, o_ref):
        # ---- ReLU (ReLU(0) = 0, so applying it to the padded tensor is equivalent) ----
        xv = jnp.maximum(x_ref[...], 0.0)                                     # (N,Hp,Wp,Cin)

        # ---- im2col: gather the KH*KW taps, single MXU matmul for the whole conv ----
        taps = []
        for kh in range(KH):
            for kw in range(KW):
                taps.append(
                    xv[:, kh:kh + (Ho - 1) * stride + 1:stride,
                       kw:kw + (Wo - 1) * stride + 1:stride, :])              # (N,Ho,Wo,Cin)
        patches = jnp.concatenate(taps, axis=-1).reshape(M2, K2)              # (M2, K2)
        y2d = jnp.dot(patches, w_ref[...],
                      preferred_element_type=jnp.float32)                     # (M2, Cout)

        # ---- BatchNorm batch statistics (biased variance = PyTorch training forward) ----
        s1 = jnp.sum(y2d, axis=0, keepdims=True)                              # (1, Cout)
        s2 = jnp.sum(y2d * y2d, axis=0, keepdims=True)                        # (1, Cout)
        mean = s1 * inv_count
        var = s2 * inv_count - mean * mean
        scale = g_ref[...] * lax.rsqrt(var + eps)                             # (1, Cout)
        shift = b_ref[...] - mean * scale                                     # (1, Cout)

        # ---- fold (Wo, Cout) into the lane axis and apply one FMA per element ----
        y3 = y2d.reshape(N * Ho, Wo, Cout)
        y_fold = jnp.concatenate([y3[:, w, :] for w in range(Wo)], axis=-1)   # (N*Ho, Wo*Cout)
        scale_l = jnp.concatenate([scale] * Wo, axis=-1)                      # (1, Wo*Cout)
        shift_l = jnp.concatenate([shift] * Wo, axis=-1)                      # (1, Wo*Cout)
        o_ref[...] = y_fold * scale_l + shift_l

    out_fold = pl.pallas_call(
        fused_kernel,
        out_shape=jax.ShapeDtypeStruct((N * Ho, Wo * Cout), jnp.float32),
        in_specs=[pl.BlockSpec(memory_space=pltpu.MemorySpace.VMEM)] * 4,
        out_specs=pl.BlockSpec(memory_space=pltpu.MemorySpace.VMEM),
    )(xp, w2d, g2, b2)

    # ---- glue: un-fold the lane-dense slab back to PyTorch NCHW layout ----
    return jnp.transpose(out_fold.reshape(N, Ho, Wo, Cout), (0, 3, 1, 2))


def reference_relu_conv_bn(x_nchw, w_oihw, gamma, beta, *, stride=1, padding=1, eps=1e-5):
    xr = jnp.maximum(x_nchw, 0.0)
    y = lax.conv_general_dilated(
        xr, w_oihw,
        window_strides=(stride, stride),
        padding=((padding, padding), (padding, padding)),
        dimension_numbers=("NCHW", "OIHW", "NCHW"),
    )
    mean = jnp.mean(y, axis=(0, 2, 3), keepdims=True)
    var = jnp.mean((y - mean) ** 2, axis=(0, 2, 3), keepdims=True)
    g = gamma.reshape(1, -1, 1, 1)
    b = beta.reshape(1, -1, 1, 1)
    return (y - mean) * lax.rsqrt(var + eps) * g + b


if __name__ == "__main__":
    # Module config: ReLUConvBNOrigin(C_in=4, C_out=8, kernel_size=3, stride=1, padding=1)
    N, C_in, H, W = 2, 4, 16, 16
    C_out, K, stride, padding = 8, 3, 1, 1

    key = jax.random.PRNGKey(0)
    kx, kw, kg, kb = jax.random.split(key, 4)
    x = jax.random.normal(kx, (N, C_in, H, W), dtype=jnp.float32)
    w = jax.random.normal(kw, (C_out, C_in, K, K), dtype=jnp.float32) * 0.1
    gamma = 1.0 + 0.1 * jax.random.normal(kg, (C_out,), dtype=jnp.float32)
    beta = 0.1 * jax.random.normal(kb, (C_out,), dtype=jnp.float32)

    out = relu_conv_bn(x, w, gamma, beta, stride=stride, padding=padding)
    out = jax.block_until_ready(out)

    ref = reference_relu_conv_bn(x, w, gamma, beta, stride=stride, padding=padding)
    assert out.shape == (N, C_out, H, W), out.shape
    assert jnp.allclose(out, ref, atol=2e-4, rtol=2e-4), float(jnp.max(jnp.abs(out - ref)))

    print("KERNEL_OK")
</pallas_src>

<mosaic_0001>
module attributes {stable_mosaic.version = 11 : i64} {
  func.func @fused_kernel(%arg0: memref<2x18x18x4xf32, #tpu.memory_space<vmem>>, %arg1: memref<36x8xf32, #tpu.memory_space<vmem>>, %arg2: memref<1x8xf32, #tpu.memory_space<vmem>>, %arg3: memref<1x8xf32, #tpu.memory_space<vmem>>, %arg4: memref<32x128xf32, #tpu.memory_space<vmem>>) attributes {dimension_semantics = [], scalar_prefetch = 0 : i64, scratch_operands = 0 : i64, tpu.core_type = #tpu.core_type<tc>} {
    %c0 = arith.constant 0 : index
    %c0_0 = arith.constant 0 : index
    %c0_1 = arith.constant 0 : index
    %c0_2 = arith.constant 0 : index
    %0 = vector.load %arg0[%c0, %c0_0, %c0_1, %c0_2] : memref<2x18x18x4xf32, #tpu.memory_space<vmem>>, vector<2x18x18x4xf32>
    %cst = arith.constant 0.000000e+00 : f32
    %1 = vector.broadcast %cst : f32 to vector<2x18x18x4xf32>
    %2 = arith.maximumf %0, %1 : vector<2x18x18x4xf32>
    %3 = vector.extract_strided_slice %2 {offsets = [0, 0, 0, 0], sizes = [2, 16, 16, 4], strides = [1, 1, 1, 1]} : vector<2x18x18x4xf32> to vector<2x16x16x4xf32>
    %4 = vector.extract_strided_slice %2 {offsets = [0, 0, 1, 0], sizes = [2, 16, 16, 4], strides = [1, 1, 1, 1]} : vector<2x18x18x4xf32> to vector<2x16x16x4xf32>
    %5 = vector.extract_strided_slice %2 {offsets = [0, 0, 2, 0], sizes = [2, 16, 16, 4], strides = [1, 1, 1, 1]} : vector<2x18x18x4xf32> to vector<2x16x16x4xf32>
    %6 = vector.extract_strided_slice %2 {offsets = [0, 1, 0, 0], sizes = [2, 16, 16, 4], strides = [1, 1, 1, 1]} : vector<2x18x18x4xf32> to vector<2x16x16x4xf32>
    %7 = vector.extract_strided_slice %2 {offsets = [0, 1, 1, 0], sizes = [2, 16, 16, 4], strides = [1, 1, 1, 1]} : vector<2x18x18x4xf32> to vector<2x16x16x4xf32>
    %8 = vector.extract_strided_slice %2 {offsets = [0, 1, 2, 0], sizes = [2, 16, 16, 4], strides = [1, 1, 1, 1]} : vector<2x18x18x4xf32> to vector<2x16x16x4xf32>
    %9 = vector.extract_strided_slice %2 {offsets = [0, 2, 0, 0], sizes = [2, 16, 16, 4], strides = [1, 1, 1, 1]} : vector<2x18x18x4xf32> to vector<2x16x16x4xf32>
    %10 = vector.extract_strided_slice %2 {offsets = [0, 2, 1, 0], sizes = [2, 16, 16, 4], strides = [1, 1, 1, 1]} : vector<2x18x18x4xf32> to vector<2x16x16x4xf32>
    %11 = vector.extract_strided_slice %2 {offsets = [0, 2, 2, 0], sizes = [2, 16, 16, 4], strides = [1, 1, 1, 1]} : vector<2x18x18x4xf32> to vector<2x16x16x4xf32>
    %12 = tpu.concatenate %3, %4, %5, %6, %7, %8, %9, %10, %11 in 3 : vector<2x16x16x4xf32>, vector<2x16x16x4xf32>, vector<2x16x16x4xf32>, vector<2x16x16x4xf32>, vector<2x16x16x4xf32>, vector<2x16x16x4xf32>, vector<2x16x16x4xf32>, vector<2x16x16x4xf32>, vector<2x16x16x4xf32> -> vector<2x16x16x36xf32>
    %13 = vector.shape_cast %12 : vector<2x16x16x36xf32> to vector<512x36xf32>
    %c0_3 = arith.constant 0 : index
    %c0_4 = arith.constant 0 : index
    %14 = vector.load %arg1[%c0_3, %c0_4] : memref<36x8xf32, #tpu.memory_space<vmem>>, vector<36x8xf32>
    %cst_5 = arith.constant dense<0.000000e+00> : vector<512x8xf32>
    %15 = tpu.matmul %13, %14, %cst_5 {dimension_numbers = #tpu.dot_dimension_numbers<[1], [0], [0], [1], [0, 0, 1, 1], [], []>} : vector<512x36xf32>, vector<36x8xf32>, vector<512x8xf32> -> vector<512x8xf32>
    %cst_6 = arith.constant dense<0.000000e+00> : vector<8xf32>
    %16 = vector.multi_reduction <add>, %15, %cst_6 [0] : vector<512x8xf32> to vector<8xf32>
    %17 = vector.shape_cast %16 : vector<8xf32> to vector<1x8xf32>
    %18 = arith.mulf %15, %15 : vector<512x8xf32>
    %cst_7 = arith.constant dense<0.000000e+00> : vector<8xf32>
    %19 = vector.multi_reduction <add>, %18, %cst_7 [0] : vector<512x8xf32> to vector<8xf32>
    %20 = vector.shape_cast %19 : vector<8xf32> to vector<1x8xf32>
    %cst_8 = arith.constant 0.001953125 : f32
    %21 = vector.broadcast %cst_8 : f32 to vector<1x8xf32>
    %22 = arith.mulf %17, %21 : vector<1x8xf32>
    %cst_9 = arith.constant 0.001953125 : f32
    %23 = vector.broadcast %cst_9 : f32 to vector<1x8xf32>
    %24 = arith.mulf %20, %23 : vector<1x8xf32>
    %25 = arith.mulf %22, %22 : vector<1x8xf32>
    %26 = arith.subf %24, %25 : vector<1x8xf32>
    %c0_10 = arith.constant 0 : index
    %c0_11 = arith.constant 0 : index
    %27 = vector.load %arg2[%c0_10, %c0_11] : memref<1x8xf32, #tpu.memory_space<vmem>>, vector<1x8xf32>
    %cst_12 = arith.constant 9.99999974E-6 : f32
    %28 = vector.broadcast %cst_12 : f32 to vector<1x8xf32>
    %29 = arith.addf %26, %28 : vector<1x8xf32>
    %30 = math.rsqrt %29 : vector<1x8xf32>
    %31 = arith.mulf %27, %30 : vector<1x8xf32>
    %c0_13 = arith.constant 0 : index
    %c0_14 = arith.constant 0 : index
    %32 = vector.load %arg3[%c0_13, %c0_14] : memref<1x8xf32, #tpu.memory_space<vmem>>, vector<1x8xf32>
    %33 = arith.mulf %22, %31 : vector<1x8xf32>
    %34 = arith.subf %32, %33 : vector<1x8xf32>
    %35 = vector.shape_cast %15 : vector<512x8xf32> to vector<32x16x8xf32>
    %36 = vector.extract_strided_slice %35 {offsets = [0, 0, 0], sizes = [32, 1, 8], strides = [1, 1, 1]} : vector<32x16x8xf32> to vector<32x1x8xf32>
    %37 = vector.shape_cast %36 : vector<32x1x8xf32> to vector<32x8xf32>
    %38 = vector.extract_strided_slice %35 {offsets = [0, 1, 0], sizes = [32, 1, 8], strides = [1, 1, 1]} : vector<32x16x8xf32> to vector<32x1x8xf32>
    %39 = vector.shape_cast %38 : vector<32x1x8xf32> to vector<32x8xf32>
    %40 = vector.extract_strided_slice %35 {offsets = [0, 2, 0], sizes = [32, 1, 8], strides = [1, 1, 1]} : vector<32x16x8xf32> to vector<32x1x8xf32>
    %41 = vector.shape_cast %40 : vector<32x1x8xf32> to vector<32x8xf32>
    %42 = vector.extract_strided_slice %35 {offsets = [0, 3, 0], sizes = [32, 1, 8], strides = [1, 1, 1]} : vector<32x16x8xf32> to vector<32x1x8xf32>
    %43 = vector.shape_cast %42 : vector<32x1x8xf32> to vector<32x8xf32>
    %44 = vector.extract_strided_slice %35 {offsets = [0, 4, 0], sizes = [32, 1, 8], strides = [1, 1, 1]} : vector<32x16x8xf32> to vector<32x1x8xf32>
    %45 = vector.shape_cast %44 : vector<32x1x8xf32> to vector<32x8xf32>
    %46 = vector.extract_strided_slice %35 {offsets = [0, 5, 0], sizes = [32, 1, 8], strides = [1, 1, 1]} : vector<32x16x8xf32> to vector<32x1x8xf32>
    %47 = vector.shape_cast %46 : vector<32x1x8xf32> to vector<32x8xf32>
    %48 = vector.extract_strided_slice %35 {offsets = [0, 6, 0], sizes = [32, 1, 8], strides = [1, 1, 1]} : vector<32x16x8xf32> to vector<32x1x8xf32>
    %49 = vector.shape_cast %48 : vector<32x1x8xf32> to vector<32x8xf32>
    %50 = vector.extract_strided_slice %35 {offsets = [0, 7, 0], sizes = [32, 1, 8], strides = [1, 1, 1]} : vector<32x16x8xf32> to vector<32x1x8xf32>
    %51 = vector.shape_cast %50 : vector<32x1x8xf32> to vector<32x8xf32>
    %52 = vector.extract_strided_slice %35 {offsets = [0, 8, 0], sizes = [32, 1, 8], strides = [1, 1, 1]} : vector<32x16x8xf32> to vector<32x1x8xf32>
    %53 = vector.shape_cast %52 : vector<32x1x8xf32> to vector<32x8xf32>
    %54 = vector.extract_strided_slice %35 {offsets = [0, 9, 0], sizes = [32, 1, 8], strides = [1, 1, 1]} : vector<32x16x8xf32> to vector<32x1x8xf32>
    %55 = vector.shape_cast %54 : vector<32x1x8xf32> to vector<32x8xf32>
    %56 = vector.extract_strided_slice %35 {offsets = [0, 10, 0], sizes = [32, 1, 8], strides = [1, 1, 1]} : vector<32x16x8xf32> to vector<32x1x8xf32>
    %57 = vector.shape_cast %56 : vector<32x1x8xf32> to vector<32x8xf32>
    %58 = vector.extract_strided_slice %35 {offsets = [0, 11, 0], sizes = [32, 1, 8], strides = [1, 1, 1]} : vector<32x16x8xf32> to vector<32x1x8xf32>
    %59 = vector.shape_cast %58 : vector<32x1x8xf32> to vector<32x8xf32>
    %60 = vector.extract_strided_slice %35 {offsets = [0, 12, 0], sizes = [32, 1, 8], strides = [1, 1, 1]} : vector<32x16x8xf32> to vector<32x1x8xf32>
    %61 = vector.shape_cast %60 : vector<32x1x8xf32> to vector<32x8xf32>
    %62 = vector.extract_strided_slice %35 {offsets = [0, 13, 0], sizes = [32, 1, 8], strides = [1, 1, 1]} : vector<32x16x8xf32> to vector<32x1x8xf32>
    %63 = vector.shape_cast %62 : vector<32x1x8xf32> to vector<32x8xf32>
    %64 = vector.extract_strided_slice %35 {offsets = [0, 14, 0], sizes = [32, 1, 8], strides = [1, 1, 1]} : vector<32x16x8xf32> to vector<32x1x8xf32>
    %65 = vector.shape_cast %64 : vector<32x1x8xf32> to vector<32x8xf32>
    %66 = vector.extract_strided_slice %35 {offsets = [0, 15, 0], sizes = [32, 1, 8], strides = [1, 1, 1]} : vector<32x16x8xf32> to vector<32x1x8xf32>
    %67 = vector.shape_cast %66 : vector<32x1x8xf32> to vector<32x8xf32>
    %68 = tpu.concatenate %37, %39, %41, %43, %45, %47, %49, %51, %53, %55, %57, %59, %61, %63, %65, %67 in 1 : vector<32x8xf32>, vector<32x8xf32>, vector<32x8xf32>, vector<32x8xf32>, vector<32x8xf32>, vector<32x8xf32>, vector<32x8xf32>, vector<32x8xf32>, vector<32x8xf32>, vector<32x8xf32>, vector<32x8xf32>, vector<32x8xf32>, vector<32x8xf32>, vector<32x8xf32>, vector<32x8xf32>, vector<32x8xf32> -> vector<32x128xf32>
    %69 = tpu.concatenate %31, %31, %31, %31, %31, %31, %31, %31, %31, %31, %31, %31, %31, %31, %31, %31 in 1 : vector<1x8xf32>, vector<1x8xf32>, vector<1x8xf32>, vector<1x8xf32>, vector<1x8xf32>, vector<1x8xf32>, vector<1x8xf32>, vector<1x8xf32>, vector<1x8xf32>, vector<1x8xf32>, vector<1x8xf32>, vector<1x8xf32>, vector<1x8xf32>, vector<1x8xf32>, vector<1x8xf32>, vector<1x8xf32> -> vector<1x128xf32>
    %70 = tpu.concatenate %34, %34, %34, %34, %34, %34, %34, %34, %34, %34, %34, %34, %34, %34, %34, %34 in 1 : vector<1x8xf32>, vector<1x8xf32>, vector<1x8xf32>, vector<1x8xf32>, vector<1x8xf32>, vector<1x8xf32>, vector<1x8xf32>, vector<1x8xf32>, vector<1x8xf32>, vector<1x8xf32>, vector<1x8xf32>, vector<1x8xf32>, vector<1x8xf32>, vector<1x8xf32>, vector<1x8xf32>, vector<1x8xf32> -> vector<1x128xf32>
    %71 = vector.broadcast %69 : vector<1x128xf32> to vector<32x128xf32>
    %72 = arith.mulf %68, %71 : vector<32x128xf32>
    %73 = vector.broadcast %70 : vector<1x128xf32> to vector<32x128xf32>
    %74 = arith.addf %72, %73 : vector<32x128xf32>
    %c0_15 = arith.constant 0 : index
    %c0_16 = arith.constant 0 : index
    %75 = vector.load %arg4[%c0_15, %c0_16] : memref<32x128xf32, #tpu.memory_space<vmem>>, vector<32x128xf32>
    tpu.vector_store %arg4[%c0_15, %c0_16], %74 {strides = array<i32>} : memref<32x128xf32, #tpu.memory_space<vmem>>, vector<32x128xf32>,
    return
  }
}

</mosaic_0001>

<bundles_post_ra>
// kernel: tpu_custom_call.1
= control target key start
LH: loop header
LB: loop body
LE: loop exit
PB: predicated region body
PF: predicated region fallthrough
CT: control target
= control target key end

     0   :  { %vm330_vm0 = vcmask 1046528   ;;  %s5377_s13 = smov 4   ;;  %s11118_s0 = inlined_call_operand.vmem [shape: f32[2,18,18,4], index: 0, kind: input, shape index: {}]   ;;  %s11119_s1 = inlined_call_operand.vmem [shape: f32[36,8], index: 1, kind: input, shape index: {}]   ;;  %s11120_s2 = inlined_call_operand.vmem [shape: f32[1,8], index: 2, kind: input, shape index: {}]   ;;  %s11121_s3 = inlined_call_operand.vmem [shape: f32[1,8], index: 3, kind: input, shape index: {}]   ;;  %s11122_s4 = inlined_call_operand.hbm [shape: f32[32,128], index: 4, kind: output, shape index: {}]  }
   0x1   :  { %v21_v0 = vld [vmem:[%s11118_s0 + $0x18] sm:$0xff]  ;;  %v22_v1 = vld [vmem:[%s11118_s0 + $0x20] sm:$0xff]  ;;  %v19_v5 = vld [vmem:[%s11118_s0 + $0x8] sm:$0xff] }
   0x2   :  { %v18_v2 = vld [vmem:[%s11118_s0] sm:$0xff]  ;;  %v5432_v3 = vmax.f32 %v21_v0, 0.0  ;;  %v5434_v4 = vmax.f32 %v22_v1, 0.0  ;;  %v5444_v7 = vld [vmem:[%s11118_s0 + $0x28] sm:$0x3]  ;;  %v5446_v8 = vmax.f32 %v19_v5, 0.0 }
   0x3   :  { %v5439_v6 = vmax.f32 %v18_v2, 0.0  ;;  %v11131_v9 = vmax.f32 %v5444_v7, 0.0  ;;  %v5452_v10 = vld [vmem:[%s11118_s0 + $0x10] sm:$0x3]  ;;  %v25_v11 = vld [vmem:[%s11118_s0 + $0x38] sm:$0xff]  ;;  %v27_v27 = vld [vmem:[%s11118_s0 + $0x48] sm:$0xff] }
   0x4   :  { %11500 = vst [vmem:[#allocation5_spill] sm:$0xff] %v5432_v3  ;;  %11501 = vst [vmem:[#allocation6_spill] sm:$0xff] %v5434_v4  ;;  %v24_v12 = vld [vmem:[%s11118_s0 + $0x30] sm:$0xff]  ;;  %v336_v13 = vrot.slane %v5432_v3, 1  ;;  %v337_v14 = vrot.slane %v5434_v4, 1  ;;  %v11132_v16 = vmax.f32 %v5452_v10, 0.0 }
   0x5   :  { %11502 = vst [vmem:[#allocation7_spill] sm:$0xff] %v5439_v6  ;;  %11503 = vst [vmem:[#allocation8_spill] sm:$0xff] %v5446_v8  ;;  %v331_v15 = vrot.slane %v5439_v6, 1  ;;  %v5467_v17 = vld [vmem:[%s11118_s0 + $0x40] sm:$0x3]  ;;  %v332_v18 = vrot.slane %v5446_v8, 1 }
   0x6   :  { %v339_v19 = vrot.slane %v11131_v9, 1  ;;  %v5472_v20 = vmax.f32 %v25_v11, 0.0  ;;  %v11130_v21 = vmax.f32 %v5467_v17, 0.0  ;;  %v28_v22 = vld [vmem:[%s11118_s0 + $0x50] sm:$0xff]  ;;  %v5479_v23 = vsel %vm330_vm0, %v336_v13, %v337_v14  ;;  %v5488_v26 = vld [vmem:[%s11118_s0 + $0x58] sm:$0x3] }
   0x7   :  { %11504 = vst [vmem:[#allocation9_spill] sm:$0xff] %v5479_v23  ;;  %v334_v24 = vrot.slane %v11132_v16, 1  ;;  %v5483_v25 = vmax.f32 %v24_v12, 0.0  ;;  %495 = vrot.lane.b32.xlu1 %v5479_v23, %s5377_s13  ;;  %v333_v28 = vsel %vm330_vm0, %v331_v15, %v332_v18  ;;  %v5496_v29 = vmax.f32 %v28_v22, 0.0  ;;  %v31_v37 = vld [vmem:[%s11118_s0 + $0x68] sm:$0xff]  ;;  %v30_v39 = vld [vmem:[%s11118_s0 + $0x60] sm:$0xff] }
   0x8   :  { %491 = vrot.lane.b32.xlu0 %v333_v28, %s5377_s13  ;;  %v5500_v30 = vsel %vm330_vm0, %v337_v14, %v339_v19  ;;  %v342_v31 = vrot.slane %v5472_v20, 1  ;;  %v344_v32 = vrot.slane %v11130_v21, 1  ;;  %v11129_v33 = vmax.f32 %v5488_v26, 0.0  ;;  %v5516_v38 = vld [vmem:[%s11118_s0 + $0x70] sm:$0x3]  ;;  %v34_v45 = vld [vmem:[%s11118_s0 + $0x80] sm:$0xff] }
   0x9   :  { %11505 = vst [vmem:[#allocation10_spill] sm:$0xff] %v5500_v30  ;;  %v335_v34 = vsel %vm330_vm0, %v332_v18, %v334_v24  ;;  %v341_v35 = vrot.slane %v5483_v25, 1  ;;  %v5508_v36 = vmax.f32 %v27_v27, 0.0  ;;  %v347_v40 = vrot.slane %v5496_v29, 1  ;;  %v5539_v46 = vld [vmem:[%s11118_s0 + $0x88] sm:$0x3] }
   0xa   :  { %v5526_v41 = vsel %vm330_vm0, %v342_v31, %v344_v32  ;;  %v349_v42 = vrot.slane %v11129_v33, 1  ;;  %v5530_v43 = vmax.f32 %v31_v37, 0.0  ;;  %v11127_v44 = vmax.f32 %v5516_v38, 0.0  ;;  %v33_v50 = vld [vmem:[%s11118_s0 + $0x78] sm:$0xff]  ;;  %v5575_v60 = vld [vmem:[%s11118_s0 + $0xa0] sm:$0x3] }
   0xb   :  { %497 = vrot.lane.b32.xlu1 %v5500_v30, %s5377_s13  ;;  %11506 = vst [vmem:[#allocation11_spill] sm:$0xff] %v5526_v41  ;;  %v5542_v47 = vsel %vm330_vm0, %v341_v35, %v342_v31  ;;  %v346_v48 = vrot.slane %v5508_v36, 1  ;;  %v5545_v49 = vmax.f32 %v30_v39, 0.0  ;;  %v5552_v51 = vmax.f32 %v34_v45, 0.0  ;;  %v37_v59 = vld [vmem:[%s11118_s0 + $0x98] sm:$0xff]  ;;  %v36_v61 = vld [vmem:[%s11118_s0 + $0x90] sm:$0xff] }
   0xc   :  { %493 = vrot.lane.b32.xlu0 %v335_v34, %s5377_s13  ;;  %11507 = vst [vmem:[#allocation12_spill] sm:$0xff] %v5542_v47  ;;  %v11126_v52 = vmax.f32 %v5539_v46, 0.0  ;;  %v5558_v53 = vsel %vm330_vm0, %v347_v40, %v349_v42  ;;  %v352_v54 = vrot.slane %v5530_v43, 1  ;;  %v354_v55 = vrot.slane %v11127_v44, 1  ;;  %v40_v13 = vld [vmem:[%s11118_s0 + $0xb0] sm:$0xff]  ;;  %v39_v15 = vld [vmem:[%s11118_s0 + $0xa8] sm:$0xff] }
   0xd   :  { %11508 = vst [vmem:[#allocation13_spill] sm:$0xff] %v5558_v53  ;;  %v5564_v56 = vsel %vm330_vm0, %v346_v48, %v347_v40  ;;  %v351_v57 = vrot.slane %v5545_v49, 1  ;;  %v5567_v58 = vmax.f32 %v33_v50, 0.0  ;;  %v357_v62 = vrot.slane %v5552_v51, 1  ;;  %v5605_v14 = vld [vmem:[%s11118_s0 + $0xb8] sm:$0x3] }
   0xe   :  { %11509 = vst [vmem:[#allocation14_spill] sm:$0xff] %v5564_v56  ;;  %v359_v63 = vrot.slane %v11126_v52, 1  ;;  %v5588_v0 = vsel %vm330_vm0, %v352_v54, %v354_v55  ;;  %v5590_v1 = vmax.f32 %v37_v59, 0.0  ;;  %v11125_v2 = vmax.f32 %v5575_v60, 0.0  ;;  %v43_v19 = vld [vmem:[%s11118_s0 + $0xc8] sm:$0xff]  ;;  %v42_v37 = vld [vmem:[%s11118_s0 + $0xc0] sm:$0xff] }
   0xf   :  { %501 = vrot.lane.b32.xlu1 %v5526_v41, %s5377_s13  ;;  %11510 = vst [vmem:[#allocation15_spill] sm:$0xff] %v5588_v0  ;;  %v5594_v5 = vsel %vm330_vm0, %v351_v57, %v352_v54  ;;  %v356_v11 = vrot.slane %v5567_v58, 1  ;;  %v5597_v12 = vmax.f32 %v36_v61, 0.0  ;;  %v5623_v27 = vmax.f32 %v40_v13, 0.0  ;;  %v5629_v31 = vld [vmem:[%s11118_s0 + $0xd0] sm:$0x3] }
  0x10   :  { %499 = vrot.lane.b32.xlu0 %v5542_v47, %s5377_s13  ;;  %11511 = vst [vmem:[#allocation16_spill] sm:$0xff] %v5594_v5  ;;  %v5613_v18 = vsel %vm330_vm0, %v357_v62, %v359_v63  ;;  %v362_v22 = vrot.slane %v5590_v1, 1  ;;  %v364_v24 = vrot.slane %v11125_v2, 1  ;;  %v11124_v28 = vmax.f32 %v5605_v14, 0.0  ;;  %v46_v57 = vld [vmem:[%s11118_s0 + $0xe0] sm:$0xff]  ;;  %v45_v61 = vld [vmem:[%s11118_s0 + $0xd8] sm:$0xff] }
  0x11   :  { %11512 = vst [vmem:[#allocation17_spill] sm:$0xff] %v5613_v18  ;;  %v5632_v32 = vsel %vm330_vm0, %v356_v11, %v357_v62  ;;  %v361_v34 = vrot.slane %v5597_v12, 1  ;;  %v5635_v35 = vmax.f32 %v39_v15, 0.0  ;;  %v5642_v39 = vmax.f32 %v43_v19, 0.0  ;;  %v5665_v59 = vld [vmem:[%s11118_s0 + $0xe8] sm:$0x3] }
  0x12   :  { %11513 = vst [vmem:[#allocation18_spill] sm:$0xff] %v5632_v32  ;;  %v11123_v40 = vmax.f32 %v5629_v31, 0.0  ;;  %v5648_v42 = vsel %vm330_vm0, %v362_v22, %v364_v24  ;;  %v367_v45 = vrot.slane %v5623_v27, 1  ;;  %v369_v48 = vrot.slane %v11124_v28, 1  ;;  %v55_v16 = vld [vmem:[%s11118_s0 + $0x128] sm:$0xff] }
  0x13   :  { %505 = vrot.lane.b32.xlu1 %v5558_v53, %s5377_s13  ;;  %11514 = vst [vmem:[#allocation19_spill] sm:$0xff] %v5648_v42  ;;  %v5654_v50 = vsel %vm330_vm0, %v361_v34, %v362_v22  ;;  %v366_v54 = vrot.slane %v5635_v35, 1  ;;  %v5657_v55 = vmax.f32 %v42_v37, 0.0  ;;  %v372_v62 = vrot.slane %v5642_v39, 1  ;;  %v49_v34 = vld [vmem:[%s11118_s0 + $0xf8] sm:$0xff] }
  0x14   :  { %503 = vrot.lane.b32.xlu0 %v5564_v56, %s5377_s13  ;;  %11515 = vst [vmem:[#allocation20_spill] sm:$0xff] %v5654_v50  ;;  %v374_v63 = vrot.slane %v11123_v40, 1  ;;  %v5678_v11 = vsel %vm330_vm0, %v367_v45, %v369_v48  ;;  %v5680_v13 = vmax.f32 %v46_v57, 0.0  ;;  %v11128_v15 = vmax.f32 %v5665_v59, 0.0  ;;  %v5695_v37 = vld [vmem:[%s11118_s0 + $0x100] sm:$0x3] }
  0x15   :  { %11516 = vst [vmem:[#allocation21_spill] sm:$0xff] %v5657_v55  ;;  %11517 = vst [vmem:[#allocation22_spill] sm:$0xff] %v5678_v11  ;;  %v5684_v19 = vsel %vm330_vm0, %v366_v54, %v367_v45  ;;  %v371_v22 = vrot.slane %v5657_v55, 1  ;;  %v5687_v24 = vmax.f32 %v45_v61, 0.0  ;;  %v48_v48 = vld [vmem:[%s11118_s0 + $0xf0] sm:$0xff]  ;;  %v5713_v40 = vmax.f32 %v49_v34, 0.0 }
  0x16   :  { %11518 = vst [vmem:[#allocation23_spill] sm:$0xff] %v5680_v13  ;;  %11519 = vst [vmem:[#allocation24_spill] sm:$0xff] %v5684_v19  ;;  %v5703_v45 = vsel %vm330_vm0, %v372_v62, %v374_v63  ;;  %v52_v54 = vld [vmem:[%s11118_s0 + $0x110] sm:$0xff]  ;;  %v377_v57 = vrot.slane %v5680_v13, 1  ;;  %v379_v61 = vrot.slane %v11128_v15, 1  ;;  %v11133_v28 = vmax.f32 %v5695_v37, 0.0 }
  0x17   :  { %509 = vrot.lane.b32.xlu1 %v5588_v0, %s5377_s13  ;;  %11520 = vst [vmem:[#allocation25_spill] sm:$0xff] %v5687_v24  ;;  %11521 = vst [vmem:[#allocation26_spill] sm:$0xff] %v5703_v45  ;;  %v5719_v63 = vld [vmem:[%s11118_s0 + $0x118] sm:$0x3]  ;;  %v5722_v2 = vsel %vm330_vm0, %v371_v22, %v372_v62  ;;  %v376_v52 = vrot.slane %v5687_v24, 1  ;;  %v5725_v44 = vmax.f32 %v48_v48, 0.0 }
  0x18   :  { %507 = vrot.lane.b32.xlu0 %v5594_v5, %s5377_s13  ;;  %11522 = vst [vmem:[#allocation27_spill] sm:$0xff] %v5713_v40  ;;  %11523 = vst [vmem:[#allocation28_spill] sm:$0xff] %v5722_v2  ;;  %v51_v15 = vld [vmem:[%s11118_s0 + $0x108] sm:$0xff]  ;;  %v5732_v34 = vmax.f32 %v52_v54, 0.0  ;;  %v11144_v33 = vmax.f32 %v5719_v63, 0.0  ;;  %v5738_v62 = vsel %vm330_vm0, %v377_v57, %v379_v61  ;;  %v382_v22 = vrot.slane %v5713_v40, 1 }
  0x19   :  { %11524 = vst [vmem:[#allocation29_spill] sm:$0xff] %v5725_v44  ;;  %11526 = vst [vmem:[#allocation31_spill] sm:$0xff] %v5738_v62  ;;  %v384_v48 = vrot.slane %v11133_v28, 1  ;;  %v5744_v21 = vsel %vm330_vm0, %v376_v52, %v377_v57  ;;  %v381_v9 = vrot.slane %v5725_v44, 1  ;;  %v5747_v54 = vmax.f32 %v51_v15, 0.0  ;;  %v54_v28 = vld [vmem:[%s11118_s0 + $0x120] sm:$0xff] }
  0x1a   :  { %11525 = vst [vmem:[#allocation30_spill] sm:$0xff] %v5732_v34  ;;  %11527 = vst [vmem:[#allocation32_spill] sm:$0xff] %v5744_v21  ;;  %v5755_v61 = vld [vmem:[%s11118_s0 + $0x130] sm:$0x3]  ;;  %v387_v52 = vrot.slane %v5732_v34, 1  ;;  %v389_v15 = vrot.slane %v11144_v33, 1 }
  0x1b   :  { %513 = vrot.lane.b32.xlu1 %v5613_v18, %s5377_s13  ;;  %11528 = vst [vmem:[#allocation33_spill] sm:$0xff] %v5747_v54  ;;  %v5768_v57 = vsel %vm330_vm0, %v382_v22, %v384_v48 }
  0x1c   :  { %511 = vrot.lane.b32.xlu0 %v5632_v32, %s5377_s13  ;;  %11529 = vst [vmem:[#allocation34_spill] sm:$0xff] %v5768_v57 }
  0x1f   :  { %517 = vrot.lane.b32.xlu1 %v5648_v42, %s5377_s13 }
  0x20   :  { %515 = vrot.lane.b32.xlu0 %v5654_v50, %s5377_s13 }
  0x23   :  { %521 = vrot.lane.b32.xlu1 %v5678_v11, %s5377_s13 }
  0x24   :  { %519 = vrot.lane.b32.xlu0 %v5684_v19, %s5377_s13 }
  0x27   :  { %525 = vrot.lane.b32.xlu1 %v5703_v45, %s5377_s13  ;;  %v11157_v45 = vmax.f32 %v5755_v61, 0.0 }
  0x28   :  { %523 = vrot.lane.b32.xlu0 %v5722_v2, %s5377_s13  ;;  %v5770_v2 = vmax.f32 %v55_v16, 0.0 }
  0x2a   :  { %11530 = vst [vmem:[#allocation35_spill] sm:$0xff] %v5770_v2 }
  0x2b   :  { %529 = vrot.lane.b32.xlu1 %v5738_v62, %s5377_s13 }
  0x2c   :  { %527 = vrot.lane.b32.xlu0 %v5744_v21, %s5377_s13 }
  0x2d   :  { %9 = vsyncpa [#allocation3], 0  ;;  %v5774_v19 = vsel %vm330_vm0, %v381_v9, %v382_v22  ;;  %v386_v62 = vrot.slane %v5747_v54, 1  ;;  %v5777_v11 = vmax.f32 %v54_v28, 0.0  ;;  %v58_v33 = vld [vmem:[%s11118_s0 + $0x140] sm:$0xff]  ;;  %v57_v16 = vld [vmem:[%s11118_s0 + $0x138] sm:$0xff]  ;;  %v5793_v9 = vsel %vm330_vm0, %v387_v52, %v389_v15 }
  0x2e   :  { %11531 = vst [vmem:[#allocation36_spill] sm:$0xff] %v5774_v19  ;;  %v5785_v48 = vld [vmem:[%s11118_s0 + $0x148] sm:$0x3]  ;;  %11533 = vst [vmem:[#allocation38_spill] sm:$0xff] %v5793_v9  ;;  %v61_v28 = vld [vmem:[%s11118_s0 + $0x158] sm:$0xff]  ;;  %v392_v22 = vrot.slane %v5770_v2, 1 }
  0x2f   :  { %11532 = vst [vmem:[#allocation37_spill] sm:$0xff] %v5777_v11  ;;  %533 = vrot.lane.b32.xlu1 %v5768_v57, %s5377_s13  ;;  %v394_v21 = vrot.slane %v11157_v45, 1  ;;  %v5803_v50 = vmax.f32 %v58_v33, 0.0  ;;  %v5809_v15 = vld [vmem:[%s11118_s0 + $0x160] sm:$0x3]  ;;  %v5812_v57 = vsel %vm330_vm0, %v386_v62, %v387_v52  ;;  %v391_v32 = vrot.slane %v5777_v11, 1 }
  0x30   :  { %531 = vrot.lane.b32.xlu0 %v5774_v19, %s5377_s13  ;;  %11535 = vst [vmem:[#allocation40_spill] sm:$0xff] %v5812_v57  ;;  %v5815_v19 = vmax.f32 %v57_v16, 0.0  ;;  %v60_v45 = vld [vmem:[%s11118_s0 + $0x150] sm:$0xff]  ;;  %v5822_v33 = vmax.f32 %v61_v28, 0.0  ;;  %v11539_v16 = vmax.f32 %v5785_v48, 0.0  ;;  %v79_v23 = vld [vmem:[%s11118_s0 + $0x1e8] sm:$0xff] }
  0x31   :  { %11534 = vst [vmem:[#allocation39_spill] sm:$0xff] %v5803_v50  ;;  %v5828_v62 = vsel %vm330_vm0, %v392_v22, %v394_v21  ;;  %v397_v52 = vrot.slane %v5803_v50, 1  ;;  %v5834_v5 = vsel %vm330_vm0, %v391_v32, %v392_v22  ;;  %v5837_v28 = vmax.f32 %v60_v45, 0.0  ;;  %v64_v42 = vld [vmem:[%s11118_s0 + $0x170] sm:$0xff]  ;;  %v5845_v21 = vld [vmem:[%s11118_s0 + $0x178] sm:$0x3] }
  0x32   :  { %11536 = vst [vmem:[#allocation41_spill] sm:$0xff] %v5815_v19  ;;  %11537 = vst [vmem:[#allocation42_spill] sm:$0xff] %v5822_v33  ;;  %v399_v18 = vrot.slane %v11539_v16, 1  ;;  %v63_v16 = vld [vmem:[%s11118_s0 + $0x168] sm:$0xff]  ;;  %v402_v32 = vrot.slane %v5822_v33, 1  ;;  %v11543_v45 = vmax.f32 %v5809_v15, 0.0 }
  0x33   :  { %537 = vrot.lane.b32.xlu1 %v5793_v9, %s5377_s13  ;;  %11538 = vst [vmem:[#allocation43_spill] sm:$0xff] %v5828_v62  ;;  %11540 = vst [vmem:[#allocation44_spill] sm:$0xff] %v5834_v5  ;;  %v396_v9 = vrot.slane %v5815_v19, 1  ;;  %v5860_v0 = vmax.f32 %v64_v42, 0.0  ;;  %v11186_v56 = vmax.f32 %v5845_v21, 0.0  ;;  %v5867_v47 = vmax.f32 %v63_v16, 0.0 }
  0x34   :  { %535 = vrot.lane.b32.xlu0 %v5812_v57, %s5377_s13  ;;  %11541 = vst [vmem:[#allocation45_spill] sm:$0xff] %v5837_v28  ;;  %11542 = vst [vmem:[#allocation46_spill] sm:$0xff] %v5845_v21  ;;  %v404_v22 = vrot.slane %v11543_v45, 1  ;;  %v5858_v57 = vsel %vm330_vm0, %v397_v52, %v399_v18  ;;  %v73_v45 = vld [vmem:[%s11118_s0 + $0x1b8] sm:$0xff]  ;;  %v5875_v18 = vld [vmem:[%s11118_s0 + $0x1c0] sm:$0x3] }
  0x35   :  { %11544 = vst [vmem:[#allocation47_spill] sm:$0xff] %v5858_v57  ;;  %11545 = vst [vmem:[#allocation48_spill] sm:$0xff] %v5860_v0  ;;  %v5864_v53 = vsel %vm330_vm0, %v396_v9, %v397_v52  ;;  %v72_v42 = vld [vmem:[%s11118_s0 + $0x1b0] sm:$0xff]  ;;  %v407_v16 = vrot.slane %v5860_v0, 1  ;;  %v5893_v41 = vmax.f32 %v73_v45, 0.0  ;;  %v406_v30 = vrot.slane %v5867_v47, 1 }
  0x36   :  { %11546 = vst [vmem:[#allocation49_spill] sm:$0xff] %v5864_v53  ;;  %11547 = vst [vmem:[#allocation50_spill] sm:$0xff] %v5867_v47  ;;  %v5883_v9 = vsel %vm330_vm0, %v402_v32, %v404_v22  ;;  %v76_v52 = vld [vmem:[%s11118_s0 + $0x1d0] sm:$0xff]  ;;  %v5899_v22 = vld [vmem:[%s11118_s0 + $0x1d8] sm:$0x3]  ;;  %vm683_vm1 = vcmask 1045504  }
  0x37   :  { %541 = vrot.lane.b32.xlu1 %v5828_v62, %s5377_s13  ;;  %v401_v62 = vrot.slane %v5837_v28, 1  ;;  %11548 = vst [vmem:[#allocation51_spill] sm:$0xff] %v5875_v18  ;;  %11549 = vst [vmem:[#allocation52_spill] sm:$0xff] %v5883_v9  ;;  %v5912_v45 = vmax.f32 %v76_v52, 0.0  ;;  %v5924_v21 = vsel %vm330_vm0, %v406_v30, %v407_v16  ;;  %s5378_s6 = smov 8   ;;  %s5380_s16 = smov 16  }
  0x38   :  { %539 = vrot.lane.b32.xlu0 %v5834_v5, %s5377_s13  ;;  %v409_v5 = vrot.slane %v11186_v56, 1  ;;  %11550 = vst [vmem:[#allocation53_spill] sm:$0xff] %v5893_v41  ;;  %11551 = vst [vmem:[#allocation54_spill] sm:$0xff] %v5899_v22  ;;  %v75_v56 = vld [vmem:[%s11118_s0 + $0x1c8] sm:$0xff]  ;;  %s5381_s21 = smov 20   ;;  %s5382_s22 = smov 24  }
  0x39   :  { %11554 = vst [vmem:[#allocation57_spill] sm:$0xff] %v5912_v45  ;;  %11557 = vst [vmem:[#allocation59_spill] sm:$0xff] %v5924_v21  ;;  %v5927_v52 = vmax.f32 %v75_v56, 0.0  ;;  %v417_v30 = vrot.slane %v5912_v45, 1  ;;  %v11560_v56 = vmax.f32 %v5899_v22, 0.0  ;;  %vm2958_vm2 = vcmask 1043456  }
  0x3a   :  { %s5384_s7 = smov 32   ;;  %vm2240_vm3 = vcmask 31744   ;;  %vm2305_vm4 = vcmask 64512   ;;  %vm2370_vm5 = vcmask 97280   ;;  %vm2435_vm6 = vcmask 130048   ;;  %s5386_s23 = smov 48  }
  0x3b   :  { %545 = vrot.lane.b32.xlu1 %v5858_v57, %s5377_s13  ;;  %v5902_v57 = vsel %vm330_vm0, %v401_v62, %v402_v32  ;;  %v5918_v62 = vsel %vm330_vm0, %v407_v16, %v409_v5  ;;  %v412_v32 = vrot.slane %v5893_v41, 1  ;;  %11558 = vst [vmem:[#allocation60_spill] sm:$0xff] %v5927_v52  ;;  %v5935_v5 = vld [vmem:[%s11118_s0 + $0x1f0] sm:$0x3]  ;;  %v419_v16 = vrot.slane %v11560_v56, 1  ;;  %s5387_s24 = smov 56  }
  0x3c   :  { %543 = vrot.lane.b32.xlu0 %v5864_v53, %s5377_s13  ;;  %11552 = vst [vmem:[#allocation55_spill] sm:$0xff] %v5902_v57  ;;  %v5905_v53 = vmax.f32 %v72_v42, 0.0  ;;  %11555 = vst [vmem:[#allocation58_spill] sm:$0xff] %v5918_v62  ;;  %v11556_v42 = vmax.f32 %v5875_v18, 0.0  ;;  %v11210_v18 = vmax.f32 %v5935_v5, 0.0  ;;  %v416_v0 = vrot.slane %v5927_v52, 1 }
  0x3d   :  { %11559 = vst [vmem:[#allocation61_spill] sm:$0xff] %v5935_v5  ;;  %v5961_v56 = vld [vmem:[%s11118_s0 + $0x208] sm:$0x3]  ;;  %v88_v52 = vld [vmem:[%s11118_s0 + $0x230] sm:$0xff]  ;;  %vm2500_vm7 = vcmask 162816   ;;  %vm2565_vm8 = vcmask 195584  }
  0x3e   :  { %11553 = vst [vmem:[#allocation56_spill] sm:$0xff] %v5905_v53  ;;  %v414_v47 = vrot.slane %v11556_v42, 1  ;;  %v78_v42 = vld [vmem:[%s11118_s0 + $0x1e0] sm:$0xff]  ;;  %11563 = vst [vmem:[#allocation64_spill] sm:$0xff] %v5961_v56  ;;  %vm2630_vm9 = vcmask 228352   ;;  %vm2695_vm10 = vcmask 261120  }
  0x3f   :  { %549 = vrot.lane.b32.xlu1 %v5883_v9, %s5377_s13  ;;  %v411_v9 = vrot.slane %v5905_v53, 1  ;;  %v5948_v53 = vmax.f32 %v79_v23, 0.0  ;;  %v5953_v28 = vmax.f32 %v78_v42, 0.0  ;;  %v81_v23 = vld [vmem:[%s11118_s0 + $0x1f8] sm:$0xff]  ;;  %v424_v42 = vrot.slane %v11210_v18, 1  ;;  %v84_v18 = vld [vmem:[%s11118_s0 + $0x210] sm:$0xff] }
  0x40   :  { %547 = vrot.lane.b32.xlu0 %v5902_v57, %s5377_s13  ;;  %v415_v57 = vsel %vm330_vm0, %v412_v32, %v414_v47  ;;  %v5968_v47 = vsel %vm330_vm0, %v417_v30, %v419_v16  ;;  %v5986_v16 = vsel %vm330_vm0, %v416_v0, %v417_v30  ;;  %vm2765_vm11 = vcmask 293888   ;;  %s5388_s25 = smov 64   ;;  %s5389_s26 = smov 72  }
  0x41   :  { %11561 = vst [vmem:[#allocation62_spill] sm:$0xff] %v5948_v53  ;;  %v413_v41 = vsel %vm330_vm0, %v411_v9, %v412_v32  ;;  %11562 = vst [vmem:[#allocation63_spill] sm:$0xff] %v5953_v28  ;;  %v85_v9 = vld [vmem:[%s11118_s0 + $0x218] sm:$0xff]  ;;  %v422_v32 = vrot.slane %v5948_v53, 1  ;;  %v421_v22 = vrot.slane %v5953_v28, 1  ;;  %vm3721_vm12 = vcmask 1041409  }
  0x42   :  { %11564 = vst [vmem:[#allocation65_spill] sm:$0xff] %v5968_v47  ;;  %11567 = vst [vmem:[#allocation68_spill] sm:$0xff] %v5986_v16  ;;  %vm3724_vm13 = vcmask 1042434   ;;  %vm3727_vm14 = vcmask 1043459   ;;  %vm3730_vm15 = vcmask 1044484   ;;  %s5390_s27 = smov 80  }
  0x43   :  { %553 = vrot.lane.b32.xlu1 %v5918_v62, %s5377_s13  ;;  %v82_v62 = vld [vmem:[%s11118_s0 + $0x200] sm:$0xff]  ;;  %v6002_v0 = vsel %vm330_vm0, %v422_v32, %v424_v42  ;;  %v6008_v5 = vsel %vm330_vm0, %v421_v22, %v422_v32  ;;  %v6019_v42 = vld [vmem:[%s11118_s0 + $0x238] sm:$0x3]  ;;  %s5391_s28 = smov 88   ;;  %s5392_s29 = smov 96  }
  0x44   :  { %551 = vrot.lane.b32.xlu0 %v5924_v21, %s5377_s13  ;;  %v5977_v21 = vmax.f32 %v82_v62, 0.0  ;;  %v5996_v62 = vmax.f32 %v85_v9, 0.0  ;;  %11570 = vst [vmem:[#allocation71_spill] sm:$0xff] %v6002_v0  ;;  %11572 = vst [vmem:[#allocation72_spill] sm:$0xff] %v6008_v5  ;;  %v6011_v9 = vmax.f32 %v84_v18, 0.0  ;;  %s5393_s30 = smov 104  }
  0x45   :  { %11574 = vst [vmem:[#allocation74_spill] sm:$0xff] %v6019_v42  ;;  %s5395_s9 = smov 120  }
  0x46   :  { %11565 = vst [vmem:[#allocation66_spill] sm:$0xff] %v5977_v21  ;;  %11569 = vst [vmem:[#allocation70_spill] sm:$0xff] %v5996_v62  ;;  %v427_v30 = vrot.slane %v5977_v21, 1  ;;  %v432_v22 = vrot.slane %v5996_v62, 1 }
  0x47   :  { %557 = vrot.lane.b32.xlu1 %v415_v57, %s5377_s13  ;;  %v5983_v57 = vld [vmem:[%s11118_s0 + $0x220] sm:$0x3]  ;;  %11573 = vst [vmem:[#allocation73_spill] sm:$0xff] %v6011_v9 }
  0x48   :  { %555 = vrot.lane.b32.xlu0 %v413_v41, %s5377_s13  ;;  %11566 = vst [vmem:[#allocation67_spill] sm:$0xff] %v5983_v57  ;;  %v5989_v41 = vmax.f32 %v81_v23, 0.0  ;;  %v11571_v23 = vmax.f32 %v5961_v56, 0.0  ;;  %v11575_v18 = vmax.f32 %v5983_v57, 0.0  ;;  %v11236_v56 = vmax.f32 %v6019_v42, 0.0  ;;  %v97_v57 = vld [vmem:[%s11118_s0 + $0x278] sm:$0xff] }
  0x4a   :  { %11568 = vst [vmem:[#allocation69_spill] sm:$0xff] %v5989_v41  ;;  %v429_v28 = vrot.slane %v11571_v23, 1  ;;  %v87_v23 = vld [vmem:[%s11118_s0 + $0x228] sm:$0xff]  ;;  %v434_v32 = vrot.slane %v11575_v18, 1 }
  0x4b   :  { %561 = vrot.lane.b32.xlu1 %v5968_v47, %s5377_s13  ;;  %v426_v47 = vrot.slane %v5989_v41, 1  ;;  %v6034_v41 = vmax.f32 %v88_v52, 0.0  ;;  %v6041_v53 = vmax.f32 %v87_v23, 0.0  ;;  %v91_v18 = vld [vmem:[%s11118_s0 + $0x248] sm:$0xff]  ;;  %v90_v52 = vld [vmem:[%s11118_s0 + $0x240] sm:$0xff] }
  0x4c   :  { %559 = vrot.lane.b32.xlu0 %v5986_v16, %s5377_s13  ;;  %v6032_v16 = vsel %vm330_vm0, %v427_v30, %v429_v28  ;;  %v6049_v28 = vld [vmem:[%s11118_s0 + $0x250] sm:$0x3] }
  0x4d   :  { %11576 = vst [vmem:[#allocation75_spill] sm:$0xff] %v6032_v16  ;;  %11577 = vst [vmem:[#allocation76_spill] sm:$0xff] %v6034_v41  ;;  %v6038_v21 = vsel %vm330_vm0, %v426_v47, %v427_v30  ;;  %v6057_v47 = vsel %vm330_vm0, %v432_v22, %v434_v32  ;;  %v94_v30 = vld [vmem:[%s11118_s0 + $0x260] sm:$0xff]  ;;  %v437_v23 = vrot.slane %v6034_v41, 1  ;;  %v6073_v32 = vld [vmem:[%s11118_s0 + $0x268] sm:$0x3] }
  0x4e   :  { %11578 = vst [vmem:[#allocation77_spill] sm:$0xff] %v6038_v21  ;;  %11579 = vst [vmem:[#allocation78_spill] sm:$0xff] %v6041_v53  ;;  %v436_v62 = vrot.slane %v6041_v53, 1 }
  0x4f   :  { %565 = vrot.lane.b32.xlu1 %v6002_v0, %s5377_s13  ;;  %v431_v0 = vrot.slane %v6011_v9, 1  ;;  %11580 = vst [vmem:[#allocation79_spill] sm:$0xff] %v6049_v28  ;;  %11581 = vst [vmem:[#allocation80_spill] sm:$0xff] %v6057_v47  ;;  %v6067_v9 = vmax.f32 %v91_v18, 0.0  ;;  %v6086_v18 = vmax.f32 %v94_v30, 0.0 }
  0x50   :  { %563 = vrot.lane.b32.xlu0 %v6008_v5, %s5377_s13  ;;  %v439_v5 = vrot.slane %v11236_v56, 1  ;;  %11583 = vst [vmem:[#allocation82_spill] sm:$0xff] %v6073_v32  ;;  %v93_v56 = vld [vmem:[%s11118_s0 + $0x258] sm:$0xff]  ;;  %v6098_v42 = vsel %vm330_vm0, %v436_v62, %v437_v23 }
  0x51   :  { %11582 = vst [vmem:[#allocation81_spill] sm:$0xff] %v6067_v9  ;;  %11586 = vst [vmem:[#allocation85_spill] sm:$0xff] %v6086_v18  ;;  %v6101_v30 = vmax.f32 %v93_v56, 0.0  ;;  %v447_v62 = vrot.slane %v6086_v18, 1  ;;  %v11592_v56 = vmax.f32 %v6073_v32, 0.0  ;;  %v106_v32 = vld [vmem:[%s11118_s0 + $0x2c0] sm:$0xff] }
  0x52   :  { %11589 = vst [vmem:[#allocation87_spill] sm:$0xff] %v6098_v42 }
  0x53   :  { %569 = vrot.lane.b32.xlu1 %v6032_v16, %s5377_s13  ;;  %v6076_v16 = vsel %vm330_vm0, %v431_v0, %v432_v22  ;;  %v6092_v0 = vsel %vm330_vm0, %v437_v23, %v439_v5  ;;  %v442_v22 = vrot.slane %v6067_v9, 1  ;;  %11590 = vst [vmem:[#allocation88_spill] sm:$0xff] %v6101_v30  ;;  %v6109_v5 = vld [vmem:[%s11118_s0 + $0x280] sm:$0x3]  ;;  %v449_v23 = vrot.slane %v11592_v56, 1  ;;  %v100_v56 = vld [vmem:[%s11118_s0 + $0x290] sm:$0xff] }
  0x54   :  { %567 = vrot.lane.b32.xlu0 %v6038_v21, %s5377_s13  ;;  %11584 = vst [vmem:[#allocation83_spill] sm:$0xff] %v6076_v16  ;;  %v6079_v21 = vmax.f32 %v90_v52, 0.0  ;;  %11587 = vst [vmem:[#allocation86_spill] sm:$0xff] %v6092_v0  ;;  %v11588_v52 = vmax.f32 %v6049_v28, 0.0  ;;  %v11264_v28 = vmax.f32 %v6109_v5, 0.0 }
  0x55   :  { %11591 = vst [vmem:[#allocation89_spill] sm:$0xff] %v6109_v5 }
  0x56   :  { %11585 = vst [vmem:[#allocation84_spill] sm:$0xff] %v6079_v21  ;;  %v444_v53 = vrot.slane %v11588_v52, 1  ;;  %v96_v52 = vld [vmem:[%s11118_s0 + $0x270] sm:$0xff] }
  0x57   :  { %573 = vrot.lane.b32.xlu1 %v6057_v47, %s5377_s13  ;;  %v441_v47 = vrot.slane %v6079_v21, 1  ;;  %v6124_v21 = vmax.f32 %v97_v57, 0.0  ;;  %v6131_v41 = vmax.f32 %v96_v52, 0.0  ;;  %v99_v57 = vld [vmem:[%s11118_s0 + $0x288] sm:$0xff] }
  0x58   :  { %571 = vrot.lane.b32.xlu0 %v6076_v16, %s5377_s13  ;;  %v6122_v16 = vsel %vm330_vm0, %v442_v22, %v444_v53  ;;  %v6139_v53 = vld [vmem:[%s11118_s0 + $0x298] sm:$0x3] }
  0x59   :  { %11593 = vst [vmem:[#allocation90_spill] sm:$0xff] %v6122_v16  ;;  %11594 = vst [vmem:[#allocation91_spill] sm:$0xff] %v6124_v21  ;;  %v6128_v9 = vsel %vm330_vm0, %v441_v47, %v442_v22  ;;  %v6147_v47 = vsel %vm330_vm0, %v447_v62, %v449_v23  ;;  %v103_v22 = vld [vmem:[%s11118_s0 + $0x2a8] sm:$0xff]  ;;  %v452_v52 = vrot.slane %v6124_v21, 1  ;;  %v6163_v23 = vld [vmem:[%s11118_s0 + $0x2b0] sm:$0x3] }
  0x5a   :  { %11595 = vst [vmem:[#allocation92_spill] sm:$0xff] %v6128_v9  ;;  %11596 = vst [vmem:[#allocation93_spill] sm:$0xff] %v6131_v41  ;;  %v451_v18 = vrot.slane %v6131_v41, 1 }
  0x5b   :  { %577 = vrot.lane.b32.xlu1 %v6092_v0, %s5377_s13  ;;  %v446_v0 = vrot.slane %v6101_v30, 1  ;;  %11597 = vst [vmem:[#allocation94_spill] sm:$0xff] %v6139_v53  ;;  %11598 = vst [vmem:[#allocation95_spill] sm:$0xff] %v6147_v47  ;;  %v6157_v30 = vmax.f32 %v100_v56, 0.0  ;;  %v6176_v56 = vmax.f32 %v103_v22, 0.0 }
  0x5c   :  { %575 = vrot.lane.b32.xlu0 %v6098_v42, %s5377_s13  ;;  %v454_v42 = vrot.slane %v11264_v28, 1  ;;  %11600 = vst [vmem:[#allocation97_spill] sm:$0xff] %v6163_v23  ;;  %v102_v28 = vld [vmem:[%s11118_s0 + $0x2a0] sm:$0xff]  ;;  %v6188_v5 = vsel %vm330_vm0, %v451_v18, %v452_v52 }
  0x5d   :  { %11599 = vst [vmem:[#allocation96_spill] sm:$0xff] %v6157_v30  ;;  %11603 = vst [vmem:[#allocation100_spill] sm:$0xff] %v6176_v56  ;;  %v6191_v22 = vmax.f32 %v102_v28, 0.0  ;;  %v462_v18 = vrot.slane %v6176_v56, 1  ;;  %v11609_v28 = vmax.f32 %v6163_v23, 0.0  ;;  %v115_v23 = vld [vmem:[%s11118_s0 + $0x308] sm:$0xff] }
  0x5e   :  { %11606 = vst [vmem:[#allocation102_spill] sm:$0xff] %v6188_v5 }
  0x5f   :  { %581 = vrot.lane.b32.xlu1 %v6122_v16, %s5377_s13  ;;  %v6166_v16 = vsel %vm330_vm0, %v446_v0, %v447_v62  ;;  %v6182_v0 = vsel %vm330_vm0, %v452_v52, %v454_v42  ;;  %v457_v62 = vrot.slane %v6157_v30, 1  ;;  %11607 = vst [vmem:[#allocation103_spill] sm:$0xff] %v6191_v22  ;;  %v6199_v42 = vld [vmem:[%s11118_s0 + $0x2c8] sm:$0x3]  ;;  %v464_v52 = vrot.slane %v11609_v28, 1  ;;  %v109_v28 = vld [vmem:[%s11118_s0 + $0x2d8] sm:$0xff] }
  0x60   :  { %579 = vrot.lane.b32.xlu0 %v6128_v9, %s5377_s13  ;;  %11601 = vst [vmem:[#allocation98_spill] sm:$0xff] %v6166_v16  ;;  %v6169_v9 = vmax.f32 %v99_v57, 0.0  ;;  %11604 = vst [vmem:[#allocation101_spill] sm:$0xff] %v6182_v0  ;;  %v11605_v57 = vmax.f32 %v6139_v53, 0.0  ;;  %v11292_v53 = vmax.f32 %v6199_v42, 0.0 }
  0x61   :  { %11608 = vst [vmem:[#allocation104_spill] sm:$0xff] %v6199_v42 }
  0x62   :  { %11602 = vst [vmem:[#allocation99_spill] sm:$0xff] %v6169_v9  ;;  %v459_v41 = vrot.slane %v11605_v57, 1  ;;  %v105_v57 = vld [vmem:[%s11118_s0 + $0x2b8] sm:$0xff] }
  0x63   :  { %585 = vrot.lane.b32.xlu1 %v6147_v47, %s5377_s13  ;;  %v456_v47 = vrot.slane %v6169_v9, 1  ;;  %v6214_v9 = vmax.f32 %v106_v32, 0.0  ;;  %v6221_v21 = vmax.f32 %v105_v57, 0.0  ;;  %v108_v32 = vld [vmem:[%s11118_s0 + $0x2d0] sm:$0xff] }
  0x64   :  { %583 = vrot.lane.b32.xlu0 %v6166_v16, %s5377_s13  ;;  %v6212_v16 = vsel %vm330_vm0, %v457_v62, %v459_v41  ;;  %v6229_v41 = vld [vmem:[%s11118_s0 + $0x2e0] sm:$0x3] }
  0x65   :  { %11610 = vst [vmem:[#allocation105_spill] sm:$0xff] %v6212_v16  ;;  %11611 = vst [vmem:[#allocation106_spill] sm:$0xff] %v6214_v9  ;;  %v6218_v30 = vsel %vm330_vm0, %v456_v47, %v457_v62  ;;  %v6237_v47 = vsel %vm330_vm0, %v462_v18, %v464_v52  ;;  %v112_v62 = vld [vmem:[%s11118_s0 + $0x2f0] sm:$0xff]  ;;  %v467_v57 = vrot.slane %v6214_v9, 1  ;;  %v6253_v52 = vld [vmem:[%s11118_s0 + $0x2f8] sm:$0x3] }
  0x66   :  { %11612 = vst [vmem:[#allocation107_spill] sm:$0xff] %v6218_v30  ;;  %11613 = vst [vmem:[#allocation108_spill] sm:$0xff] %v6221_v21  ;;  %v466_v56 = vrot.slane %v6221_v21, 1 }
  0x67   :  { %589 = vrot.lane.b32.xlu1 %v6182_v0, %s5377_s13  ;;  %v461_v0 = vrot.slane %v6191_v22, 1  ;;  %11614 = vst [vmem:[#allocation109_spill] sm:$0xff] %v6229_v41  ;;  %11615 = vst [vmem:[#allocation110_spill] sm:$0xff] %v6237_v47  ;;  %v6247_v22 = vmax.f32 %v109_v28, 0.0  ;;  %v6266_v28 = vmax.f32 %v112_v62, 0.0 }
  0x68   :  { %587 = vrot.lane.b32.xlu0 %v6188_v5, %s5377_s13  ;;  %v469_v5 = vrot.slane %v11292_v53, 1  ;;  %11617 = vst [vmem:[#allocation112_spill] sm:$0xff] %v6253_v52  ;;  %v111_v53 = vld [vmem:[%s11118_s0 + $0x2e8] sm:$0xff]  ;;  %v6278_v42 = vsel %vm330_vm0, %v466_v56, %v467_v57 }
  0x69   :  { %11616 = vst [vmem:[#allocation111_spill] sm:$0xff] %v6247_v22  ;;  %11620 = vst [vmem:[#allocation115_spill] sm:$0xff] %v6266_v28  ;;  %v6281_v62 = vmax.f32 %v111_v53, 0.0  ;;  %v477_v56 = vrot.slane %v6266_v28, 1  ;;  %v11625_v53 = vmax.f32 %v6253_v52, 0.0 }
  0x6a   :  { %11623 = vst [vmem:[#allocation117_spill] sm:$0xff] %v6278_v42 }
  0x6b   :  { %593 = vrot.lane.b32.xlu1 %v6212_v16, %s5377_s13  ;;  %v6256_v16 = vsel %vm330_vm0, %v461_v0, %v462_v18  ;;  %v6272_v0 = vsel %vm330_vm0, %v467_v57, %v469_v5  ;;  %v472_v18 = vrot.slane %v6247_v22, 1  ;;  %11624 = vst [vmem:[#allocation118_spill] sm:$0xff] %v6281_v62  ;;  %v6289_v5 = vld [vmem:[%s11118_s0 + $0x310] sm:$0x3]  ;;  %v479_v57 = vrot.slane %v11625_v53, 1  ;;  %v118_v53 = vld [vmem:[%s11118_s0 + $0x320] sm:$0xff] }
  0x6c   :  { %591 = vrot.lane.b32.xlu0 %v6218_v30, %s5377_s13  ;;  %11618 = vst [vmem:[#allocation113_spill] sm:$0xff] %v6256_v16  ;;  %v6259_v30 = vmax.f32 %v108_v32, 0.0  ;;  %11621 = vst [vmem:[#allocation116_spill] sm:$0xff] %v6272_v0  ;;  %v11622_v32 = vmax.f32 %v6229_v41, 0.0  ;;  %v11320_v41 = vmax.f32 %v6289_v5, 0.0 }
  0x6e   :  { %11619 = vst [vmem:[#allocation114_spill] sm:$0xff] %v6259_v30  ;;  %v474_v21 = vrot.slane %v11622_v32, 1  ;;  %v114_v32 = vld [vmem:[%s11118_s0 + $0x300] sm:$0xff] }
  0x6f   :  { %597 = vrot.lane.b32.xlu1 %v6237_v47, %s5377_s13  ;;  %v471_v47 = vrot.slane %v6259_v30, 1  ;;  %v6304_v30 = vmax.f32 %v115_v23, 0.0  ;;  %v6311_v9 = vmax.f32 %v114_v32, 0.0  ;;  %v117_v23 = vld [vmem:[%s11118_s0 + $0x318] sm:$0xff]  ;;  %v484_v32 = vrot.slane %v11320_v41, 1 }
  0x70   :  { %595 = vrot.lane.b32.xlu0 %v6256_v16, %s5377_s13  ;;  %v6302_v16 = vsel %vm330_vm0, %v472_v18, %v474_v21  ;;  %v6319_v21 = vld [vmem:[%s11118_s0 + $0x328] sm:$0x3] }
  0x71   :  { %11626 = vst [vmem:[#allocation119_spill] sm:$0xff] %v6302_v16  ;;  %11627 = vst [vmem:[#allocation120_spill] sm:$0xff] %v6304_v30  ;;  %v6308_v22 = vsel %vm330_vm0, %v471_v47, %v472_v18  ;;  %v6327_v47 = vsel %vm330_vm0, %v477_v56, %v479_v57  ;;  %v482_v18 = vrot.slane %v6304_v30, 1  ;;  %v481_v57 = vrot.slane %v6311_v9, 1 }
  0x72   :  { %11628 = vst [vmem:[#allocation121_spill] sm:$0xff] %v6308_v22  ;;  %11629 = vst [vmem:[#allocation122_spill] sm:$0xff] %v6311_v9 }
  0x73   :  { %601 = vrot.lane.b32.xlu1 %v6272_v0, %s5377_s13  ;;  %v476_v0 = vrot.slane %v6281_v62, 1  ;;  %11630 = vst [vmem:[#allocation123_spill] sm:$0xff] %v6327_v47  ;;  %v11321_v62 = vmax.f32 %v6319_v21, 0.0 }
  0x74   :  { %599 = vrot.lane.b32.xlu0 %v6278_v42, %s5377_s13  ;;  %v6334_v42 = vmax.f32 %v118_v53, 0.0  ;;  %v6352_v53 = vsel %vm330_vm0, %v482_v18, %v484_v32 }
  0x75   :  { %v6340_v28 = vsel %vm330_vm0, %v476_v0, %v477_v56  ;;  %11636 = vst [vmem:[#allocation129_spill] sm:$0xff] %v6352_v53  ;;  %v489_v0 = vrot.slane %v11321_v62, 1  ;;  %v685_v62 = vrot.slane %v5446_v8, 2  ;;  %v695_v8 = vrot.slane %v5472_v20, 2 }
  0x76   :  { %11631 = vst [vmem:[#allocation124_spill] sm:$0xff] %v6334_v42  ;;  %11633 = vst [vmem:[#allocation126_spill] sm:$0xff] %v6340_v28  ;;  %v487_v41 = vrot.slane %v6334_v42, 1 }
  0x77   :  { %605 = vrot.lane.b32.xlu1 %v6302_v16, %s5377_s13  ;;  %v6343_v16 = vmax.f32 %v117_v23, 0.0  ;;  %v6360_v23 = vsel %vm330_vm0, %v481_v57, %v482_v18 }
  0x78   :  { %603 = vrot.lane.b32.xlu0 %v6308_v22, %s5377_s13  ;;  %11638 = vst [vmem:[#allocation131_spill] sm:$0xff] %v6360_v23  ;;  %v6370_v32 = vsel %vm330_vm0, %v487_v41, %v489_v0 }
  0x79   :  { %v6337_v52 = vpop.permute.xlu1 %495  ;;  %11634 = vst [vmem:[#allocation127_spill] sm:$0xff] %v6343_v16  ;;  %11640 = vst [vmem:[#allocation133_spill] sm:$0xff] %v6370_v32 }
  0x7a   :  { %11632 = vst [vmem:[#allocation125_spill] sm:$0xff] %v6337_v52  ;;  %v6345_v45 = vpop.permute.xlu0 %491  ;;  %v486_v52 = vrot.slane %v6343_v16, 1 }
  0x7b   :  { %11635 = vst [vmem:[#allocation128_spill] sm:$0xff] %v6345_v45  ;;  %609 = vrot.lane.b32.xlu1 %v6327_v47, %s5377_s13 }
  0x7c   :  { %607 = vrot.lane.b32.xlu0 %v6340_v28, %s5377_s13  ;;  %v6378_v57 = vsel %vm330_vm0, %v486_v52, %v487_v41 }
  0x7d   :  { %v6357_v56 = vpop.permute.xlu1 %497  ;;  %11643 = vst [vmem:[#allocation135_spill] sm:$0xff] %v6378_v57 }
  0x7e   :  { %11637 = vst [vmem:[#allocation130_spill] sm:$0xff] %v6357_v56  ;;  %v6363_v45 = vpop.permute.xlu0 %493  ;;  %v11641_v56 = vmax.f32 %v5452_v10, 0.0  ;;  %v690_v10 = vrot.slane %v5434_v4, 2 }
  0x7f   :  { %11639 = vst [vmem:[#allocation132_spill] sm:$0xff] %v6363_v45  ;;  %613 = vrot.lane.b32.xlu1 %v6352_v53, %s5377_s13  ;;  %v684_v45 = vrot.slane %v5439_v6, 2  ;;  %v689_v6 = vrot.slane %v5432_v3, 2 }
  0x80   :  { %611 = vrot.lane.b32.xlu0 %v6360_v23, %s5377_s13  ;;  %v687_v28 = vrot.slane %v11641_v56, 2  ;;  %v11645_v56 = vmax.f32 %v5444_v7, 0.0  ;;  %v11649_v7 = vmax.f32 %v5467_v17, 0.0  ;;  %v700_v17 = vrot.slane %v5496_v29, 2 }
  0x81   :  { %v6375_v18 = vpop.permute.xlu1 %501  ;;  %v686_v52 = vsel %vm683_vm1, %v684_v45, %v685_v62  ;;  %v6408_v45 = vsel %vm683_vm1, %v689_v6, %v690_v10 }
  0x82   :  { %11642 = vst [vmem:[#allocation134_spill] sm:$0xff] %v6375_v18  ;;  %v6381_v53 = vpop.permute.xlu0 %499  ;;  %v688_v0 = vsel %vm683_vm1, %v685_v62, %v687_v28  ;;  %v692_v18 = vrot.slane %v11645_v56, 2  ;;  %v697_v56 = vrot.slane %v11649_v7, 2  ;;  %11651 = vst [vmem:[#allocation141_spill] sm:$0xff] %v6408_v45  ;;  %v694_v62 = vrot.slane %v5483_v25, 2 }
  0x83   :  { %11644 = vst [vmem:[#allocation136_spill] sm:$0xff] %v6381_v53  ;;  %617 = vrot.lane.b32.xlu1 %v6370_v32, %s5377_s13  ;;  %v699_v7 = vrot.slane %v5508_v36, 2 }
  0x84   :  { %615 = vrot.lane.b32.xlu0 %v6378_v57, %s5377_s13  ;;  %v6400_v28 = vsel %vm683_vm1, %v690_v10, %v692_v18  ;;  %v6418_v18 = vsel %vm683_vm1, %v695_v8, %v697_v56  ;;  %v6426_v10 = vsel %vm683_vm1, %v694_v62, %v695_v8  ;;  %s5379_s13 = smov 12  }
  0x85   :  { %v6391_v41 = vpop.permute.xlu1 %505  ;;  %11648 = vst [vmem:[#allocation139_spill] sm:$0xff] %v6400_v28  ;;  %11653 = vst [vmem:[#allocation143_spill] sm:$0xff] %v6418_v18  ;;  %v6444_v62 = vsel %vm683_vm1, %v699_v7, %v700_v17 }
  0x86   :  { %11646 = vst [vmem:[#allocation137_spill] sm:$0xff] %v6391_v41  ;;  %v6395_v53 = vpop.permute.xlu0 %503  ;;  %11656 = vst [vmem:[#allocation145_spill] sm:$0xff] %v6426_v10 }
  0x87   :  { %11647 = vst [vmem:[#allocation138_spill] sm:$0xff] %v6395_v53  ;;  %846 = vrot.lane.b32.xlu1 %v688_v0, %s5378_s6  ;;  %v11654_v0 = vmax.f32 %v5488_v26, 0.0  ;;  %v705_v26 = vrot.slane %v5530_v43, 2  ;;  %11661 = vst [vmem:[#allocation149_spill] sm:$0xff] %v6444_v62 }
  0x88   :  { %844 = vrot.lane.b32.xlu0 %v686_v52, %s5378_s6 }
  0x89   :  { %v6405_v41 = vpop.permute.xlu1 %509  ;;  %v702_v52 = vrot.slane %v11654_v0, 2  ;;  %v11659_v0 = vmax.f32 %v5516_v38, 0.0  ;;  %v710_v38 = vrot.slane %v5552_v51, 2 }
  0x8a   :  { %11650 = vst [vmem:[#allocation140_spill] sm:$0xff] %v6405_v41  ;;  %v6411_v53 = vpop.permute.xlu0 %507 }
  0x8b   :  { %11652 = vst [vmem:[#allocation142_spill] sm:$0xff] %v6411_v53  ;;  %850 = vrot.lane.b32.xlu1 %v6400_v28, %s5378_s6  ;;  %v6436_v56 = vsel %vm683_vm1, %v700_v17, %v702_v52 }
  0x8c   :  { %848 = vrot.lane.b32.xlu0 %v6408_v45, %s5378_s6  ;;  %11658 = vst [vmem:[#allocation147_spill] sm:$0xff] %v6436_v56 }
  0x8d   :  { %v6423_v6 = vpop.permute.xlu1 %513 }
  0x8e   :  { %11655 = vst [vmem:[#allocation144_spill] sm:$0xff] %v6423_v6  ;;  %v6429_v53 = vpop.permute.xlu0 %511  ;;  %v707_v6 = vrot.slane %v11659_v0, 2  ;;  %v11664_v0 = vmax.f32 %v5539_v46, 0.0  ;;  %v715_v46 = vrot.slane %v5590_v1, 2 }
  0x8f   :  { %11657 = vst [vmem:[#allocation146_spill] sm:$0xff] %v6429_v53  ;;  %854 = vrot.lane.b32.xlu1 %v6418_v18, %s5378_s6  ;;  %v704_v53 = vrot.slane %v5545_v49, 2 }
  0x90   :  { %852 = vrot.lane.b32.xlu0 %v6426_v10, %s5378_s6  ;;  %v6454_v52 = vsel %vm683_vm1, %v705_v26, %v707_v6 }
  0x91   :  { %v6441_v8 = vpop.permute.xlu1 %517  ;;  %11663 = vst [vmem:[#allocation151_spill] sm:$0xff] %v6454_v52  ;;  %v6462_v7 = vsel %vm683_vm1, %v704_v53, %v705_v26 }
  0x92   :  { %11660 = vst [vmem:[#allocation148_spill] sm:$0xff] %v6441_v8  ;;  %v6447_v41 = vpop.permute.xlu0 %515  ;;  %v712_v8 = vrot.slane %v11664_v0, 2  ;;  %11666 = vst [vmem:[#allocation153_spill] sm:$0xff] %v6462_v7  ;;  %v11669_v0 = vmax.f32 %v5575_v60, 0.0  ;;  %v720_v60 = vrot.slane %v5623_v27, 2 }
  0x93   :  { %11662 = vst [vmem:[#allocation150_spill] sm:$0xff] %v6447_v41  ;;  %858 = vrot.lane.b32.xlu1 %v6436_v56, %s5378_s6  ;;  %v709_v41 = vrot.slane %v5567_v58, 2 }
  0x94   :  { %856 = vrot.lane.b32.xlu0 %v6444_v62, %s5378_s6  ;;  %v6472_v6 = vsel %vm683_vm1, %v710_v38, %v712_v8 }
  0x95   :  { %v6459_v17 = vpop.permute.xlu1 %521  ;;  %11668 = vst [vmem:[#allocation155_spill] sm:$0xff] %v6472_v6  ;;  %v6480_v26 = vsel %vm683_vm1, %v709_v41, %v710_v38 }
  0x96   :  { %11665 = vst [vmem:[#allocation152_spill] sm:$0xff] %v6459_v17  ;;  %v6465_v10 = vpop.permute.xlu0 %519  ;;  %v717_v17 = vrot.slane %v11669_v0, 2  ;;  %11671 = vst [vmem:[#allocation157_spill] sm:$0xff] %v6480_v26  ;;  %v11674_v0 = vmax.f32 %v5605_v14, 0.0  ;;  %v725_v14 = vrot.slane %v5642_v39, 2 }
  0x97   :  { %11667 = vst [vmem:[#allocation154_spill] sm:$0xff] %v6465_v10  ;;  %862 = vrot.lane.b32.xlu1 %v6454_v52, %s5378_s6  ;;  %v714_v10 = vrot.slane %v5597_v12, 2 }
  0x98   :  { %860 = vrot.lane.b32.xlu0 %v6462_v7, %s5378_s6  ;;  %v6490_v8 = vsel %vm683_vm1, %v715_v46, %v717_v17 }
  0x99   :  { %v6477_v53 = vpop.permute.xlu1 %525  ;;  %11673 = vst [vmem:[#allocation159_spill] sm:$0xff] %v6490_v8  ;;  %v6498_v38 = vsel %vm683_vm1, %v714_v10, %v715_v46 }
  0x9a   :  { %11670 = vst [vmem:[#allocation156_spill] sm:$0xff] %v6477_v53  ;;  %v6483_v62 = vpop.permute.xlu0 %523  ;;  %v722_v53 = vrot.slane %v11674_v0, 2  ;;  %11676 = vst [vmem:[#allocation161_spill] sm:$0xff] %v6498_v38  ;;  %v11679_v0 = vmax.f32 %v5629_v31, 0.0  ;;  %v730_v31 = vrot.slane %v5680_v13, 2 }
  0x9b   :  { %11672 = vst [vmem:[#allocation158_spill] sm:$0xff] %v6483_v62  ;;  %866 = vrot.lane.b32.xlu1 %v6472_v6, %s5378_s6  ;;  %v719_v62 = vrot.slane %v5635_v35, 2 }
  0x9c   :  { %864 = vrot.lane.b32.xlu0 %v6480_v26, %s5378_s6  ;;  %v6508_v17 = vsel %vm683_vm1, %v720_v60, %v722_v53 }
  0x9d   :  { %v6495_v41 = vpop.permute.xlu1 %529  ;;  %11678 = vst [vmem:[#allocation163_spill] sm:$0xff] %v6508_v17  ;;  %v6516_v46 = vsel %vm683_vm1, %v719_v62, %v720_v60 }
  0x9e   :  { %11675 = vst [vmem:[#allocation160_spill] sm:$0xff] %v6495_v41  ;;  %v6501_v7 = vpop.permute.xlu0 %527  ;;  %v727_v41 = vrot.slane %v11679_v0, 2  ;;  %11681 = vst [vmem:[#allocation165_spill] sm:$0xff] %v6516_v46  ;;  %v11684_v0 = vmax.f32 %v5665_v59, 0.0  ;;  %v735_v59 = vrot.slane %v5713_v40, 2 }
  0x9f   :  { %11677 = vst [vmem:[#allocation162_spill] sm:$0xff] %v6501_v7  ;;  %870 = vrot.lane.b32.xlu1 %v6490_v8, %s5378_s6  ;;  %v724_v7 = vrot.slane %v5657_v55, 2  ;;  %v11738_v8 = vld [vmem:[#allocation61_spill] sm:$0xff] }
  0xa0   :  { %868 = vrot.lane.b32.xlu0 %v6498_v38, %s5378_s6  ;;  %v6526_v53 = vsel %vm683_vm1, %v725_v14, %v727_v41 }
  0xa1   :  { %v6513_v10 = vpop.permute.xlu1 %533  ;;  %11683 = vst [vmem:[#allocation167_spill] sm:$0xff] %v6526_v53  ;;  %v6534_v60 = vsel %vm683_vm1, %v724_v7, %v725_v14 }
  0xa2   :  { %11680 = vst [vmem:[#allocation164_spill] sm:$0xff] %v6513_v10  ;;  %v6519_v26 = vpop.permute.xlu0 %531  ;;  %v732_v10 = vrot.slane %v11684_v0, 2  ;;  %11686 = vst [vmem:[#allocation169_spill] sm:$0xff] %v6534_v60  ;;  %v11689_v0 = vmax.f32 %v5695_v37, 0.0  ;;  %v740_v37 = vrot.slane %v5732_v34, 2 }
  0xa3   :  { %11682 = vst [vmem:[#allocation166_spill] sm:$0xff] %v6519_v26  ;;  %874 = vrot.lane.b32.xlu1 %v6508_v17, %s5378_s6  ;;  %v729_v26 = vrot.slane %v5687_v24, 2 }
  0xa4   :  { %872 = vrot.lane.b32.xlu0 %v6516_v46, %s5378_s6  ;;  %v6544_v41 = vsel %vm683_vm1, %v730_v31, %v732_v10 }
  0xa5   :  { %v6531_v62 = vpop.permute.xlu1 %537  ;;  %11688 = vst [vmem:[#allocation171_spill] sm:$0xff] %v6544_v41  ;;  %v6552_v14 = vsel %vm683_vm1, %v729_v26, %v730_v31 }
  0xa6   :  { %11685 = vst [vmem:[#allocation168_spill] sm:$0xff] %v6531_v62  ;;  %v6537_v38 = vpop.permute.xlu0 %535  ;;  %v737_v62 = vrot.slane %v11689_v0, 2  ;;  %11691 = vst [vmem:[#allocation173_spill] sm:$0xff] %v6552_v14  ;;  %v11694_v0 = vmax.f32 %v5719_v63, 0.0  ;;  %v745_v63 = vrot.slane %v5770_v2, 2 }
  0xa7   :  { %11687 = vst [vmem:[#allocation170_spill] sm:$0xff] %v6537_v38  ;;  %878 = vrot.lane.b32.xlu1 %v6526_v53, %s5378_s6  ;;  %v734_v38 = vrot.slane %v5725_v44, 2 }
  0xa8   :  { %876 = vrot.lane.b32.xlu0 %v6534_v60, %s5378_s6  ;;  %v6562_v10 = vsel %vm683_vm1, %v735_v59, %v737_v62 }
  0xa9   :  { %v6549_v7 = vpop.permute.xlu1 %541  ;;  %11693 = vst [vmem:[#allocation175_spill] sm:$0xff] %v6562_v10  ;;  %v6570_v31 = vsel %vm683_vm1, %v734_v38, %v735_v59 }
  0xaa   :  { %11690 = vst [vmem:[#allocation172_spill] sm:$0xff] %v6549_v7  ;;  %v6555_v46 = vpop.permute.xlu0 %539  ;;  %v742_v7 = vrot.slane %v11694_v0, 2  ;;  %11696 = vst [vmem:[#allocation177_spill] sm:$0xff] %v6570_v31  ;;  %v11699_v0 = vmax.f32 %v5755_v61, 0.0  ;;  %v750_v61 = vrot.slane %v5803_v50, 2 }
  0xab   :  { %11692 = vst [vmem:[#allocation174_spill] sm:$0xff] %v6555_v46  ;;  %882 = vrot.lane.b32.xlu1 %v6544_v41, %s5378_s6  ;;  %v739_v46 = vrot.slane %v5747_v54, 2 }
  0xac   :  { %880 = vrot.lane.b32.xlu0 %v6552_v14, %s5378_s6  ;;  %v6580_v62 = vsel %vm683_vm1, %v740_v37, %v742_v7 }
  0xad   :  { %v6567_v26 = vpop.permute.xlu1 %545  ;;  %11698 = vst [vmem:[#allocation179_spill] sm:$0xff] %v6580_v62  ;;  %v6588_v59 = vsel %vm683_vm1, %v739_v46, %v740_v37 }
  0xae   :  { %11695 = vst [vmem:[#allocation176_spill] sm:$0xff] %v6567_v26  ;;  %v6573_v60 = vpop.permute.xlu0 %543  ;;  %v747_v26 = vrot.slane %v11699_v0, 2  ;;  %11701 = vst [vmem:[#allocation181_spill] sm:$0xff] %v6588_v59  ;;  %v11704_v0 = vmax.f32 %v5785_v48, 0.0  ;;  %v755_v48 = vrot.slane %v5822_v33, 2 }
  0xaf   :  { %11697 = vst [vmem:[#allocation178_spill] sm:$0xff] %v6573_v60  ;;  %886 = vrot.lane.b32.xlu1 %v6562_v10, %s5378_s6  ;;  %v744_v60 = vrot.slane %v5777_v11, 2 }
  0xb0   :  { %884 = vrot.lane.b32.xlu0 %v6570_v31, %s5378_s6  ;;  %v6598_v7 = vsel %vm683_vm1, %v745_v63, %v747_v26 }
  0xb1   :  { %v6585_v38 = vpop.permute.xlu1 %549  ;;  %11703 = vst [vmem:[#allocation183_spill] sm:$0xff] %v6598_v7  ;;  %v6606_v37 = vsel %vm683_vm1, %v744_v60, %v745_v63 }
  0xb2   :  { %11700 = vst [vmem:[#allocation180_spill] sm:$0xff] %v6585_v38  ;;  %v6591_v14 = vpop.permute.xlu0 %547  ;;  %v752_v38 = vrot.slane %v11704_v0, 2  ;;  %11706 = vst [vmem:[#allocation185_spill] sm:$0xff] %v6606_v37  ;;  %v11709_v0 = vmax.f32 %v5809_v15, 0.0  ;;  %v11715_v15 = vld [vmem:[#allocation48_spill] sm:$0xff] }
  0xb3   :  { %11702 = vst [vmem:[#allocation182_spill] sm:$0xff] %v6591_v14  ;;  %890 = vrot.lane.b32.xlu1 %v6580_v62, %s5378_s6  ;;  %v749_v14 = vrot.slane %v5815_v19, 2 }
  0xb4   :  { %888 = vrot.lane.b32.xlu0 %v6588_v59, %s5378_s6  ;;  %v6616_v26 = vsel %vm683_vm1, %v750_v61, %v752_v38 }
  0xb5   :  { %v6603_v46 = vpop.permute.xlu1 %553  ;;  %11708 = vst [vmem:[#allocation187_spill] sm:$0xff] %v6616_v26  ;;  %v6624_v63 = vsel %vm683_vm1, %v749_v14, %v750_v61 }
  0xb6   :  { %11705 = vst [vmem:[#allocation184_spill] sm:$0xff] %v6603_v46  ;;  %v6609_v31 = vpop.permute.xlu0 %551  ;;  %v757_v46 = vrot.slane %v11709_v0, 2  ;;  %11711 = vst [vmem:[#allocation189_spill] sm:$0xff] %v6624_v63  ;;  %v760_v0 = vrot.slane %v11715_v15, 2 }
  0xb7   :  { %11707 = vst [vmem:[#allocation186_spill] sm:$0xff] %v6609_v31  ;;  %894 = vrot.lane.b32.xlu1 %v6598_v7, %s5378_s6  ;;  %v11712_v31 = vld [vmem:[#allocation45_spill] sm:$0xff] }
  0xb8   :  { %892 = vrot.lane.b32.xlu0 %v6606_v37, %s5378_s6  ;;  %v754_v59 = vrot.slane %v11712_v31, 2  ;;  %v6634_v38 = vsel %vm683_vm1, %v755_v48, %v757_v46  ;;  %v11716_v37 = vld [vmem:[#allocation46_spill] sm:$0xff] }
  0xb9   :  { %v6621_v60 = vpop.permute.xlu1 %557  ;;  %11714 = vst [vmem:[#allocation191_spill] sm:$0xff] %v6634_v38 }
  0xba   :  { %11710 = vst [vmem:[#allocation188_spill] sm:$0xff] %v6621_v60  ;;  %v6627_v62 = vpop.permute.xlu0 %555  ;;  %v11717_v60 = vmax.f32 %v11716_v37, 0.0  ;;  %v6642_v61 = vsel %vm683_vm1, %v754_v59, %v755_v48  ;;  %v11723_v37 = vld [vmem:[#allocation53_spill] sm:$0xff] }
  0xbb   :  { %11713 = vst [vmem:[#allocation190_spill] sm:$0xff] %v6627_v62  ;;  %898 = vrot.lane.b32.xlu1 %v6616_v26, %s5378_s6  ;;  %11719 = vst [vmem:[#allocation192_spill] sm:$0xff] %v6642_v61  ;;  %v11720_v62 = vld [vmem:[#allocation50_spill] sm:$0xff] }
  0xbc   :  { %896 = vrot.lane.b32.xlu0 %v6624_v63, %s5378_s6  ;;  %v762_v7 = vrot.slane %v11717_v60, 2  ;;  %v759_v10 = vrot.slane %v11720_v62, 2  ;;  %v765_v60 = vrot.slane %v11723_v37, 2  ;;  %v11724_v63 = vld [vmem:[#allocation51_spill] sm:$0xff]  ;;  %v11730_v37 = vld [vmem:[#allocation57_spill] sm:$0xff] }
  0xbd   :  { %v6639_v14 = vpop.permute.xlu1 %561 }
  0xbe   :  { %11718 = vst [vmem:[#allocation46_spill] sm:$0xff] %v6639_v14  ;;  %v6645_v41 = vpop.permute.xlu0 %559  ;;  %v6652_v46 = vsel %vm683_vm1, %v760_v0, %v762_v7  ;;  %v11725_v14 = vmax.f32 %v11724_v63, 0.0  ;;  %v6660_v48 = vsel %vm683_vm1, %v759_v10, %v760_v0  ;;  %v770_v63 = vrot.slane %v11730_v37, 2  ;;  %v11734_v0 = vld [vmem:[#allocation60_spill] sm:$0xff] }
  0xbf   :  { %11721 = vst [vmem:[#allocation193_spill] sm:$0xff] %v6645_v41  ;;  %902 = vrot.lane.b32.xlu1 %v6634_v38, %s5378_s6  ;;  %11722 = vst [vmem:[#allocation194_spill] sm:$0xff] %v6652_v46  ;;  %v11728_v41 = vld [vmem:[#allocation56_spill] sm:$0xff] }
  0xc0   :  { %900 = vrot.lane.b32.xlu0 %v6642_v61, %s5378_s6  ;;  %v767_v26 = vrot.slane %v11725_v14, 2  ;;  %11727 = vst [vmem:[#allocation195_spill] sm:$0xff] %v6660_v48  ;;  %v764_v53 = vrot.slane %v11728_v41, 2  ;;  %v11731_v14 = vld [vmem:[#allocation54_spill] sm:$0xff]  ;;  %v769_v41 = vrot.slane %v11734_v0, 2 }
  0xc1   :  { %v6657_v59 = vpop.permute.xlu1 %565  ;;  %v11732_v61 = vmax.f32 %v11731_v14, 0.0  ;;  %v11739_v14 = vmax.f32 %v11738_v8, 0.0  ;;  %v11745_v8 = vld [vmem:[#allocation66_spill] sm:$0xff] }
  0xc2   :  { %11726 = vst [vmem:[#allocation51_spill] sm:$0xff] %v6657_v59  ;;  %v6663_v17 = vpop.permute.xlu0 %563  ;;  %v768_v7 = vsel %vm683_vm1, %v765_v60, %v767_v26  ;;  %v766_v10 = vsel %vm683_vm1, %v764_v53, %v765_v60  ;;  %v11737_v26 = vld [vmem:[#allocation62_spill] sm:$0xff]  ;;  %v6690_v53 = vsel %vm683_vm1, %v769_v41, %v770_v63  ;;  %v11742_v60 = vld [vmem:[#allocation63_spill] sm:$0xff] }
  0xc3   :  { %11729 = vst [vmem:[#allocation196_spill] sm:$0xff] %v6663_v17  ;;  %906 = vrot.lane.b32.xlu1 %v6652_v46, %s5378_s6  ;;  %v772_v59 = vrot.slane %v11732_v61, 2  ;;  %v775_v46 = vrot.slane %v11737_v26, 2  ;;  %v777_v61 = vrot.slane %v11739_v14, 2  ;;  %11741 = vst [vmem:[#allocation199_spill] sm:$0xff] %v6690_v53 }
  0xc4   :  { %904 = vrot.lane.b32.xlu0 %v6660_v48, %s5378_s6 }
  0xc5   :  { %v6673_v38 = vpop.permute.xlu1 %569  ;;  %v6682_v48 = vsel %vm683_vm1, %v770_v63, %v772_v59  ;;  %v6700_v59 = vsel %vm683_vm1, %v775_v46, %v777_v61 }
  0xc6   :  { %11733 = vst [vmem:[#allocation54_spill] sm:$0xff] %v6673_v38  ;;  %v6677_v17 = vpop.permute.xlu0 %567  ;;  %11736 = vst [vmem:[#allocation198_spill] sm:$0xff] %v6682_v48  ;;  %v774_v38 = vrot.slane %v11742_v60, 2 }
  0xc7   :  { %11735 = vst [vmem:[#allocation197_spill] sm:$0xff] %v6677_v17  ;;  %910 = vrot.lane.b32.xlu1 %v768_v7, %s5378_s6  ;;  %11744 = vst [vmem:[#allocation201_spill] sm:$0xff] %v6700_v59  ;;  %v780_v7 = vrot.slane %v11745_v8, 2 }
  0xc8   :  { %908 = vrot.lane.b32.xlu0 %v766_v10, %s5378_s6  ;;  %v11746_v10 = vld [vmem:[#allocation64_spill] sm:$0xff]  ;;  %v6708_v63 = vsel %vm683_vm1, %v774_v38, %v775_v46 }
  0xc9   :  { %v6687_v6 = vpop.permute.xlu1 %573  ;;  %v11747_v14 = vmax.f32 %v11746_v10, 0.0  ;;  %11749 = vst [vmem:[#allocation202_spill] sm:$0xff] %v6708_v63  ;;  %v11753_v10 = vld [vmem:[#allocation70_spill] sm:$0xff] }
  0xca   :  { %11740 = vst [vmem:[#allocation61_spill] sm:$0xff] %v6687_v6  ;;  %v6693_v17 = vpop.permute.xlu0 %571 }
  0xcb   :  { %11743 = vst [vmem:[#allocation200_spill] sm:$0xff] %v6693_v17  ;;  %914 = vrot.lane.b32.xlu1 %v6682_v48, %s5378_s6  ;;  %v782_v6 = vrot.slane %v11747_v14, 2  ;;  %v11750_v17 = vld [vmem:[#allocation69_spill] sm:$0xff]  ;;  %v785_v14 = vrot.slane %v11753_v10, 2 }
  0xcc   :  { %912 = vrot.lane.b32.xlu0 %v6690_v53, %s5378_s6  ;;  %v779_v52 = vrot.slane %v11750_v17, 2  ;;  %v11754_v53 = vld [vmem:[#allocation67_spill] sm:$0xff] }
  0xcd   :  { %v6705_v41 = vpop.permute.xlu1 %577  ;;  %v6718_v61 = vsel %vm683_vm1, %v780_v7, %v782_v6 }
  0xce   :  { %11748 = vst [vmem:[#allocation64_spill] sm:$0xff] %v6705_v41  ;;  %v6711_v56 = vpop.permute.xlu0 %575  ;;  %11752 = vst [vmem:[#allocation204_spill] sm:$0xff] %v6718_v61  ;;  %v11755_v41 = vmax.f32 %v11754_v53, 0.0  ;;  %v6726_v46 = vsel %vm683_vm1, %v779_v52, %v780_v7  ;;  %v11761_v53 = vld [vmem:[#allocation76_spill] sm:$0xff] }
  0xcf   :  { %11751 = vst [vmem:[#allocation203_spill] sm:$0xff] %v6711_v56  ;;  %918 = vrot.lane.b32.xlu1 %v6700_v59, %s5378_s6  ;;  %11757 = vst [vmem:[#allocation205_spill] sm:$0xff] %v6726_v46  ;;  %v11758_v56 = vld [vmem:[#allocation73_spill] sm:$0xff] }
  0xd0   :  { %916 = vrot.lane.b32.xlu0 %v6708_v63, %s5378_s6  ;;  %v787_v48 = vrot.slane %v11755_v41, 2  ;;  %v784_v18 = vrot.slane %v11758_v56, 2  ;;  %v790_v41 = vrot.slane %v11761_v53, 2  ;;  %v11762_v63 = vld [vmem:[#allocation74_spill] sm:$0xff] }
  0xd1   :  { %v6723_v38 = vpop.permute.xlu1 %581 }
  0xd2   :  { %11756 = vst [vmem:[#allocation67_spill] sm:$0xff] %v6723_v38  ;;  %v6729_v45 = vpop.permute.xlu0 %579  ;;  %v6736_v6 = vsel %vm683_vm1, %v785_v14, %v787_v48  ;;  %v11763_v38 = vmax.f32 %v11762_v63, 0.0  ;;  %v6744_v7 = vsel %vm683_vm1, %v784_v18, %v785_v14  ;;  %v11769_v63 = vld [vmem:[#allocation81_spill] sm:$0xff] }
  0xd3   :  { %11759 = vst [vmem:[#allocation206_spill] sm:$0xff] %v6729_v45  ;;  %922 = vrot.lane.b32.xlu1 %v6718_v61, %s5378_s6  ;;  %11760 = vst [vmem:[#allocation207_spill] sm:$0xff] %v6736_v6  ;;  %v11766_v45 = vld [vmem:[#allocation78_spill] sm:$0xff] }
  0xd4   :  { %920 = vrot.lane.b32.xlu0 %v6726_v46, %s5378_s6  ;;  %v792_v59 = vrot.slane %v11763_v38, 2  ;;  %11765 = vst [vmem:[#allocation208_spill] sm:$0xff] %v6744_v7  ;;  %v789_v28 = vrot.slane %v11766_v45, 2  ;;  %v795_v38 = vrot.slane %v11769_v63, 2  ;;  %v11770_v46 = vld [vmem:[#allocation79_spill] sm:$0xff] }
  0xd5   :  { %v6741_v52 = vpop.permute.xlu1 %585 }
  0xd6   :  { %11764 = vst [vmem:[#allocation74_spill] sm:$0xff] %v6741_v52  ;;  %v6747_v57 = vpop.permute.xlu0 %583  ;;  %v6754_v48 = vsel %vm683_vm1, %v790_v41, %v792_v59  ;;  %v11771_v52 = vmax.f32 %v11770_v46, 0.0  ;;  %v6762_v14 = vsel %vm683_vm1, %v789_v28, %v790_v41  ;;  %v11777_v46 = vld [vmem:[#allocation85_spill] sm:$0xff] }
  0xd7   :  { %11767 = vst [vmem:[#allocation209_spill] sm:$0xff] %v6747_v57  ;;  %926 = vrot.lane.b32.xlu1 %v6736_v6, %s5378_s6  ;;  %11768 = vst [vmem:[#allocation210_spill] sm:$0xff] %v6754_v48  ;;  %v11774_v57 = vld [vmem:[#allocation84_spill] sm:$0xff] }
  0xd8   :  { %924 = vrot.lane.b32.xlu0 %v6744_v7, %s5378_s6  ;;  %v797_v61 = vrot.slane %v11771_v52, 2  ;;  %11773 = vst [vmem:[#allocation211_spill] sm:$0xff] %v6762_v14  ;;  %v794_v32 = vrot.slane %v11774_v57, 2  ;;  %v800_v52 = vrot.slane %v11777_v46, 2  ;;  %v11778_v7 = vld [vmem:[#allocation82_spill] sm:$0xff] }
  0xd9   :  { %v6759_v18 = vpop.permute.xlu1 %589 }
  0xda   :  { %11772 = vst [vmem:[#allocation79_spill] sm:$0xff] %v6759_v18  ;;  %v6765_v23 = vpop.permute.xlu0 %587  ;;  %v6772_v59 = vsel %vm683_vm1, %v795_v38, %v797_v61  ;;  %v11779_v18 = vmax.f32 %v11778_v7, 0.0  ;;  %v6780_v41 = vsel %vm683_vm1, %v794_v32, %v795_v38  ;;  %v11785_v7 = vld [vmem:[#allocation91_spill] sm:$0xff] }
  0xdb   :  { %11775 = vst [vmem:[#allocation212_spill] sm:$0xff] %v6765_v23  ;;  %930 = vrot.lane.b32.xlu1 %v6754_v48, %s5378_s6  ;;  %11776 = vst [vmem:[#allocation213_spill] sm:$0xff] %v6772_v59  ;;  %v11782_v23 = vld [vmem:[#allocation88_spill] sm:$0xff] }
  0xdc   :  { %928 = vrot.lane.b32.xlu0 %v6762_v14, %s5378_s6  ;;  %v802_v6 = vrot.slane %v11779_v18, 2  ;;  %11781 = vst [vmem:[#allocation214_spill] sm:$0xff] %v6780_v41  ;;  %v799_v47 = vrot.slane %v11782_v23, 2  ;;  %v805_v18 = vrot.slane %v11785_v7, 2  ;;  %v11786_v14 = vld [vmem:[#allocation89_spill] sm:$0xff] }
  0xdd   :  { %v6777_v28 = vpop.permute.xlu1 %593 }
  0xde   :  { %11780 = vst [vmem:[#allocation82_spill] sm:$0xff] %v6777_v28  ;;  %v6783_v22 = vpop.permute.xlu0 %591  ;;  %v6790_v61 = vsel %vm683_vm1, %v800_v52, %v802_v6  ;;  %v11787_v28 = vmax.f32 %v11786_v14, 0.0  ;;  %v6798_v38 = vsel %vm683_vm1, %v799_v47, %v800_v52  ;;  %v11793_v14 = vld [vmem:[#allocation96_spill] sm:$0xff] }
  0xdf   :  { %11783 = vst [vmem:[#allocation215_spill] sm:$0xff] %v6783_v22  ;;  %934 = vrot.lane.b32.xlu1 %v6772_v59, %s5378_s6  ;;  %11784 = vst [vmem:[#allocation216_spill] sm:$0xff] %v6790_v61  ;;  %v11790_v22 = vld [vmem:[#allocation93_spill] sm:$0xff] }
  0xe0   :  { %932 = vrot.lane.b32.xlu0 %v6780_v41, %s5378_s6  ;;  %v807_v48 = vrot.slane %v11787_v28, 2  ;;  %11789 = vst [vmem:[#allocation217_spill] sm:$0xff] %v6798_v38  ;;  %v804_v23 = vrot.slane %v11790_v22, 2  ;;  %v810_v28 = vrot.slane %v11793_v14, 2  ;;  %v11794_v41 = vld [vmem:[#allocation94_spill] sm:$0xff] }
  0xe1   :  { %v6795_v32 = vpop.permute.xlu1 %597 }
  0xe2   :  { %11788 = vst [vmem:[#allocation89_spill] sm:$0xff] %v6795_v32  ;;  %v6801_v46 = vpop.permute.xlu0 %595  ;;  %v6808_v6 = vsel %vm683_vm1, %v805_v18, %v807_v48  ;;  %v11795_v32 = vmax.f32 %v11794_v41, 0.0  ;;  %v6816_v52 = vsel %vm683_vm1, %v804_v23, %v805_v18  ;;  %v11801_v41 = vld [vmem:[#allocation100_spill] sm:$0xff] }
  0xe3   :  { %11791 = vst [vmem:[#allocation218_spill] sm:$0xff] %v6801_v46  ;;  %938 = vrot.lane.b32.xlu1 %v6790_v61, %s5378_s6  ;;  %11792 = vst [vmem:[#allocation219_spill] sm:$0xff] %v6808_v6  ;;  %v11798_v46 = vld [vmem:[#allocation99_spill] sm:$0xff] }
  0xe4   :  { %936 = vrot.lane.b32.xlu0 %v6798_v38, %s5378_s6  ;;  %v812_v59 = vrot.slane %v11795_v32, 2  ;;  %11797 = vst [vmem:[#allocation220_spill] sm:$0xff] %v6816_v52  ;;  %v809_v22 = vrot.slane %v11798_v46, 2  ;;  %v815_v32 = vrot.slane %v11801_v41, 2  ;;  %v11802_v38 = vld [vmem:[#allocation97_spill] sm:$0xff] }
  0xe5   :  { %v6813_v47 = vpop.permute.xlu1 %601 }
  0xe6   :  { %11796 = vst [vmem:[#allocation94_spill] sm:$0xff] %v6813_v47  ;;  %v6819_v7 = vpop.permute.xlu0 %599  ;;  %v6826_v48 = vsel %vm683_vm1, %v810_v28, %v812_v59  ;;  %v11803_v47 = vmax.f32 %v11802_v38, 0.0  ;;  %v6834_v18 = vsel %vm683_vm1, %v809_v22, %v810_v28  ;;  %v11809_v38 = vld [vmem:[#allocation106_spill] sm:$0xff] }
  0xe7   :  { %11799 = vst [vmem:[#allocation221_spill] sm:$0xff] %v6819_v7  ;;  %942 = vrot.lane.b32.xlu1 %v6808_v6, %s5378_s6  ;;  %11800 = vst [vmem:[#allocation222_spill] sm:$0xff] %v6826_v48  ;;  %v11806_v7 = vld [vmem:[#allocation103_spill] sm:$0xff] }
  0xe8   :  { %940 = vrot.lane.b32.xlu0 %v6816_v52, %s5378_s6  ;;  %v817_v61 = vrot.slane %v11803_v47, 2  ;;  %11805 = vst [vmem:[#allocation223_spill] sm:$0xff] %v6834_v18  ;;  %v814_v46 = vrot.slane %v11806_v7, 2  ;;  %v820_v47 = vrot.slane %v11809_v38, 2  ;;  %v11810_v52 = vld [vmem:[#allocation104_spill] sm:$0xff] }
  0xe9   :  { %v6831_v23 = vpop.permute.xlu1 %605 }
  0xea   :  { %11804 = vst [vmem:[#allocation97_spill] sm:$0xff] %v6831_v23  ;;  %v6837_v14 = vpop.permute.xlu0 %603  ;;  %v6844_v59 = vsel %vm683_vm1, %v815_v32, %v817_v61  ;;  %v11811_v23 = vmax.f32 %v11810_v52, 0.0  ;;  %v6852_v28 = vsel %vm683_vm1, %v814_v46, %v815_v32  ;;  %v11817_v52 = vld [vmem:[#allocation111_spill] sm:$0xff] }
  0xeb   :  { %11807 = vst [vmem:[#allocation224_spill] sm:$0xff] %v6837_v14  ;;  %946 = vrot.lane.b32.xlu1 %v6826_v48, %s5378_s6  ;;  %11808 = vst [vmem:[#allocation225_spill] sm:$0xff] %v6844_v59  ;;  %v11814_v14 = vld [vmem:[#allocation108_spill] sm:$0xff] }
  0xec   :  { %944 = vrot.lane.b32.xlu0 %v6834_v18, %s5378_s6  ;;  %v822_v6 = vrot.slane %v11811_v23, 2  ;;  %11813 = vst [vmem:[#allocation226_spill] sm:$0xff] %v6852_v28  ;;  %v819_v7 = vrot.slane %v11814_v14, 2  ;;  %v825_v23 = vrot.slane %v11817_v52, 2  ;;  %v11818_v18 = vld [vmem:[#allocation109_spill] sm:$0xff] }
  0xed   :  { %v6849_v22 = vpop.permute.xlu1 %609 }
  0xee   :  { %11812 = vst [vmem:[#allocation104_spill] sm:$0xff] %v6849_v22  ;;  %v6855_v41 = vpop.permute.xlu0 %607  ;;  %v6862_v61 = vsel %vm683_vm1, %v820_v47, %v822_v6  ;;  %v11819_v22 = vmax.f32 %v11818_v18, 0.0  ;;  %v6870_v32 = vsel %vm683_vm1, %v819_v7, %v820_v47  ;;  %v11825_v18 = vld [vmem:[#allocation115_spill] sm:$0xff] }
  0xef   :  { %11815 = vst [vmem:[#allocation227_spill] sm:$0xff] %v6855_v41  ;;  %950 = vrot.lane.b32.xlu1 %v6844_v59, %s5378_s6  ;;  %11816 = vst [vmem:[#allocation228_spill] sm:$0xff] %v6862_v61  ;;  %v11822_v41 = vld [vmem:[#allocation114_spill] sm:$0xff] }
  0xf0   :  { %948 = vrot.lane.b32.xlu0 %v6852_v28, %s5378_s6  ;;  %v827_v48 = vrot.slane %v11819_v22, 2  ;;  %11821 = vst [vmem:[#allocation229_spill] sm:$0xff] %v6870_v32  ;;  %v824_v14 = vrot.slane %v11822_v41, 2  ;;  %v830_v22 = vrot.slane %v11825_v18, 2  ;;  %v11826_v28 = vld [vmem:[#allocation112_spill] sm:$0xff] }
  0xf1   :  { %v6867_v46 = vpop.permute.xlu1 %613 }
  0xf2   :  { %11820 = vst [vmem:[#allocation109_spill] sm:$0xff] %v6867_v46  ;;  %v6873_v38 = vpop.permute.xlu0 %611  ;;  %v6880_v6 = vsel %vm683_vm1, %v825_v23, %v827_v48  ;;  %v11827_v46 = vmax.f32 %v11826_v28, 0.0  ;;  %v6888_v47 = vsel %vm683_vm1, %v824_v14, %v825_v23  ;;  %v835_v28 = vrot.slane %v6304_v30, 2 }
  0xf3   :  { %11823 = vst [vmem:[#allocation230_spill] sm:$0xff] %v6873_v38  ;;  %954 = vrot.lane.b32.xlu1 %v6862_v61, %s5378_s6  ;;  %11824 = vst [vmem:[#allocation231_spill] sm:$0xff] %v6880_v6  ;;  %v11830_v38 = vld [vmem:[#allocation118_spill] sm:$0xff] }
  0xf4   :  { %952 = vrot.lane.b32.xlu0 %v6870_v32, %s5378_s6  ;;  %v832_v59 = vrot.slane %v11827_v46, 2  ;;  %11829 = vst [vmem:[#allocation232_spill] sm:$0xff] %v6888_v47  ;;  %v829_v41 = vrot.slane %v11830_v38, 2  ;;  %v11833_v46 = vmax.f32 %v6289_v5, 0.0  ;;  %v840_v5 = vrot.slane %v6334_v42, 2 }
  0xf5   :  { %v6885_v7 = vpop.permute.xlu1 %617 }
  0xf6   :  { %11828 = vst [vmem:[#allocation112_spill] sm:$0xff] %v6885_v7  ;;  %v6891_v52 = vpop.permute.xlu0 %615  ;;  %v6898_v48 = vsel %vm683_vm1, %v830_v22, %v832_v59  ;;  %v837_v7 = vrot.slane %v11833_v46, 2  ;;  %v6906_v23 = vsel %vm683_vm1, %v829_v41, %v830_v22  ;;  %v11838_v46 = vmax.f32 %v6319_v21, 0.0 }
  0xf7   :  { %11831 = vst [vmem:[#allocation233_spill] sm:$0xff] %v6891_v52  ;;  %958 = vrot.lane.b32.xlu1 %v6880_v6, %s5378_s6  ;;  %11832 = vst [vmem:[#allocation234_spill] sm:$0xff] %v6898_v48  ;;  %v834_v52 = vrot.slane %v6311_v9, 2 }
  0xf8   :  { %956 = vrot.lane.b32.xlu0 %v6888_v47, %s5378_s6  ;;  %11835 = vst [vmem:[#allocation236_spill] sm:$0xff] %v6906_v23  ;;  %v6916_v59 = vsel %vm683_vm1, %v835_v28, %v837_v7 }
  0xf9   :  { %v6903_v14 = vpop.permute.xlu1 %846  ;;  %11837 = vst [vmem:[#allocation238_spill] sm:$0xff] %v6916_v59  ;;  %v6924_v22 = vsel %vm683_vm1, %v834_v52, %v835_v28 }
  0xfa   :  { %11834 = vst [vmem:[#allocation235_spill] sm:$0xff] %v6903_v14  ;;  %v6909_v32 = vpop.permute.xlu0 %844  ;;  %v842_v14 = vrot.slane %v11838_v46, 2  ;;  %11840 = vst [vmem:[#allocation240_spill] sm:$0xff] %v6924_v22 }
  0xfb   :  { %11836 = vst [vmem:[#allocation237_spill] sm:$0xff] %v6909_v32  ;;  %962 = vrot.lane.b32.xlu1 %v6898_v48, %s5378_s6  ;;  %v839_v32 = vrot.slane %v6343_v16, 2 }
  0xfc   :  { %960 = vrot.lane.b32.xlu0 %v6906_v23, %s5378_s6  ;;  %v6934_v7 = vsel %vm683_vm1, %v840_v5, %v842_v14 }
  0xfd   :  { %v6921_v41 = vpop.permute.xlu1 %850  ;;  %11842 = vst [vmem:[#allocation242_spill] sm:$0xff] %v6934_v7  ;;  %v6939_v46 = vsel %vm683_vm1, %v839_v32, %v840_v5 }
  0xfe   :  { %11839 = vst [vmem:[#allocation239_spill] sm:$0xff] %v6921_v41  ;;  %v6927_v47 = vpop.permute.xlu0 %848  ;;  %11844 = vst [vmem:[#allocation244_spill] sm:$0xff] %v6939_v46 }
  0xff   :  { %11841 = vst [vmem:[#allocation241_spill] sm:$0xff] %v6927_v47  ;;  %966 = vrot.lane.b32.xlu1 %v6916_v59, %s5378_s6 }
 0x100   :  { %964 = vrot.lane.b32.xlu0 %v6924_v22, %s5378_s6 }
 0x101   :  { %v6936_v21 = vpop.permute.xlu1 %854 }
 0x102   :  { %11843 = vst [vmem:[#allocation243_spill] sm:$0xff] %v6936_v21  ;;  %v6941_v52 = vpop.permute.xlu0 %852 }
 0x103   :  { %11845 = vst [vmem:[#allocation245_spill] sm:$0xff] %v6941_v52  ;;  %970 = vrot.lane.b32.xlu1 %v6934_v7, %s5378_s6 }
 0x104   :  { %968 = vrot.lane.b32.xlu0 %v6939_v46, %s5378_s6 }
 0x105   :  { %v6947_v28 = vpop.permute.xlu1 %858 }
 0x106   :  { %11846 = vst [vmem:[#allocation246_spill] sm:$0xff] %v6947_v28  ;;  %v6949_v47 = vpop.permute.xlu0 %856 }
 0x107   :  { %11847 = vst [vmem:[#allocation247_spill] sm:$0xff] %v6949_v47  ;;  %1042 = vrot.lane.b32.xlu1 %v5434_v4, %s5379_s13  ;;  %v11963_v4 = vld [vmem:[#allocation36_spill] sm:$0xff] }
 0x108   :  { %1040 = vrot.lane.b32.xlu0 %v5432_v3, %s5379_s13 }
 0x109   :  { %v6955_v32 = vpop.permute.xlu1 %862 }
 0x10a   :  { %11848 = vst [vmem:[#allocation248_spill] sm:$0xff] %v6955_v32  ;;  %v6957_v14 = vpop.permute.xlu0 %860 }
 0x10b   :  { %11849 = vst [vmem:[#allocation249_spill] sm:$0xff] %v6957_v14  ;;  %1046 = vrot.lane.b32.xlu1 %v5472_v20, %s5379_s13 }
 0x10c   :  { %1044 = vrot.lane.b32.xlu0 %v5483_v25, %s5379_s13 }
 0x10d   :  { %v6963_v5 = vpop.permute.xlu1 %866 }
 0x10e   :  { %11850 = vst [vmem:[#allocation250_spill] sm:$0xff] %v6963_v5  ;;  %v6965_v47 = vpop.permute.xlu0 %864 }
 0x10f   :  { %11851 = vst [vmem:[#allocation251_spill] sm:$0xff] %v6965_v47  ;;  %1050 = vrot.lane.b32.xlu1 %v5496_v29, %s5379_s13 }
 0x110   :  { %1048 = vrot.lane.b32.xlu0 %v5508_v36, %s5379_s13 }
 0x111   :  { %v6971_v28 = vpop.permute.xlu1 %870 }
 0x112   :  { %11852 = vst [vmem:[#allocation252_spill] sm:$0xff] %v6971_v28  ;;  %v6973_v32 = vpop.permute.xlu0 %868 }
 0x113   :  { %11853 = vst [vmem:[#allocation253_spill] sm:$0xff] %v6973_v32  ;;  %1054 = vrot.lane.b32.xlu1 %v5530_v43, %s5379_s13 }
 0x114   :  { %1052 = vrot.lane.b32.xlu0 %v5545_v49, %s5379_s13 }
 0x115   :  { %v6979_v14 = vpop.permute.xlu1 %874 }
 0x116   :  { %11854 = vst [vmem:[#allocation254_spill] sm:$0xff] %v6979_v14  ;;  %v6981_v5 = vpop.permute.xlu0 %872 }
 0x117   :  { %11855 = vst [vmem:[#allocation255_spill] sm:$0xff] %v6981_v5  ;;  %1058 = vrot.lane.b32.xlu1 %v5552_v51, %s5379_s13 }
 0x118   :  { %1056 = vrot.lane.b32.xlu0 %v5567_v58, %s5379_s13 }
 0x119   :  { %v6987_v47 = vpop.permute.xlu1 %878 }
 0x11a   :  { %11856 = vst [vmem:[#allocation256_spill] sm:$0xff] %v6987_v47  ;;  %v6989_v28 = vpop.permute.xlu0 %876 }
 0x11b   :  { %11857 = vst [vmem:[#allocation257_spill] sm:$0xff] %v6989_v28  ;;  %1062 = vrot.lane.b32.xlu1 %v5590_v1, %s5379_s13 }
 0x11c   :  { %1060 = vrot.lane.b32.xlu0 %v5597_v12, %s5379_s13 }
 0x11d   :  { %v6995_v32 = vpop.permute.xlu1 %882 }
 0x11e   :  { %11858 = vst [vmem:[#allocation258_spill] sm:$0xff] %v6995_v32  ;;  %v6997_v14 = vpop.permute.xlu0 %880 }
 0x11f   :  { %11859 = vst [vmem:[#allocation259_spill] sm:$0xff] %v6997_v14  ;;  %1066 = vrot.lane.b32.xlu1 %v5623_v27, %s5379_s13 }
 0x120   :  { %1064 = vrot.lane.b32.xlu0 %v5635_v35, %s5379_s13 }
 0x121   :  { %v7003_v5 = vpop.permute.xlu1 %886 }
 0x122   :  { %11860 = vst [vmem:[#allocation260_spill] sm:$0xff] %v7003_v5  ;;  %v7005_v47 = vpop.permute.xlu0 %884 }
 0x123   :  { %11861 = vst [vmem:[#allocation261_spill] sm:$0xff] %v7005_v47  ;;  %1070 = vrot.lane.b32.xlu1 %v5642_v39, %s5379_s13 }
 0x124   :  { %1068 = vrot.lane.b32.xlu0 %v5657_v55, %s5379_s13 }
 0x125   :  { %v7011_v28 = vpop.permute.xlu1 %890 }
 0x126   :  { %11862 = vst [vmem:[#allocation262_spill] sm:$0xff] %v7011_v28  ;;  %v7013_v32 = vpop.permute.xlu0 %888 }
 0x127   :  { %11863 = vst [vmem:[#allocation263_spill] sm:$0xff] %v7013_v32  ;;  %1074 = vrot.lane.b32.xlu1 %v5680_v13, %s5379_s13 }
 0x128   :  { %1072 = vrot.lane.b32.xlu0 %v5687_v24, %s5379_s13 }
 0x129   :  { %v7019_v14 = vpop.permute.xlu1 %894 }
 0x12a   :  { %11864 = vst [vmem:[#allocation264_spill] sm:$0xff] %v7019_v14  ;;  %v7021_v5 = vpop.permute.xlu0 %892 }
 0x12b   :  { %11865 = vst [vmem:[#allocation265_spill] sm:$0xff] %v7021_v5  ;;  %1078 = vrot.lane.b32.xlu1 %v5713_v40, %s5379_s13 }
 0x12c   :  { %1076 = vrot.lane.b32.xlu0 %v5725_v44, %s5379_s13 }
 0x12d   :  { %v7027_v47 = vpop.permute.xlu1 %898 }
 0x12e   :  { %11866 = vst [vmem:[#allocation266_spill] sm:$0xff] %v7027_v47  ;;  %v7029_v28 = vpop.permute.xlu0 %896 }
 0x12f   :  { %11867 = vst [vmem:[#allocation267_spill] sm:$0xff] %v7029_v28  ;;  %1082 = vrot.lane.b32.xlu1 %v5732_v34, %s5379_s13 }
 0x130   :  { %1080 = vrot.lane.b32.xlu0 %v5747_v54, %s5379_s13 }
 0x131   :  { %v7035_v32 = vpop.permute.xlu1 %902 }
 0x132   :  { %11868 = vst [vmem:[#allocation268_spill] sm:$0xff] %v7035_v32  ;;  %v7037_v14 = vpop.permute.xlu0 %900 }
 0x133   :  { %11869 = vst [vmem:[#allocation269_spill] sm:$0xff] %v7037_v14  ;;  %1086 = vrot.lane.b32.xlu1 %v5770_v2, %s5379_s13  ;;  %v66_v14 = vld [vmem:[%s11118_s0 + $0x180] sm:$0xff] }
 0x134   :  { %1084 = vrot.lane.b32.xlu0 %v5777_v11, %s5379_s13 }
 0x135   :  { %v7043_v5 = vpop.permute.xlu1 %906 }
 0x136   :  { %11870 = vst [vmem:[#allocation270_spill] sm:$0xff] %v7043_v5  ;;  %v7045_v47 = vpop.permute.xlu0 %904 }
 0x137   :  { %11871 = vst [vmem:[#allocation271_spill] sm:$0xff] %v7045_v47  ;;  %1090 = vrot.lane.b32.xlu1 %v5803_v50, %s5379_s13  ;;  %v67_v47 = vld [vmem:[%s11118_s0 + $0x188] sm:$0xff] }
 0x138   :  { %1088 = vrot.lane.b32.xlu0 %v5815_v19, %s5379_s13 }
 0x139   :  { %v7051_v28 = vpop.permute.xlu1 %910 }
 0x13a   :  { %11872 = vst [vmem:[#allocation272_spill] sm:$0xff] %v7051_v28  ;;  %v7053_v32 = vpop.permute.xlu0 %908  ;;  %v7075_v28 = vmax.f32 %v66_v14, 0.0 }
 0x13b   :  { %11873 = vst [vmem:[#allocation273_spill] sm:$0xff] %v7053_v32  ;;  %1094 = vrot.lane.b32.xlu1 %v5822_v33, %s5379_s13  ;;  %v7071_v32 = vmax.f32 %v67_v47, 0.0  ;;  %v11974_v33 = vld [vmem:[#allocation47_spill] sm:$0xff] }
 0x13c   :  { %1092 = vrot.lane.b32.xlu0 %v11712_v31, %s5379_s13 }
 0x13d   :  { %v7062_v5 = vpop.permute.xlu1 %914 }
 0x13e   :  { %11874 = vst [vmem:[#allocation274_spill] sm:$0xff] %v7062_v5  ;;  %v7067_v52 = vpop.permute.xlu0 %912 }
 0x13f   :  { %11875 = vst [vmem:[#allocation275_spill] sm:$0xff] %v7067_v52  ;;  %1098 = vrot.lane.b32.xlu1 %v11715_v15, %s5379_s13  ;;  %v11971_v15 = vld [vmem:[#allocation44_spill] sm:$0xff] }
 0x140   :  { %1096 = vrot.lane.b32.xlu0 %v11720_v62, %s5379_s13 }
 0x141   :  { %v7077_v21 = vpop.permute.xlu1 %918 }
 0x142   :  { %11876 = vst [vmem:[#allocation276_spill] sm:$0xff] %v7077_v21  ;;  %v7079_v41 = vpop.permute.xlu0 %916  ;;  %v11893_v21 = vld [vmem:[#allocation88_spill] sm:$0xff] }
 0x143   :  { %11877 = vst [vmem:[#allocation277_spill] sm:$0xff] %v7079_v41  ;;  %1102 = vrot.lane.b32.xlu1 %v7071_v32, %s5379_s13 }
 0x144   :  { %1100 = vrot.lane.b32.xlu0 %v7075_v28, %s5379_s13 }
 0x145   :  { %v7085_v52 = vpop.permute.xlu1 %922 }
 0x146   :  { %11878 = vst [vmem:[#allocation278_spill] sm:$0xff] %v7085_v52  ;;  %v7087_v5 = vpop.permute.xlu0 %920 }
 0x147   :  { %11879 = vst [vmem:[#allocation279_spill] sm:$0xff] %v7087_v5  ;;  %1106 = vrot.lane.b32.xlu1 %v11730_v37, %s5379_s13  ;;  %v11897_v37 = vld [vmem:[#allocation93_spill] sm:$0xff] }
 0x148   :  { %1104 = vrot.lane.b32.xlu0 %v11734_v0, %s5379_s13 }
 0x149   :  { %v7093_v47 = vpop.permute.xlu1 %926 }
 0x14a   :  { %11880 = vst [vmem:[#allocation280_spill] sm:$0xff] %v7093_v47  ;;  %v7095_v14 = vpop.permute.xlu0 %924 }
 0x14b   :  { %11881 = vst [vmem:[#allocation281_spill] sm:$0xff] %v7095_v14  ;;  %1110 = vrot.lane.b32.xlu1 %v11737_v26, %s5379_s13  ;;  %v11943_v26 = vld [vmem:[#allocation18_spill] sm:$0xff] }
 0x14c   :  { %1108 = vrot.lane.b32.xlu0 %v11742_v60, %s5379_s13 }
 0x14d   :  { %v7101_v41 = vpop.permute.xlu1 %930 }
 0x14e   :  { %11882 = vst [vmem:[#allocation282_spill] sm:$0xff] %v7101_v41  ;;  %v7103_v52 = vpop.permute.xlu0 %928 }
 0x14f   :  { %11883 = vst [vmem:[#allocation283_spill] sm:$0xff] %v7103_v52  ;;  %1114 = vrot.lane.b32.xlu1 %v11745_v8, %s5379_s13  ;;  %v11939_v8 = vld [vmem:[#allocation16_spill] sm:$0xff] }
 0x150   :  { %1112 = vrot.lane.b32.xlu0 %v11750_v17, %s5379_s13  ;;  %v11938_v17 = vld [vmem:[#allocation15_spill] sm:$0xff] }
 0x151   :  { %v7109_v5 = vpop.permute.xlu1 %934 }
 0x152   :  { %11884 = vst [vmem:[#allocation284_spill] sm:$0xff] %v7109_v5  ;;  %v7111_v47 = vpop.permute.xlu0 %932 }
 0x153   :  { %11885 = vst [vmem:[#allocation285_spill] sm:$0xff] %v7111_v47  ;;  %1118 = vrot.lane.b32.xlu1 %v11753_v10, %s5379_s13 }
 0x154   :  { %1116 = vrot.lane.b32.xlu0 %v11758_v56, %s5379_s13  ;;  %v11934_v56 = vld [vmem:[#allocation13_spill] sm:$0xff] }
 0x155   :  { %v7117_v14 = vpop.permute.xlu1 %938 }
 0x156   :  { %11886 = vst [vmem:[#allocation286_spill] sm:$0xff] %v7117_v14  ;;  %v7119_v41 = vpop.permute.xlu0 %936 }
 0x157   :  { %11887 = vst [vmem:[#allocation287_spill] sm:$0xff] %v7119_v41  ;;  %1122 = vrot.lane.b32.xlu1 %v11761_v53, %s5379_s13  ;;  %v11892_v41 = vld [vmem:[#allocation85_spill] sm:$0xff] }
 0x158   :  { %1120 = vrot.lane.b32.xlu0 %v11766_v45, %s5379_s13 }
 0x159   :  { %v7125_v52 = vpop.permute.xlu1 %942 }
 0x15a   :  { %11888 = vst [vmem:[#allocation288_spill] sm:$0xff] %v7125_v52  ;;  %v7127_v5 = vpop.permute.xlu0 %940 }
 0x15b   :  { %11889 = vst [vmem:[#allocation289_spill] sm:$0xff] %v7127_v5  ;;  %1126 = vrot.lane.b32.xlu1 %v11769_v63, %s5379_s13  ;;  %v11896_v5 = vld [vmem:[#allocation91_spill] sm:$0xff]  ;;  %v11931_v63 = vld [vmem:[#allocation12_spill] sm:$0xff] }
 0x15c   :  { %1124 = vrot.lane.b32.xlu0 %v11774_v57, %s5379_s13 }
 0x15d   :  { %v7133_v47 = vpop.permute.xlu1 %946 }
 0x15e   :  { %11890 = vst [vmem:[#allocation290_spill] sm:$0xff] %v7133_v47  ;;  %v7135_v14 = vpop.permute.xlu0 %944 }
 0x15f   :  { %11891 = vst [vmem:[#allocation291_spill] sm:$0xff] %v7135_v14  ;;  %1130 = vrot.lane.b32.xlu1 %v11892_v41, %s5379_s13  ;;  %v11900_v14 = vld [vmem:[#allocation96_spill] sm:$0xff]  ;;  %v11901_v41 = vld [vmem:[#allocation99_spill] sm:$0xff] }
 0x160   :  { %1128 = vrot.lane.b32.xlu0 %v11893_v21, %s5379_s13 }
 0x161   :  { %v7141_v0 = vpop.permute.xlu1 %950 }
 0x162   :  { %11894 = vst [vmem:[#allocation292_spill] sm:$0xff] %v7141_v0  ;;  %v7143_v52 = vpop.permute.xlu0 %948 }
 0x163   :  { %11895 = vst [vmem:[#allocation293_spill] sm:$0xff] %v7143_v52  ;;  %1134 = vrot.lane.b32.xlu1 %v11896_v5, %s5379_s13  ;;  %v11904_v52 = vld [vmem:[#allocation100_spill] sm:$0xff]  ;;  %v11905_v5 = vld [vmem:[#allocation103_spill] sm:$0xff] }
 0x164   :  { %1132 = vrot.lane.b32.xlu0 %v11897_v37, %s5379_s13 }
 0x165   :  { %v7149_v57 = vpop.permute.xlu1 %954 }
 0x166   :  { %11898 = vst [vmem:[#allocation294_spill] sm:$0xff] %v7149_v57  ;;  %v7151_v47 = vpop.permute.xlu0 %952 }
 0x167   :  { %11899 = vst [vmem:[#allocation295_spill] sm:$0xff] %v7151_v47  ;;  %1138 = vrot.lane.b32.xlu1 %v11900_v14, %s5379_s13  ;;  %v11908_v47 = vld [vmem:[#allocation106_spill] sm:$0xff]  ;;  %v11909_v14 = vld [vmem:[#allocation108_spill] sm:$0xff] }
 0x168   :  { %1136 = vrot.lane.b32.xlu0 %v11901_v41, %s5379_s13 }
 0x169   :  { %v7157_v21 = vpop.permute.xlu1 %958 }
 0x16a   :  { %11902 = vst [vmem:[#allocation296_spill] sm:$0xff] %v7157_v21  ;;  %v7159_v0 = vpop.permute.xlu0 %956 }
 0x16b   :  { %11903 = vst [vmem:[#allocation297_spill] sm:$0xff] %v7159_v0  ;;  %1142 = vrot.lane.b32.xlu1 %v11904_v52, %s5379_s13  ;;  %v11912_v0 = vld [vmem:[#allocation111_spill] sm:$0xff]  ;;  %v11913_v52 = vld [vmem:[#allocation114_spill] sm:$0xff] }
 0x16c   :  { %1140 = vrot.lane.b32.xlu0 %v11905_v5, %s5379_s13 }
 0x16d   :  { %v7165_v37 = vpop.permute.xlu1 %962 }
 0x16e   :  { %11906 = vst [vmem:[#allocation298_spill] sm:$0xff] %v7165_v37  ;;  %v7167_v57 = vpop.permute.xlu0 %960 }
 0x16f   :  { %11907 = vst [vmem:[#allocation299_spill] sm:$0xff] %v7167_v57  ;;  %1146 = vrot.lane.b32.xlu1 %v11908_v47, %s5379_s13  ;;  %v11930_v47 = vld [vmem:[#allocation11_spill] sm:$0xff] }
 0x170   :  { %1144 = vrot.lane.b32.xlu0 %v11909_v14, %s5379_s13 }
 0x171   :  { %v7173_v41 = vpop.permute.xlu1 %966 }
 0x172   :  { %11910 = vst [vmem:[#allocation300_spill] sm:$0xff] %v7173_v41  ;;  %v7175_v21 = vpop.permute.xlu0 %964 }
 0x173   :  { %11911 = vst [vmem:[#allocation301_spill] sm:$0xff] %v7175_v21  ;;  %1150 = vrot.lane.b32.xlu1 %v11912_v0, %s5379_s13  ;;  %v120_v21 = vld [vmem:[%s11118_s0 + $0x330] sm:$0xff] }
 0x174   :  { %1148 = vrot.lane.b32.xlu0 %v11913_v52, %s5379_s13 }
 0x175   :  { %v7181_v5 = vpop.permute.xlu1 %970 }
 0x176   :  { %11914 = vst [vmem:[#allocation302_spill] sm:$0xff] %v7181_v5  ;;  %v7183_v37 = vpop.permute.xlu0 %968 }
 0x177   :  { %11915 = vst [vmem:[#allocation303_spill] sm:$0xff] %v7183_v37  ;;  %1154 = vrot.lane.b32.xlu1 %v11825_v18, %s5379_s13  ;;  %v121_v37 = vld [vmem:[%s11118_s0 + $0x338] sm:$0xff] }
 0x178   :  { %1152 = vrot.lane.b32.xlu0 %v11830_v38, %s5379_s13  ;;  %v7209_v18 = vmax.f32 %v121_v37, 0.0  ;;  %v11926_v37 = vld [vmem:[#allocation10_spill] sm:$0xff] }
 0x179   :  { %v7189_v57 = vpop.permute.xlu1 %1042 }
 0x17a   :  { %11916 = vst [vmem:[#allocation304_spill] sm:$0xff] %v7189_v57  ;;  %v7191_v41 = vpop.permute.xlu0 %1040  ;;  %11920 = vst [vmem:[#allocation308_spill] sm:$0xff] %v7209_v18  ;;  %v11967_v57 = vld [vmem:[#allocation40_spill] sm:$0xff] }
 0x17b   :  { %11917 = vst [vmem:[#allocation305_spill] sm:$0xff] %v7191_v41  ;;  %1158 = vrot.lane.b32.xlu1 %v6304_v30, %s5379_s13 }
 0x17c   :  { %1156 = vrot.lane.b32.xlu0 %v6311_v9, %s5379_s13  ;;  %v7213_v9 = vmax.f32 %v120_v21, 0.0  ;;  %v11927_v21 = vld [vmem:[#allocation9_spill] sm:$0xff] }
 0x17d   :  { %v7200_v5 = vpop.permute.xlu1 %1046 }
 0x17e   :  { %11918 = vst [vmem:[#allocation306_spill] sm:$0xff] %v7200_v5  ;;  %v7205_v38 = vpop.permute.xlu0 %1044  ;;  %11921 = vst [vmem:[#allocation309_spill] sm:$0xff] %v7213_v9  ;;  %v11959_v5 = vld [vmem:[#allocation32_spill] sm:$0xff] }
 0x17f   :  { %11919 = vst [vmem:[#allocation307_spill] sm:$0xff] %v7205_v38  ;;  %1162 = vrot.lane.b32.xlu1 %v6334_v42, %s5379_s13 }
 0x180   :  { %1160 = vrot.lane.b32.xlu0 %v6343_v16, %s5379_s13 }
 0x181   :  { %v7215_v30 = vpop.permute.xlu1 %1050 }
 0x182   :  { %11922 = vst [vmem:[#allocation310_spill] sm:$0xff] %v7215_v30  ;;  %v7217_v52 = vpop.permute.xlu0 %1048  ;;  %v11955_v30 = vld [vmem:[#allocation28_spill] sm:$0xff] }
 0x183   :  { %11923 = vst [vmem:[#allocation311_spill] sm:$0xff] %v7217_v52  ;;  %1166 = vrot.lane.b32.xlu1 %v7209_v18, %s5379_s13 }
 0x184   :  { %1164 = vrot.lane.b32.xlu0 %v7213_v9, %s5379_s13 }
 0x185   :  { %v7223_v0 = vpop.permute.xlu1 %1054 }
 0x186   :  { %11924 = vst [vmem:[#allocation312_spill] sm:$0xff] %v7223_v0  ;;  %v7225_v42 = vpop.permute.xlu0 %1052  ;;  %v11951_v0 = vld [vmem:[#allocation24_spill] sm:$0xff] }
 0x187   :  { %11925 = vst [vmem:[#allocation313_spill] sm:$0xff] %v7225_v42  ;;  %1246 = vrot.lane.b32.xlu1 %v11926_v37, %s5380_s16  ;;  %v11935_v37 = vld [vmem:[#allocation14_spill] sm:$0xff] }
 0x188   :  { %1244 = vrot.lane.b32.xlu0 %v11927_v21, %s5380_s16 }
 0x189   :  { %v7231_v16 = vpop.permute.xlu1 %1058 }
 0x18a   :  { %11928 = vst [vmem:[#allocation10_spill] sm:$0xff] %v7231_v16  ;;  %v7233_v14 = vpop.permute.xlu0 %1056  ;;  %v11947_v16 = vld [vmem:[#allocation20_spill] sm:$0xff] }
 0x18b   :  { %11929 = vst [vmem:[#allocation9_spill] sm:$0xff] %v7233_v14  ;;  %1250 = vrot.lane.b32.xlu1 %v11930_v47, %s5380_s16 }
 0x18c   :  { %1248 = vrot.lane.b32.xlu0 %v11931_v63, %s5380_s16 }
 0x18d   :  { %v7239_v45 = vpop.permute.xlu1 %1062 }
 0x18e   :  { %11932 = vst [vmem:[#allocation11_spill] sm:$0xff] %v7239_v45  ;;  %v7241_v53 = vpop.permute.xlu0 %1060 }
 0x18f   :  { %11933 = vst [vmem:[#allocation12_spill] sm:$0xff] %v7241_v53  ;;  %1254 = vrot.lane.b32.xlu1 %v11934_v56, %s5380_s16  ;;  %v11942_v53 = vld [vmem:[#allocation17_spill] sm:$0xff] }
 0x190   :  { %1252 = vrot.lane.b32.xlu0 %v11935_v37, %s5380_s16 }
 0x191   :  { %v7247_v21 = vpop.permute.xlu1 %1066 }
 0x192   :  { %11936 = vst [vmem:[#allocation13_spill] sm:$0xff] %v7247_v21  ;;  %v7249_v10 = vpop.permute.xlu0 %1064 }
 0x193   :  { %11937 = vst [vmem:[#allocation14_spill] sm:$0xff] %v7249_v10  ;;  %1258 = vrot.lane.b32.xlu1 %v11938_v17, %s5380_s16  ;;  %v11946_v10 = vld [vmem:[#allocation19_spill] sm:$0xff] }
 0x194   :  { %1256 = vrot.lane.b32.xlu0 %v11939_v8, %s5380_s16 }
 0x195   :  { %v7255_v60 = vpop.permute.xlu1 %1070 }
 0x196   :  { %11940 = vst [vmem:[#allocation15_spill] sm:$0xff] %v7255_v60  ;;  %v7257_v45 = vpop.permute.xlu0 %1068 }
 0x197   :  { %11941 = vst [vmem:[#allocation16_spill] sm:$0xff] %v7257_v45  ;;  %1262 = vrot.lane.b32.xlu1 %v11942_v53, %s5380_s16  ;;  %v11950_v45 = vld [vmem:[#allocation22_spill] sm:$0xff] }
 0x198   :  { %1260 = vrot.lane.b32.xlu0 %v11943_v26, %s5380_s16 }
 0x199   :  { %v7263_v14 = vpop.permute.xlu1 %1074 }
 0x19a   :  { %11944 = vst [vmem:[#allocation17_spill] sm:$0xff] %v7263_v14  ;;  %v7265_v21 = vpop.permute.xlu0 %1072 }
 0x19b   :  { %11945 = vst [vmem:[#allocation18_spill] sm:$0xff] %v7265_v21  ;;  %1266 = vrot.lane.b32.xlu1 %v11946_v10, %s5380_s16  ;;  %v11954_v21 = vld [vmem:[#allocation26_spill] sm:$0xff] }
 0x19c   :  { %1264 = vrot.lane.b32.xlu0 %v11947_v16, %s5380_s16 }
 0x19d   :  { %v7271_v42 = vpop.permute.xlu1 %1078 }
 0x19e   :  { %11948 = vst [vmem:[#allocation19_spill] sm:$0xff] %v7271_v42  ;;  %v7273_v60 = vpop.permute.xlu0 %1076 }
 0x19f   :  { %11949 = vst [vmem:[#allocation20_spill] sm:$0xff] %v7273_v60  ;;  %1270 = vrot.lane.b32.xlu1 %v11950_v45, %s5380_s16  ;;  %v11958_v60 = vld [vmem:[#allocation31_spill] sm:$0xff]  ;;  %v12083_v45 = vld [vmem:[#allocation169_spill] sm:$0xff] }
 0x1a0   :  { %1268 = vrot.lane.b32.xlu0 %v11951_v0, %s5380_s16 }
 0x1a1   :  { %v7279_v52 = vpop.permute.xlu1 %1082 }
 0x1a2   :  { %11952 = vst [vmem:[#allocation314_spill] sm:$0xff] %v7279_v52  ;;  %v7281_v14 = vpop.permute.xlu0 %1080 }
 0x1a3   :  { %11953 = vst [vmem:[#allocation315_spill] sm:$0xff] %v7281_v14  ;;  %1274 = vrot.lane.b32.xlu1 %v11954_v21, %s5380_s16  ;;  %v11962_v14 = vld [vmem:[#allocation34_spill] sm:$0xff]  ;;  %v12079_v21 = vld [vmem:[#allocation165_spill] sm:$0xff] }
 0x1a4   :  { %1272 = vrot.lane.b32.xlu0 %v11955_v30, %s5380_s16 }
 0x1a5   :  { %v7287_v38 = vpop.permute.xlu1 %1086 }
 0x1a6   :  { %11956 = vst [vmem:[#allocation316_spill] sm:$0xff] %v7287_v38  ;;  %v7289_v42 = vpop.permute.xlu0 %1084 }
 0x1a7   :  { %11957 = vst [vmem:[#allocation317_spill] sm:$0xff] %v7289_v42  ;;  %1278 = vrot.lane.b32.xlu1 %v11958_v60, %s5380_s16  ;;  %v11966_v42 = vld [vmem:[#allocation38_spill] sm:$0xff]  ;;  %v12075_v60 = vld [vmem:[#allocation161_spill] sm:$0xff] }
 0x1a8   :  { %1276 = vrot.lane.b32.xlu0 %v11959_v5, %s5380_s16 }
 0x1a9   :  { %v7295_v3 = vpop.permute.xlu1 %1090 }
 0x1aa   :  { %11960 = vst [vmem:[#allocation318_spill] sm:$0xff] %v7295_v3  ;;  %v7297_v52 = vpop.permute.xlu0 %1088 }
 0x1ab   :  { %11961 = vst [vmem:[#allocation319_spill] sm:$0xff] %v7297_v52  ;;  %1282 = vrot.lane.b32.xlu1 %v11962_v14, %s5380_s16  ;;  %v11970_v52 = vld [vmem:[#allocation43_spill] sm:$0xff]  ;;  %v12071_v14 = vld [vmem:[#allocation157_spill] sm:$0xff] }
 0x1ac   :  { %1280 = vrot.lane.b32.xlu0 %v11963_v4, %s5380_s16 }
 0x1ad   :  { %v7303_v41 = vpop.permute.xlu1 %1094 }
 0x1ae   :  { %11964 = vst [vmem:[#allocation320_spill] sm:$0xff] %v7303_v41  ;;  %v7305_v38 = vpop.permute.xlu0 %1092 }
 0x1af   :  { %11965 = vst [vmem:[#allocation321_spill] sm:$0xff] %v7305_v38  ;;  %1286 = vrot.lane.b32.xlu1 %v11966_v42, %s5380_s16  ;;  %v7324_v38 = vld [vmem:[%s11118_s0 + $0x190] sm:$0x3] }
 0x1b0   :  { %1284 = vrot.lane.b32.xlu0 %v11967_v57, %s5380_s16 }
 0x1b1   :  { %v7311_v62 = vpop.permute.xlu1 %1098 }
 0x1b2   :  { %11968 = vst [vmem:[#allocation322_spill] sm:$0xff] %v7311_v62  ;;  %v7313_v3 = vpop.permute.xlu0 %1096  ;;  %v11471_v62 = vmax.f32 %v7324_v38, 0.0 }
 0x1b3   :  { %11969 = vst [vmem:[#allocation323_spill] sm:$0xff] %v7313_v3  ;;  %1290 = vrot.lane.b32.xlu1 %v11970_v52, %s5380_s16  ;;  %v11975_v3 = vld [vmem:[#allocation49_spill] sm:$0xff] }
 0x1b4   :  { %1288 = vrot.lane.b32.xlu0 %v11971_v15, %s5380_s16  ;;  %v11979_v15 = vld [vmem:[#allocation55_spill] sm:$0xff] }
 0x1b5   :  { %v7319_v31 = vpop.permute.xlu1 %1102 }
 0x1b6   :  { %11972 = vst [vmem:[#allocation324_spill] sm:$0xff] %v7319_v31  ;;  %v7326_v41 = vpop.permute.xlu0 %1100  ;;  %v11978_v31 = vld [vmem:[#allocation52_spill] sm:$0xff] }
 0x1b7   :  { %11973 = vst [vmem:[#allocation325_spill] sm:$0xff] %v7326_v41  ;;  %1294 = vrot.lane.b32.xlu1 %v11974_v33, %s5380_s16  ;;  %v1235_v41 = vrot.slane %v7071_v32, 1  ;;  %v1237_v33 = vrot.slane %v11471_v62, 1 }
 0x1b8   :  { %1292 = vrot.lane.b32.xlu0 %v11975_v3, %s5380_s16  ;;  %v1234_v3 = vrot.slane %v7075_v28, 1 }
 0x1b9   :  { %v7333_v19 = vpop.permute.xlu1 %1106 }
 0x1ba   :  { %11976 = vst [vmem:[#allocation326_spill] sm:$0xff] %v7333_v19  ;;  %v7335_v50 = vpop.permute.xlu0 %1104  ;;  %v11982_v19 = vld [vmem:[#allocation58_spill] sm:$0xff]  ;;  %v7359_v42 = vsel %vm330_vm0, %v1234_v3, %v1235_v41 }
 0x1bb   :  { %11977 = vst [vmem:[#allocation327_spill] sm:$0xff] %v7335_v50  ;;  %1298 = vrot.lane.b32.xlu1 %v11978_v31, %s5380_s16  ;;  %v11983_v50 = vld [vmem:[#allocation59_spill] sm:$0xff]  ;;  %v7354_v31 = vsel %vm330_vm0, %v1235_v41, %v1237_v33  ;;  %11986 = vst [vmem:[#allocation332_spill] sm:$0xff] %v7359_v42  ;;  %v11990_v33 = vld [vmem:[#allocation65_spill] sm:$0xff] }
 0x1bc   :  { %1296 = vrot.lane.b32.xlu0 %v11979_v15, %s5380_s16  ;;  %11984 = vst [vmem:[#allocation330_spill] sm:$0xff] %v7354_v31 }
 0x1bd   :  { %v7344_v52 = vpop.permute.xlu1 %1110 }
 0x1be   :  { %11980 = vst [vmem:[#allocation328_spill] sm:$0xff] %v7344_v52  ;;  %v7347_v57 = vpop.permute.xlu0 %1108 }
 0x1bf   :  { %11981 = vst [vmem:[#allocation329_spill] sm:$0xff] %v7347_v57  ;;  %1302 = vrot.lane.b32.xlu1 %v11982_v19, %s5380_s16 }
 0x1c0   :  { %1300 = vrot.lane.b32.xlu0 %v11983_v50, %s5380_s16 }
 0x1c1   :  { %v7356_v15 = vpop.permute.xlu1 %1114 }
 0x1c2   :  { %11985 = vst [vmem:[#allocation331_spill] sm:$0xff] %v7356_v15  ;;  %v7361_v62 = vpop.permute.xlu0 %1112  ;;  %v11991_v15 = vld [vmem:[#allocation68_spill] sm:$0xff] }
 0x1c3   :  { %11987 = vst [vmem:[#allocation333_spill] sm:$0xff] %v7361_v62  ;;  %1306 = vrot.lane.b32.xlu1 %v7354_v31, %s5380_s16  ;;  %v11994_v62 = vld [vmem:[#allocation71_spill] sm:$0xff]  ;;  %v11995_v31 = vld [vmem:[#allocation72_spill] sm:$0xff] }
 0x1c4   :  { %1304 = vrot.lane.b32.xlu0 %v7359_v42, %s5380_s16 }
 0x1c5   :  { %v7367_v57 = vpop.permute.xlu1 %1118 }
 0x1c6   :  { %11988 = vst [vmem:[#allocation334_spill] sm:$0xff] %v7367_v57  ;;  %v7369_v52 = vpop.permute.xlu0 %1116 }
 0x1c7   :  { %11989 = vst [vmem:[#allocation335_spill] sm:$0xff] %v7369_v52  ;;  %1310 = vrot.lane.b32.xlu1 %v11990_v33, %s5380_s16  ;;  %v11998_v52 = vld [vmem:[#allocation75_spill] sm:$0xff]  ;;  %v11999_v33 = vld [vmem:[#allocation77_spill] sm:$0xff] }
 0x1c8   :  { %1308 = vrot.lane.b32.xlu0 %v11991_v15, %s5380_s16 }
 0x1c9   :  { %v7375_v3 = vpop.permute.xlu1 %1122 }
 0x1ca   :  { %11992 = vst [vmem:[#allocation65_spill] sm:$0xff] %v7375_v3  ;;  %v7377_v41 = vpop.permute.xlu0 %1120 }
 0x1cb   :  { %11993 = vst [vmem:[#allocation68_spill] sm:$0xff] %v7377_v41  ;;  %1314 = vrot.lane.b32.xlu1 %v11994_v62, %s5380_s16  ;;  %v12002_v41 = vld [vmem:[#allocation80_spill] sm:$0xff]  ;;  %v12003_v62 = vld [vmem:[#allocation83_spill] sm:$0xff] }
 0x1cc   :  { %1312 = vrot.lane.b32.xlu0 %v11995_v31, %s5380_s16 }
 0x1cd   :  { %v7383_v42 = vpop.permute.xlu1 %1126 }
 0x1ce   :  { %11996 = vst [vmem:[#allocation336_spill] sm:$0xff] %v7383_v42  ;;  %v7385_v57 = vpop.permute.xlu0 %1124 }
 0x1cf   :  { %11997 = vst [vmem:[#allocation337_spill] sm:$0xff] %v7385_v57  ;;  %1318 = vrot.lane.b32.xlu1 %v11998_v52, %s5380_s16  ;;  %v12006_v57 = vld [vmem:[#allocation86_spill] sm:$0xff]  ;;  %v12007_v52 = vld [vmem:[#allocation87_spill] sm:$0xff] }
 0x1d0   :  { %1316 = vrot.lane.b32.xlu0 %v11999_v33, %s5380_s16 }
 0x1d1   :  { %v7391_v15 = vpop.permute.xlu1 %1130 }
 0x1d2   :  { %12000 = vst [vmem:[#allocation338_spill] sm:$0xff] %v7391_v15  ;;  %v7393_v3 = vpop.permute.xlu0 %1128 }
 0x1d3   :  { %12001 = vst [vmem:[#allocation339_spill] sm:$0xff] %v7393_v3  ;;  %1322 = vrot.lane.b32.xlu1 %v12002_v41, %s5380_s16  ;;  %v12010_v3 = vld [vmem:[#allocation90_spill] sm:$0xff]  ;;  %v12011_v41 = vld [vmem:[#allocation92_spill] sm:$0xff] }
 0x1d4   :  { %1320 = vrot.lane.b32.xlu0 %v12003_v62, %s5380_s16 }
 0x1d5   :  { %v7399_v31 = vpop.permute.xlu1 %1134 }
 0x1d6   :  { %12004 = vst [vmem:[#allocation340_spill] sm:$0xff] %v7399_v31  ;;  %v7401_v42 = vpop.permute.xlu0 %1132 }
 0x1d7   :  { %12005 = vst [vmem:[#allocation341_spill] sm:$0xff] %v7401_v42  ;;  %1326 = vrot.lane.b32.xlu1 %v12006_v57, %s5380_s16  ;;  %v12014_v42 = vld [vmem:[#allocation95_spill] sm:$0xff]  ;;  %v12015_v57 = vld [vmem:[#allocation98_spill] sm:$0xff] }
 0x1d8   :  { %1324 = vrot.lane.b32.xlu0 %v12007_v52, %s5380_s16 }
 0x1d9   :  { %v7407_v33 = vpop.permute.xlu1 %1138 }
 0x1da   :  { %12008 = vst [vmem:[#allocation342_spill] sm:$0xff] %v7407_v33  ;;  %v7409_v15 = vpop.permute.xlu0 %1136 }
 0x1db   :  { %12009 = vst [vmem:[#allocation343_spill] sm:$0xff] %v7409_v15  ;;  %1330 = vrot.lane.b32.xlu1 %v12010_v3, %s5380_s16  ;;  %v12018_v15 = vld [vmem:[#allocation101_spill] sm:$0xff]  ;;  %v12019_v3 = vld [vmem:[#allocation102_spill] sm:$0xff] }
 0x1dc   :  { %1328 = vrot.lane.b32.xlu0 %v12011_v41, %s5380_s16 }
 0x1dd   :  { %v7415_v62 = vpop.permute.xlu1 %1142 }
 0x1de   :  { %12012 = vst [vmem:[#allocation344_spill] sm:$0xff] %v7415_v62  ;;  %v7417_v31 = vpop.permute.xlu0 %1140 }
 0x1df   :  { %12013 = vst [vmem:[#allocation345_spill] sm:$0xff] %v7417_v31  ;;  %1334 = vrot.lane.b32.xlu1 %v12014_v42, %s5380_s16  ;;  %v12022_v31 = vld [vmem:[#allocation105_spill] sm:$0xff]  ;;  %v12023_v42 = vld [vmem:[#allocation107_spill] sm:$0xff] }
 0x1e0   :  { %1332 = vrot.lane.b32.xlu0 %v12015_v57, %s5380_s16 }
 0x1e1   :  { %v7423_v52 = vpop.permute.xlu1 %1146 }
 0x1e2   :  { %12016 = vst [vmem:[#allocation346_spill] sm:$0xff] %v7423_v52  ;;  %v7425_v33 = vpop.permute.xlu0 %1144 }
 0x1e3   :  { %12017 = vst [vmem:[#allocation347_spill] sm:$0xff] %v7425_v33  ;;  %1338 = vrot.lane.b32.xlu1 %v12018_v15, %s5380_s16  ;;  %v12026_v33 = vld [vmem:[#allocation110_spill] sm:$0xff]  ;;  %v12027_v15 = vld [vmem:[#allocation113_spill] sm:$0xff] }
 0x1e4   :  { %1336 = vrot.lane.b32.xlu0 %v12019_v3, %s5380_s16 }
 0x1e5   :  { %v7431_v41 = vpop.permute.xlu1 %1150 }
 0x1e6   :  { %12020 = vst [vmem:[#allocation348_spill] sm:$0xff] %v7431_v41  ;;  %v7433_v62 = vpop.permute.xlu0 %1148 }
 0x1e7   :  { %12021 = vst [vmem:[#allocation349_spill] sm:$0xff] %v7433_v62  ;;  %1342 = vrot.lane.b32.xlu1 %v12022_v31, %s5380_s16  ;;  %v12030_v62 = vld [vmem:[#allocation116_spill] sm:$0xff]  ;;  %v12031_v31 = vld [vmem:[#allocation117_spill] sm:$0xff] }
 0x1e8   :  { %1340 = vrot.lane.b32.xlu0 %v12023_v42, %s5380_s16 }
 0x1e9   :  { %v7439_v57 = vpop.permute.xlu1 %1154 }
 0x1ea   :  { %12024 = vst [vmem:[#allocation350_spill] sm:$0xff] %v7439_v57  ;;  %v7441_v52 = vpop.permute.xlu0 %1152 }
 0x1eb   :  { %12025 = vst [vmem:[#allocation351_spill] sm:$0xff] %v7441_v52  ;;  %1346 = vrot.lane.b32.xlu1 %v12026_v33, %s5380_s16  ;;  %v12034_v52 = vld [vmem:[#allocation119_spill] sm:$0xff]  ;;  %v12035_v33 = vld [vmem:[#allocation121_spill] sm:$0xff] }
 0x1ec   :  { %1344 = vrot.lane.b32.xlu0 %v12027_v15, %s5380_s16 }
 0x1ed   :  { %v7447_v3 = vpop.permute.xlu1 %1158 }
 0x1ee   :  { %12028 = vst [vmem:[#allocation352_spill] sm:$0xff] %v7447_v3  ;;  %v7449_v41 = vpop.permute.xlu0 %1156 }
 0x1ef   :  { %12029 = vst [vmem:[#allocation353_spill] sm:$0xff] %v7449_v41  ;;  %1350 = vrot.lane.b32.xlu1 %v12030_v62, %s5380_s16  ;;  %v7468_v41 = vld [vmem:[%s11118_s0 + $0x340] sm:$0x3]  ;;  %v12043_v62 = vld [vmem:[#allocation131_spill] sm:$0xff] }
 0x1f0   :  { %1348 = vrot.lane.b32.xlu0 %v12031_v31, %s5380_s16  ;;  %v12038_v31 = vld [vmem:[#allocation123_spill] sm:$0xff] }
 0x1f1   :  { %v7455_v42 = vpop.permute.xlu1 %1162 }
 0x1f2   :  { %12032 = vst [vmem:[#allocation354_spill] sm:$0xff] %v7455_v42  ;;  %v7457_v57 = vpop.permute.xlu0 %1160  ;;  %v11474_v42 = vmax.f32 %v7468_v41, 0.0 }
 0x1f3   :  { %12033 = vst [vmem:[#allocation355_spill] sm:$0xff] %v7457_v57  ;;  %1354 = vrot.lane.b32.xlu1 %v12034_v52, %s5380_s16  ;;  %v12039_v57 = vld [vmem:[#allocation126_spill] sm:$0xff] }
 0x1f4   :  { %1352 = vrot.lane.b32.xlu0 %v12035_v33, %s5380_s16 }
 0x1f5   :  { %v7463_v15 = vpop.permute.xlu1 %1166 }
 0x1f6   :  { %12036 = vst [vmem:[#allocation356_spill] sm:$0xff] %v7463_v15  ;;  %v7470_v3 = vpop.permute.xlu0 %1164  ;;  %v12042_v15 = vld [vmem:[#allocation129_spill] sm:$0xff] }
 0x1f7   :  { %12037 = vst [vmem:[#allocation357_spill] sm:$0xff] %v7470_v3  ;;  %1358 = vrot.lane.b32.xlu1 %v12038_v31, %s5380_s16  ;;  %v1240_v3 = vrot.slane %v7209_v18, 1  ;;  %v1242_v31 = vrot.slane %v11474_v42, 1 }
 0x1f8   :  { %1356 = vrot.lane.b32.xlu0 %v12039_v57, %s5380_s16  ;;  %v1239_v57 = vrot.slane %v7213_v9, 1 }
 0x1f9   :  { %v7477_v52 = vpop.permute.xlu1 %1246 }
 0x1fa   :  { %12040 = vst [vmem:[#allocation358_spill] sm:$0xff] %v7477_v52  ;;  %v7479_v33 = vpop.permute.xlu0 %1244  ;;  %v12046_v52 = vld [vmem:[#allocation133_spill] sm:$0xff]  ;;  %v7503_v4 = vsel %vm330_vm0, %v1239_v57, %v1240_v3 }
 0x1fb   :  { %12041 = vst [vmem:[#allocation359_spill] sm:$0xff] %v7479_v33  ;;  %1362 = vrot.lane.b32.xlu1 %v12042_v15, %s5380_s16  ;;  %v12047_v33 = vld [vmem:[#allocation135_spill] sm:$0xff]  ;;  %v7498_v15 = vsel %vm330_vm0, %v1240_v3, %v1242_v31  ;;  %12050 = vst [vmem:[#allocation364_spill] sm:$0xff] %v7503_v4 }
 0x1fc   :  { %1360 = vrot.lane.b32.xlu0 %v12043_v62, %s5380_s16  ;;  %12048 = vst [vmem:[#allocation362_spill] sm:$0xff] %v7498_v15  ;;  %v12054_v31 = vld [vmem:[#allocation139_spill] sm:$0xff] }
 0x1fd   :  { %v7488_v50 = vpop.permute.xlu1 %1250 }
 0x1fe   :  { %12044 = vst [vmem:[#allocation360_spill] sm:$0xff] %v7488_v50  ;;  %v7491_v19 = vpop.permute.xlu0 %1248 }
 0x1ff   :  { %12045 = vst [vmem:[#allocation361_spill] sm:$0xff] %v7491_v19  ;;  %1366 = vrot.lane.b32.xlu1 %v12046_v52, %s5380_s16 }
 0x200   :  { %1364 = vrot.lane.b32.xlu0 %v12047_v33, %s5380_s16  ;;  %v12055_v33 = vld [vmem:[#allocation141_spill] sm:$0xff] }
 0x201   :  { %v7500_v62 = vpop.permute.xlu1 %1254 }
 0x202   :  { %12049 = vst [vmem:[#allocation363_spill] sm:$0xff] %v7500_v62  ;;  %v7505_v42 = vpop.permute.xlu0 %1252  ;;  %v12067_v62 = vld [vmem:[#allocation153_spill] sm:$0xff] }
 0x203   :  { %12051 = vst [vmem:[#allocation365_spill] sm:$0xff] %v7505_v42  ;;  %1370 = vrot.lane.b32.xlu1 %v7498_v15, %s5380_s16  ;;  %v12058_v15 = vld [vmem:[#allocation143_spill] sm:$0xff] }
 0x204   :  { %1368 = vrot.lane.b32.xlu0 %v7503_v4, %s5380_s16  ;;  %v12059_v4 = vld [vmem:[#allocation145_spill] sm:$0xff]  ;;  %v12062_v42 = vld [vmem:[#allocation147_spill] sm:$0xff] }
 0x205   :  { %v7511_v52 = vpop.permute.xlu1 %1258 }
 0x206   :  { %12052 = vst [vmem:[#allocation366_spill] sm:$0xff] %v7511_v52  ;;  %v7513_v19 = vpop.permute.xlu0 %1256 }
 0x207   :  { %12053 = vst [vmem:[#allocation367_spill] sm:$0xff] %v7513_v19  ;;  %1448 = vrot.lane.b32.xlu1 %v12054_v31, %s5381_s21  ;;  %v12063_v31 = vld [vmem:[#allocation149_spill] sm:$0xff] }
 0x208   :  { %1446 = vrot.lane.b32.xlu0 %v12055_v33, %s5381_s21 }
 0x209   :  { %v7519_v57 = vpop.permute.xlu1 %1262 }
 0x20a   :  { %12056 = vst [vmem:[#allocation139_spill] sm:$0xff] %v7519_v57  ;;  %v7521_v3 = vpop.permute.xlu0 %1260 }
 0x20b   :  { %12057 = vst [vmem:[#allocation141_spill] sm:$0xff] %v7521_v3  ;;  %1452 = vrot.lane.b32.xlu1 %v12058_v15, %s5381_s21  ;;  %v12066_v3 = vld [vmem:[#allocation151_spill] sm:$0xff] }
 0x20c   :  { %1450 = vrot.lane.b32.xlu0 %v12059_v4, %s5381_s21 }
 0x20d   :  { %v7527_v52 = vpop.permute.xlu1 %1266 }
 0x20e   :  { %12060 = vst [vmem:[#allocation143_spill] sm:$0xff] %v7527_v52  ;;  %v7529_v19 = vpop.permute.xlu0 %1264 }
 0x20f   :  { %12061 = vst [vmem:[#allocation145_spill] sm:$0xff] %v7529_v19  ;;  %1456 = vrot.lane.b32.xlu1 %v12062_v42, %s5381_s21  ;;  %v12070_v19 = vld [vmem:[#allocation155_spill] sm:$0xff] }
 0x210   :  { %1454 = vrot.lane.b32.xlu0 %v12063_v31, %s5381_s21 }
 0x211   :  { %v7535_v33 = vpop.permute.xlu1 %1270 }
 0x212   :  { %12064 = vst [vmem:[#allocation147_spill] sm:$0xff] %v7535_v33  ;;  %v7537_v57 = vpop.permute.xlu0 %1268 }
 0x213   :  { %12065 = vst [vmem:[#allocation149_spill] sm:$0xff] %v7537_v57  ;;  %1460 = vrot.lane.b32.xlu1 %v12066_v3, %s5381_s21  ;;  %v12074_v57 = vld [vmem:[#allocation159_spill] sm:$0xff] }
 0x214   :  { %1458 = vrot.lane.b32.xlu0 %v12067_v62, %s5381_s21 }
 0x215   :  { %v7543_v50 = vpop.permute.xlu1 %1274 }
 0x216   :  { %12068 = vst [vmem:[#allocation151_spill] sm:$0xff] %v7543_v50  ;;  %v7545_v52 = vpop.permute.xlu0 %1272 }
 0x217   :  { %12069 = vst [vmem:[#allocation153_spill] sm:$0xff] %v7545_v52  ;;  %1464 = vrot.lane.b32.xlu1 %v12070_v19, %s5381_s21  ;;  %v12078_v52 = vld [vmem:[#allocation163_spill] sm:$0xff] }
 0x218   :  { %1462 = vrot.lane.b32.xlu0 %v12071_v14, %s5381_s21 }
 0x219   :  { %v7551_v5 = vpop.permute.xlu1 %1278 }
 0x21a   :  { %12072 = vst [vmem:[#allocation155_spill] sm:$0xff] %v7551_v5  ;;  %v7553_v33 = vpop.permute.xlu0 %1276 }
 0x21b   :  { %12073 = vst [vmem:[#allocation157_spill] sm:$0xff] %v7553_v33  ;;  %1468 = vrot.lane.b32.xlu1 %v12074_v57, %s5381_s21  ;;  %v12082_v33 = vld [vmem:[#allocation167_spill] sm:$0xff] }
 0x21c   :  { %1466 = vrot.lane.b32.xlu0 %v12075_v60, %s5381_s21 }
 0x21d   :  { %v7559_v30 = vpop.permute.xlu1 %1282 }
 0x21e   :  { %12076 = vst [vmem:[#allocation368_spill] sm:$0xff] %v7559_v30  ;;  %v7561_v50 = vpop.permute.xlu0 %1280 }
 0x21f   :  { %12077 = vst [vmem:[#allocation369_spill] sm:$0xff] %v7561_v50  ;;  %1472 = vrot.lane.b32.xlu1 %v12078_v52, %s5381_s21  ;;  %v12086_v50 = vld [vmem:[#allocation171_spill] sm:$0xff]  ;;  %v12087_v52 = vld [vmem:[#allocation173_spill] sm:$0xff] }
 0x220   :  { %1470 = vrot.lane.b32.xlu0 %v12079_v21, %s5381_s21 }
 0x221   :  { %v7567_v0 = vpop.permute.xlu1 %1286 }
 0x222   :  { %12080 = vst [vmem:[#allocation370_spill] sm:$0xff] %v7567_v0  ;;  %v7569_v5 = vpop.permute.xlu0 %1284 }
 0x223   :  { %12081 = vst [vmem:[#allocation371_spill] sm:$0xff] %v7569_v5  ;;  %1476 = vrot.lane.b32.xlu1 %v12082_v33, %s5381_s21  ;;  %v12090_v5 = vld [vmem:[#allocation175_spill] sm:$0xff]  ;;  %v12091_v33 = vld [vmem:[#allocation177_spill] sm:$0xff] }
 0x224   :  { %1474 = vrot.lane.b32.xlu0 %v12083_v45, %s5381_s21 }
 0x225   :  { %v7575_v60 = vpop.permute.xlu1 %1290 }
 0x226   :  { %12084 = vst [vmem:[#allocation372_spill] sm:$0xff] %v7575_v60  ;;  %v7577_v30 = vpop.permute.xlu0 %1288 }
 0x227   :  { %12085 = vst [vmem:[#allocation373_spill] sm:$0xff] %v7577_v30  ;;  %1480 = vrot.lane.b32.xlu1 %v12086_v50, %s5381_s21  ;;  %v12094_v30 = vld [vmem:[#allocation179_spill] sm:$0xff]  ;;  %v12095_v50 = vld [vmem:[#allocation181_spill] sm:$0xff] }
 0x228   :  { %1478 = vrot.lane.b32.xlu0 %v12087_v52, %s5381_s21 }
 0x229   :  { %v7583_v21 = vpop.permute.xlu1 %1294 }
 0x22a   :  { %12088 = vst [vmem:[#allocation374_spill] sm:$0xff] %v7583_v21  ;;  %v7585_v0 = vpop.permute.xlu0 %1292 }
 0x22b   :  { %12089 = vst [vmem:[#allocation375_spill] sm:$0xff] %v7585_v0  ;;  %1484 = vrot.lane.b32.xlu1 %v12090_v5, %s5381_s21  ;;  %v12098_v0 = vld [vmem:[#allocation183_spill] sm:$0xff]  ;;  %v12099_v5 = vld [vmem:[#allocation185_spill] sm:$0xff] }
 0x22c   :  { %1482 = vrot.lane.b32.xlu0 %v12091_v33, %s5381_s21 }
 0x22d   :  { %v7591_v45 = vpop.permute.xlu1 %1298 }
 0x22e   :  { %12092 = vst [vmem:[#allocation376_spill] sm:$0xff] %v7591_v45  ;;  %v7593_v60 = vpop.permute.xlu0 %1296 }
 0x22f   :  { %12093 = vst [vmem:[#allocation377_spill] sm:$0xff] %v7593_v60  ;;  %1488 = vrot.lane.b32.xlu1 %v12094_v30, %s5381_s21  ;;  %v12102_v60 = vld [vmem:[#allocation187_spill] sm:$0xff]  ;;  %v12103_v30 = vld [vmem:[#allocation189_spill] sm:$0xff] }
 0x230   :  { %1486 = vrot.lane.b32.xlu0 %v12095_v50, %s5381_s21 }
 0x231   :  { %v7599_v52 = vpop.permute.xlu1 %1302 }
 0x232   :  { %12096 = vst [vmem:[#allocation378_spill] sm:$0xff] %v7599_v52  ;;  %v7601_v21 = vpop.permute.xlu0 %1300 }
 0x233   :  { %12097 = vst [vmem:[#allocation379_spill] sm:$0xff] %v7601_v21  ;;  %1492 = vrot.lane.b32.xlu1 %v12098_v0, %s5381_s21  ;;  %v12106_v21 = vld [vmem:[#allocation191_spill] sm:$0xff]  ;;  %v12107_v0 = vld [vmem:[#allocation192_spill] sm:$0xff] }
 0x234   :  { %1490 = vrot.lane.b32.xlu0 %v12099_v5, %s5381_s21 }
 0x235   :  { %v7607_v33 = vpop.permute.xlu1 %1306 }
 0x236   :  { %12100 = vst [vmem:[#allocation380_spill] sm:$0xff] %v7607_v33  ;;  %v7609_v45 = vpop.permute.xlu0 %1304  ;;  %v1437_v33 = vrot.slane %v7071_v32, 2 }
 0x237   :  { %12101 = vst [vmem:[#allocation381_spill] sm:$0xff] %v7609_v45  ;;  %1496 = vrot.lane.b32.xlu1 %v12102_v60, %s5381_s21  ;;  %v12108_v45 = vmax.f32 %v7324_v38, 0.0  ;;  %v1436_v60 = vrot.slane %v7075_v28, 2 }
 0x238   :  { %1494 = vrot.lane.b32.xlu0 %v12103_v30, %s5381_s21 }
 0x239   :  { %v7615_v50 = vpop.permute.xlu1 %1310  ;;  %v1439_v5 = vrot.slane %v12108_v45, 2  ;;  %v7641_v38 = vsel %vm683_vm1, %v1436_v60, %v1437_v33 }
 0x23a   :  { %12104 = vst [vmem:[#allocation382_spill] sm:$0xff] %v7615_v50  ;;  %v7617_v52 = vpop.permute.xlu0 %1308  ;;  %v12111_v50 = vld [vmem:[#allocation194_spill] sm:$0xff]  ;;  %12115 = vst [vmem:[#allocation386_spill] sm:$0xff] %v7641_v38 }
 0x23b   :  { %12105 = vst [vmem:[#allocation383_spill] sm:$0xff] %v7617_v52  ;;  %1500 = vrot.lane.b32.xlu1 %v12106_v21, %s5381_s21  ;;  %v12112_v52 = vld [vmem:[#allocation195_spill] sm:$0xff]  ;;  %v7636_v21 = vsel %vm683_vm1, %v1437_v33, %v1439_v5  ;;  %v12119_v5 = vld [vmem:[#allocation198_spill] sm:$0xff] }
 0x23c   :  { %1498 = vrot.lane.b32.xlu0 %v12107_v0, %s5381_s21  ;;  %12113 = vst [vmem:[#allocation194_spill] sm:$0xff] %v7636_v21 }
 0x23d   :  { %v7626_v57 = vpop.permute.xlu1 %1314 }
 0x23e   :  { %12109 = vst [vmem:[#allocation384_spill] sm:$0xff] %v7626_v57  ;;  %v7629_v30 = vpop.permute.xlu0 %1312 }
 0x23f   :  { %12110 = vst [vmem:[#allocation385_spill] sm:$0xff] %v7629_v30  ;;  %1504 = vrot.lane.b32.xlu1 %v12111_v50, %s5381_s21 }
 0x240   :  { %1502 = vrot.lane.b32.xlu0 %v12112_v52, %s5381_s21 }
 0x241   :  { %v7638_v0 = vpop.permute.xlu1 %1318 }
 0x242   :  { %12114 = vst [vmem:[#allocation195_spill] sm:$0xff] %v7638_v0  ;;  %v7643_v45 = vpop.permute.xlu0 %1316  ;;  %v12120_v0 = vld [vmem:[#allocation199_spill] sm:$0xff] }
 0x243   :  { %12116 = vst [vmem:[#allocation387_spill] sm:$0xff] %v7643_v45  ;;  %1508 = vrot.lane.b32.xlu1 %v7636_v21, %s5381_s21  ;;  %v12123_v45 = vld [vmem:[#allocation201_spill] sm:$0xff]  ;;  %v12124_v21 = vld [vmem:[#allocation202_spill] sm:$0xff] }
 0x244   :  { %1506 = vrot.lane.b32.xlu0 %v7641_v38, %s5381_s21 }
 0x245   :  { %v7649_v30 = vpop.permute.xlu1 %1322 }
 0x246   :  { %12117 = vst [vmem:[#allocation388_spill] sm:$0xff] %v7649_v30  ;;  %v7651_v57 = vpop.permute.xlu0 %1320 }
 0x247   :  { %12118 = vst [vmem:[#allocation389_spill] sm:$0xff] %v7651_v57  ;;  %1512 = vrot.lane.b32.xlu1 %v12119_v5, %s5381_s21  ;;  %v12127_v57 = vld [vmem:[#allocation204_spill] sm:$0xff]  ;;  %v12128_v5 = vld [vmem:[#allocation205_spill] sm:$0xff] }
 0x248   :  { %1510 = vrot.lane.b32.xlu0 %v12120_v0, %s5381_s21 }
 0x249   :  { %v7657_v60 = vpop.permute.xlu1 %1326 }
 0x24a   :  { %12121 = vst [vmem:[#allocation198_spill] sm:$0xff] %v7657_v60  ;;  %v7659_v33 = vpop.permute.xlu0 %1324 }
 0x24b   :  { %12122 = vst [vmem:[#allocation199_spill] sm:$0xff] %v7659_v33  ;;  %1516 = vrot.lane.b32.xlu1 %v12123_v45, %s5381_s21  ;;  %v12131_v33 = vld [vmem:[#allocation207_spill] sm:$0xff]  ;;  %v12132_v45 = vld [vmem:[#allocation208_spill] sm:$0xff] }
 0x24c   :  { %1514 = vrot.lane.b32.xlu0 %v12124_v21, %s5381_s21 }
 0x24d   :  { %v7665_v38 = vpop.permute.xlu1 %1330 }
 0x24e   :  { %12125 = vst [vmem:[#allocation390_spill] sm:$0xff] %v7665_v38  ;;  %v7667_v30 = vpop.permute.xlu0 %1328 }
 0x24f   :  { %12126 = vst [vmem:[#allocation391_spill] sm:$0xff] %v7667_v30  ;;  %1520 = vrot.lane.b32.xlu1 %v12127_v57, %s5381_s21  ;;  %v12135_v30 = vld [vmem:[#allocation210_spill] sm:$0xff]  ;;  %v12136_v57 = vld [vmem:[#allocation211_spill] sm:$0xff] }
 0x250   :  { %1518 = vrot.lane.b32.xlu0 %v12128_v5, %s5381_s21 }
 0x251   :  { %v7673_v0 = vpop.permute.xlu1 %1334 }
 0x252   :  { %12129 = vst [vmem:[#allocation392_spill] sm:$0xff] %v7673_v0  ;;  %v7675_v60 = vpop.permute.xlu0 %1332 }
 0x253   :  { %12130 = vst [vmem:[#allocation393_spill] sm:$0xff] %v7675_v60  ;;  %1524 = vrot.lane.b32.xlu1 %v12131_v33, %s5381_s21  ;;  %v12139_v60 = vld [vmem:[#allocation213_spill] sm:$0xff]  ;;  %v12140_v33 = vld [vmem:[#allocation214_spill] sm:$0xff] }
 0x254   :  { %1522 = vrot.lane.b32.xlu0 %v12132_v45, %s5381_s21 }
 0x255   :  { %v7681_v21 = vpop.permute.xlu1 %1338 }
 0x256   :  { %12133 = vst [vmem:[#allocation394_spill] sm:$0xff] %v7681_v21  ;;  %v7683_v38 = vpop.permute.xlu0 %1336 }
 0x257   :  { %12134 = vst [vmem:[#allocation395_spill] sm:$0xff] %v7683_v38  ;;  %1528 = vrot.lane.b32.xlu1 %v12135_v30, %s5381_s21  ;;  %v12143_v38 = vld [vmem:[#allocation216_spill] sm:$0xff]  ;;  %v12144_v30 = vld [vmem:[#allocation217_spill] sm:$0xff] }
 0x258   :  { %1526 = vrot.lane.b32.xlu0 %v12136_v57, %s5381_s21 }
 0x259   :  { %v7689_v5 = vpop.permute.xlu1 %1342 }
 0x25a   :  { %12137 = vst [vmem:[#allocation396_spill] sm:$0xff] %v7689_v5  ;;  %v7691_v0 = vpop.permute.xlu0 %1340 }
 0x25b   :  { %12138 = vst [vmem:[#allocation397_spill] sm:$0xff] %v7691_v0  ;;  %1532 = vrot.lane.b32.xlu1 %v12139_v60, %s5381_s21  ;;  %v12147_v0 = vld [vmem:[#allocation219_spill] sm:$0xff]  ;;  %v12148_v60 = vld [vmem:[#allocation220_spill] sm:$0xff] }
 0x25c   :  { %1530 = vrot.lane.b32.xlu0 %v12140_v33, %s5381_s21 }
 0x25d   :  { %v7697_v45 = vpop.permute.xlu1 %1346 }
 0x25e   :  { %12141 = vst [vmem:[#allocation398_spill] sm:$0xff] %v7697_v45  ;;  %v7699_v21 = vpop.permute.xlu0 %1344 }
 0x25f   :  { %12142 = vst [vmem:[#allocation399_spill] sm:$0xff] %v7699_v21  ;;  %1536 = vrot.lane.b32.xlu1 %v12143_v38, %s5381_s21  ;;  %v12151_v21 = vld [vmem:[#allocation222_spill] sm:$0xff]  ;;  %v12152_v38 = vld [vmem:[#allocation223_spill] sm:$0xff] }
 0x260   :  { %1534 = vrot.lane.b32.xlu0 %v12144_v30, %s5381_s21 }
 0x261   :  { %v7705_v57 = vpop.permute.xlu1 %1350 }
 0x262   :  { %12145 = vst [vmem:[#allocation400_spill] sm:$0xff] %v7705_v57  ;;  %v7707_v5 = vpop.permute.xlu0 %1348 }
 0x263   :  { %12146 = vst [vmem:[#allocation401_spill] sm:$0xff] %v7707_v5  ;;  %1540 = vrot.lane.b32.xlu1 %v12147_v0, %s5381_s21  ;;  %v12155_v5 = vld [vmem:[#allocation225_spill] sm:$0xff]  ;;  %v12156_v0 = vld [vmem:[#allocation226_spill] sm:$0xff] }
 0x264   :  { %1538 = vrot.lane.b32.xlu0 %v12148_v60, %s5381_s21 }
 0x265   :  { %v7713_v33 = vpop.permute.xlu1 %1354 }
 0x266   :  { %12149 = vst [vmem:[#allocation402_spill] sm:$0xff] %v7713_v33  ;;  %v7715_v45 = vpop.permute.xlu0 %1352 }
 0x267   :  { %12150 = vst [vmem:[#allocation403_spill] sm:$0xff] %v7715_v45  ;;  %1544 = vrot.lane.b32.xlu1 %v12151_v21, %s5381_s21  ;;  %v12159_v45 = vld [vmem:[#allocation229_spill] sm:$0xff] }
 0x268   :  { %1542 = vrot.lane.b32.xlu0 %v12152_v38, %s5381_s21 }
 0x269   :  { %v7721_v30 = vpop.permute.xlu1 %1358 }
 0x26a   :  { %12153 = vst [vmem:[#allocation404_spill] sm:$0xff] %v7721_v30  ;;  %v7723_v57 = vpop.permute.xlu0 %1356 }
 0x26b   :  { %12154 = vst [vmem:[#allocation405_spill] sm:$0xff] %v7723_v57  ;;  %1548 = vrot.lane.b32.xlu1 %v12155_v5, %s5381_s21  ;;  %v12162_v57 = vld [vmem:[#allocation232_spill] sm:$0xff] }
 0x26c   :  { %1546 = vrot.lane.b32.xlu0 %v12156_v0, %s5381_s21 }
 0x26d   :  { %v7729_v60 = vpop.permute.xlu1 %1362 }
 0x26e   :  { %12157 = vst [vmem:[#allocation406_spill] sm:$0xff] %v7729_v60  ;;  %v7731_v33 = vpop.permute.xlu0 %1360 }
 0x26f   :  { %12158 = vst [vmem:[#allocation407_spill] sm:$0xff] %v7731_v33  ;;  %1552 = vrot.lane.b32.xlu1 %v6862_v61, %s5381_s21 }
 0x270   :  { %1550 = vrot.lane.b32.xlu0 %v12159_v45, %s5381_s21 }
 0x271   :  { %v7737_v38 = vpop.permute.xlu1 %1366 }
 0x272   :  { %12160 = vst [vmem:[#allocation408_spill] sm:$0xff] %v7737_v38  ;;  %v7739_v30 = vpop.permute.xlu0 %1364 }
 0x273   :  { %12161 = vst [vmem:[#allocation409_spill] sm:$0xff] %v7739_v30  ;;  %1556 = vrot.lane.b32.xlu1 %v6880_v6, %s5381_s21 }
 0x274   :  { %1554 = vrot.lane.b32.xlu0 %v12162_v57, %s5381_s21 }
 0x275   :  { %v7745_v0 = vpop.permute.xlu1 %1370 }
 0x276   :  { %12163 = vst [vmem:[#allocation410_spill] sm:$0xff] %v7745_v0  ;;  %v7747_v60 = vpop.permute.xlu0 %1368  ;;  %v1442_v0 = vrot.slane %v7209_v18, 2 }
 0x277   :  { %12164 = vst [vmem:[#allocation411_spill] sm:$0xff] %v7747_v60  ;;  %1560 = vrot.lane.b32.xlu1 %v6898_v48, %s5381_s21  ;;  %v12165_v60 = vmax.f32 %v7468_v41, 0.0  ;;  %v1441_v48 = vrot.slane %v7213_v9, 2 }
 0x278   :  { %1558 = vrot.lane.b32.xlu0 %v6906_v23, %s5381_s21 }
 0x279   :  { %v7753_v33 = vpop.permute.xlu1 %1448  ;;  %v1444_v30 = vrot.slane %v12165_v60, 2  ;;  %v7779_v41 = vsel %vm683_vm1, %v1441_v48, %v1442_v0 }
 0x27a   :  { %v7755_v38 = vpop.permute.xlu0 %1446  ;;  %12167 = vst [vmem:[#allocation413_spill] sm:$0xff] %v7779_v41 }
 0x27b   :  { %1564 = vrot.lane.b32.xlu1 %v6916_v59, %s5381_s21  ;;  %v7774_v59 = vsel %vm683_vm1, %v1442_v0, %v1444_v30 }
 0x27c   :  { %1562 = vrot.lane.b32.xlu0 %v6924_v22, %s5381_s21  ;;  %12166 = vst [vmem:[#allocation412_spill] sm:$0xff] %v7774_v59 }
 0x27d   :  { %v7764_v57 = vpop.permute.xlu1 %1452 }
 0x27e   :  { %v7767_v23 = vpop.permute.xlu0 %1450 }
 0x27f   :  { %1568 = vrot.lane.b32.xlu1 %v6934_v7, %s5381_s21 }
 0x280   :  { %1566 = vrot.lane.b32.xlu0 %v6939_v46, %s5381_s21 }
 0x281   :  { %v7776_v22 = vpop.permute.xlu1 %1456 }
 0x282   :  { %v7781_v60 = vpop.permute.xlu0 %1454 }
 0x283   :  { %1572 = vrot.lane.b32.xlu1 %v7774_v59, %s5381_s21 }
 0x284   :  { %1570 = vrot.lane.b32.xlu0 %v7779_v41, %s5381_s21 }
 0x285   :  { %v7787_v9 = vpop.permute.xlu1 %1460 }
 0x286   :  { %v7789_v18 = vpop.permute.xlu0 %1458 }
 0x287   :  { %1644 = vrot.lane.b32.xlu1 %v5472_v20, %s5382_s22 }
 0x288   :  { %1642 = vrot.lane.b32.xlu0 %v5483_v25, %s5382_s22 }
 0x289   :  { %v7795_v30 = vpop.permute.xlu1 %1464 }
 0x28a   :  { %v7797_v48 = vpop.permute.xlu0 %1462 }
 0x28b   :  { %1648 = vrot.lane.b32.xlu1 %v5496_v29, %s5382_s22 }
 0x28c   :  { %1646 = vrot.lane.b32.xlu0 %v5508_v36, %s5382_s22 }
 0x28d   :  { %v7803_v0 = vpop.permute.xlu1 %1468 }
 0x28e   :  { %v7805_v41 = vpop.permute.xlu0 %1466 }
 0x28f   :  { %1652 = vrot.lane.b32.xlu1 %v5530_v43, %s5382_s22 }
 0x290   :  { %1650 = vrot.lane.b32.xlu0 %v5545_v49, %s5382_s22 }
 0x291   :  { %v7811_v59 = vpop.permute.xlu1 %1472 }
 0x292   :  { %v7813_v46 = vpop.permute.xlu0 %1470 }
 0x293   :  { %1656 = vrot.lane.b32.xlu1 %v5552_v51, %s5382_s22 }
 0x294   :  { %1654 = vrot.lane.b32.xlu0 %v5567_v58, %s5382_s22 }
 0x295   :  { %v7819_v7 = vpop.permute.xlu1 %1476 }
 0x296   :  { %12168 = vst [vmem:[#allocation414_spill] sm:$0xff] %v7819_v7  ;;  %v7821_v6 = vpop.permute.xlu0 %1474 }
 0x297   :  { %12169 = vst [vmem:[#allocation415_spill] sm:$0xff] %v7821_v6  ;;  %1660 = vrot.lane.b32.xlu1 %v5590_v1, %s5382_s22 }
 0x298   :  { %1658 = vrot.lane.b32.xlu0 %v5597_v12, %s5382_s22 }
 0x299   :  { %v7827_v45 = vpop.permute.xlu1 %1480 }
 0x29a   :  { %12170 = vst [vmem:[#allocation416_spill] sm:$0xff] %v7827_v45  ;;  %v7829_v61 = vpop.permute.xlu0 %1478  ;;  %v2761_v45 = vld [vmem:[%s11119_s1 + $0x8] sm:$0xff] }
 0x29b   :  { %12171 = vst [vmem:[#allocation417_spill] sm:$0xff] %v7829_v61  ;;  %1664 = vrot.lane.b32.xlu1 %v5623_v27, %s5382_s22  ;;  %v2760_v61 = vld [vmem:[%s11119_s1] sm:$0xff] }
 0x29c   :  { %1662 = vrot.lane.b32.xlu0 %v5635_v35, %s5382_s22  ;;  %v5316_v7 = vpack.c.bf16 %v2761_v45, %v2760_v61 }
 0x29d   :  { %v7835_v5 = vpop.permute.xlu1 %1484 }
 0x29e   :  { %12172 = vst [vmem:[#allocation418_spill] sm:$0xff] %v7835_v5  ;;  %v7837_v21 = vpop.permute.xlu0 %1482  ;;  %5317 = vmatprep.subr.bf16.mxu0 %v5316_v7  ;;  %5324 = vmatprep.subr.bf16.mxu1 %v5316_v7 }
 0x29f   :  { %12173 = vst [vmem:[#allocation419_spill] sm:$0xff] %v7837_v21  ;;  %1668 = vrot.lane.b32.xlu1 %v5642_v39, %s5382_s22  ;;  %5319 = vmatpush3.bf16.msra.mxu0 %v5316_v7  ;;  %v2762_v21 = vld [vmem:[%s11119_s1 + $0x10] sm:$0xff] }
 0x2a0   :  { %1666 = vrot.lane.b32.xlu0 %v5657_v55, %s5382_s22  ;;  %v2763_v55 = vld [vmem:[%s11119_s1 + $0x18] sm:$0xff]  ;;  %5327 = vmatpush3.bf16.msra.mxu1 %v5316_v7 }
 0x2a1   :  { %v7849_v6 = vpop.permute.xlu1 %1488  ;;  %v5320_v61 = vpack.c.bf16 %v2763_v55, %v2762_v21  ;;  %v2764_v55 = vld [vmem:[%s11119_s1 + $0x20] sm:$0xf]  ;;  %s5383_s1 = smov 28  }
 0x2a2   :  { %12174 = vst [vmem:[#allocation420_spill] sm:$0xff] %v7849_v6  ;;  %v7851_v5 = vpop.permute.xlu0 %1486 }
 0x2a3   :  { %12175 = vst [vmem:[#allocation421_spill] sm:$0xff] %v7851_v5  ;;  %1672 = vrot.lane.b32.xlu1 %v5680_v13, %s5382_s22  ;;  %5321 = vmatprep.subr.bf16.mxu0 %v5320_v61  ;;  %v12270_v13 = vld [vmem:[#allocation358_spill] sm:$0xff] }
 0x2a4   :  { %1670 = vrot.lane.b32.xlu0 %v5687_v24, %s5382_s22  ;;  %5323 = vmatpush3.bf16.msra.mxu0 %v5320_v61 }
 0x2a5   :  { %v7863_v6 = vpop.permute.xlu1 %1492  ;;  %5325 = vmatprep.subr.bf16.mxu1 %v5320_v61  ;;  %5218 = vmatprep.subr.msk.mxu0 %vm2958_vm2, %v2764_v55 }
 0x2a6   :  { %12176 = vst [vmem:[#allocation422_spill] sm:$0xff] %v7863_v6  ;;  %v7865_v45 = vpop.permute.xlu0 %1490  ;;  %5328 = vmatpush3.bf16.msra.mxu1 %v5320_v61  ;;  %v12262_v6 = vld [vmem:[#allocation48_spill] sm:$0xff] }
 0x2a7   :  { %12177 = vst [vmem:[#allocation423_spill] sm:$0xff] %v7865_v45  ;;  %1676 = vrot.lane.b32.xlu1 %v5713_v40, %s5382_s22  ;;  %5326 = vmatprep.subr.msk.mxu1 %vm2958_vm2, %v2764_v55  ;;  %v12261_v45 = vld [vmem:[#allocation8_spill] sm:$0xff] }
 0x2a8   :  { %1674 = vrot.lane.b32.xlu0 %v5725_v44, %s5382_s22  ;;  %5219 = vmatpush3.msk.msra.mxu0 %vm2958_vm2, %v2764_v55 }
 0x2a9   :  { %v7871_v5 = vpop.permute.xlu1 %1496 }
 0x2aa   :  { %12178 = vst [vmem:[#allocation424_spill] sm:$0xff] %v7871_v5  ;;  %v7873_v24 = vpop.permute.xlu0 %1494  ;;  %5329 = vmatpush3.msk.msra.mxu1 %vm2958_vm2, %v2764_v55  ;;  %vm3739_vm2 = vcmask 1047559  }
 0x2ab   :  { %12179 = vst [vmem:[#allocation425_spill] sm:$0xff] %v7873_v24  ;;  %1680 = vrot.lane.b32.xlu1 %v5732_v34, %s5382_s22 }
 0x2ac   :  { %1678 = vrot.lane.b32.xlu0 %v5747_v54, %s5382_s22  ;;  %v12263_v54 = vld [vmem:[#allocation128_spill] sm:$0xff] }
 0x2ad   :  { %v7882_v7 = vpop.permute.xlu1 %1500 }
 0x2ae   :  { %12180 = vst [vmem:[#allocation426_spill] sm:$0xff] %v7882_v7  ;;  %v7884_v21 = vpop.permute.xlu0 %1498 }
 0x2af   :  { %12181 = vst [vmem:[#allocation427_spill] sm:$0xff] %v7884_v21  ;;  %1684 = vrot.lane.b32.xlu1 %v5770_v2, %s5382_s22  ;;  %v12250_v21 = vld [vmem:[#allocation42_spill] sm:$0xff] }
 0x2b0   :  { %1682 = vrot.lane.b32.xlu0 %v5777_v11, %s5382_s22  ;;  %v12256_v11 = vld [vmem:[#allocation191_spill] sm:$0xff] }
 0x2b1   :  { %v7890_v61 = vpop.permute.xlu1 %1504 }
 0x2b2   :  { %12182 = vst [vmem:[#allocation428_spill] sm:$0xff] %v7890_v61  ;;  %v7892_v24 = vpop.permute.xlu0 %1502 }
 0x2b3   :  { %12183 = vst [vmem:[#allocation429_spill] sm:$0xff] %v7892_v24  ;;  %1848 = vrot.lane.b32.xlu1 %v11930_v47, %s5383_s1 }
 0x2b4   :  { %1846 = vrot.lane.b32.xlu0 %v11931_v63, %s5383_s1 }
 0x2b5   :  { %v7898_v7 = vpop.permute.xlu1 %1508 }
 0x2b6   :  { %12184 = vst [vmem:[#allocation430_spill] sm:$0xff] %v7898_v7  ;;  %v7900_v55 = vpop.permute.xlu0 %1506 }
 0x2b7   :  { %12185 = vst [vmem:[#allocation431_spill] sm:$0xff] %v7900_v55  ;;  %2050 = vrot.lane.b32.xlu1 %v12058_v15, %s5384_s7 }
 0x2b8   :  { %2048 = vrot.lane.b32.xlu0 %v12059_v4, %s5384_s7 }
 0x2b9   :  { %v7906_v61 = vpop.permute.xlu1 %1512 }
 0x2ba   :  { %12186 = vst [vmem:[#allocation432_spill] sm:$0xff] %v7906_v61  ;;  %v7908_v24 = vpop.permute.xlu0 %1510  ;;  %v12249_v61 = vld [vmem:[#allocation189_spill] sm:$0xff] }
 0x2bb   :  { %12187 = vst [vmem:[#allocation433_spill] sm:$0xff] %v7908_v24  ;;  %1852 = vrot.lane.b32.xlu1 %v11934_v56, %s5383_s1  ;;  %v12248_v24 = vld [vmem:[#allocation187_spill] sm:$0xff] }
 0x2bc   :  { %1850 = vrot.lane.b32.xlu0 %v11935_v37, %s5383_s1 }
 0x2bd   :  { %v7914_v63 = vpop.permute.xlu1 %1516 }
 0x2be   :  { %12188 = vst [vmem:[#allocation434_spill] sm:$0xff] %v7914_v63  ;;  %v7916_v47 = vpop.permute.xlu0 %1514 }
 0x2bf   :  { %12189 = vst [vmem:[#allocation435_spill] sm:$0xff] %v7916_v47  ;;  %2054 = vrot.lane.b32.xlu1 %v12062_v42, %s5384_s7  ;;  %v12246_v47 = vld [vmem:[#allocation47_spill] sm:$0xff] }
 0x2c0   :  { %2052 = vrot.lane.b32.xlu0 %v12063_v31, %s5384_s7 }
 0x2c1   :  { %v7922_v4 = vpop.permute.xlu1 %1520 }
 0x2c2   :  { %12190 = vst [vmem:[#allocation436_spill] sm:$0xff] %v7922_v4  ;;  %v7924_v15 = vpop.permute.xlu0 %1518 }
 0x2c3   :  { %12191 = vst [vmem:[#allocation437_spill] sm:$0xff] %v7924_v15  ;;  %1856 = vrot.lane.b32.xlu1 %v11938_v17, %s5383_s1  ;;  %v12244_v15 = vld [vmem:[#allocation39_spill] sm:$0xff] }
 0x2c4   :  { %1854 = vrot.lane.b32.xlu0 %v11939_v8, %s5383_s1 }
 0x2c5   :  { %v7930_v56 = vpop.permute.xlu1 %1524 }
 0x2c6   :  { %12192 = vst [vmem:[#allocation438_spill] sm:$0xff] %v7930_v56  ;;  %v7932_v37 = vpop.permute.xlu0 %1522 }
 0x2c7   :  { %12193 = vst [vmem:[#allocation439_spill] sm:$0xff] %v7932_v37  ;;  %2058 = vrot.lane.b32.xlu1 %v12066_v3, %s5384_s7  ;;  %v12242_v37 = vld [vmem:[#allocation183_spill] sm:$0xff] }
 0x2c8   :  { %2056 = vrot.lane.b32.xlu0 %v12067_v62, %s5384_s7 }
 0x2c9   :  { %v7938_v42 = vpop.permute.xlu1 %1528 }
 0x2ca   :  { %12194 = vst [vmem:[#allocation440_spill] sm:$0xff] %v7938_v42  ;;  %v7940_v31 = vpop.permute.xlu0 %1526 }
 0x2cb   :  { %12195 = vst [vmem:[#allocation441_spill] sm:$0xff] %v7940_v31  ;;  %1860 = vrot.lane.b32.xlu1 %v11942_v53, %s5383_s1  ;;  %v12240_v31 = vld [vmem:[#allocation43_spill] sm:$0xff] }
 0x2cc   :  { %1858 = vrot.lane.b32.xlu0 %v11943_v26, %s5383_s1 }
 0x2cd   :  { %v7946_v17 = vpop.permute.xlu1 %1532 }
 0x2ce   :  { %12196 = vst [vmem:[#allocation442_spill] sm:$0xff] %v7946_v17  ;;  %v7948_v8 = vpop.permute.xlu0 %1530 }
 0x2cf   :  { %12197 = vst [vmem:[#allocation443_spill] sm:$0xff] %v7948_v8  ;;  %2062 = vrot.lane.b32.xlu1 %v12070_v19, %s5384_s7  ;;  %v12202_v8 = vld [vmem:[#allocation159_spill] sm:$0xff]  ;;  %v12203_v19 = vld [vmem:[#allocation161_spill] sm:$0xff] }
 0x2d0   :  { %2060 = vrot.lane.b32.xlu0 %v12071_v14, %s5384_s7 }
 0x2d1   :  { %v7954_v62 = vpop.permute.xlu1 %1536 }
 0x2d2   :  { %12198 = vst [vmem:[#allocation444_spill] sm:$0xff] %v7954_v62  ;;  %v7956_v3 = vpop.permute.xlu0 %1534 }
 0x2d3   :  { %12199 = vst [vmem:[#allocation445_spill] sm:$0xff] %v7956_v3  ;;  %1864 = vrot.lane.b32.xlu1 %v11946_v10, %s5383_s1  ;;  %v12206_v3 = vld [vmem:[#allocation22_spill] sm:$0xff]  ;;  %v12207_v10 = vld [vmem:[#allocation24_spill] sm:$0xff] }
 0x2d4   :  { %1862 = vrot.lane.b32.xlu0 %v11947_v16, %s5383_s1 }
 0x2d5   :  { %v7962_v26 = vpop.permute.xlu1 %1540 }
 0x2d6   :  { %12200 = vst [vmem:[#allocation446_spill] sm:$0xff] %v7962_v26  ;;  %v7964_v53 = vpop.permute.xlu0 %1538 }
 0x2d7   :  { %12201 = vst [vmem:[#allocation447_spill] sm:$0xff] %v7964_v53  ;;  %2066 = vrot.lane.b32.xlu1 %v12202_v8, %s5384_s7  ;;  %v12210_v53 = vld [vmem:[#allocation163_spill] sm:$0xff]  ;;  %v12211_v8 = vld [vmem:[#allocation165_spill] sm:$0xff] }
 0x2d8   :  { %2064 = vrot.lane.b32.xlu0 %v12203_v19, %s5384_s7 }
 0x2d9   :  { %v7970_v14 = vpop.permute.xlu1 %1544 }
 0x2da   :  { %12204 = vst [vmem:[#allocation159_spill] sm:$0xff] %v7970_v14  ;;  %v7972_v62 = vpop.permute.xlu0 %1542 }
 0x2db   :  { %12205 = vst [vmem:[#allocation161_spill] sm:$0xff] %v7972_v62  ;;  %1868 = vrot.lane.b32.xlu1 %v12206_v3, %s5383_s1  ;;  %v12214_v62 = vld [vmem:[#allocation26_spill] sm:$0xff]  ;;  %v12215_v3 = vld [vmem:[#allocation28_spill] sm:$0xff] }
 0x2dc   :  { %1866 = vrot.lane.b32.xlu0 %v12207_v10, %s5383_s1 }
 0x2dd   :  { %v7978_v16 = vpop.permute.xlu1 %1548 }
 0x2de   :  { %12208 = vst [vmem:[#allocation22_spill] sm:$0xff] %v7978_v16  ;;  %v7980_v26 = vpop.permute.xlu0 %1546 }
 0x2df   :  { %12209 = vst [vmem:[#allocation24_spill] sm:$0xff] %v7980_v26  ;;  %2070 = vrot.lane.b32.xlu1 %v12210_v53, %s5384_s7  ;;  %v12218_v26 = vld [vmem:[#allocation167_spill] sm:$0xff]  ;;  %v12219_v53 = vld [vmem:[#allocation169_spill] sm:$0xff] }
 0x2e0   :  { %2068 = vrot.lane.b32.xlu0 %v12211_v8, %s5384_s7 }
 0x2e1   :  { %v7986_v19 = vpop.permute.xlu1 %1552 }
 0x2e2   :  { %12212 = vst [vmem:[#allocation163_spill] sm:$0xff] %v7986_v19  ;;  %v7988_v14 = vpop.permute.xlu0 %1550 }
 0x2e3   :  { %12213 = vst [vmem:[#allocation165_spill] sm:$0xff] %v7988_v14  ;;  %1872 = vrot.lane.b32.xlu1 %v12214_v62, %s5383_s1  ;;  %v12222_v14 = vld [vmem:[#allocation31_spill] sm:$0xff]  ;;  %v12223_v62 = vld [vmem:[#allocation32_spill] sm:$0xff] }
 0x2e4   :  { %1870 = vrot.lane.b32.xlu0 %v12215_v3, %s5383_s1 }
 0x2e5   :  { %v7994_v10 = vpop.permute.xlu1 %1556 }
 0x2e6   :  { %12216 = vst [vmem:[#allocation26_spill] sm:$0xff] %v7994_v10  ;;  %v7996_v16 = vpop.permute.xlu0 %1554 }
 0x2e7   :  { %12217 = vst [vmem:[#allocation28_spill] sm:$0xff] %v7996_v16  ;;  %2074 = vrot.lane.b32.xlu1 %v12218_v26, %s5384_s7  ;;  %v12226_v16 = vld [vmem:[#allocation171_spill] sm:$0xff]  ;;  %v12227_v26 = vld [vmem:[#allocation173_spill] sm:$0xff] }
 0x2e8   :  { %2072 = vrot.lane.b32.xlu0 %v12219_v53, %s5384_s7 }
 0x2e9   :  { %v8002_v8 = vpop.permute.xlu1 %1560 }
 0x2ea   :  { %12220 = vst [vmem:[#allocation167_spill] sm:$0xff] %v8002_v8  ;;  %v8004_v19 = vpop.permute.xlu0 %1558 }
 0x2eb   :  { %12221 = vst [vmem:[#allocation169_spill] sm:$0xff] %v8004_v19  ;;  %1876 = vrot.lane.b32.xlu1 %v12222_v14, %s5383_s1  ;;  %v12230_v19 = vld [vmem:[#allocation34_spill] sm:$0xff]  ;;  %v12231_v14 = vld [vmem:[#allocation36_spill] sm:$0xff] }
 0x2ec   :  { %1874 = vrot.lane.b32.xlu0 %v12223_v62, %s5383_s1 }
 0x2ed   :  { %v8010_v3 = vpop.permute.xlu1 %1564 }
 0x2ee   :  { %12224 = vst [vmem:[#allocation31_spill] sm:$0xff] %v8010_v3  ;;  %v8012_v10 = vpop.permute.xlu0 %1562 }
 0x2ef   :  { %12225 = vst [vmem:[#allocation32_spill] sm:$0xff] %v8012_v10  ;;  %2078 = vrot.lane.b32.xlu1 %v12226_v16, %s5384_s7  ;;  %v12234_v10 = vld [vmem:[#allocation175_spill] sm:$0xff]  ;;  %v12235_v16 = vld [vmem:[#allocation177_spill] sm:$0xff] }
 0x2f0   :  { %2076 = vrot.lane.b32.xlu0 %v12227_v26, %s5384_s7 }
 0x2f1   :  { %v8018_v53 = vpop.permute.xlu1 %1568 }
 0x2f2   :  { %12228 = vst [vmem:[#allocation171_spill] sm:$0xff] %v8018_v53  ;;  %v8020_v8 = vpop.permute.xlu0 %1566 }
 0x2f3   :  { %12229 = vst [vmem:[#allocation173_spill] sm:$0xff] %v8020_v8  ;;  %1880 = vrot.lane.b32.xlu1 %v12230_v19, %s5383_s1  ;;  %v12236_v8 = vld [vmem:[#allocation38_spill] sm:$0xff]  ;;  %v12237_v19 = vld [vmem:[#allocation40_spill] sm:$0xff] }
 0x2f4   :  { %1878 = vrot.lane.b32.xlu0 %v12231_v14, %s5383_s1 }
 0x2f5   :  { %v8026_v62 = vpop.permute.xlu1 %1572 }
 0x2f6   :  { %12232 = vst [vmem:[#allocation34_spill] sm:$0xff] %v8026_v62  ;;  %v8028_v3 = vpop.permute.xlu0 %1570 }
 0x2f7   :  { %12233 = vst [vmem:[#allocation36_spill] sm:$0xff] %v8028_v3  ;;  %2082 = vrot.lane.b32.xlu1 %v12234_v10, %s5384_s7  ;;  %v12238_v3 = vld [vmem:[#allocation179_spill] sm:$0xff]  ;;  %v12239_v10 = vld [vmem:[#allocation181_spill] sm:$0xff] }
 0x2f8   :  { %2080 = vrot.lane.b32.xlu0 %v12235_v16, %s5384_s7 }
 0x2f9   :  { %v8034_v26 = vpop.permute.xlu1 %1644 }
 0x2fa   :  { %v8036_v53 = vpop.permute.xlu0 %1642 }
 0x2fb   :  { %1884 = vrot.lane.b32.xlu1 %v12236_v8, %s5383_s1  ;;  %v12241_v8 = vld [vmem:[#allocation44_spill] sm:$0xff] }
 0x2fc   :  { %1882 = vrot.lane.b32.xlu0 %v12237_v19, %s5383_s1 }
 0x2fd   :  { %v8042_v14 = vpop.permute.xlu1 %1648 }
 0x2fe   :  { %v8044_v62 = vpop.permute.xlu0 %1646 }
 0x2ff   :  { %2086 = vrot.lane.b32.xlu1 %v12238_v3, %s5384_s7  ;;  %v12243_v3 = vld [vmem:[#allocation185_spill] sm:$0xff] }
 0x300   :  { %2084 = vrot.lane.b32.xlu0 %v12239_v10, %s5384_s7 }
 0x301   :  { %v8050_v16 = vpop.permute.xlu1 %1652 }
 0x302   :  { %v8052_v17 = vpop.permute.xlu0 %1650 }
 0x303   :  { %1888 = vrot.lane.b32.xlu1 %v12240_v31, %s5383_s1  ;;  %v12245_v31 = vld [vmem:[#allocation41_spill] sm:$0xff] }
 0x304   :  { %1886 = vrot.lane.b32.xlu0 %v12241_v8, %s5383_s1 }
 0x305   :  { %v8058_v19 = vpop.permute.xlu1 %1656 }
 0x306   :  { %v8060_v42 = vpop.permute.xlu0 %1654 }
 0x307   :  { %2090 = vrot.lane.b32.xlu1 %v12242_v37, %s5384_s7  ;;  %v12247_v37 = vld [vmem:[#allocation49_spill] sm:$0xff] }
 0x308   :  { %2088 = vrot.lane.b32.xlu0 %v12243_v3, %s5384_s7 }
 0x309   :  { %v8066_v10 = vpop.permute.xlu1 %1660 }
 0x30a   :  { %v8068_v56 = vpop.permute.xlu0 %1658 }
 0x30b   :  { %1688 = vrot.lane.b32.xlu1 %v12244_v15, %s5382_s22  ;;  %v12252_v15 = vld [vmem:[#allocation52_spill] sm:$0xff] }
 0x30c   :  { %1686 = vrot.lane.b32.xlu0 %v12245_v31, %s5382_s22 }
 0x30d   :  { %v8074_v8 = vpop.permute.xlu1 %1664 }
 0x30e   :  { %v8076_v4 = vpop.permute.xlu0 %1662 }
 0x30f   :  { %1892 = vrot.lane.b32.xlu1 %v12246_v47, %s5383_s1  ;;  %v12251_v47 = vld [vmem:[#allocation45_spill] sm:$0xff] }
 0x310   :  { %1890 = vrot.lane.b32.xlu0 %v12247_v37, %s5383_s1 }
 0x311   :  { %v8082_v3 = vpop.permute.xlu1 %1668 }
 0x312   :  { %v8084_v63 = vpop.permute.xlu0 %1666 }
 0x313   :  { %2094 = vrot.lane.b32.xlu1 %v12248_v24, %s5384_s7  ;;  %v12253_v24 = vld [vmem:[#allocation55_spill] sm:$0xff] }
 0x314   :  { %2092 = vrot.lane.b32.xlu0 %v12249_v61, %s5384_s7 }
 0x315   :  { %v8090_v55 = vpop.permute.xlu1 %1672 }
 0x316   :  { %v8092_v7 = vpop.permute.xlu0 %1670 }
 0x317   :  { %1692 = vrot.lane.b32.xlu1 %v12250_v21, %s5382_s22  ;;  %v12257_v21 = vld [vmem:[#allocation192_spill] sm:$0xff] }
 0x318   :  { %1690 = vrot.lane.b32.xlu0 %v12251_v47, %s5382_s22 }
 0x319   :  { %v8098_v37 = vpop.permute.xlu1 %1676 }
 0x31a   :  { %v8100_v31 = vpop.permute.xlu0 %1674 }
 0x31b   :  { %1896 = vrot.lane.b32.xlu1 %v12252_v15, %s5383_s1  ;;  %v12260_v15 = vld [vmem:[#allocation132_spill] sm:$0xff] }
 0x31c   :  { %1894 = vrot.lane.b32.xlu0 %v12253_v24, %s5383_s1  ;;  %v2242_v24 = vsel %vm2240_vm3, %v12261_v45, %v12260_v15 }
 0x31d   :  { %v8106_v61 = vpop.permute.xlu1 %1680 }
 0x31e   :  { %12254 = vst [vmem:[#allocation175_spill] sm:$0xff] %v8106_v61  ;;  %v8108_v5 = vpop.permute.xlu0 %1678 }
 0x31f   :  { %12255 = vst [vmem:[#allocation177_spill] sm:$0xff] %v8108_v5  ;;  %2098 = vrot.lane.b32.xlu1 %v12256_v11, %s5384_s7  ;;  %v12264_v11 = vld [vmem:[#allocation7_spill] sm:$0xff]  ;;  %v12268_v5 = vld [vmem:[#allocation304_spill] sm:$0xff] }
 0x320   :  { %2096 = vrot.lane.b32.xlu0 %v12257_v21, %s5384_s7  ;;  %v2241_v34 = vsel %vm2240_vm3, %v12264_v11, %v12263_v54  ;;  %v12265_v21 = vld [vmem:[#allocation235_spill] sm:$0xff] }
 0x321   :  { %v8114_v47 = vpop.permute.xlu1 %1684  ;;  %v2307_v44 = vsel %vm2305_vm4, %v2242_v24, %v12265_v21  ;;  %v12271_v11 = vld [vmem:[#allocation359_spill] sm:$0xff] }
 0x322   :  { %12258 = vst [vmem:[#allocation38_spill] sm:$0xff] %v8114_v47  ;;  %v8116_v2 = vpop.permute.xlu0 %1682  ;;  %v12266_v47 = vld [vmem:[#allocation50_spill] sm:$0xff]  ;;  %v2372_v45 = vsel %vm2370_vm5, %v2307_v44, %v12268_v5 }
 0x323   :  { %12259 = vst [vmem:[#allocation40_spill] sm:$0xff] %v8116_v2  ;;  %1696 = vrot.lane.b32.xlu1 %v12262_v6, %s5382_s22  ;;  %v12267_v2 = vld [vmem:[#allocation237_spill] sm:$0xff]  ;;  %v2437_v54 = vsel %vm2435_vm6, %v2372_v45, %v12270_v13  ;;  %v12273_v13 = vld [vmem:[#allocation59_spill] sm:$0xff] }
 0x324   :  { %1694 = vrot.lane.b32.xlu0 %v12266_v47, %s5382_s22  ;;  %v2306_v40 = vsel %vm2305_vm4, %v2241_v34, %v12267_v2  ;;  %v12269_v6 = vld [vmem:[#allocation305_spill] sm:$0xff]  ;;  %v2502_v47 = vsel %vm2500_vm7, %v2437_v54, %v7753_v33  ;;  %v12272_v2 = vld [vmem:[#allocation58_spill] sm:$0xff] }
 0x325   :  { %v1849_v15 = vpop.permute.xlu1 %1848  ;;  %v2371_v61 = vsel %vm2370_vm5, %v2306_v40, %v12269_v6  ;;  %v2567_v40 = vsel %vm2565_vm8, %v2502_v47, %v8034_v26  ;;  %v12274_v54 = vld [vmem:[#allocation130_spill] sm:$0xff]  ;;  %v12276_v47 = vld [vmem:[#allocation125_spill] sm:$0xff] }
 0x326   :  { %v1847_v24 = vpop.permute.xlu0 %1846  ;;  %v2436_v21 = vsel %vm2435_vm6, %v2371_v61, %v12271_v11  ;;  %v2632_v6 = vsel %vm2630_vm9, %v2567_v40, %v1849_v15  ;;  %v12280_v40 = vld [vmem:[#allocation306_spill] sm:$0xff] }
 0x327   :  { %1900 = vrot.lane.b32.xlu1 %v12272_v2, %s5383_s1  ;;  %v2501_v44 = vsel %vm2500_vm7, %v2436_v21, %v7755_v38  ;;  %v12275_v38 = vld [vmem:[#allocation6_spill] sm:$0xff]  ;;  %v12278_v21 = vld [vmem:[#allocation239_spill] sm:$0xff] }
 0x328   :  { %1898 = vrot.lane.b32.xlu0 %v12273_v13, %s5383_s1  ;;  %v2566_v34 = vsel %vm2565_vm8, %v2501_v44, %v8036_v53  ;;  %v2244_v11 = vsel %vm2240_vm3, %v12275_v38, %v12274_v54  ;;  %v12277_v53 = vld [vmem:[#allocation5_spill] sm:$0xff] }
 0x329   :  { %v2051_v5 = vpop.permute.xlu1 %2050  ;;  %v2631_v33 = vsel %vm2630_vm9, %v2566_v34, %v1847_v24  ;;  %v2243_v15 = vsel %vm2240_vm3, %v12277_v53, %v12276_v47  ;;  %v2309_v2 = vsel %vm2305_vm4, %v2244_v11, %v12278_v21  ;;  %v12279_v24 = vld [vmem:[#allocation241_spill] sm:$0xff]  ;;  %v12281_v34 = vld [vmem:[#allocation307_spill] sm:$0xff] }
 0x32a   :  { %v2697_v61 = vsel %vm2695_vm10, %v2632_v6, %v2051_v5  ;;  %v2049_v45 = vpop.permute.xlu0 %2048  ;;  %v2308_v44 = vsel %vm2305_vm4, %v2243_v15, %v12279_v24  ;;  %v12282_v5 = vld [vmem:[#allocation360_spill] sm:$0xff]  ;;  %v12283_v54 = vld [vmem:[#allocation361_spill] sm:$0xff]  ;;  %v12285_v24 = vld [vmem:[#allocation330_spill] sm:$0xff] }
 0x32b   :  { %2102 = vrot.lane.b32.xlu1 %v12111_v50, %s5384_s7  ;;  %v2696_v26 = vsel %vm2695_vm10, %v2631_v33, %v2049_v45  ;;  %v2374_v50 = vsel %vm2370_vm5, %v2309_v2, %v12280_v40  ;;  %v2373_v6 = vsel %vm2370_vm5, %v2308_v44, %v12281_v34  ;;  %v12286_v44 = vld [vmem:[#allocation136_spill] sm:$0xff] }
 0x32c   :  { %2100 = vrot.lane.b32.xlu0 %v12112_v52, %s5384_s7  ;;  %5220 = vmatprep.mubr.msk.f32.mxu0 %vm2765_vm11, %v2696_v26  ;;  %v2439_v33 = vsel %vm2435_vm6, %v2374_v50, %v12282_v5  ;;  %v2438_v52 = vsel %vm2435_vm6, %v2373_v6, %v12283_v54  ;;  %v2245_v40 = vsel %vm2240_vm3, %v5483_v25, %v12286_v44  ;;  %v12287_v50 = vld [vmem:[#allocation243_spill] sm:$0xff]  ;;  %v12288_v34 = vld [vmem:[#allocation332_spill] sm:$0xff] }
 0x32d   :  { %5221 = vmatmul.mubr.msk.f32.vlgmr.msra.gmra.mrb[0].mxu0 %vm2765_vm11, %v2697_v61  ;;  %v1853_v13 = vpop.permute.xlu1 %1852  ;;  %v2504_v38 = vsel %vm2500_vm7, %v2439_v33, %v7764_v57  ;;  %v2503_v61 = vsel %vm2500_vm7, %v2438_v52, %v7767_v23  ;;  %v70_v57 = vld [vmem:[%s11118_s0 + $0x1a0] sm:$0xff]  ;;  %v71_v23 = vld [vmem:[%s11118_s0 + $0x1a8] sm:$0x3] }
 0x32e   :  { %v1851_v45 = vpop.permute.xlu0 %1850  ;;  %v2569_v11 = vsel %vm2565_vm8, %v2504_v38, %v8042_v14  ;;  %v2568_v26 = vsel %vm2565_vm8, %v2503_v61, %v8044_v62  ;;  %v12284_v62 = vld [vmem:[#allocation134_spill] sm:$0xff]  ;;  %v178_v6 = vmax.f32 %v70_v57, 0.0  ;;  %v179_v5 = vmax.f32 %v71_v23, 0.0  ;;  %v12291_v38 = vld [vmem:[#allocation311_spill] sm:$0xff] }
 0x32f   :  { %1700 = vrot.lane.b32.xlu1 %v7071_v32, %s5382_s22  ;;  %v2634_v47 = vsel %vm2630_vm9, %v2569_v11, %v1853_v13  ;;  %v2633_v32 = vsel %vm2630_vm9, %v2568_v26, %v1851_v45  ;;  %v2246_v21 = vsel %vm2240_vm3, %v5472_v20, %v12284_v62  ;;  %v12289_v20 = vld [vmem:[#allocation245_spill] sm:$0xff]  ;;  %v12290_v45 = vld [vmem:[#allocation310_spill] sm:$0xff]  ;;  %v12292_v11 = vld [vmem:[#allocation363_spill] sm:$0xff] }
 0x330   :  { %1698 = vrot.lane.b32.xlu0 %v7075_v28, %s5382_s22  ;;  %v69_v28 = vld [vmem:[%s11118_s0 + $0x198] sm:$0xff]  ;;  %v2311_v13 = vsel %vm2305_vm4, %v2246_v21, %v12287_v50  ;;  %v2310_v33 = vsel %vm2305_vm4, %v2245_v40, %v12289_v20  ;;  %v1837_v62 = vrot.slane %v178_v6, 1  ;;  %v1839_v21 = vrot.slane %v179_v5, 1 }
 0x331   :  { %v2055_v53 = vpop.permute.xlu1 %2054  ;;  %v2376_v54 = vsel %vm2370_vm5, %v2311_v13, %v12290_v45  ;;  %v177_v25 = vmax.f32 %v69_v28, 0.0  ;;  %v2375_v61 = vsel %vm2370_vm5, %v2310_v33, %v12291_v38  ;;  %v12295_v28 = vld [vmem:[#allocation386_spill] sm:$0xff]  ;;  %v12296_v13 = vld [vmem:[#allocation137_spill] sm:$0xff]  ;;  %v2041_v38 = vrot.slane %v179_v5, 2  ;;  %v12303_v5 = vld [vmem:[#allocation367_spill] sm:$0xff] }
 0x332   :  { %v2699_v14 = vsel %vm2695_vm10, %v2634_v47, %v2055_v53  ;;  %v2053_v15 = vpop.permute.xlu0 %2052  ;;  %v2441_v26 = vsel %vm2435_vm6, %v2376_v54, %v12292_v11  ;;  %v12293_v53 = vld [vmem:[#allocation365_spill] sm:$0xff]  ;;  %v1840_v54 = vsel %vm330_vm0, %v1837_v62, %v1839_v21  ;;  %v12300_v11 = vld [vmem:[#allocation312_spill] sm:$0xff] }
 0x333   :  { %v2698_v2 = vsel %vm2695_vm10, %v2633_v32, %v2053_v15  ;;  %1904 = vrot.lane.b32.xlu1 %v12285_v24, %s5383_s1  ;;  %v2440_v57 = vsel %vm2435_vm6, %v2375_v61, %v12293_v53  ;;  %v2506_v23 = vsel %vm2500_vm7, %v2441_v26, %v7776_v22  ;;  %v12294_v32 = vld [vmem:[#allocation194_spill] sm:$0xff]  ;;  %v1836_v44 = vrot.slane %v177_v25, 1 }
 0x334   :  { %1902 = vrot.lane.b32.xlu0 %v12288_v34, %s5383_s1  ;;  %5223 = vmatprep.mubr.msk.f32.mxu0 %vm2765_vm11, %v2698_v2  ;;  %v2571_v15 = vsel %vm2565_vm8, %v2506_v23, %v8050_v16  ;;  %v2248_v16 = vsel %vm2240_vm3, %v5496_v29, %v12296_v13  ;;  %v12297_v34 = vld [vmem:[#allocation138_spill] sm:$0xff]  ;;  %v12299_v29 = vld [vmem:[#allocation247_spill] sm:$0xff]  ;;  %v2038_v53 = vrot.slane %v177_v25, 2 }
 0x335   :  { %5224 = vmatmul.mubr.msk.f32.gmra.mrb[2].mxu0 %vm2765_vm11, %v2699_v14  ;;  %v1857_v52 = vpop.permute.xlu1 %1856  ;;  %v2505_v14 = vsel %vm2500_vm7, %v2440_v57, %v7781_v60  ;;  %v2247_v20 = vsel %vm2240_vm3, %v5508_v36, %v12297_v34  ;;  %v12301_v57 = vld [vmem:[#allocation313_spill] sm:$0xff]  ;;  %v12305_v13 = vld [vmem:[#allocation142_spill] sm:$0xff] }
 0x336   :  { %v1855_v47 = vpop.permute.xlu0 %1854  ;;  %v2570_v2 = vsel %vm2565_vm8, %v2505_v14, %v8052_v17  ;;  %v2636_v24 = vsel %vm2630_vm9, %v2571_v15, %v1857_v52  ;;  %v12298_v17 = vld [vmem:[#allocation246_spill] sm:$0xff]  ;;  %v2039_v52 = vrot.slane %v178_v6, 2  ;;  %v2312_v61 = vsel %vm2305_vm4, %v2247_v20, %v12299_v29  ;;  %v12307_v20 = vld [vmem:[#allocation249_spill] sm:$0xff] }
 0x337   :  { %2106 = vrot.lane.b32.xlu1 %v12294_v32, %s5384_s7  ;;  %v2635_v40 = vsel %vm2630_vm9, %v2570_v2, %v1855_v47  ;;  %v2313_v45 = vsel %vm2305_vm4, %v2248_v16, %v12298_v17  ;;  %v1838_v47 = vsel %vm330_vm0, %v1836_v44, %v1837_v62  ;;  %v2377_v23 = vsel %vm2370_vm5, %v2312_v61, %v12301_v57  ;;  %v12302_v32 = vld [vmem:[#allocation366_spill] sm:$0xff]  ;;  %v12306_v16 = vld [vmem:[#allocation248_spill] sm:$0xff]  ;;  %v12311_v61 = vld [vmem:[#allocation141_spill] sm:$0xff] }
 0x338   :  { %2104 = vrot.lane.b32.xlu0 %v12295_v28, %s5384_s7  ;;  %v2378_v36 = vsel %vm2370_vm5, %v2313_v45, %v12300_v11  ;;  %v2442_v15 = vsel %vm2435_vm6, %v2377_v23, %v12303_v5  ;;  %v2042_v62 = vsel %vm683_vm1, %v2039_v52, %v2041_v38  ;;  %v12308_v17 = vld [vmem:[#allocation10_spill] sm:$0xff]  ;;  %v12313_v57 = vld [vmem:[#allocation63_spill] sm:$0xff] }
 0x339   :  { %v2059_v22 = vpop.permute.xlu1 %2058  ;;  %v2443_v14 = vsel %vm2435_vm6, %v2378_v36, %v12302_v32  ;;  %v2507_v21 = vsel %vm2500_vm7, %v2442_v15, %v7789_v18  ;;  %v12314_v15 = vld [vmem:[#allocation144_spill] sm:$0xff] }
 0x33a   :  { %v2701_v50 = vsel %vm2695_vm10, %v2636_v24, %v2059_v22  ;;  %v2057_v60 = vpop.permute.xlu0 %2056  ;;  %v2508_v28 = vsel %vm2500_vm7, %v2443_v14, %v7787_v9  ;;  %v2572_v2 = vsel %vm2565_vm8, %v2507_v21, %v8060_v42  ;;  %v2040_v9 = vsel %vm683_vm1, %v2038_v53, %v2039_v52  ;;  %v12316_v21 = vld [vmem:[#allocation146_spill] sm:$0xff] }
 0x33b   :  { %v2700_v33 = vsel %vm2695_vm10, %v2635_v40, %v2057_v60  ;;  %1704 = vrot.lane.b32.xlu1 %v178_v6, %s5382_s22  ;;  %v2249_v42 = vsel %vm2240_vm3, %v5545_v49, %v12305_v13  ;;  %v12310_v49 = vld [vmem:[#allocation139_spill] sm:$0xff] }
 0x33c   :  { %1702 = vrot.lane.b32.xlu0 %v177_v25, %s5382_s22  ;;  %5226 = vmatprep.mubr.msk.f32.mxu0 %vm2765_vm11, %v2700_v33  ;;  %v2573_v25 = vsel %vm2565_vm8, %v2508_v28, %v8058_v19  ;;  %v2314_v33 = vsel %vm2305_vm4, %v2249_v42, %v12307_v20  ;;  %v12315_v28 = vld [vmem:[#allocation71_spill] sm:$0xff] }
 0x33d   :  { %5227 = vmatmul.mubr.msk.f32.gmra.mrb[4].mxu0 %vm2765_vm11, %v2701_v50  ;;  %v1861_v26 = vpop.permute.xlu1 %1860  ;;  %v12304_v50 = vld [vmem:[#allocation140_spill] sm:$0xff] }
 0x33e   :  { %v1859_v6 = vpop.permute.xlu0 %1858  ;;  %v2638_v24 = vsel %vm2630_vm9, %v2573_v25, %v1861_v26  ;;  %v2250_v19 = vsel %vm2240_vm3, %v5530_v43, %v12304_v50  ;;  %v12312_v26 = vld [vmem:[#allocation62_spill] sm:$0xff] }
 0x33f   :  { %1908 = vrot.lane.b32.xlu1 %v1840_v54, %s5383_s1  ;;  %v2637_v44 = vsel %vm2630_vm9, %v2572_v2, %v1859_v6  ;;  %v2315_v34 = vsel %vm2305_vm4, %v2250_v19, %v12306_v16  ;;  %v12309_v54 = vld [vmem:[#allocation9_spill] sm:$0xff]  ;;  %v12317_v25 = vld [vmem:[#allocation250_spill] sm:$0xff]  ;;  %v12318_v2 = vld [vmem:[#allocation72_spill] sm:$0xff] }
 0x340   :  { %1906 = vrot.lane.b32.xlu0 %v1838_v47, %s5383_s1  ;;  %v2380_v43 = vsel %vm2370_vm5, %v2315_v34, %v12308_v17  ;;  %v2379_v52 = vsel %vm2370_vm5, %v2314_v33, %v12309_v54  ;;  %v12324_v16 = vld [vmem:[#allocation201_spill] sm:$0xff]  ;;  %v12325_v33 = vld [vmem:[#allocation202_spill] sm:$0xff] }
 0x341   :  { %v2063_v22 = vpop.permute.xlu1 %2062  ;;  %v2445_v38 = vsel %vm2435_vm6, %v2380_v43, %v12310_v49  ;;  %v2444_v11 = vsel %vm2435_vm6, %v2379_v52, %v12311_v61  ;;  %v12326_v49 = vld [vmem:[#allocation148_spill] sm:$0xff] }
 0x342   :  { %v2703_v40 = vsel %vm2695_vm10, %v2638_v24, %v2063_v22  ;;  %v2061_v18 = vpop.permute.xlu0 %2060  ;;  %v2510_v36 = vsel %vm2500_vm7, %v2445_v38, %v7795_v30  ;;  %v2509_v47 = vsel %vm2500_vm7, %v2444_v11, %v7797_v48  ;;  %v2252_v48 = vsel %vm2240_vm3, %v5552_v51, %v12314_v15  ;;  %v12319_v24 = vld [vmem:[#allocation251_spill] sm:$0xff]  ;;  %v12327_v38 = vld [vmem:[#allocation66_spill] sm:$0xff]  ;;  %v12329_v61 = vld [vmem:[#allocation252_spill] sm:$0xff] }
 0x343   :  { %v2702_v60 = vsel %vm2695_vm10, %v2637_v44, %v2061_v18  ;;  %2110 = vrot.lane.b32.xlu1 %v2042_v62, %s5384_s7  ;;  %v2575_v53 = vsel %vm2565_vm8, %v2510_v36, %v8066_v10  ;;  %v2574_v23 = vsel %vm2565_vm8, %v2509_v47, %v8068_v56  ;;  %v2251_v56 = vsel %vm2240_vm3, %v5567_v58, %v12316_v21  ;;  %v12320_v22 = vld [vmem:[#allocation11_spill] sm:$0xff]  ;;  %v12330_v36 = vld [vmem:[#allocation69_spill] sm:$0xff] }
 0x344   :  { %2108 = vrot.lane.b32.xlu0 %v2040_v9, %s5384_s7  ;;  %5229 = vmatprep.mubr.msk.f32.mxu0 %vm2765_vm11, %v2702_v60  ;;  %v2317_v62 = vsel %vm2305_vm4, %v2252_v48, %v12317_v25  ;;  %v2316_v51 = vsel %vm2305_vm4, %v2251_v56, %v12319_v24  ;;  %v12322_v18 = vld [vmem:[#allocation143_spill] sm:$0xff]  ;;  %v12323_v60 = vld [vmem:[#allocation145_spill] sm:$0xff] }
 0x345   :  { %5230 = vmatmul.mubr.msk.f32.gmra.mrb[6].mxu0 %vm2765_vm11, %v2703_v40  ;;  %v1865_v45 = vpop.permute.xlu1 %1864  ;;  %v2382_v9 = vsel %vm2370_vm5, %v2317_v62, %v12320_v22  ;;  %v12321_v40 = vld [vmem:[#allocation12_spill] sm:$0xff]  ;;  %v12331_v47 = vld [vmem:[#allocation253_spill] sm:$0xff] }
 0x346   :  { %v1863_v29 = vpop.permute.xlu0 %1862  ;;  %v2640_v32 = vsel %vm2630_vm9, %v2575_v53, %v1865_v45  ;;  %v2381_v58 = vsel %vm2370_vm5, %v2316_v51, %v12321_v40  ;;  %v2447_v50 = vsel %vm2435_vm6, %v2382_v9, %v12322_v18  ;;  %v12332_v53 = vld [vmem:[#allocation13_spill] sm:$0xff]  ;;  %v12338_v9 = vld [vmem:[#allocation152_spill] sm:$0xff]  ;;  %v12340_v40 = vld [vmem:[#allocation154_spill] sm:$0xff] }
 0x347   :  { %1708 = vrot.lane.b32.xlu1 %v12312_v26, %s5382_s22  ;;  %v2639_v30 = vsel %vm2630_vm9, %v2574_v23, %v1863_v29  ;;  %v2446_v13 = vsel %vm2435_vm6, %v2381_v58, %v12323_v60  ;;  %v2512_v42 = vsel %vm2500_vm7, %v2447_v50, %v7803_v0  ;;  %v12328_v29 = vld [vmem:[#allocation150_spill] sm:$0xff]  ;;  %v12335_v15 = vld [vmem:[#allocation149_spill] sm:$0xff]  ;;  %v12344_v60 = vld [vmem:[#allocation15_spill] sm:$0xff] }
 0x348   :  { %1706 = vrot.lane.b32.xlu0 %v12313_v57, %s5382_s22  ;;  %v2511_v34 = vsel %vm2500_vm7, %v2446_v13, %v7805_v41  ;;  %v2577_v20 = vsel %vm2565_vm8, %v2512_v42, %v8074_v8  ;;  %v2254_v41 = vsel %vm2240_vm3, %v5590_v1, %v12326_v49  ;;  %v12337_v25 = vld [vmem:[#allocation77_spill] sm:$0xff]  ;;  %v12341_v58 = vld [vmem:[#allocation254_spill] sm:$0xff] }
 0x349   :  { %v2067_v14 = vpop.permute.xlu1 %2066  ;;  %v2576_v17 = vsel %vm2565_vm8, %v2511_v34, %v8076_v4  ;;  %v2253_v4 = vsel %vm2240_vm3, %v5597_v12, %v12328_v29  ;;  %v2319_v11 = vsel %vm2305_vm4, %v2254_v41, %v12329_v61  ;;  %v12342_v50 = vld [vmem:[#allocation205_spill] sm:$0xff]  ;;  %v12346_v34 = vld [vmem:[#allocation151_spill] sm:$0xff] }
 0x34a   :  { %v2705_v6 = vsel %vm2695_vm10, %v2640_v32, %v2067_v14  ;;  %v2065_v5 = vpop.permute.xlu0 %2064  ;;  %v2318_v1 = vsel %vm2305_vm4, %v2253_v4, %v12331_v47  ;;  %v2384_v23 = vsel %vm2370_vm5, %v2319_v11, %v12332_v53  ;;  %v12333_v14 = vld [vmem:[#allocation14_spill] sm:$0xff]  ;;  %v12352_v53 = vld [vmem:[#allocation156_spill] sm:$0xff] }
 0x34b   :  { %v2704_v10 = vsel %vm2695_vm10, %v2639_v30, %v2065_v5  ;;  %1912 = vrot.lane.b32.xlu1 %v12315_v28, %s5383_s1  ;;  %v2383_v12 = vsel %vm2370_vm5, %v2318_v1, %v12333_v14  ;;  %v12334_v30 = vld [vmem:[#allocation147_spill] sm:$0xff]  ;;  %v12354_v14 = vld [vmem:[#allocation158_spill] sm:$0xff] }
 0x34c   :  { %1910 = vrot.lane.b32.xlu0 %v12318_v2, %s5383_s1  ;;  %5232 = vmatprep.mubr.msk.f32.mxu0 %vm2765_vm11, %v2704_v10  ;;  %v2448_v48 = vsel %vm2435_vm6, %v2383_v12, %v12335_v15  ;;  %v12336_v28 = vld [vmem:[#allocation75_spill] sm:$0xff]  ;;  %v12355_v12 = vld [vmem:[#allocation21_spill] sm:$0xff] }
 0x34d   :  { %5233 = vmatmul.mubr.msk.f32.gmra.mrb[8].mxu0 %vm2765_vm11, %v2705_v6  ;;  %v1869_v44 = vpop.permute.xlu1 %1868  ;;  %v2449_v6 = vsel %vm2435_vm6, %v2384_v23, %v12334_v30  ;;  %v2513_v21 = vsel %vm2500_vm7, %v2448_v48, %v7813_v46  ;;  %v2256_v46 = vsel %vm2240_vm3, %v5623_v27, %v12338_v9  ;;  %v2258_v23 = vsel %vm2240_vm3, %v5642_v39, %v12352_v53  ;;  %v12356_v30 = vld [vmem:[#allocation256_spill] sm:$0xff]  ;;  %v12358_v15 = vld [vmem:[#allocation257_spill] sm:$0xff]  ;;  %v12364_v9 = vld [vmem:[#allocation207_spill] sm:$0xff] }
 0x34e   :  { %v1867_v19 = vpop.permute.xlu0 %1866  ;;  %v2642_v43 = vsel %vm2630_vm9, %v2577_v20, %v1869_v44  ;;  %v2514_v10 = vsel %vm2500_vm7, %v2449_v6, %v7811_v59  ;;  %v2578_v62 = vsel %vm2565_vm8, %v2513_v21, %v8084_v63  ;;  %v12339_v44 = vld [vmem:[#allocation204_spill] sm:$0xff]  ;;  %v2255_v63 = vsel %vm2240_vm3, %v5635_v35, %v12340_v40  ;;  %v12359_v48 = vld [vmem:[#allocation17_spill] sm:$0xff]  ;;  %v12360_v21 = vld [vmem:[#allocation18_spill] sm:$0xff] }
 0x34f   :  { %2114 = vrot.lane.b32.xlu1 %v12324_v16, %s5384_s7  ;;  %v2641_v0 = vsel %vm2630_vm9, %v2576_v17, %v1867_v19  ;;  %v2579_v56 = vsel %vm2565_vm8, %v2514_v10, %v8082_v3  ;;  %v2321_v18 = vsel %vm2305_vm4, %v2256_v46, %v12341_v58  ;;  %v12343_v19 = vld [vmem:[#allocation255_spill] sm:$0xff]  ;;  %v12345_v16 = vld [vmem:[#allocation16_spill] sm:$0xff]  ;;  %v12347_v17 = vld [vmem:[#allocation153_spill] sm:$0xff]  ;;  %v2323_v6 = vsel %vm2305_vm4, %v2258_v23, %v12356_v30 }
 0x350   :  { %2112 = vrot.lane.b32.xlu0 %v12325_v33, %s5384_s7  ;;  %v2320_v27 = vsel %vm2305_vm4, %v2255_v63, %v12343_v19  ;;  %v2386_v13 = vsel %vm2370_vm5, %v2321_v18, %v12344_v60  ;;  %v2388_v10 = vsel %vm2370_vm5, %v2323_v6, %v12359_v48  ;;  %v12365_v46 = vld [vmem:[#allocation417_spill] sm:$0xff]  ;;  %v12366_v40 = vld [vmem:[#allocation208_spill] sm:$0xff]  ;;  %v12379_v53 = vld [vmem:[#allocation418_spill] sm:$0xff] }
 0x351   :  { %v2071_v45 = vpop.permute.xlu1 %2070  ;;  %v2385_v35 = vsel %vm2370_vm5, %v2320_v27, %v12345_v16  ;;  %v2451_v20 = vsel %vm2435_vm6, %v2386_v13, %v12346_v34  ;;  %v12367_v60 = vld [vmem:[#allocation160_spill] sm:$0xff]  ;;  %v12368_v13 = vld [vmem:[#allocation23_spill] sm:$0xff]  ;;  %v12371_v34 = vld [vmem:[#allocation25_spill] sm:$0xff] }
 0x352   :  { %v2707_v54 = vsel %vm2695_vm10, %v2642_v43, %v2071_v45  ;;  %v2069_v52 = vpop.permute.xlu0 %2068  ;;  %v2450_v43 = vsel %vm2435_vm6, %v2385_v35, %v12347_v17  ;;  %v12348_v45 = vld [vmem:[#allocation414_spill] sm:$0xff]  ;;  %v12369_v16 = vld [vmem:[#allocation76_spill] sm:$0xff]  ;;  %v12383_v30 = vld [vmem:[#allocation87_spill] sm:$0xff] }
 0x353   :  { %v2706_v8 = vsel %vm2695_vm10, %v2641_v0, %v2069_v52  ;;  %1712 = vrot.lane.b32.xlu1 %v12327_v38, %s5382_s22  ;;  %v2516_v0 = vsel %vm2500_vm7, %v2451_v20, %v12348_v45  ;;  %v12350_v52 = vld [vmem:[#allocation415_spill] sm:$0xff]  ;;  %v12370_v35 = vld [vmem:[#allocation162_spill] sm:$0xff]  ;;  %v12384_v6 = vld [vmem:[#allocation177_spill] sm:$0xff] }
 0x354   :  { %1710 = vrot.lane.b32.xlu0 %v12330_v36, %s5382_s22  ;;  %5235 = vmatprep.mubr.msk.f32.mxu0 %vm2765_vm11, %v2706_v8  ;;  %v2515_v49 = vsel %vm2500_vm7, %v2450_v43, %v12350_v52  ;;  %v2581_v41 = vsel %vm2565_vm8, %v2516_v0, %v8090_v55  ;;  %v12351_v8 = vld [vmem:[#allocation73_spill] sm:$0xff]  ;;  %v12372_v20 = vld [vmem:[#allocation258_spill] sm:$0xff]  ;;  %v12374_v43 = vld [vmem:[#allocation259_spill] sm:$0xff] }
 0x355   :  { %5236 = vmatmul.mubr.msk.f32.gmra.mrb[10].mxu0 %vm2765_vm11, %v2707_v54  ;;  %v1873_v32 = vpop.permute.xlu1 %1872  ;;  %v12349_v54 = vld [vmem:[#allocation70_spill] sm:$0xff]  ;;  %v2580_v29 = vsel %vm2565_vm8, %v2515_v49, %v8092_v7  ;;  %v2257_v7 = vsel %vm2240_vm3, %v12355_v12, %v12354_v14  ;;  %v12375_v0 = vld [vmem:[#allocation19_spill] sm:$0xff] }
 0x356   :  { %v1871_v5 = vpop.permute.xlu0 %1870  ;;  %v2644_v2 = vsel %vm2630_vm9, %v2579_v56, %v1873_v32  ;;  %v12353_v32 = vld [vmem:[#allocation80_spill] sm:$0xff]  ;;  %v2322_v39 = vsel %vm2305_vm4, %v2257_v7, %v12358_v15  ;;  %v12373_v17 = vld [vmem:[#allocation78_spill] sm:$0xff]  ;;  %v12382_v12 = vld [vmem:[#allocation175_spill] sm:$0xff] }
 0x357   :  { %1916 = vrot.lane.b32.xlu1 %v12336_v28, %s5383_s1  ;;  %v2643_v59 = vsel %vm2630_vm9, %v2578_v62, %v1871_v5  ;;  %v12357_v5 = vld [vmem:[#allocation83_spill] sm:$0xff]  ;;  %v2387_v56 = vsel %vm2370_vm5, %v2322_v39, %v12360_v21  ;;  %v12385_v21 = vld [vmem:[#allocation164_spill] sm:$0xff] }
 0x358   :  { %1914 = vrot.lane.b32.xlu0 %v12337_v25, %s5383_s1  ;;  %v12361_v25 = vld [vmem:[#allocation155_spill] sm:$0xff] }
 0x359   :  { %v2075_v24 = vpop.permute.xlu1 %2074  ;;  %v2453_v62 = vsel %vm2435_vm6, %v2388_v10, %v12361_v25 }
 0x35a   :  { %v2709_v51 = vsel %vm2695_vm10, %v2644_v2, %v2075_v24  ;;  %v2073_v22 = vpop.permute.xlu0 %2072  ;;  %v12362_v24 = vld [vmem:[#allocation157_spill] sm:$0xff] }
 0x35b   :  { %v2708_v3 = vsel %vm2695_vm10, %v2643_v59, %v2073_v22  ;;  %2118 = vrot.lane.b32.xlu1 %v12339_v44, %s5384_s7  ;;  %v2452_v59 = vsel %vm2435_vm6, %v2387_v56, %v12362_v24  ;;  %v12386_v56 = vld [vmem:[#allocation27_spill] sm:$0xff]  ;;  %v12388_v24 = vld [vmem:[#allocation166_spill] sm:$0xff] }
 0x35c   :  { %2116 = vrot.lane.b32.xlu0 %v12342_v50, %s5384_s7  ;;  %5238 = vmatprep.mubr.msk.f32.mxu0 %vm2765_vm11, %v2708_v3  ;;  %v2517_v3 = vsel %vm2500_vm7, %v2452_v59, %v12365_v46  ;;  %v2262_v25 = vsel %vm2240_vm3, %v12386_v56, %v12385_v21  ;;  %v12389_v59 = vld [vmem:[#allocation29_spill] sm:$0xff]  ;;  %v12391_v46 = vld [vmem:[#allocation211_spill] sm:$0xff] }
 0x35d   :  { %5239 = vmatmul.mubr.msk.f32.gmra.mrb[12].mxu0 %vm2765_vm11, %v2709_v51  ;;  %v1877_v42 = vpop.permute.xlu1 %1876  ;;  %v12363_v51 = vld [vmem:[#allocation416_spill] sm:$0xff]  ;;  %v2582_v63 = vsel %vm2565_vm8, %v2517_v3, %v8100_v31  ;;  %v2259_v31 = vsel %vm2240_vm3, %v12371_v34, %v12370_v35  ;;  %v12392_v3 = vld [vmem:[#allocation261_spill] sm:$0xff] }
 0x35e   :  { %v1875_v33 = vpop.permute.xlu0 %1874  ;;  %v2646_v4 = vsel %vm2630_vm9, %v2581_v41, %v1877_v42  ;;  %v2518_v22 = vsel %vm2500_vm7, %v2453_v62, %v12363_v51  ;;  %v2260_v42 = vsel %vm2240_vm3, %v12368_v13, %v12367_v60  ;;  %v2324_v45 = vsel %vm2305_vm4, %v2259_v31, %v12374_v43  ;;  %v12376_v41 = vld [vmem:[#allocation20_spill] sm:$0xff]  ;;  %v12396_v13 = vld [vmem:[#allocation371_spill] sm:$0xff]  ;;  %v12398_v34 = vld [vmem:[#allocation81_spill] sm:$0xff] }
 0x35f   :  { %1716 = vrot.lane.b32.xlu1 %v12349_v54, %s5382_s22  ;;  %v2645_v11 = vsel %vm2630_vm9, %v2580_v29, %v1875_v33  ;;  %v2583_v44 = vsel %vm2565_vm8, %v2518_v22, %v8098_v37  ;;  %v2325_v33 = vsel %vm2305_vm4, %v2260_v42, %v12372_v20  ;;  %v2389_v29 = vsel %vm2370_vm5, %v2324_v45, %v12376_v41  ;;  %v12390_v22 = vld [vmem:[#allocation260_spill] sm:$0xff]  ;;  %v12399_v31 = vld [vmem:[#allocation421_spill] sm:$0xff] }
 0x360   :  { %1714 = vrot.lane.b32.xlu0 %v12351_v8, %s5382_s22  ;;  %v2390_v52 = vsel %vm2370_vm5, %v2325_v33, %v12375_v0  ;;  %v2261_v51 = vsel %vm2240_vm3, %v12389_v59, %v12388_v24  ;;  %v12400_v33 = vld [vmem:[#allocation38_spill] sm:$0xff]  ;;  %v12401_v45 = vld [vmem:[#allocation84_spill] sm:$0xff] }
 0x361   :  { %v2079_v61 = vpop.permute.xlu1 %2078  ;;  %v12402_v0 = vld [vmem:[#allocation40_spill] sm:$0xff] }
 0x362   :  { %v2711_v47 = vsel %vm2695_vm10, %v2646_v4, %v2079_v61  ;;  %v2077_v1 = vpop.permute.xlu0 %2076  ;;  %v12377_v4 = vld [vmem:[#allocation368_spill] sm:$0xff] }
 0x363   :  { %v2710_v55 = vsel %vm2695_vm10, %v2645_v11, %v2077_v1  ;;  %1920 = vrot.lane.b32.xlu1 %v12353_v32, %s5383_s1  ;;  %v2455_v61 = vsel %vm2435_vm6, %v2390_v52, %v12377_v4  ;;  %v12381_v32 = vld [vmem:[#allocation419_spill] sm:$0xff] }
 0x364   :  { %1918 = vrot.lane.b32.xlu0 %v12357_v5, %s5383_s1  ;;  %5241 = vmatprep.mubr.msk.f32.mxu0 %vm2765_vm11, %v2710_v55  ;;  %v2520_v23 = vsel %vm2500_vm7, %v2455_v61, %v12379_v53  ;;  %v12380_v55 = vld [vmem:[#allocation86_spill] sm:$0xff] }
 0x365   :  { %5242 = vmatmul.mubr.msk.f32.gmra.mrb[14].mxu0 %vm2765_vm11, %v2711_v47  ;;  %v1881_v28 = vpop.permute.xlu1 %1880  ;;  %v12378_v47 = vld [vmem:[#allocation369_spill] sm:$0xff]  ;;  %v2585_v7 = vsel %vm2565_vm8, %v2520_v23, %v12382_v12 }
 0x366   :  { %v1879_v2 = vpop.permute.xlu0 %1878  ;;  %v2648_v58 = vsel %vm2630_vm9, %v2583_v44, %v1881_v28  ;;  %v2454_v1 = vsel %vm2435_vm6, %v2389_v29, %v12378_v47  ;;  %v2326_v44 = vsel %vm2305_vm4, %v2261_v51, %v12392_v3  ;;  %v12403_v47 = vld [vmem:[#allocation90_spill] sm:$0xff]  ;;  %v12407_v12 = vld [vmem:[#allocation213_spill] sm:$0xff] }
 0x367   :  { %2122 = vrot.lane.b32.xlu1 %v12364_v9, %s5384_s7  ;;  %v2647_v50 = vsel %vm2630_vm9, %v2582_v63, %v1879_v2  ;;  %v2519_v14 = vsel %vm2500_vm7, %v2454_v1, %v12381_v32  ;;  %v12387_v2 = vld [vmem:[#allocation210_spill] sm:$0xff]  ;;  %v2327_v9 = vsel %vm2305_vm4, %v2262_v25, %v12390_v22  ;;  %v12404_v1 = vld [vmem:[#allocation92_spill] sm:$0xff]  ;;  %v12414_v25 = vld [vmem:[#allocation317_spill] sm:$0xff] }
 0x368   :  { %2120 = vrot.lane.b32.xlu0 %v12366_v40, %s5384_s7  ;;  %v2584_v5 = vsel %vm2565_vm8, %v2519_v14, %v12384_v6  ;;  %v12393_v40 = vld [vmem:[#allocation314_spill] sm:$0xff]  ;;  %v12416_v51 = vld [vmem:[#allocation373_spill] sm:$0xff] }
 0x369   :  { %v2083_v18 = vpop.permute.xlu1 %2082  ;;  %v2392_v63 = vsel %vm2370_vm5, %v2327_v9, %v12393_v40  ;;  %v12406_v32 = vld [vmem:[#allocation30_spill] sm:$0xff]  ;;  %v12418_v3 = vld [vmem:[#allocation85_spill] sm:$0xff] }
 0x36a   :  { %v2713_v19 = vsel %vm2695_vm10, %v2648_v58, %v2083_v18  ;;  %v2081_v27 = vpop.permute.xlu0 %2080  ;;  %v12394_v18 = vld [vmem:[#allocation315_spill] sm:$0xff]  ;;  %v12417_v9 = vld [vmem:[#allocation422_spill] sm:$0xff] }
 0x36b   :  { %v2712_v37 = vsel %vm2695_vm10, %v2647_v50, %v2081_v27  ;;  %1720 = vrot.lane.b32.xlu1 %v12369_v16, %s5382_s22  ;;  %v2391_v50 = vsel %vm2370_vm5, %v2326_v44, %v12394_v18  ;;  %v12419_v44 = vld [vmem:[#allocation423_spill] sm:$0xff] }
 0x36c   :  { %1718 = vrot.lane.b32.xlu0 %v12373_v17, %s5382_s22  ;;  %5244 = vmatprep.mubr.msk.f32.mxu0 %vm2765_vm11, %v2712_v37  ;;  %v2456_v42 = vsel %vm2435_vm6, %v2391_v50, %v12396_v13  ;;  %v12397_v37 = vld [vmem:[#allocation420_spill] sm:$0xff] }
 0x36d   :  { %5245 = vmatmul.mubr.msk.f32.gmra.mrb[16].mxu0 %vm2765_vm11, %v2713_v19  ;;  %v1885_v49 = vpop.permute.xlu1 %1884  ;;  %v12395_v19 = vld [vmem:[#allocation370_spill] sm:$0xff]  ;;  %v2521_v20 = vsel %vm2500_vm7, %v2456_v42, %v12399_v31 }
 0x36e   :  { %v1883_v11 = vpop.permute.xlu0 %1882  ;;  %v2650_v15 = vsel %vm2630_vm9, %v2585_v7, %v1885_v49  ;;  %v2457_v27 = vsel %vm2435_vm6, %v2392_v63, %v12395_v19  ;;  %v2586_v52 = vsel %vm2565_vm8, %v2521_v20, %v12402_v0  ;;  %v12408_v7 = vld [vmem:[#allocation170_spill] sm:$0xff] }
 0x36f   :  { %1924 = vrot.lane.b32.xlu1 %v12380_v55, %s5383_s1  ;;  %v2649_v48 = vsel %vm2630_vm9, %v2584_v5, %v1883_v11  ;;  %v2522_v35 = vsel %vm2500_vm7, %v2457_v27, %v12397_v37  ;;  %v12405_v55 = vld [vmem:[#allocation168_spill] sm:$0xff]  ;;  %v12410_v5 = vld [vmem:[#allocation262_spill] sm:$0xff]  ;;  %v12421_v37 = vld [vmem:[#allocation95_spill] sm:$0xff] }
 0x370   :  { %1922 = vrot.lane.b32.xlu0 %v12383_v30, %s5383_s1  ;;  %v2587_v43 = vsel %vm2565_vm8, %v2522_v35, %v12400_v33  ;;  %v2264_v14 = vsel %vm2240_vm3, %v12406_v32, %v12405_v55  ;;  %v12409_v30 = vld [vmem:[#allocation33_spill] sm:$0xff]  ;;  %v12422_v35 = vld [vmem:[#allocation98_spill] sm:$0xff]  ;;  %v12423_v33 = vld [vmem:[#allocation172_spill] sm:$0xff] }
 0x371   :  { %v2087_v39 = vpop.permute.xlu1 %2086  ;;  %v2263_v6 = vsel %vm2240_vm3, %v12409_v30, %v12408_v7  ;;  %v12432_v32 = vld [vmem:[#allocation319_spill] sm:$0xff] }
 0x372   :  { %v2715_v10 = vsel %vm2695_vm10, %v2650_v15, %v2087_v39  ;;  %v2085_v28 = vpop.permute.xlu0 %2084  ;;  %v2329_v15 = vsel %vm2305_vm4, %v2264_v14, %v12410_v5  ;;  %v12411_v39 = vld [vmem:[#allocation214_spill] sm:$0xff] }
 0x373   :  { %v2714_v62 = vsel %vm2695_vm10, %v2649_v48, %v2085_v28  ;;  %2126 = vrot.lane.b32.xlu1 %v12387_v2, %s5384_s7  ;;  %v12412_v48 = vld [vmem:[#allocation263_spill] sm:$0xff]  ;;  %v12413_v28 = vld [vmem:[#allocation316_spill] sm:$0xff] }
 0x374   :  { %2124 = vrot.lane.b32.xlu0 %v12391_v46, %s5384_s7  ;;  %5247 = vmatprep.mubr.msk.f32.mxu0 %vm2765_vm11, %v2714_v62  ;;  %v2394_v21 = vsel %vm2370_vm5, %v2329_v15, %v12413_v28  ;;  %v12415_v2 = vld [vmem:[#allocation372_spill] sm:$0xff] }
 0x375   :  { %5248 = vmatmul.mubr.msk.f32.gmra.mrb[18].mxu0 %vm2765_vm11, %v2715_v10  ;;  %v1889_v58 = vpop.permute.xlu1 %1888  ;;  %v2328_v10 = vsel %vm2305_vm4, %v2263_v6, %v12412_v48  ;;  %v2459_v24 = vsel %vm2435_vm6, %v2394_v21, %v12415_v2  ;;  %v12434_v6 = vld [vmem:[#allocation375_spill] sm:$0xff]  ;;  %v12435_v15 = vld [vmem:[#allocation424_spill] sm:$0xff] }
 0x376   :  { %v1887_v60 = vpop.permute.xlu0 %1886  ;;  %v2652_v49 = vsel %vm2630_vm9, %v2587_v43, %v1889_v58  ;;  %v2393_v62 = vsel %vm2370_vm5, %v2328_v10, %v12414_v25  ;;  %v2524_v46 = vsel %vm2500_vm7, %v2459_v24, %v12417_v9  ;;  %v12420_v58 = vld [vmem:[#allocation88_spill] sm:$0xff]  ;;  %v12424_v43 = vld [vmem:[#allocation35_spill] sm:$0xff]  ;;  %v12437_v10 = vld [vmem:[#allocation425_spill] sm:$0xff] }
 0x377   :  { %1724 = vrot.lane.b32.xlu1 %v12398_v34, %s5382_s22  ;;  %v2651_v29 = vsel %vm2630_vm9, %v2586_v52, %v1887_v60  ;;  %v2458_v22 = vsel %vm2435_vm6, %v2393_v62, %v12416_v51  ;;  %v2266_v0 = vsel %vm2240_vm3, %v12424_v43, %v12423_v33  ;;  %v12425_v52 = vld [vmem:[#allocation216_spill] sm:$0xff]  ;;  %v12436_v48 = vld [vmem:[#allocation91_spill] sm:$0xff]  ;;  %v12439_v9 = vld [vmem:[#allocation101_spill] sm:$0xff] }
 0x378   :  { %1722 = vrot.lane.b32.xlu0 %v12401_v45, %s5382_s22  ;;  %v2523_v40 = vsel %vm2500_vm7, %v2458_v22, %v12419_v44  ;;  %v12449_v33 = vld [vmem:[#allocation320_spill] sm:$0xff] }
 0x379   :  { %v2091_v41 = vpop.permute.xlu1 %2090 }
 0x37a   :  { %v2717_v4 = vsel %vm2695_vm10, %v2652_v49, %v2091_v41  ;;  %v2089_v61 = vpop.permute.xlu0 %2088  ;;  %v12426_v49 = vld [vmem:[#allocation174_spill] sm:$0xff]  ;;  %v12427_v41 = vld [vmem:[#allocation37_spill] sm:$0xff] }
 0x37b   :  { %v2716_v11 = vsel %vm2695_vm10, %v2651_v29, %v2089_v61  ;;  %1928 = vrot.lane.b32.xlu1 %v12403_v47, %s5383_s1  ;;  %v2265_v29 = vsel %vm2240_vm3, %v12427_v41, %v12426_v49  ;;  %v12430_v47 = vld [vmem:[#allocation265_spill] sm:$0xff]  ;;  %v12451_v41 = vld [vmem:[#allocation376_spill] sm:$0xff] }
 0x37c   :  { %1926 = vrot.lane.b32.xlu0 %v12404_v1, %s5383_s1  ;;  %5250 = vmatprep.mubr.msk.f32.mxu0 %vm2765_vm11, %v2716_v11  ;;  %v12429_v11 = vld [vmem:[#allocation217_spill] sm:$0xff]  ;;  %v2330_v1 = vsel %vm2305_vm4, %v2265_v29, %v12430_v47  ;;  %v12453_v47 = vld [vmem:[#allocation426_spill] sm:$0xff] }
 0x37d   :  { %5251 = vmatmul.mubr.msk.f32.gmra.mrb[20].mxu0 %vm2765_vm11, %v2717_v4  ;;  %v1689_v53 = vpop.permute.xlu1 %1688  ;;  %v12428_v4 = vld [vmem:[#allocation264_spill] sm:$0xff]  ;;  %v2395_v14 = vsel %vm2370_vm5, %v2330_v1, %v12432_v32 }
 0x37e   :  { %v1687_v23 = vpop.permute.xlu0 %1686  ;;  %v2589_v63 = vsel %vm2565_vm8, %v2524_v46, %v1689_v53  ;;  %v2331_v61 = vsel %vm2305_vm4, %v2266_v0, %v12428_v4  ;;  %v12431_v53 = vld [vmem:[#allocation318_spill] sm:$0xff]  ;;  %v2460_v5 = vsel %vm2435_vm6, %v2395_v14, %v12434_v6  ;;  %v12456_v14 = vld [vmem:[#allocation99_spill] sm:$0xff] }
 0x37f   :  { %2130 = vrot.lane.b32.xlu1 %v12407_v12, %s5384_s7  ;;  %v2588_v18 = vsel %vm2565_vm8, %v2523_v40, %v1687_v23  ;;  %v2396_v23 = vsel %vm2370_vm5, %v2331_v61, %v12431_v53  ;;  %v12433_v12 = vld [vmem:[#allocation374_spill] sm:$0xff]  ;;  %v2525_v28 = vsel %vm2500_vm7, %v2460_v5, %v12437_v10  ;;  %v12452_v61 = vld [vmem:[#allocation377_spill] sm:$0xff]  ;;  %v12454_v53 = vld [vmem:[#allocation96_spill] sm:$0xff] }
 0x380   :  { %2128 = vrot.lane.b32.xlu0 %v12411_v39, %s5384_s7  ;;  %v2461_v7 = vsel %vm2435_vm6, %v2396_v23, %v12433_v12  ;;  %v12440_v46 = vld [vmem:[#allocation102_spill] sm:$0xff]  ;;  %v12455_v23 = vld [vmem:[#allocation427_spill] sm:$0xff]  ;;  %v12457_v10 = vld [vmem:[#allocation105_spill] sm:$0xff] }
 0x381   :  { %v1893_v56 = vpop.permute.xlu1 %1892  ;;  %v2526_v39 = vsel %vm2500_vm7, %v2461_v7, %v12435_v15 }
 0x382   :  { %v1891_v59 = vpop.permute.xlu0 %1890  ;;  %v2654_v50 = vsel %vm2630_vm9, %v2589_v63, %v1893_v56  ;;  %v12438_v56 = vld [vmem:[#allocation93_spill] sm:$0xff]  ;;  %v12441_v63 = vld [vmem:[#allocation176_spill] sm:$0xff] }
 0x383   :  { %1728 = vrot.lane.b32.xlu1 %v12418_v3, %s5382_s22  ;;  %v2653_v27 = vsel %vm2630_vm9, %v2588_v18, %v1891_v59  ;;  %v12442_v18 = vld [vmem:[#allocation39_spill] sm:$0xff] }
 0x384   :  { %1726 = vrot.lane.b32.xlu0 %v12420_v58, %s5382_s22 }
 0x385   :  { %v2095_v19 = vpop.permute.xlu1 %2094 }
 0x386   :  { %v2719_v60 = vsel %vm2695_vm10, %v2654_v50, %v2095_v19  ;;  %v2093_v13 = vpop.permute.xlu0 %2092  ;;  %v2268_v50 = vsel %vm2240_vm3, %v12442_v18, %v12441_v63  ;;  %v12443_v19 = vld [vmem:[#allocation219_spill] sm:$0xff]  ;;  %v12466_v63 = vld [vmem:[#allocation269_spill] sm:$0xff] }
 0x387   :  { %v2718_v42 = vsel %vm2695_vm10, %v2653_v27, %v2093_v13  ;;  %1932 = vrot.lane.b32.xlu1 %v12421_v37, %s5383_s1  ;;  %v12444_v27 = vld [vmem:[#allocation178_spill] sm:$0xff] }
 0x388   :  { %1930 = vrot.lane.b32.xlu0 %v12422_v35, %s5383_s1  ;;  %5253 = vmatprep.mubr.msk.f32.mxu0 %vm2765_vm11, %v2718_v42  ;;  %v12446_v42 = vld [vmem:[#allocation266_spill] sm:$0xff]  ;;  %v12447_v35 = vld [vmem:[#allocation220_spill] sm:$0xff] }
 0x389   :  { %5254 = vmatmul.mubr.msk.f32.gmra.mrb[22].mxu0 %vm2765_vm11, %v2719_v60  ;;  %v1693_v31 = vpop.permute.xlu1 %1692  ;;  %v12445_v60 = vld [vmem:[#allocation41_spill] sm:$0xff]  ;;  %v2333_v37 = vsel %vm2305_vm4, %v2268_v50, %v12446_v42  ;;  %v12467_v50 = vld [vmem:[#allocation322_spill] sm:$0xff] }
 0x38a   :  { %v1691_v20 = vpop.permute.xlu0 %1690  ;;  %v2591_v21 = vsel %vm2565_vm8, %v2526_v39, %v1693_v31  ;;  %v2267_v13 = vsel %vm2240_vm3, %v12445_v60, %v12444_v27  ;;  %v12448_v31 = vld [vmem:[#allocation267_spill] sm:$0xff]  ;;  %v2398_v43 = vsel %vm2370_vm5, %v2333_v37, %v12449_v33  ;;  %v12469_v42 = vld [vmem:[#allocation378_spill] sm:$0xff]  ;;  %v12471_v33 = vld [vmem:[#allocation428_spill] sm:$0xff] }
 0x38b   :  { %2134 = vrot.lane.b32.xlu1 %v12425_v52, %s5384_s7  ;;  %v2590_v25 = vsel %vm2565_vm8, %v2525_v28, %v1691_v20  ;;  %v2332_v20 = vsel %vm2305_vm4, %v2267_v13, %v12448_v31  ;;  %v12450_v52 = vld [vmem:[#allocation321_spill] sm:$0xff]  ;;  %v2463_v29 = vsel %vm2435_vm6, %v2398_v43, %v12451_v41  ;;  %v12458_v28 = vld [vmem:[#allocation107_spill] sm:$0xff] }
 0x38c   :  { %2132 = vrot.lane.b32.xlu0 %v12429_v11, %s5384_s7  ;;  %v2397_v49 = vsel %vm2370_vm5, %v2332_v20, %v12450_v52  ;;  %v2528_v1 = vsel %vm2500_vm7, %v2463_v29, %v12453_v47  ;;  %v12468_v60 = vld [vmem:[#allocation323_spill] sm:$0xff]  ;;  %v12473_v52 = vld [vmem:[#allocation429_spill] sm:$0xff] }
 0x38d   :  { %v1897_v55 = vpop.permute.xlu1 %1896  ;;  %v2462_v11 = vsel %vm2435_vm6, %v2397_v49, %v12452_v61  ;;  %v12470_v31 = vld [vmem:[#allocation379_spill] sm:$0xff] }
 0x38e   :  { %v1895_v30 = vpop.permute.xlu0 %1894  ;;  %v2656_v62 = vsel %vm2630_vm9, %v2591_v21, %v1897_v55  ;;  %v2527_v55 = vsel %vm2500_vm7, %v2462_v11, %v12455_v23  ;;  %v12474_v29 = vld [vmem:[#allocation103_spill] sm:$0xff] }
 0x38f   :  { %1732 = vrot.lane.b32.xlu1 %v12436_v48, %s5382_s22  ;;  %v2655_v24 = vsel %vm2630_vm9, %v2590_v25, %v1895_v30 }
 0x390   :  { %1730 = vrot.lane.b32.xlu0 %v12438_v56, %s5382_s22 }
 0x391   :  { %v2099_v2 = vpop.permute.xlu1 %2098 }
 0x392   :  { %v2721_v59 = vsel %vm2695_vm10, %v2656_v62, %v2099_v2  ;;  %v2097_v51 = vpop.permute.xlu0 %2096  ;;  %v12459_v62 = vld [vmem:[#allocation180_spill] sm:$0xff]  ;;  %v12460_v2 = vld [vmem:[#allocation42_spill] sm:$0xff] }
 0x393   :  { %v2720_v22 = vsel %vm2695_vm10, %v2655_v24, %v2097_v51  ;;  %1936 = vrot.lane.b32.xlu1 %v12439_v9, %s5383_s1  ;;  %v2270_v24 = vsel %vm2240_vm3, %v12460_v2, %v12459_v62  ;;  %v12462_v51 = vld [vmem:[#allocation182_spill] sm:$0xff] }
 0x394   :  { %1934 = vrot.lane.b32.xlu0 %v12440_v46, %s5383_s1  ;;  %5256 = vmatprep.mubr.msk.f32.mxu0 %vm2765_vm11, %v2720_v22  ;;  %v12463_v22 = vld [vmem:[#allocation45_spill] sm:$0xff]  ;;  %v12464_v46 = vld [vmem:[#allocation268_spill] sm:$0xff]  ;;  %v12483_v2 = vld [vmem:[#allocation226_spill] sm:$0xff] }
 0x395   :  { %5257 = vmatmul.mubr.msk.f32.gmra.mrb[24].mxu0 %vm2765_vm11, %v2721_v59  ;;  %v1697_v44 = vpop.permute.xlu1 %1696  ;;  %v12461_v59 = vld [vmem:[#allocation222_spill] sm:$0xff]  ;;  %v2269_v9 = vsel %vm2240_vm3, %v12463_v22, %v12462_v51  ;;  %v12485_v51 = vld [vmem:[#allocation324_spill] sm:$0xff] }
 0x396   :  { %v1695_v40 = vpop.permute.xlu0 %1694  ;;  %v2593_v32 = vsel %vm2565_vm8, %v2528_v1, %v1697_v44  ;;  %v2335_v44 = vsel %vm2305_vm4, %v2270_v24, %v12464_v46  ;;  %v2334_v18 = vsel %vm2305_vm4, %v2269_v9, %v12466_v63  ;;  %v12484_v24 = vld [vmem:[#allocation271_spill] sm:$0xff]  ;;  %v12486_v46 = vld [vmem:[#allocation325_spill] sm:$0xff] }
 0x397   :  { %2138 = vrot.lane.b32.xlu1 %v12443_v19, %s5384_s7  ;;  %v2592_v12 = vsel %vm2565_vm8, %v2527_v55, %v1695_v40  ;;  %v12465_v40 = vld [vmem:[#allocation223_spill] sm:$0xff]  ;;  %v2400_v19 = vsel %vm2370_vm5, %v2335_v44, %v12467_v50  ;;  %v2399_v13 = vsel %vm2370_vm5, %v2334_v18, %v12468_v60  ;;  %v12488_v50 = vld [vmem:[#allocation381_spill] sm:$0xff] }
 0x398   :  { %2136 = vrot.lane.b32.xlu0 %v12447_v35, %s5384_s7  ;;  %v2465_v37 = vsel %vm2435_vm6, %v2400_v19, %v12469_v42  ;;  %v2464_v20 = vsel %vm2435_vm6, %v2399_v13, %v12470_v31  ;;  %v12490_v13 = vld [vmem:[#allocation106_spill] sm:$0xff]  ;;  %v12491_v42 = vld [vmem:[#allocation431_spill] sm:$0xff]  ;;  %v12492_v31 = vld [vmem:[#allocation108_spill] sm:$0xff] }
 0x399   :  { %v1901_v0 = vpop.permute.xlu1 %1900  ;;  %v2530_v43 = vsel %vm2500_vm7, %v2465_v37, %v12471_v33  ;;  %v2529_v49 = vsel %vm2500_vm7, %v2464_v20, %v12473_v52 }
 0x39a   :  { %v1899_v4 = vpop.permute.xlu0 %1898  ;;  %v2658_v7 = vsel %vm2630_vm9, %v2593_v32, %v1901_v0  ;;  %v12472_v0 = vld [vmem:[#allocation100_spill] sm:$0xff]  ;;  %v12475_v32 = vld [vmem:[#allocation110_spill] sm:$0xff] }
 0x39b   :  { %1736 = vrot.lane.b32.xlu1 %v12454_v53, %s5382_s22  ;;  %v2657_v6 = vsel %vm2630_vm9, %v2592_v12, %v1899_v4  ;;  %v12476_v12 = vld [vmem:[#allocation113_spill] sm:$0xff] }
 0x39c   :  { %1734 = vrot.lane.b32.xlu0 %v12456_v14, %s5382_s22 }
 0x39d   :  { %v2103_v30 = vpop.permute.xlu1 %2102 }
 0x39e   :  { %v2723_v5 = vsel %vm2695_vm10, %v2658_v7, %v2103_v30  ;;  %v2101_v15 = vpop.permute.xlu0 %2100 }
 0x39f   :  { %v2722_v39 = vsel %vm2695_vm10, %v2657_v6, %v2101_v15  ;;  %1940 = vrot.lane.b32.xlu1 %v12457_v10, %s5383_s1  ;;  %v12477_v6 = vld [vmem:[#allocation184_spill] sm:$0xff]  ;;  %v12480_v10 = vld [vmem:[#allocation186_spill] sm:$0xff] }
 0x3a0   :  { %1938 = vrot.lane.b32.xlu0 %v12458_v28, %s5383_s1  ;;  %5259 = vmatprep.mubr.msk.f32.mxu0 %vm2765_vm11, %v2722_v39  ;;  %v12479_v39 = vld [vmem:[#allocation225_spill] sm:$0xff]  ;;  %v12481_v28 = vld [vmem:[#allocation50_spill] sm:$0xff] }
 0x3a1   :  { %5260 = vmatmul.mubr.msk.f32.gmra.mrb[26].mxu0 %vm2765_vm11, %v2723_v5  ;;  %v1701_v21 = vpop.permute.xlu1 %1700  ;;  %v12478_v5 = vld [vmem:[#allocation48_spill] sm:$0xff] }
 0x3a2   :  { %v1699_v25 = vpop.permute.xlu0 %1698  ;;  %v2595_v41 = vsel %vm2565_vm8, %v2530_v43, %v1701_v21  ;;  %v2272_v15 = vsel %vm2240_vm3, %v12478_v5, %v12477_v6  ;;  %v2271_v21 = vsel %vm2240_vm3, %v12481_v28, %v12480_v10  ;;  %v12500_v5 = vld [vmem:[#allocation272_spill] sm:$0xff]  ;;  %v12502_v10 = vld [vmem:[#allocation273_spill] sm:$0xff] }
 0x3a3   :  { %2142 = vrot.lane.b32.xlu1 %v12461_v59, %s5384_s7  ;;  %v2594_v4 = vsel %vm2565_vm8, %v2529_v49, %v1699_v25  ;;  %v12482_v25 = vld [vmem:[#allocation270_spill] sm:$0xff]  ;;  %v2336_v59 = vsel %vm2305_vm4, %v2271_v21, %v12484_v24 }
 0x3a4   :  { %2140 = vrot.lane.b32.xlu0 %v12465_v40, %s5384_s7  ;;  %v2337_v62 = vsel %vm2305_vm4, %v2272_v15, %v12482_v25  ;;  %v2401_v44 = vsel %vm2370_vm5, %v2336_v59, %v12486_v46  ;;  %v12487_v40 = vld [vmem:[#allocation380_spill] sm:$0xff]  ;;  %v12503_v21 = vld [vmem:[#allocation326_spill] sm:$0xff] }
 0x3a5   :  { %v1905_v27 = vpop.permute.xlu1 %1904  ;;  %v2402_v22 = vsel %vm2370_vm5, %v2337_v62, %v12485_v51  ;;  %v2466_v19 = vsel %vm2435_vm6, %v2401_v44, %v12488_v50  ;;  %v12505_v59 = vld [vmem:[#allocation382_spill] sm:$0xff]  ;;  %v12507_v44 = vld [vmem:[#allocation432_spill] sm:$0xff] }
 0x3a6   :  { %v1903_v35 = vpop.permute.xlu0 %1902  ;;  %v2660_v61 = vsel %vm2630_vm9, %v2595_v41, %v1905_v27  ;;  %v2467_v63 = vsel %vm2435_vm6, %v2402_v22, %v12487_v40  ;;  %v12489_v27 = vld [vmem:[#allocation430_spill] sm:$0xff]  ;;  %v2531_v37 = vsel %vm2500_vm7, %v2466_v19, %v12491_v42 }
 0x3a7   :  { %1740 = vrot.lane.b32.xlu1 %v12472_v0, %s5382_s22  ;;  %v2659_v47 = vsel %vm2630_vm9, %v2594_v4, %v1903_v35  ;;  %v2532_v60 = vsel %vm2500_vm7, %v2467_v63, %v12489_v27  ;;  %v12508_v63 = vld [vmem:[#allocation111_spill] sm:$0xff]  ;;  %v12510_v27 = vld [vmem:[#allocation114_spill] sm:$0xff] }
 0x3a8   :  { %1738 = vrot.lane.b32.xlu0 %v12474_v29, %s5382_s22 }
 0x3a9   :  { %v2107_v11 = vpop.permute.xlu1 %2106 }
 0x3aa   :  { %v2725_v1 = vsel %vm2695_vm10, %v2660_v61, %v2107_v11  ;;  %v2105_v23 = vpop.permute.xlu0 %2104  ;;  %v12493_v61 = vld [vmem:[#allocation116_spill] sm:$0xff]  ;;  %v12494_v11 = vld [vmem:[#allocation117_spill] sm:$0xff] }
 0x3ab   :  { %v2724_v55 = vsel %vm2695_vm10, %v2659_v47, %v2105_v23  ;;  %1944 = vrot.lane.b32.xlu1 %v12475_v32, %s5383_s1  ;;  %v12495_v23 = vld [vmem:[#allocation188_spill] sm:$0xff] }
 0x3ac   :  { %1942 = vrot.lane.b32.xlu0 %v12476_v12, %s5383_s1  ;;  %5262 = vmatprep.mubr.msk.f32.mxu0 %vm2765_vm11, %v2724_v55  ;;  %v12496_v55 = vld [vmem:[#allocation53_spill] sm:$0xff]  ;;  %v12497_v12 = vld [vmem:[#allocation228_spill] sm:$0xff] }
 0x3ad   :  { %5263 = vmatmul.mubr.msk.f32.gmra.mrb[28].mxu0 %vm2765_vm11, %v2725_v1  ;;  %v1705_v7 = vpop.permute.xlu1 %1704  ;;  %v2274_v32 = vsel %vm2240_vm3, %v12496_v55, %v12495_v23  ;;  %v12516_v23 = vld [vmem:[#allocation193_spill] sm:$0xff]  ;;  %v12517_v55 = vld [vmem:[#allocation60_spill] sm:$0xff] }
 0x3ae   :  { %v1703_v30 = vpop.permute.xlu0 %1702  ;;  %v2597_v35 = vsel %vm2565_vm8, %v2532_v60, %v1705_v7  ;;  %v12498_v7 = vld [vmem:[#allocation190_spill] sm:$0xff]  ;;  %v2339_v15 = vsel %vm2305_vm4, %v2274_v32, %v12500_v5  ;;  %v2275_v32 = vsel %vm2240_vm3, %v12517_v55, %v12516_v23  ;;  %v12535_v55 = vld [vmem:[#allocation236_spill] sm:$0xff] }
 0x3af   :  { %2146 = vrot.lane.b32.xlu1 %v12479_v39, %s5384_s7  ;;  %v2596_v20 = vsel %vm2565_vm8, %v2531_v37, %v1703_v30  ;;  %v12499_v30 = vld [vmem:[#allocation56_spill] sm:$0xff]  ;;  %v12501_v39 = vld [vmem:[#allocation229_spill] sm:$0xff]  ;;  %v2404_v25 = vsel %vm2370_vm5, %v2339_v15, %v12503_v21 }
 0x3b0   :  { %2144 = vrot.lane.b32.xlu0 %v12483_v2, %s5384_s7  ;;  %v2273_v6 = vsel %vm2240_vm3, %v12499_v30, %v12498_v7  ;;  %v12504_v2 = vld [vmem:[#allocation327_spill] sm:$0xff]  ;;  %v2469_v51 = vsel %vm2435_vm6, %v2404_v25, %v12505_v59  ;;  %v12519_v30 = vld [vmem:[#allocation232_spill] sm:$0xff] }
 0x3b1   :  { %v1909_v9 = vpop.permute.xlu1 %1908  ;;  %v2338_v28 = vsel %vm2305_vm4, %v2273_v6, %v12502_v10  ;;  %v2534_v40 = vsel %vm2500_vm7, %v2469_v51, %v12507_v44  ;;  %v12520_v6 = vld [vmem:[#allocation275_spill] sm:$0xff]  ;;  %v12521_v15 = vld [vmem:[#allocation328_spill] sm:$0xff]  ;;  %v12525_v51 = vld [vmem:[#allocation434_spill] sm:$0xff] }
 0x3b2   :  { %v1907_v18 = vpop.permute.xlu0 %1906  ;;  %v2662_v33 = vsel %vm2630_vm9, %v2597_v35, %v1909_v9  ;;  %v2403_v24 = vsel %vm2370_vm5, %v2338_v28, %v12504_v2  ;;  %v12506_v9 = vld [vmem:[#allocation383_spill] sm:$0xff]  ;;  %v2340_v5 = vsel %vm2305_vm4, %v2275_v32, %v12520_v6  ;;  %v12522_v28 = vld [vmem:[#allocation329_spill] sm:$0xff]  ;;  %v12523_v25 = vld [vmem:[#allocation384_spill] sm:$0xff] }
 0x3b3   :  { %1744 = vrot.lane.b32.xlu1 %v12490_v13, %s5382_s22  ;;  %v2661_v52 = vsel %vm2630_vm9, %v2596_v20, %v1907_v18  ;;  %v2468_v46 = vsel %vm2435_vm6, %v2403_v24, %v12506_v9  ;;  %v12509_v18 = vld [vmem:[#allocation433_spill] sm:$0xff]  ;;  %v2405_v21 = vsel %vm2370_vm5, %v2340_v5, %v12522_v28  ;;  %v12526_v9 = vld [vmem:[#allocation115_spill] sm:$0xff] }
 0x3b4   :  { %1742 = vrot.lane.b32.xlu0 %v12492_v31, %s5382_s22  ;;  %v2533_v50 = vsel %vm2500_vm7, %v2468_v46, %v12509_v18  ;;  %v12524_v24 = vld [vmem:[#allocation385_spill] sm:$0xff]  ;;  %v12527_v46 = vld [vmem:[#allocation435_spill] sm:$0xff]  ;;  %v12528_v18 = vld [vmem:[#allocation118_spill] sm:$0xff] }
 0x3b5   :  { %v2111_v43 = vpop.permute.xlu1 %2110  ;;  %v2470_v59 = vsel %vm2435_vm6, %v2405_v21, %v12524_v24  ;;  %v12536_v32 = vld [vmem:[#allocation277_spill] sm:$0xff]  ;;  %v12541_v21 = vld [vmem:[#allocation436_spill] sm:$0xff] }
 0x3b6   :  { %v2727_v49 = vsel %vm2695_vm10, %v2662_v33, %v2111_v43  ;;  %v2109_v41 = vpop.permute.xlu0 %2108  ;;  %v12511_v43 = vld [vmem:[#allocation119_spill] sm:$0xff]  ;;  %v2535_v44 = vsel %vm2500_vm7, %v2470_v59, %v12527_v46  ;;  %v12538_v6 = vld [vmem:[#allocation333_spill] sm:$0xff] }
 0x3b7   :  { %v2726_v4 = vsel %vm2695_vm10, %v2661_v52, %v2109_v41  ;;  %1948 = vrot.lane.b32.xlu1 %v12493_v61, %s5383_s1  ;;  %v12513_v61 = vld [vmem:[#allocation46_spill] sm:$0xff]  ;;  %v12544_v59 = vld [vmem:[#allocation197_spill] sm:$0xff] }
 0x3b8   :  { %1946 = vrot.lane.b32.xlu0 %v12494_v11, %s5383_s1  ;;  %5265 = vmatprep.mubr.msk.f32.mxu0 %vm2765_vm11, %v2726_v4  ;;  %v12514_v11 = vld [vmem:[#allocation57_spill] sm:$0xff] }
 0x3b9   :  { %5266 = vmatmul.mubr.msk.f32.gmra.mrb[30].mxu0 %vm2765_vm11, %v2727_v49  ;;  %v1709_v47 = vpop.permute.xlu1 %1708  ;;  %v12512_v49 = vld [vmem:[#allocation121_spill] sm:$0xff] }
 0x3ba   :  { %v1707_v1 = vpop.permute.xlu0 %1706  ;;  %v2599_v19 = vsel %vm2565_vm8, %v2534_v40, %v1709_v47  ;;  %v2276_v47 = vsel %vm2240_vm3, %v12514_v11, %v12513_v61  ;;  %v12532_v61 = vld [vmem:[#allocation234_spill] sm:$0xff]  ;;  %v12533_v11 = vld [vmem:[#allocation196_spill] sm:$0xff] }
 0x3bb   :  { %2150 = vrot.lane.b32.xlu1 %v12497_v12, %s5384_s7  ;;  %v2598_v60 = vsel %vm2565_vm8, %v2533_v50, %v1707_v1  ;;  %v12515_v1 = vld [vmem:[#allocation231_spill] sm:$0xff]  ;;  %v12518_v12 = vld [vmem:[#allocation274_spill] sm:$0xff] }
 0x3bc   :  { %2148 = vrot.lane.b32.xlu0 %v12501_v39, %s5384_s7  ;;  %v2341_v7 = vsel %vm2305_vm4, %v2276_v47, %v12518_v12  ;;  %v2277_v47 = vsel %vm2240_vm3, %v12313_v57, %v12533_v11  ;;  %v12553_v11 = vld [vmem:[#allocation74_spill] sm:$0xff] }
 0x3bd   :  { %v1913_v62 = vpop.permute.xlu1 %1912  ;;  %v2406_v39 = vsel %vm2370_vm5, %v2341_v7, %v12521_v15  ;;  %v2342_v12 = vsel %vm2305_vm4, %v2277_v47, %v12536_v32  ;;  %v12537_v7 = vld [vmem:[#allocation331_spill] sm:$0xff]  ;;  %v12557_v32 = vld [vmem:[#allocation212_spill] sm:$0xff] }
 0x3be   :  { %v1911_v22 = vpop.permute.xlu0 %1910  ;;  %v2664_v42 = vsel %vm2630_vm9, %v2599_v19, %v1913_v62  ;;  %v2471_v62 = vsel %vm2435_vm6, %v2406_v39, %v12523_v25  ;;  %v2407_v5 = vsel %vm2370_vm5, %v2342_v12, %v12538_v6  ;;  %v12539_v15 = vld [vmem:[#allocation195_spill] sm:$0xff]  ;;  %v12562_v6 = vld [vmem:[#allocation218_spill] sm:$0xff] }
 0x3bf   :  { %1748 = vrot.lane.b32.xlu1 %v12508_v63, %s5382_s22  ;;  %v2663_v35 = vsel %vm2630_vm9, %v2598_v60, %v1911_v22  ;;  %v2536_v22 = vsel %vm2500_vm7, %v2471_v62, %v12525_v51  ;;  %v12542_v62 = vld [vmem:[#allocation120_spill] sm:$0xff]  ;;  %v2279_v51 = vsel %vm2240_vm3, %v12330_v36, %v12544_v59  ;;  %v12558_v12 = vld [vmem:[#allocation131_spill] sm:$0xff]  ;;  %v12569_v59 = vld [vmem:[#allocation109_spill] sm:$0xff] }
 0x3c0   :  { %1746 = vrot.lane.b32.xlu0 %v12510_v27, %s5382_s22 }
 0x3c1   :  { %v2115_v37 = vpop.permute.xlu1 %2114 }
 0x3c2   :  { %v2729_v20 = vsel %vm2695_vm10, %v2664_v42, %v2115_v37  ;;  %v2113_v33 = vpop.permute.xlu0 %2112 }
 0x3c3   :  { %1952 = vrot.lane.b32.xlu1 %v12511_v43, %s5383_s1  ;;  %v2728_v52 = vsel %vm2695_vm10, %v2663_v35, %v2113_v33  ;;  %v12529_v33 = vld [vmem:[#allocation123_spill] sm:$0xff]  ;;  %v12530_v43 = vld [vmem:[#allocation126_spill] sm:$0xff] }
 0x3c4   :  { %1950 = vrot.lane.b32.xlu0 %v12512_v49, %s5383_s1  ;;  %5268 = vmatprep.mubr.msk.f32.mxu1 %vm2765_vm11, %v2728_v52 }
 0x3c5   :  { %5269 = vmatmul.mubr.msk.f32.vlgmr.msra.gmra.mrb[0].mxu1 %vm2765_vm11, %v2729_v20  ;;  %v1713_v41 = vpop.permute.xlu1 %1712 }
 0x3c6   :  { %v1711_v4 = vpop.permute.xlu0 %1710  ;;  %v2601_v40 = vsel %vm2565_vm8, %v2536_v22, %v1713_v41  ;;  %v12531_v41 = vld [vmem:[#allocation51_spill] sm:$0xff]  ;;  %v12545_v22 = vld [vmem:[#allocation437_spill] sm:$0xff] }
 0x3c7   :  { %2154 = vrot.lane.b32.xlu1 %v12515_v1, %s5384_s7  ;;  %v2600_v50 = vsel %vm2565_vm8, %v2535_v44, %v1711_v4  ;;  %v2278_v4 = vsel %vm2240_vm3, %v12312_v26, %v12531_v41  ;;  %v12534_v1 = vld [vmem:[#allocation276_spill] sm:$0xff] }
 0x3c8   :  { %2152 = vrot.lane.b32.xlu0 %v12519_v30, %s5384_s7  ;;  %v2343_v23 = vsel %vm2305_vm4, %v2278_v4, %v12534_v1  ;;  %v12551_v4 = vld [vmem:[#allocation67_spill] sm:$0xff]  ;;  %v12555_v1 = vld [vmem:[#allocation209_spill] sm:$0xff] }
 0x3c9   :  { %v1917_v10 = vpop.permute.xlu1 %1916  ;;  %v2408_v30 = vsel %vm2370_vm5, %v2343_v23, %v12537_v7  ;;  %v2287_v23 = vsel %vm2240_vm3, %v12420_v58, %v12555_v1 }
 0x3ca   :  { %v1915_v2 = vpop.permute.xlu0 %1914  ;;  %v2666_v19 = vsel %vm2630_vm9, %v2601_v40, %v1917_v10  ;;  %v2473_v39 = vsel %vm2435_vm6, %v2408_v30, %v12539_v15  ;;  %v12540_v10 = vld [vmem:[#allocation387_spill] sm:$0xff]  ;;  %v12546_v40 = vld [vmem:[#allocation122_spill] sm:$0xff] }
 0x3cb   :  { %1752 = vrot.lane.b32.xlu1 %v12526_v9, %s5382_s22  ;;  %v2665_v42 = vsel %vm2630_vm9, %v2600_v50, %v1915_v2  ;;  %v2472_v28 = vsel %vm2435_vm6, %v2407_v5, %v12540_v10  ;;  %v2538_v25 = vsel %vm2500_vm7, %v2473_v39, %v12541_v21  ;;  %v12543_v2 = vld [vmem:[#allocation54_spill] sm:$0xff]  ;;  %v12547_v50 = vld [vmem:[#allocation61_spill] sm:$0xff]  ;;  %v12560_v30 = vld [vmem:[#allocation215_spill] sm:$0xff] }
 0x3cc   :  { %1750 = vrot.lane.b32.xlu0 %v12528_v18, %s5382_s22  ;;  %v2280_v24 = vsel %vm2240_vm3, %v12327_v38, %v12543_v2  ;;  %v2537_v46 = vsel %vm2500_vm7, %v2472_v28, %v12545_v22  ;;  %v2291_v58 = vsel %vm2240_vm3, %v12456_v14, %v12560_v30  ;;  %v12563_v15 = vld [vmem:[#allocation94_spill] sm:$0xff]  ;;  %v12565_v14 = vld [vmem:[#allocation97_spill] sm:$0xff]  ;;  %v12567_v21 = vld [vmem:[#allocation104_spill] sm:$0xff] }
 0x3cd   :  { %v2119_v60 = vpop.permute.xlu1 %2118  ;;  %v2296_v39 = vsel %vm2240_vm3, %v12490_v13, %v12563_v15  ;;  %v2298_v10 = vsel %vm2240_vm3, %v12508_v63, %v12565_v14  ;;  %v12568_v2 = vld [vmem:[#allocation227_spill] sm:$0xff]  ;;  %v12570_v22 = vld [vmem:[#allocation230_spill] sm:$0xff] }
 0x3ce   :  { %v2731_v37 = vsel %vm2695_vm10, %v2666_v19, %v2119_v60  ;;  %v2117_v35 = vpop.permute.xlu0 %2116  ;;  %v2282_v19 = vsel %vm2240_vm3, %v12349_v54, %v12547_v50  ;;  %v12548_v60 = vld [vmem:[#allocation200_spill] sm:$0xff]  ;;  %v2299_v13 = vsel %vm2240_vm3, %v12528_v18, %v12568_v2  ;;  %v2301_v63 = vsel %vm2240_vm3, %v12546_v40, %v12570_v22  ;;  %v12576_v18 = vld [vmem:[#allocation278_spill] sm:$0xff]  ;;  %v12593_v2 = vld [vmem:[#allocation439_spill] sm:$0xff] }
 0x3cf   :  { %v2730_v20 = vsel %vm2695_vm10, %v2665_v42, %v2117_v35  ;;  %1956 = vrot.lane.b32.xlu1 %v12529_v33, %s5383_s1  ;;  %v2281_v38 = vsel %vm2240_vm3, %v12351_v8, %v12548_v60  ;;  %v12549_v35 = vld [vmem:[#allocation64_spill] sm:$0xff]  ;;  %v12550_v33 = vld [vmem:[#allocation203_spill] sm:$0xff]  ;;  %v2286_v8 = vsel %vm2240_vm3, %v12398_v34, %v12551_v4  ;;  %v12588_v30 = vld [vmem:[#allocation286_spill] sm:$0xff] }
 0x3d0   :  { %1954 = vrot.lane.b32.xlu0 %v12530_v43, %s5383_s1  ;;  %5271 = vmatprep.mubr.msk.f32.mxu1 %vm2765_vm11, %v2730_v20  ;;  %v2284_v20 = vsel %vm2240_vm3, %v12369_v16, %v12549_v35  ;;  %v2283_v43 = vsel %vm2240_vm3, %v12373_v17, %v12550_v33  ;;  %v2288_v16 = vsel %vm2240_vm3, %v12418_v3, %v12553_v11  ;;  %v12554_v17 = vld [vmem:[#allocation129_spill] sm:$0xff]  ;;  %v12559_v3 = vld [vmem:[#allocation82_spill] sm:$0xff]  ;;  %v12575_v60 = vld [vmem:[#allocation127_spill] sm:$0xff] }
 0x3d1   :  { %5272 = vmatmul.mubr.msk.f32.gmra.mrb[2].mxu1 %vm2765_vm11, %v2731_v37  ;;  %v1717_v52 = vpop.permute.xlu1 %1716  ;;  %v2292_v7 = vsel %vm2240_vm3, %v12454_v53, %v12559_v3  ;;  %v12564_v53 = vld [vmem:[#allocation221_spill] sm:$0xff]  ;;  %v12578_v35 = vld [vmem:[#allocation240_spill] sm:$0xff] }
 0x3d2   :  { %v1715_v49 = vpop.permute.xlu0 %1714  ;;  %v2603_v44 = vsel %vm2565_vm8, %v2538_v25, %v1717_v52  ;;  %v2300_v25 = vsel %vm2240_vm3, %v12526_v9, %v12567_v21  ;;  %v12574_v9 = vld [vmem:[#allocation233_spill] sm:$0xff] }
 0x3d3   :  { %2158 = vrot.lane.b32.xlu1 %v12532_v61, %s5384_s7  ;;  %v2602_v42 = vsel %vm2565_vm8, %v2537_v46, %v1715_v49  ;;  %v12552_v49 = vld [vmem:[#allocation206_spill] sm:$0xff]  ;;  %v12587_v3 = vld [vmem:[#allocation285_spill] sm:$0xff] }
 0x3d4   :  { %2156 = vrot.lane.b32.xlu0 %v12535_v55, %s5384_s7  ;;  %v2285_v61 = vsel %vm2240_vm3, %v12401_v45, %v12552_v49  ;;  %v12556_v55 = vld [vmem:[#allocation79_spill] sm:$0xff]  ;;  %v2289_v45 = vsel %vm2240_vm3, %v12438_v56, %v12557_v32  ;;  %v2293_v56 = vsel %vm2240_vm3, %v12474_v29, %v12562_v6  ;;  %v12571_v46 = vld [vmem:[#allocation238_spill] sm:$0xff]  ;;  %v12589_v6 = vld [vmem:[#allocation389_spill] sm:$0xff] }
 0x3d5   :  { %v1921_v26 = vpop.permute.xlu1 %1920  ;;  %v2290_v34 = vsel %vm2240_vm3, %v12436_v48, %v12556_v55  ;;  %v12582_v49 = vld [vmem:[#allocation334_spill] sm:$0xff]  ;;  %v12585_v55 = vld [vmem:[#allocation335_spill] sm:$0xff] }
 0x3d6   :  { %v1919_v57 = vpop.permute.xlu0 %1918  ;;  %v2668_v36 = vsel %vm2630_vm9, %v2603_v44, %v1921_v26  ;;  %v12561_v26 = vld [vmem:[#allocation89_spill] sm:$0xff]  ;;  %v12573_v44 = vld [vmem:[#allocation124_spill] sm:$0xff] }
 0x3d7   :  { %1756 = vrot.lane.b32.xlu1 %v12542_v62, %s5382_s22  ;;  %v2667_v52 = vsel %vm2630_vm9, %v2602_v42, %v1919_v57  ;;  %v2294_v48 = vsel %vm2240_vm3, %v12472_v0, %v12561_v26  ;;  %v2295_v57 = vsel %vm2240_vm3, %v12492_v31, %v12564_v53  ;;  %v12566_v0 = vld [vmem:[#allocation224_spill] sm:$0xff]  ;;  %v2302_v31 = vsel %vm2240_vm3, %v12542_v62, %v12569_v59  ;;  %v12594_v59 = vld [vmem:[#allocation289_spill] sm:$0xff] }
 0x3d8   :  { %1754 = vrot.lane.b32.xlu0 %v12546_v40, %s5382_s22  ;;  %v2297_v28 = vsel %vm2240_vm3, %v12510_v27, %v12566_v0  ;;  %v12572_v27 = vld [vmem:[#allocation112_spill] sm:$0xff]  ;;  %v2303_v42 = vsel %vm2240_vm3, %v12575_v60, %v12574_v9  ;;  %v2353_v26 = vsel %vm2305_vm4, %v2288_v16, %v12588_v30  ;;  %v2354_v22 = vsel %vm2305_vm4, %v2289_v45, %v12594_v59  ;;  %v12598_v45 = vld [vmem:[#allocation293_spill] sm:$0xff] }
 0x3d9   :  { %v2123_v37 = vpop.permute.xlu1 %2122  ;;  %v2304_v50 = vsel %vm2240_vm3, %v12573_v44, %v12572_v27  ;;  %v12579_v40 = vld [vmem:[#allocation280_spill] sm:$0xff]  ;;  %v12611_v30 = vld [vmem:[#allocation65_spill] sm:$0xff]  ;;  %vm4855_vm3 = vcmask 326656  }
 0x3da   :  { %v2733_v54 = vsel %vm2695_vm10, %v2668_v36, %v2123_v37  ;;  %v2121_v41 = vpop.permute.xlu0 %2120  ;;  %v2345_v36 = vsel %vm2305_vm4, %v2280_v24, %v12576_v18  ;;  %v12577_v37 = vld [vmem:[#allocation279_spill] sm:$0xff]  ;;  %v2347_v33 = vsel %vm2305_vm4, %v2282_v19, %v12579_v40  ;;  %v12586_v19 = vld [vmem:[#allocation388_spill] sm:$0xff] }
 0x3db   :  { %v2732_v47 = vsel %vm2695_vm10, %v2667_v52, %v2121_v41  ;;  %1960 = vrot.lane.b32.xlu1 %v12554_v17, %s5383_s1  ;;  %v2344_v62 = vsel %vm2305_vm4, %v2279_v51, %v12577_v37  ;;  %v12580_v52 = vld [vmem:[#allocation281_spill] sm:$0xff]  ;;  %v12581_v41 = vld [vmem:[#allocation282_spill] sm:$0xff]  ;;  %v2410_v11 = vsel %vm2370_vm5, %v2345_v36, %v12582_v49  ;;  %v12583_v24 = vld [vmem:[#allocation283_spill] sm:$0xff] }
 0x3dc   :  { %1958 = vrot.lane.b32.xlu0 %v12558_v12, %s5383_s1  ;;  %5274 = vmatprep.mubr.msk.f32.mxu1 %vm2765_vm11, %v2732_v47  ;;  %v2349_v4 = vsel %vm2305_vm4, %v2284_v20, %v12581_v41  ;;  %v2348_v17 = vsel %vm2305_vm4, %v2283_v43, %v12583_v24  ;;  %v12584_v51 = vld [vmem:[#allocation284_spill] sm:$0xff]  ;;  %v2409_v32 = vsel %vm2370_vm5, %v2344_v62, %v12585_v55  ;;  %v12590_v43 = vld [vmem:[#allocation438_spill] sm:$0xff]  ;;  %v12600_v40 = vld [vmem:[#allocation295_spill] sm:$0xff] }
 0x3dd   :  { %5275 = vmatmul.mubr.msk.f32.gmra.mrb[4].mxu1 %vm2765_vm11, %v2733_v54  ;;  %v1721_v5 = vpop.permute.xlu1 %1720  ;;  %v2346_v54 = vsel %vm2305_vm4, %v2281_v38, %v12580_v52  ;;  %v2351_v1 = vsel %vm2305_vm4, %v2286_v8, %v12584_v51  ;;  %v2475_v12 = vsel %vm2435_vm6, %v2410_v11, %v12586_v19  ;;  %v2350_v20 = vsel %vm2305_vm4, %v2285_v61, %v12587_v3  ;;  %v12591_v8 = vld [vmem:[#allocation287_spill] sm:$0xff]  ;;  %v12592_v0 = vld [vmem:[#allocation288_spill] sm:$0xff]  ;;  %v12603_v11 = vld [vmem:[#allocation297_spill] sm:$0xff] }
 0x3de   :  { %v1719_v29 = vpop.permute.xlu0 %1718  ;;  %v2474_v15 = vsel %vm2435_vm6, %v2409_v32, %v12589_v6  ;;  %v2540_v53 = vsel %vm2500_vm7, %v2475_v12, %v12590_v43  ;;  %v2352_v14 = vsel %vm2305_vm4, %v2287_v23, %v12591_v8  ;;  %v2355_v21 = vsel %vm2305_vm4, %v2290_v34, %v12592_v0  ;;  %v12596_v34 = vld [vmem:[#allocation291_spill] sm:$0xff]  ;;  %v12597_v36 = vld [vmem:[#allocation292_spill] sm:$0xff]  ;;  %v12604_v24 = vld [vmem:[#allocation298_spill] sm:$0xff] }
 0x3df   :  { %2162 = vrot.lane.b32.xlu1 %v12571_v46, %s5384_s7  ;;  %v2539_v61 = vsel %vm2500_vm7, %v2474_v15, %v12593_v2  ;;  %v2605_v16 = vsel %vm2565_vm8, %v2540_v53, %v1721_v5  ;;  %v12595_v46 = vld [vmem:[#allocation290_spill] sm:$0xff]  ;;  %v2356_v18 = vsel %vm2305_vm4, %v2291_v58, %v12596_v34  ;;  %v2359_v5 = vsel %vm2305_vm4, %v2294_v48, %v12597_v36  ;;  %v12601_v58 = vld [vmem:[#allocation133_spill] sm:$0xff]  ;;  %v12602_v48 = vld [vmem:[#allocation296_spill] sm:$0xff] }
 0x3e0   :  { %2160 = vrot.lane.b32.xlu0 %v12578_v35, %s5384_s7  ;;  %v2357_v27 = vsel %vm2305_vm4, %v2292_v7, %v12595_v46  ;;  %v2358_v35 = vsel %vm2305_vm4, %v2293_v56, %v12598_v45  ;;  %v12599_v7 = vld [vmem:[#allocation294_spill] sm:$0xff]  ;;  %v2360_v52 = vsel %vm2305_vm4, %v2295_v57, %v12600_v40  ;;  %v2363_v49 = vsel %vm2305_vm4, %v2298_v10, %v12602_v48  ;;  %v12605_v51 = vld [vmem:[#allocation135_spill] sm:$0xff]  ;;  %v12607_v55 = vld [vmem:[#allocation300_spill] sm:$0xff] }
 0x3e1   :  { %v1925_v47 = vpop.permute.xlu1 %1924  ;;  %v2365_v56 = vsel %vm2305_vm4, %v2300_v25, %v12604_v24  ;;  %v2367_v32 = vsel %vm2305_vm4, %v2302_v31, %v12607_v55  ;;  %v12608_v19 = vld [vmem:[#allocation301_spill] sm:$0xff]  ;;  %v12609_v12 = vld [vmem:[#allocation302_spill] sm:$0xff]  ;;  %v2412_v6 = vsel %vm2370_vm5, %v2347_v33, %v12611_v30  ;;  %v12612_v15 = vld [vmem:[#allocation68_spill] sm:$0xff] }
 0x3e2   :  { %v1923_v38 = vpop.permute.xlu0 %1922  ;;  %v2670_v23 = vsel %vm2630_vm9, %v2605_v16, %v1925_v47  ;;  %v2362_v47 = vsel %vm2305_vm4, %v2297_v28, %v12603_v11  ;;  %v2366_v10 = vsel %vm2305_vm4, %v2301_v63, %v12608_v19  ;;  %v2369_v28 = vsel %vm2305_vm4, %v2304_v50, %v12609_v12  ;;  %v12613_v43 = vld [vmem:[#allocation336_spill] sm:$0xff]  ;;  %v12614_v63 = vld [vmem:[#allocation337_spill] sm:$0xff]  ;;  %v12615_v50 = vld [vmem:[#allocation338_spill] sm:$0xff] }
 0x3e3   :  { %1760 = vrot.lane.b32.xlu1 %v12573_v44, %s5382_s22  ;;  %v2604_v44 = vsel %vm2565_vm8, %v2539_v61, %v1719_v29  ;;  %v2361_v29 = vsel %vm2305_vm4, %v2296_v39, %v12599_v7  ;;  %v12606_v39 = vld [vmem:[#allocation299_spill] sm:$0xff]  ;;  %v2414_v31 = vsel %vm2370_vm5, %v2349_v4, %v12613_v43  ;;  %v2413_v8 = vsel %vm2370_vm5, %v2348_v17, %v12614_v63  ;;  %v12618_v33 = vld [vmem:[#allocation242_spill] sm:$0xff]  ;;  %v12632_v48 = vld [vmem:[#allocation352_spill] sm:$0xff] }
 0x3e4   :  { %1758 = vrot.lane.b32.xlu0 %v12575_v60, %s5382_s22  ;;  %v2669_v37 = vsel %vm2630_vm9, %v2604_v44, %v1923_v38  ;;  %v2364_v57 = vsel %vm2305_vm4, %v2299_v13, %v12606_v39  ;;  %v12610_v38 = vld [vmem:[#allocation303_spill] sm:$0xff]  ;;  %v2411_v13 = vsel %vm2370_vm5, %v2346_v54, %v12612_v15  ;;  %v2416_v0 = vsel %vm2370_vm5, %v2351_v1, %v12615_v50  ;;  %v12619_v54 = vld [vmem:[#allocation341_spill] sm:$0xff]  ;;  %v12620_v4 = vld [vmem:[#allocation342_spill] sm:$0xff] }
 0x3e5   :  { %v2127_v9 = vpop.permute.xlu1 %2126  ;;  %v2368_v3 = vsel %vm2305_vm4, %v2303_v42, %v12610_v38  ;;  %v12616_v2 = vld [vmem:[#allocation339_spill] sm:$0xff]  ;;  %v12617_v42 = vld [vmem:[#allocation340_spill] sm:$0xff]  ;;  %v2417_v59 = vsel %vm2370_vm5, %v2352_v14, %v12619_v54  ;;  %v2420_v46 = vsel %vm2370_vm5, %v2355_v21, %v12620_v4  ;;  %v12625_v34 = vld [vmem:[#allocation346_spill] sm:$0xff] }
 0x3e6   :  { %v2735_v60 = vsel %vm2695_vm10, %v2670_v23, %v2127_v9  ;;  %v2125_v62 = vpop.permute.xlu0 %2124  ;;  %v2415_v61 = vsel %vm2370_vm5, %v2350_v20, %v12616_v2  ;;  %v2418_v16 = vsel %vm2370_vm5, %v2353_v26, %v12617_v42  ;;  %v12621_v44 = vld [vmem:[#allocation343_spill] sm:$0xff]  ;;  %v12622_v23 = vld [vmem:[#allocation344_spill] sm:$0xff]  ;;  %v12624_v9 = vld [vmem:[#allocation345_spill] sm:$0xff]  ;;  %v2424_v36 = vsel %vm2370_vm5, %v2359_v5, %v12625_v34 }
 0x3e7   :  { %v2734_v41 = vsel %vm2695_vm10, %v2669_v37, %v2125_v62  ;;  %1964 = vrot.lane.b32.xlu1 %v12601_v58, %s5383_s1  ;;  %v2419_v17 = vsel %vm2370_vm5, %v2354_v22, %v12621_v44  ;;  %v2422_v1 = vsel %vm2370_vm5, %v2357_v27, %v12622_v23  ;;  %v12623_v20 = vld [vmem:[#allocation244_spill] sm:$0xff]  ;;  %v2421_v26 = vsel %vm2370_vm5, %v2356_v18, %v12624_v9  ;;  %v12626_v37 = vld [vmem:[#allocation347_spill] sm:$0xff]  ;;  %v12628_v22 = vld [vmem:[#allocation349_spill] sm:$0xff] }
 0x3e8   :  { %1962 = vrot.lane.b32.xlu0 %v12605_v51, %s5383_s1  ;;  %5277 = vmatprep.mubr.msk.f32.mxu1 %vm2765_vm11, %v2734_v41  ;;  %v2423_v14 = vsel %vm2370_vm5, %v2358_v35, %v12626_v37  ;;  %v2425_v45 = vsel %vm2370_vm5, %v2360_v52, %v12628_v22  ;;  %v12629_v27 = vld [vmem:[#allocation350_spill] sm:$0xff]  ;;  %v12630_v40 = vld [vmem:[#allocation351_spill] sm:$0xff]  ;;  %v2430_v35 = vsel %vm2370_vm5, %v2365_v56, %v12632_v48  ;;  %v12633_v11 = vld [vmem:[#allocation353_spill] sm:$0xff] }
 0x3e9   :  { %5278 = vmatmul.mubr.msk.f32.gmra.mrb[6].mxu1 %vm2765_vm11, %v2735_v60  ;;  %v1725_v25 = vpop.permute.xlu1 %1724  ;;  %v12627_v60 = vld [vmem:[#allocation348_spill] sm:$0xff]  ;;  %v2428_v7 = vsel %vm2370_vm5, %v2363_v49, %v12629_v27  ;;  %v2427_v41 = vsel %vm2370_vm5, %v2362_v47, %v12630_v40  ;;  %v12631_v18 = vld [vmem:[#allocation198_spill] sm:$0xff]  ;;  %v12634_v24 = vld [vmem:[#allocation199_spill] sm:$0xff] }
 0x3ea   :  { %v1723_v53 = vpop.permute.xlu0 %1722  ;;  %v2426_v21 = vsel %vm2370_vm5, %v2361_v29, %v12627_v60  ;;  %v2477_v58 = vsel %vm2435_vm6, %v2412_v6, %v12631_v18  ;;  %v2429_v29 = vsel %vm2370_vm5, %v2364_v57, %v12633_v11  ;;  %v2476_v51 = vsel %vm2435_vm6, %v2411_v13, %v12634_v24  ;;  %v12635_v52 = vld [vmem:[#allocation440_spill] sm:$0xff]  ;;  %v12637_v47 = vld [vmem:[#allocation354_spill] sm:$0xff]  ;;  %v12638_v19 = vld [vmem:[#allocation355_spill] sm:$0xff] }
 0x3eb   :  { %2166 = vrot.lane.b32.xlu1 %v12618_v33, %s5384_s7  ;;  %v2542_v39 = vsel %vm2500_vm7, %v2477_v58, %v12635_v52  ;;  %v12636_v49 = vld [vmem:[#allocation308_spill] sm:$0xff]  ;;  %v2432_v55 = vsel %vm2370_vm5, %v2367_v32, %v12637_v47  ;;  %v2431_v12 = vsel %vm2370_vm5, %v2366_v10, %v12638_v19  ;;  %v12639_v38 = vld [vmem:[#allocation441_spill] sm:$0xff]  ;;  %v124_v10 = vld [vmem:[%s11118_s0 + $0x350] sm:$0xff] }
 0x3ec   :  { %2164 = vrot.lane.b32.xlu0 %v12623_v20, %s5384_s7  ;;  %v2541_v56 = vsel %vm2500_vm7, %v2476_v51, %v12639_v38  ;;  %v2607_v57 = vsel %vm2565_vm8, %v2542_v39, %v1725_v25  ;;  %v12640_v30 = vld [vmem:[#allocation309_spill] sm:$0xff]  ;;  %v12641_v6 = vld [vmem:[#allocation356_spill] sm:$0xff]  ;;  %v12643_v2 = vld [vmem:[#allocation390_spill] sm:$0xff] }
 0x3ed   :  { %v1929_v62 = vpop.permute.xlu1 %1928  ;;  %v2434_v15 = vsel %vm2370_vm5, %v2369_v28, %v12641_v6  ;;  %v12642_v13 = vld [vmem:[#allocation357_spill] sm:$0xff]  ;;  %v2606_v63 = vsel %vm2565_vm8, %v2541_v56, %v1723_v53  ;;  %v125_v25 = vld [vmem:[%s11118_s0 + $0x358] sm:$0x3]  ;;  %v2479_v42 = vsel %vm2435_vm6, %v2414_v31, %v12643_v2  ;;  %v12644_v28 = vld [vmem:[#allocation391_spill] sm:$0xff] }
 0x3ee   :  { %v1927_v5 = vpop.permute.xlu0 %1926  ;;  %v2433_v43 = vsel %vm2370_vm5, %v2368_v3, %v12642_v13  ;;  %v2672_v32 = vsel %vm2630_vm9, %v2607_v57, %v1929_v62  ;;  %v2478_v33 = vsel %vm2435_vm6, %v2413_v8, %v12644_v28  ;;  %v123_v4 = vld [vmem:[%s11118_s0 + $0x348] sm:$0xff]  ;;  %v12645_v44 = vld [vmem:[#allocation392_spill] sm:$0xff]  ;;  %v12646_v20 = vld [vmem:[#allocation393_spill] sm:$0xff]  ;;  %s5385_s0 = smov 40   ;;  %vm4860_vm5 = vcmask 392192  }
 0x3ef   :  { %1764 = vrot.lane.b32.xlu1 %v12636_v49, %s5382_s22  ;;  %v2671_v3 = vsel %vm2630_vm9, %v2606_v63, %v1927_v5  ;;  %v2481_v23 = vsel %vm2435_vm6, %v2416_v0, %v12645_v44  ;;  %v2480_v9 = vsel %vm2435_vm6, %v2415_v61, %v12646_v20  ;;  %v12647_v34 = vld [vmem:[#allocation394_spill] sm:$0xff]  ;;  %v12649_v60 = vld [vmem:[#allocation395_spill] sm:$0xff]  ;;  %v12650_v22 = vld [vmem:[#allocation396_spill] sm:$0xff]  ;;  %v9165_v0 = vmax.f32 %v124_v10, 0.0 }
 0x3f0   :  { %1762 = vrot.lane.b32.xlu0 %v12640_v30, %s5382_s22  ;;  %v2483_v31 = vsel %vm2435_vm6, %v2418_v16, %v12647_v34  ;;  %v12648_v37 = vld [vmem:[#allocation362_spill] sm:$0xff]  ;;  %v2482_v62 = vsel %vm2435_vm6, %v2417_v59, %v12649_v60  ;;  %v2485_v27 = vsel %vm2435_vm6, %v2420_v46, %v12650_v22  ;;  %v12651_v40 = vld [vmem:[#allocation364_spill] sm:$0xff]  ;;  %v233_v61 = vmax.f32 %v125_v25, 0.0  ;;  %v12652_v16 = vld [vmem:[#allocation397_spill] sm:$0xff] }
 0x3f1   :  { %v2131_v50 = vpop.permute.xlu1 %2130  ;;  %v2484_v18 = vsel %vm2435_vm6, %v2419_v17, %v12652_v16  ;;  %v12653_v58 = vld [vmem:[#allocation398_spill] sm:$0xff]  ;;  %v12654_v48 = vld [vmem:[#allocation399_spill] sm:$0xff]  ;;  %v9174_v11 = vmax.f32 %v123_v4, 0.0  ;;  %v12655_v24 = vld [vmem:[#allocation400_spill] sm:$0xff] }
 0x3f2   :  { %v2737_v53 = vsel %vm2695_vm10, %v2672_v32, %v2131_v50  ;;  %v2129_v54 = vpop.permute.xlu0 %2128  ;;  %v2487_v5 = vsel %vm2435_vm6, %v2422_v1, %v12653_v58  ;;  %v2486_v59 = vsel %vm2435_vm6, %v2421_v26, %v12654_v48  ;;  %v2489_v51 = vsel %vm2435_vm6, %v2424_v36, %v12655_v24  ;;  %v12656_v52 = vld [vmem:[#allocation401_spill] sm:$0xff]  ;;  %v12657_v49 = vld [vmem:[#allocation402_spill] sm:$0xff]  ;;  %v12658_v47 = vld [vmem:[#allocation403_spill] sm:$0xff] }
 0x3f3   :  { %v2736_v8 = vsel %vm2695_vm10, %v2671_v3, %v2129_v54  ;;  %1968 = vrot.lane.b32.xlu1 %v12648_v37, %s5383_s1  ;;  %v2488_v39 = vsel %vm2435_vm6, %v2423_v14, %v12656_v52  ;;  %v2491_v17 = vsel %vm2435_vm6, %v2426_v21, %v12657_v49  ;;  %v2490_v1 = vsel %vm2435_vm6, %v2425_v45, %v12658_v47  ;;  %v12659_v38 = vld [vmem:[#allocation404_spill] sm:$0xff]  ;;  %v12660_v56 = vld [vmem:[#allocation405_spill] sm:$0xff]  ;;  %v12661_v30 = vld [vmem:[#allocation406_spill] sm:$0xff] }
 0x3f4   :  { %1966 = vrot.lane.b32.xlu0 %v12651_v40, %s5383_s1  ;;  %5280 = vmatprep.mubr.msk.f32.mxu1 %vm2765_vm11, %v2736_v8  ;;  %v2493_v26 = vsel %vm2435_vm6, %v2428_v7, %v12659_v38  ;;  %v2492_v57 = vsel %vm2435_vm6, %v2427_v41, %v12660_v56  ;;  %v2495_v6 = vsel %vm2435_vm6, %v2430_v35, %v12661_v30  ;;  %v12662_v36 = vld [vmem:[#allocation407_spill] sm:$0xff]  ;;  %v12663_v14 = vld [vmem:[#allocation412_spill] sm:$0xff]  ;;  %v12665_v45 = vld [vmem:[#allocation409_spill] sm:$0xff]  ;;  %v1842_v41 = vrot.slane %v9165_v0, 1 }
 0x3f5   :  { %5281 = vmatmul.mubr.msk.f32.gmra.mrb[8].mxu1 %vm2765_vm11, %v2737_v53  ;;  %v1729_v46 = vpop.permute.xlu1 %1728  ;;  %v2494_v13 = vsel %vm2435_vm6, %v2429_v29, %v12662_v36  ;;  %v12664_v21 = vld [vmem:[#allocation408_spill] sm:$0xff]  ;;  %v2496_v32 = vsel %vm2435_vm6, %v2431_v12, %v12665_v45  ;;  %v12666_v7 = vld [vmem:[#allocation413_spill] sm:$0xff]  ;;  %v1844_v50 = vrot.slane %v233_v61, 1  ;;  %v12667_v10 = vld [vmem:[#allocation410_spill] sm:$0xff]  ;;  %v2046_v40 = vrot.slane %v233_v61, 2 }
 0x3f6   :  { %v1727_v19 = vpop.permute.xlu0 %1726  ;;  %v2497_v63 = vsel %vm2435_vm6, %v2432_v55, %v12664_v21  ;;  %v2499_v35 = vsel %vm2435_vm6, %v2434_v15, %v12667_v10  ;;  %v12668_v25 = vld [vmem:[#allocation411_spill] sm:$0xff]  ;;  %v12669_v2 = vld [vmem:[#allocation442_spill] sm:$0xff]  ;;  %v1841_v55 = vrot.slane %v9174_v11, 1  ;;  %v12671_v54 = vld [vmem:[#allocation444_spill] sm:$0xff]  ;;  %v2043_v48 = vrot.slane %v9174_v11, 2 }
 0x3f7   :  { %2170 = vrot.lane.b32.xlu1 %v12663_v14, %s5384_s7  ;;  %v2498_v29 = vsel %vm2435_vm6, %v2433_v43, %v12668_v25  ;;  %v2544_v28 = vsel %vm2500_vm7, %v2479_v42, %v12669_v2  ;;  %v12670_v53 = vld [vmem:[#allocation443_spill] sm:$0xff]  ;;  %v2546_v4 = vsel %vm2500_vm7, %v2481_v23, %v12671_v54  ;;  %v12672_v44 = vld [vmem:[#allocation445_spill] sm:$0xff]  ;;  %v12673_v34 = vld [vmem:[#allocation446_spill] sm:$0xff] }
 0x3f8   :  { %2168 = vrot.lane.b32.xlu0 %v12666_v7, %s5384_s7  ;;  %v2543_v12 = vsel %vm2500_vm7, %v2478_v33, %v12670_v53  ;;  %v2545_v20 = vsel %vm2500_vm7, %v2480_v9, %v12672_v44  ;;  %v9216_v15 = vsel %vm2500_vm7, %v2483_v31, %v12673_v34  ;;  %v12674_v8 = vld [vmem:[#allocation447_spill] sm:$0xff]  ;;  %v12676_v33 = vld [vmem:[#allocation161_spill] sm:$0xff]  ;;  %v12677_v23 = vld [vmem:[#allocation22_spill] sm:$0xff]  ;;  %v2609_v31 = vsel %vm2565_vm8, %v2544_v28, %v1729_v46 }
 0x3f9   :  { %v1933_v3 = vpop.permute.xlu1 %1932  ;;  %v9220_v42 = vsel %vm2500_vm7, %v2482_v62, %v12674_v8  ;;  %v12675_v37 = vld [vmem:[#allocation159_spill] sm:$0xff]  ;;  %v9228_v22 = vsel %vm2500_vm7, %v2484_v18, %v12676_v33  ;;  %v9232_v9 = vsel %vm2500_vm7, %v2487_v5, %v12677_v23  ;;  %v1845_v62 = vsel %vm330_vm0, %v1842_v41, %v1844_v50  ;;  %v12678_v24 = vld [vmem:[#allocation24_spill] sm:$0xff]  ;;  %v12681_v56 = vld [vmem:[#allocation26_spill] sm:$0xff] }
 0x3fa   :  { %v1931_v43 = vpop.permute.xlu0 %1930  ;;  %v9224_v60 = vsel %vm2500_vm7, %v2485_v27, %v12675_v37  ;;  %v2044_v27 = vrot.slane %v9165_v0, 2  ;;  %v2608_v16 = vsel %vm2565_vm8, %v2543_v12, %v1727_v19  ;;  %v2674_v18 = vsel %vm2630_vm9, %v2609_v31, %v1933_v3  ;;  %v12679_v52 = vld [vmem:[#allocation163_spill] sm:$0xff]  ;;  %v12680_v19 = vld [vmem:[#allocation165_spill] sm:$0xff]  ;;  %v12682_v30 = vld [vmem:[#allocation28_spill] sm:$0xff] }
 0x3fb   :  { %1768 = vrot.lane.b32.xlu1 %v9165_v0, %s5382_s22  ;;  %v1843_v5 = vsel %vm330_vm0, %v1841_v55, %v1842_v41  ;;  %v9247_v46 = vsel %vm2500_vm7, %v2486_v59, %v12678_v24  ;;  %v9251_v49 = vsel %vm2500_vm7, %v2489_v51, %v12679_v52  ;;  %v2673_v0 = vsel %vm2630_vm9, %v2608_v16, %v1931_v43  ;;  %v12683_v36 = vld [vmem:[#allocation167_spill] sm:$0xff]  ;;  %v12684_v21 = vld [vmem:[#allocation169_spill] sm:$0xff]  ;;  %v12686_v25 = vld [vmem:[#allocation32_spill] sm:$0xff] }
 0x3fc   :  { %1766 = vrot.lane.b32.xlu0 %v9174_v11, %s5382_s22  ;;  %v9257_v38 = vsel %vm2500_vm7, %v2488_v39, %v12680_v19  ;;  %v9261_v11 = vsel %vm2500_vm7, %v2491_v17, %v12681_v56  ;;  %v9265_v59 = vsel %vm2500_vm7, %v2490_v1, %v12682_v30  ;;  %v9271_v14 = vsel %vm2500_vm7, %v2493_v26, %v12683_v36  ;;  %v12685_v1 = vld [vmem:[#allocation31_spill] sm:$0xff]  ;;  %v12688_v12 = vld [vmem:[#allocation173_spill] sm:$0xff]  ;;  %v12689_v44 = vld [vmem:[#allocation34_spill] sm:$0xff] }
 0x3fd   :  { %v2135_v58 = vpop.permute.xlu1 %2134  ;;  %v9275_v39 = vsel %vm2500_vm7, %v2492_v57, %v12684_v21  ;;  %v2047_v17 = vsel %vm683_vm1, %v2044_v27, %v2046_v40  ;;  %v9284_v7 = vsel %vm2500_vm7, %v2495_v6, %v12685_v1  ;;  %v2045_v10 = vsel %vm683_vm1, %v2043_v48, %v2044_v27  ;;  %v12687_v28 = vld [vmem:[#allocation171_spill] sm:$0xff] }
 0x3fe   :  { %v2739_v61 = vsel %vm2695_vm10, %v2674_v18, %v2135_v58  ;;  %v2133_v47 = vpop.permute.xlu0 %2132  ;;  %v9296_v2 = vsel %vm2500_vm7, %v2494_v13, %v12686_v25  ;;  %v9300_v6 = vsel %vm2500_vm7, %v2497_v63, %v12687_v28  ;;  %v9308_v54 = vsel %vm2500_vm7, %v2496_v32, %v12688_v12  ;;  %v12690_v63 = vld [vmem:[#allocation36_spill] sm:$0xff] }
 0x3ff   :  { %v2738_v51 = vsel %vm2695_vm10, %v2673_v0, %v2133_v47  ;;  %1972 = vrot.lane.b32.xlu1 %v1845_v62, %s5383_s1  ;;  %v9312_v34 = vsel %vm2500_vm7, %v2499_v35, %v12689_v44  ;;  %v9318_v8 = vsel %vm2500_vm7, %v2498_v29, %v12690_v63  ;;  %vm3733_vm0 = vcmask 1045509  }
 0x400   :  { %v9277_v45 = vpop.f32.mrb[0].mxu0  ;;  %1970 = vrot.lane.b32.xlu0 %v1843_v5, %s5383_s1  ;;  %5283 = vmatprep.mubr.msk.f32.mxu1 %vm2765_vm11, %v2738_v51  ;;  %vm3736_vm1 = vcmask 1046534   ;;  %vm4865_vm7 = vcmask 457728  }
 0x401   :  { %v3348_v26 = vsel %vm2305_vm4, %v9277_v45, 0.0  ;;  %v3481_v41 = vmul.f32 %v9277_v45, %v9277_v45  ;;  %v9290_v57 = vpop.f32.mrb[1].mxu0  ;;  %5284 = vmatmul.mubr.msk.f32.gmra.mrb[10].mxu1 %vm2765_vm11, %v2739_v61  ;;  %v1733_v50 = vpop.permute.xlu1 %1732  ;;  %v4363_v32 = vrot.slane %v9277_v45, 1  ;;  %v4431_v62 = vrot.slane %v9277_v45, 2 }
 0x402   :  { %v3347_v3 = vsel %vm2305_vm4, %v9290_v57, 0.0  ;;  %v3480_v55 = vmul.f32 %v9290_v57, %v9290_v57  ;;  %v1731_v53 = vpop.permute.xlu0 %1730  ;;  %v2611_v35 = vsel %vm2565_vm8, %v2546_v4, %v1733_v50  ;;  %v3787_v31 = vrot.slane %v9290_v57, 1 }
 0x403   :  { %v3545_v13 = vsel %vm2305_vm4, %v3481_v41, 0.0  ;;  %v3349_v43 = vadd.f32 %v3348_v26, %v3347_v3  ;;  %2174 = vrot.lane.b32.xlu1 %v2047_v17, %s5384_s7  ;;  %v2610_v27 = vsel %vm2565_vm8, %v2545_v20, %v1731_v53  ;;  %v3855_v29 = vrot.slane %v9290_v57, 2 }
 0x404   :  { %v3544_v37 = vsel %vm2305_vm4, %v3480_v55, 0.0  ;;  %2172 = vrot.lane.b32.xlu0 %v2045_v10, %s5384_s7  ;;  %v3923_v16 = vrot.slane %v9290_v57, 3  ;;  %v3991_v18 = vrot.slane %v9290_v57, 4  ;;  %v4059_v58 = vrot.slane %v9290_v57, 5 }
 0x405   :  { %v3546_v33 = vadd.f32 %v3545_v13, %v3544_v37  ;;  %v1937_v23 = vpop.permute.xlu1 %1936  ;;  %v4127_v5 = vrot.slane %v9290_v57, 6  ;;  %v4195_v4 = vrot.slane %v9290_v57, 7  ;;  %v4499_v48 = vrot.slane %v9277_v45, 3 }
 0x406   :  { %v1935_v40 = vpop.permute.xlu0 %1934  ;;  %v2676_v24 = vsel %vm2630_vm9, %v2611_v35, %v1937_v23  ;;  %v4567_v0 = vrot.slane %v9277_v45, 4  ;;  %v4635_v61 = vrot.slane %v9277_v45, 5 }
 0x407   :  { %v2675_v52 = vsel %vm2630_vm9, %v2610_v27, %v1935_v40 }
 0x408   :  { %v9336_v20 = vpop.f32.mrb[2].mxu0 }
 0x409   :  { %v3352_v47 = vsel %vm2305_vm4, %v9336_v20, 0.0  ;;  %v3483_v19 = vmul.f32 %v9336_v20, %v9336_v20  ;;  %v9344_v56 = vpop.f32.mrb[3].mxu0  ;;  %v2139_v30 = vpop.permute.xlu1 %2138  ;;  %v4295_v51 = vrot.slane %v9336_v20, 7  ;;  %v9349_v36 = vsel %vm3721_vm12, %v9336_v20, %v4363_v32 }
 0x40a   :  { %v3350_v21 = vsel %vm2305_vm4, %v9344_v56, 0.0  ;;  %v3482_v17 = vmul.f32 %v9344_v56, %v9344_v56  ;;  %v2741_v1 = vsel %vm2695_vm10, %v2676_v24, %v2139_v30  ;;  %v2137_v26 = vpop.permute.xlu0 %2136  ;;  %v3788_v41 = vsel %vm3721_vm12, %v9344_v56, %v3787_v31 }
 0x40b   :  { %v3549_v50 = vsel %vm2305_vm4, %v3483_v19, 0.0  ;;  %v3351_v10 = vadd.f32 %v3350_v21, %v3349_v43  ;;  %v2740_v25 = vsel %vm2695_vm10, %v2675_v52, %v2137_v26  ;;  %v3720_v28 = vrot.slane %v9344_v56, 7 }
 0x40c   :  { %v3547_v3 = vsel %vm2305_vm4, %v3482_v17, 0.0  ;;  %5286 = vmatprep.mubr.msk.f32.mxu1 %vm2765_vm11, %v2740_v25  ;;  %v3856_v55 = vrot.slane %v9344_v56, 1  ;;  %v3924_v53 = vrot.slane %v9344_v56, 2  ;;  %v3992_v12 = vrot.slane %v9344_v56, 3 }
 0x40d   :  { %v3548_v44 = vadd.f32 %v3547_v3, %v3546_v33  ;;  %5287 = vmatmul.mubr.msk.f32.gmra.mrb[12].mxu1 %vm2765_vm11, %v2741_v1  ;;  %v1737_v13 = vpop.permute.xlu1 %1736  ;;  %v3353_v63 = vadd.f32 %v3352_v47, %v3351_v10  ;;  %v3722_v43 = vsel %vm3721_vm12, %v3720_v28, %v9290_v57  ;;  %v4060_v37 = vrot.slane %v9344_v56, 4 }
 0x40e   :  { %v2613_v32 = vsel %vm2565_vm8, %v9216_v15, %v1737_v13  ;;  %v1735_v35 = vpop.permute.xlu0 %1734  ;;  %v3857_v23 = vsel %vm3721_vm12, %v3856_v55, %v3855_v29  ;;  %v3925_v31 = vsel %vm3721_vm12, %v3924_v53, %v3923_v16  ;;  %v3993_v27 = vsel %vm3721_vm12, %v3992_v12, %v3991_v18 }
 0x40f   :  { %v2612_v33 = vsel %vm2565_vm8, %v9220_v42, %v1735_v35  ;;  %v3550_v40 = vadd.f32 %v3549_v50, %v3548_v44  ;;  %v4061_v24 = vsel %vm3721_vm12, %v4060_v37, %v4059_v58  ;;  %v4128_v52 = vrot.slane %v9344_v56, 5 }
 0x410   :  { %v9379_v47 = vpop.f32.mrb[4].mxu0  ;;  %v4196_v19 = vrot.slane %v9344_v56, 6  ;;  %v4296_v15 = vsel %vm3721_vm12, %v4295_v51, %v9277_v45  ;;  %v4432_v29 = vrot.slane %v9336_v20, 1  ;;  %v4500_v16 = vrot.slane %v9336_v20, 2 }
 0x411   :  { %v3356_v18 = vsel %vm2305_vm4, %v9379_v47, 0.0  ;;  %v3485_v42 = vmul.f32 %v9379_v47, %v9379_v47  ;;  %v9390_v58 = vpop.f32.mrb[5].mxu0  ;;  %v1941_v30 = vpop.permute.xlu1 %1940  ;;  %v4129_v21 = vsel %vm3721_vm12, %v4128_v52, %v4127_v5  ;;  %v4297_v56 = vrot.slane %v9379_v47, 6 }
 0x412   :  { %v3354_v51 = vsel %vm2305_vm4, %v9390_v58, 0.0  ;;  %v3484_v17 = vmul.f32 %v9390_v58, %v9390_v58  ;;  %v2678_v1 = vsel %vm2630_vm9, %v2613_v32, %v1941_v30  ;;  %v1939_v26 = vpop.permute.xlu0 %1938  ;;  %v3789_v50 = vrot.slane %v9390_v58, 7 }
 0x413   :  { %v3553_v10 = vsel %vm2305_vm4, %v3485_v42, 0.0  ;;  %v3355_v25 = vadd.f32 %v3354_v51, %v3353_v63  ;;  %v2677_v28 = vsel %vm2630_vm9, %v2612_v33, %v1939_v26  ;;  %v3723_v5 = vrot.slane %v9390_v58, 6 }
 0x414   :  { %v3551_v3 = vsel %vm2305_vm4, %v3484_v17, 0.0  ;;  %v3790_v55 = vsel %vm3724_vm13, %v3789_v50, %v3788_v41  ;;  %v3858_v53 = vsel %vm3724_vm13, %v9390_v58, %v3857_v23  ;;  %v3926_v12 = vrot.slane %v9390_v58, 1 }
 0x415   :  { %v3552_v44 = vadd.f32 %v3551_v3, %v3550_v40  ;;  %v2143_v13 = vpop.permute.xlu1 %2142  ;;  %v3357_v37 = vadd.f32 %v3356_v18, %v3355_v25  ;;  %v3725_v32 = vsel %vm3724_vm13, %v3723_v5, %v3722_v43  ;;  %v3994_v63 = vrot.slane %v9390_v58, 2 }
 0x416   :  { %v2743_v35 = vsel %vm2695_vm10, %v2678_v1, %v2143_v13  ;;  %v2141_v33 = vpop.permute.xlu0 %2140  ;;  %v3927_v52 = vsel %vm3724_vm13, %v3926_v12, %v3925_v31  ;;  %v4062_v42 = vrot.slane %v9390_v58, 3  ;;  %v4130_v41 = vrot.slane %v9390_v58, 4 }
 0x417   :  { %v2742_v23 = vsel %vm2695_vm10, %v2677_v28, %v2141_v33  ;;  %v3554_v30 = vadd.f32 %v3553_v10, %v3552_v44  ;;  %v3995_v40 = vsel %vm3724_vm13, %v3994_v63, %v3993_v27  ;;  %v4197_v43 = vsel %vm3721_vm12, %v4196_v19, %v4195_v4 }
 0x418   :  { %v9419_v18 = vpop.f32.mrb[6].mxu0  ;;  %5289 = vmatprep.mubr.msk.f32.mxu1 %vm2765_vm11, %v2742_v23  ;;  %v4063_v51 = vsel %vm3724_vm13, %v4062_v42, %v4061_v24  ;;  %v4131_v31 = vsel %vm3724_vm13, %v4130_v41, %v4129_v21  ;;  %v4198_v17 = vrot.slane %v9390_v58, 5  ;;  %v4298_v1 = vsel %vm3724_vm13, %v4297_v56, %v4296_v15 }
 0x419   :  { %v3360_v26 = vsel %vm2305_vm4, %v9419_v18, 0.0  ;;  %v3487_v57 = vmul.f32 %v9419_v18, %v9419_v18  ;;  %v9430_v27 = vpop.f32.mrb[7].mxu0  ;;  %5290 = vmatmul.mubr.msk.f32.gmra.mrb[14].mxu1 %vm2765_vm11, %v2743_v35  ;;  %v1741_v4 = vpop.permute.xlu1 %1740  ;;  %v4299_v19 = vrot.slane %v9419_v18, 5  ;;  %v4365_v24 = vrot.slane %v9379_v47, 7 }
 0x41a   :  { %v3358_v58 = vsel %vm2305_vm4, %v9430_v27, 0.0  ;;  %v3486_v15 = vmul.f32 %v9430_v27, %v9430_v27  ;;  %v2615_v21 = vsel %vm2565_vm8, %v9224_v60, %v1741_v4  ;;  %v1739_v56 = vpop.permute.xlu0 %1738  ;;  %v3791_v50 = vrot.slane %v9430_v27, 6 }
 0x41b   :  { %v3557_v10 = vsel %vm2305_vm4, %v3487_v57, 0.0  ;;  %v3359_v25 = vadd.f32 %v3358_v58, %v3357_v37  ;;  %v2614_v28 = vsel %vm2565_vm8, %v9228_v22, %v1739_v56  ;;  %v3726_v5 = vrot.slane %v9430_v27, 5 }
 0x41c   :  { %v3555_v3 = vsel %vm2305_vm4, %v3486_v15, 0.0  ;;  %v3792_v12 = vsel %vm3727_vm14, %v3791_v50, %v3790_v55  ;;  %v3859_v44 = vrot.slane %v9430_v27, 7  ;;  %v3928_v60 = vsel %vm3727_vm14, %v9430_v27, %v3927_v52 }
 0x41d   :  { %v3556_v13 = vadd.f32 %v3555_v3, %v3554_v30  ;;  %v1945_v63 = vpop.permute.xlu1 %1944  ;;  %v3361_v35 = vadd.f32 %v3360_v26, %v3359_v25  ;;  %v3728_v33 = vsel %vm3727_vm14, %v3726_v5, %v3725_v32  ;;  %v3996_v37 = vrot.slane %v9430_v27, 1 }
 0x41e   :  { %v2680_v22 = vsel %vm2630_vm9, %v2615_v21, %v1945_v63  ;;  %v1943_v42 = vpop.permute.xlu0 %1942  ;;  %v3860_v41 = vsel %vm3727_vm14, %v3859_v44, %v3858_v53  ;;  %v4064_v23 = vrot.slane %v9430_v27, 2  ;;  %v4132_v55 = vrot.slane %v9430_v27, 3 }
 0x41f   :  { %v2679_v57 = vsel %vm2630_vm9, %v2614_v28, %v1943_v42  ;;  %v3558_v4 = vadd.f32 %v3557_v10, %v3556_v13  ;;  %v3997_v52 = vsel %vm3727_vm14, %v3996_v37, %v3995_v40  ;;  %v4199_v30 = vsel %vm3724_vm13, %v4198_v17, %v4197_v43 }
 0x420   :  { %v9460_v26 = vpop.f32.mrb[8].mxu0  ;;  %v4065_v32 = vsel %vm3727_vm14, %v4064_v23, %v4063_v51  ;;  %v4133_v58 = vsel %vm3727_vm14, %v4132_v55, %v4131_v31  ;;  %v4200_v15 = vrot.slane %v9430_v27, 4  ;;  %v4300_v53 = vsel %vm3727_vm14, %v4299_v19, %v4298_v1 }
 0x421   :  { %v3364_v21 = vsel %vm2305_vm4, %v9460_v26, 0.0  ;;  %v3489_v56 = vmul.f32 %v9460_v26, %v9460_v26  ;;  %v9470_v50 = vpop.f32.mrb[9].mxu0  ;;  %v2147_v40 = vpop.permute.xlu1 %2146  ;;  %v4301_v43 = vrot.slane %v9460_v26, 4  ;;  %v9475_v51 = vsel %vm3724_vm13, %v4365_v24, %v9349_v36 }
 0x422   :  { %v3362_v31 = vsel %vm2305_vm4, %v9470_v50, 0.0  ;;  %v3488_v17 = vmul.f32 %v9470_v50, %v9470_v50  ;;  %v2745_v1 = vsel %vm2695_vm10, %v2680_v22, %v2147_v40  ;;  %v2145_v27 = vpop.permute.xlu0 %2144  ;;  %v3793_v19 = vrot.slane %v9470_v50, 5 }
 0x423   :  { %v3561_v10 = vsel %vm2305_vm4, %v3489_v56, 0.0  ;;  %v3363_v25 = vadd.f32 %v3362_v31, %v3361_v35  ;;  %v2744_v28 = vsel %vm2695_vm10, %v2679_v57, %v2145_v27  ;;  %v3729_v36 = vrot.slane %v9470_v50, 4 }
 0x424   :  { %v3559_v24 = vsel %vm2305_vm4, %v3488_v17, 0.0  ;;  %5292 = vmatprep.mubr.msk.f32.mxu1 %vm2765_vm11, %v2744_v28  ;;  %v3794_v5 = vsel %vm3730_vm15, %v3793_v19, %v3792_v12  ;;  %v3861_v3 = vrot.slane %v9470_v50, 6  ;;  %v3929_v44 = vrot.slane %v9470_v50, 7 }
 0x425   :  { %v3560_v13 = vadd.f32 %v3559_v24, %v3558_v4  ;;  %5293 = vmatmul.mubr.msk.f32.gmra.mrb[16].mxu1 %vm2765_vm11, %v2745_v1  ;;  %v1745_v63 = vpop.permute.xlu1 %1744  ;;  %v3365_v35 = vadd.f32 %v3364_v21, %v3363_v25  ;;  %v3731_v37 = vsel %vm3730_vm15, %v3729_v36, %v3728_v33  ;;  %v3998_v22 = vsel %vm3730_vm15, %v9470_v50, %v3997_v52 }
 0x426   :  { %v2617_v42 = vsel %vm2565_vm8, %v9232_v9, %v1745_v63  ;;  %v1743_v23 = vpop.permute.xlu0 %1742  ;;  %v3862_v12 = vsel %vm3730_vm15, %v3861_v3, %v3860_v41  ;;  %v3930_v55 = vsel %vm3730_vm15, %v3929_v44, %v3928_v60  ;;  %v4066_v57 = vrot.slane %v9470_v50, 1 }
 0x427   :  { %v2616_v4 = vsel %vm2565_vm8, %v9247_v46, %v1743_v23  ;;  %v3562_v56 = vadd.f32 %v3561_v10, %v3560_v13  ;;  %v4134_v21 = vrot.slane %v9470_v50, 2  ;;  %v4201_v33 = vsel %vm3727_vm14, %v4200_v15, %v4199_v30 }
 0x428   :  { %v9504_v40 = vpop.f32.mrb[10].mxu0  ;;  %v4067_v52 = vsel %vm3730_vm15, %v4066_v57, %v4065_v32  ;;  %v4202_v9 = vrot.slane %v9470_v50, 3  ;;  %v4302_v41 = vsel %vm3730_vm15, %v4301_v43, %v4300_v53  ;;  %v4367_v60 = vrot.slane %v9419_v18, 6 }
 0x429   :  { %v3368_v31 = vsel %vm2305_vm4, %v9504_v40, 0.0  ;;  %v3491_v46 = vmul.f32 %v9504_v40, %v9504_v40  ;;  %v9514_v17 = vpop.f32.mrb[11].mxu0  ;;  %v1949_v1 = vpop.permute.xlu1 %1948  ;;  %v4135_v30 = vsel %vm3730_vm15, %v4134_v21, %v4133_v58  ;;  %v4303_v15 = vrot.slane %v9504_v40, 3 }
 0x42a   :  { %v3366_v32 = vsel %vm2305_vm4, %v9514_v17, 0.0  ;;  %v3490_v53 = vmul.f32 %v9514_v17, %v9514_v17  ;;  %v2682_v50 = vsel %vm2630_vm9, %v2617_v42, %v1949_v1  ;;  %v1947_v43 = vpop.permute.xlu0 %1946  ;;  %v3795_v27 = vrot.slane %v9514_v17, 4 }
 0x42b   :  { %v3565_v19 = vsel %vm2305_vm4, %v3491_v46, 0.0  ;;  %v3367_v10 = vadd.f32 %v3366_v32, %v3365_v35  ;;  %v2681_v25 = vsel %vm2630_vm9, %v2616_v4, %v1947_v43  ;;  %v3732_v58 = vrot.slane %v9514_v17, 3 }
 0x42c   :  { %v3563_v28 = vsel %vm2305_vm4, %v3490_v53, 0.0  ;;  %v3796_v36 = vsel %vm3733_vm0, %v3795_v27, %v3794_v5  ;;  %v3863_v24 = vrot.slane %v9514_v17, 5  ;;  %v3931_v3 = vrot.slane %v9514_v17, 6 }
 0x42d   :  { %v3564_v44 = vadd.f32 %v3563_v28, %v3562_v56  ;;  %v2151_v13 = vpop.permute.xlu1 %2150  ;;  %v3369_v63 = vadd.f32 %v3368_v31, %v3367_v10  ;;  %v3734_v42 = vsel %vm3733_vm0, %v3732_v58, %v3731_v37  ;;  %v3999_v35 = vrot.slane %v9514_v17, 7 }
 0x42e   :  { %v2747_v23 = vsel %vm2695_vm10, %v2682_v50, %v2151_v13  ;;  %v2149_v57 = vpop.permute.xlu0 %2148  ;;  %v3864_v4 = vsel %vm3733_vm0, %v3863_v24, %v3862_v12  ;;  %v3932_v21 = vsel %vm3733_vm0, %v3931_v3, %v3930_v55  ;;  %v4068_v5 = vsel %vm3733_vm0, %v9514_v17, %v4067_v52 }
 0x42f   :  { %v2746_v46 = vsel %vm2695_vm10, %v2681_v25, %v2149_v57  ;;  %v3566_v1 = vadd.f32 %v3565_v19, %v3564_v44  ;;  %v4000_v56 = vsel %vm3733_vm0, %v3999_v35, %v3998_v22  ;;  %v4136_v31 = vrot.slane %v9514_v17, 1 }
 0x430   :  { %v9541_v37 = vpop.f32.mrb[12].mxu0  ;;  %5295 = vmatprep.mubr.msk.f32.mxu1 %vm2765_vm11, %v2746_v46  ;;  %v4203_v32 = vsel %vm3730_vm15, %v4202_v9, %v4201_v33  ;;  %v4204_v12 = vrot.slane %v9514_v17, 2  ;;  %v4304_v55 = vsel %vm3733_vm0, %v4303_v15, %v4302_v41  ;;  %v9549_v52 = vsel %vm3727_vm14, %v4367_v60, %v9475_v51 }
 0x431   :  { %v3372_v53 = vsel %vm2305_vm4, %v9541_v37, 0.0  ;;  %v3493_v22 = vmul.f32 %v9541_v37, %v9541_v37  ;;  %v9555_v50 = vpop.f32.mrb[13].mxu0  ;;  %5296 = vmatmul.mubr.msk.f32.gmra.mrb[18].mxu1 %vm2765_vm11, %v2747_v23  ;;  %v1749_v43 = vpop.permute.xlu1 %1748  ;;  %v4137_v33 = vsel %vm3733_vm0, %v4136_v31, %v4135_v30  ;;  %v4305_v9 = vrot.slane %v9541_v37, 2 }
 0x432   :  { %v3370_v41 = vsel %vm2305_vm4, %v9555_v50, 0.0  ;;  %v3492_v51 = vmul.f32 %v9555_v50, %v9555_v50  ;;  %v2619_v60 = vsel %vm2565_vm8, %v9251_v49, %v1749_v43  ;;  %v1747_v17 = vpop.permute.xlu0 %1746  ;;  %v3797_v15 = vrot.slane %v9555_v50, 3 }
 0x433   :  { %v3569_v27 = vsel %vm2305_vm4, %v3493_v22, 0.0  ;;  %v3371_v19 = vadd.f32 %v3370_v41, %v3369_v63  ;;  %v2618_v30 = vsel %vm2565_vm8, %v9257_v38, %v1747_v17  ;;  %v3735_v10 = vrot.slane %v9555_v50, 2 }
 0x434   :  { %v3567_v25 = vsel %vm2305_vm4, %v3492_v51, 0.0  ;;  %v3798_v58 = vsel %vm3736_vm1, %v3797_v15, %v3796_v36  ;;  %v3865_v28 = vrot.slane %v9555_v50, 4  ;;  %v3933_v49 = vrot.slane %v9555_v50, 5 }
 0x435   :  { %v3568_v24 = vadd.f32 %v3567_v25, %v3566_v1  ;;  %v1953_v3 = vpop.permute.xlu1 %1952  ;;  %v3373_v44 = vadd.f32 %v3372_v53, %v3371_v19  ;;  %v3737_v13 = vsel %vm3736_vm1, %v3735_v10, %v3734_v42  ;;  %v4001_v63 = vrot.slane %v9555_v50, 6 }
 0x436   :  { %v2684_v38 = vsel %vm2630_vm9, %v2619_v60, %v1953_v3  ;;  %v1951_v35 = vpop.permute.xlu0 %1950  ;;  %v3866_v23 = vsel %vm3736_vm1, %v3865_v28, %v3864_v4  ;;  %v3934_v57 = vsel %vm3736_vm1, %v3933_v49, %v3932_v21  ;;  %v4069_v36 = vrot.slane %v9555_v50, 7 }
 0x437   :  { %v2683_v46 = vsel %vm2630_vm9, %v2618_v30, %v1951_v35  ;;  %v3570_v31 = vadd.f32 %v3569_v27, %v3568_v24  ;;  %v4002_v1 = vsel %vm3736_vm1, %v4001_v63, %v4000_v56  ;;  %v4138_v53 = vsel %vm3736_vm1, %v9555_v50, %v4137_v33 }
 0x438   :  { %v9585_v42 = vpop.f32.mrb[14].mxu0  ;;  %v4070_v22 = vsel %vm3736_vm1, %v4069_v36, %v4068_v5  ;;  %v4205_v43 = vsel %vm3733_vm0, %v4204_v12, %v4203_v32  ;;  %v4206_v4 = vrot.slane %v9555_v50, 1  ;;  %v4306_v21 = vsel %vm3736_vm1, %v4305_v9, %v4304_v55 }
 0x439   :  { %v3376_v41 = vsel %vm2305_vm4, %v9585_v42, 0.0  ;;  %v3495_v51 = vmul.f32 %v9585_v42, %v9585_v42  ;;  %v3098_v56 = vpop.f32.mrb[15].mxu0  ;;  %v2155_v60 = vpop.permute.xlu1 %2154  ;;  %v4307_v33 = vrot.slane %v9585_v42, 1  ;;  %v4369_v17 = vrot.slane %v9460_v26, 5 }
 0x43a   :  { %v3374_v5 = vsel %vm2305_vm4, %v3098_v56, 0.0  ;;  %v3494_v15 = vmul.f32 %v3098_v56, %v3098_v56  ;;  %v2749_v32 = vsel %vm2695_vm10, %v2684_v38, %v2155_v60  ;;  %v2153_v12 = vpop.permute.xlu0 %2152  ;;  %v3799_v50 = vrot.slane %v3098_v56, 2 }
 0x43b   :  { %v3573_v55 = vsel %vm2305_vm4, %v3495_v51, 0.0  ;;  %v3375_v9 = vadd.f32 %v3374_v5, %v3373_v44  ;;  %v2748_v27 = vsel %vm2695_vm10, %v2683_v46, %v2153_v12  ;;  %v3738_v19 = vrot.slane %v3098_v56, 1 }
 0x43c   :  { %v3571_v30 = vsel %vm2305_vm4, %v3494_v15, 0.0  ;;  %5298 = vmatprep.mubr.msk.f32.mxu1 %vm2765_vm11, %v2748_v27  ;;  %v3800_v10 = vsel %vm3739_vm2, %v3799_v50, %v3798_v58  ;;  %v3867_v25 = vrot.slane %v3098_v56, 3  ;;  %v3935_v28 = vrot.slane %v3098_v56, 4 }
 0x43d   :  { %v3572_v49 = vadd.f32 %v3571_v30, %v3570_v31  ;;  %3843 = vrot.lane.b32.xlu0 %v3800_v10, %s5378_s6  ;;  %5299 = vmatmul.mubr.msk.f32.gmra.mrb[20].mxu1 %vm2765_vm11, %v2749_v32  ;;  %v1753_v24 = vpop.permute.xlu1 %1752  ;;  %v3377_v3 = vadd.f32 %v3376_v41, %v3375_v9  ;;  %v9607_v44 = vsel %vm3739_vm2, %v3738_v19, %v3737_v13  ;;  %v4003_v63 = vrot.slane %v3098_v56, 5 }
 0x43e   :  { %12691 = vst [vmem:[#allocation179_spill] sm:$0xff] %v9607_v44  ;;  %v2621_v38 = vsel %vm2565_vm8, %v9261_v11, %v1753_v24  ;;  %v1751_v35 = vpop.permute.xlu0 %1750  ;;  %v9612_v36 = vsel %vm3739_vm2, %v3867_v25, %v3866_v23  ;;  %v9615_v58 = vsel %vm3739_vm2, %v3935_v28, %v3934_v57  ;;  %v4071_v46 = vrot.slane %v3098_v56, 6 }
 0x43f   :  { %v2620_v31 = vsel %vm2565_vm8, %v9265_v59, %v1751_v35  ;;  %v3574_v51 = vadd.f32 %v3573_v55, %v3572_v49  ;;  %v9620_v41 = vsel %vm3739_vm2, %v4003_v63, %v4002_v1  ;;  %v4139_v13 = vrot.slane %v3098_v56, 7 }
 0x440   :  { %v9622_v60 = vpop.f32.mrb[16].mxu0  ;;  %v9625_v11 = vsel %vm3739_vm2, %v4071_v46, %v4070_v22  ;;  %v4207_v23 = vsel %vm3736_vm1, %v4206_v4, %v4205_v43  ;;  %v9629_v5 = vsel %vm3739_vm2, %v4307_v33, %v4306_v21  ;;  %v4370_v57 = vsel %vm3730_vm15, %v4369_v17, %v9549_v52 }
 0x441   :  { %12692 = vst [vmem:[#allocation181_spill] sm:$0xff] %v9629_v5  ;;  %v3380_v59 = vsel %vm2305_vm4, %v9622_v60, 0.0  ;;  %v3497_v1 = vmul.f32 %v9622_v60, %v9622_v60  ;;  %v9637_v15 = vpop.f32.mrb[17].mxu0  ;;  %v1957_v32 = vpop.permute.xlu1 %1956  ;;  %v9640_v22 = vsel %vm3739_vm2, %v4139_v13, %v4138_v53  ;;  %v9643_v43 = vsel %vm3739_vm2, %v3098_v56, %v4207_v23 }
 0x442   :  { %12693 = vst [vmem:[#allocation43_spill] sm:$0xff] %v9640_v22  ;;  %12694 = vst [vmem:[#allocation44_spill] sm:$0xff] %v9643_v43  ;;  %v3378_v4 = vsel %vm2305_vm4, %v9637_v15, 0.0  ;;  %v3496_v52 = vmul.f32 %v9637_v15, %v9637_v15  ;;  %v2686_v21 = vsel %vm2630_vm9, %v2621_v38, %v1957_v32  ;;  %v1955_v33 = vpop.permute.xlu0 %1954  ;;  %v3801_v17 = vrot.slane %v9637_v15, 1 }
 0x443   :  { %v3577_v12 = vsel %vm2305_vm4, %v3497_v1, 0.0  ;;  %v3379_v50 = vadd.f32 %v3378_v4, %v3377_v3  ;;  %v2685_v53 = vsel %vm2630_vm9, %v2620_v31, %v1955_v33  ;;  %v4371_v55 = vrot.slane %v9504_v40, 4 }
 0x444   :  { %v3575_v56 = vsel %vm2305_vm4, %v3496_v52, 0.0  ;;  %v4373_v9 = vrot.slane %v9541_v37, 3  ;;  %v4375_v27 = vrot.slane %v9585_v42, 2  ;;  %v4433_v19 = vsel %vm3721_vm12, %v4432_v29, %v4431_v62 }
 0x445   :  { %v3576_v30 = vadd.f32 %v3575_v56, %v3574_v51  ;;  %v2159_v10 = vpop.permute.xlu1 %2158  ;;  %v3381_v25 = vadd.f32 %v3380_v59, %v3379_v50  ;;  %v4372_v28 = vsel %vm3733_vm0, %v4371_v55, %v4370_v57  ;;  %v4434_v49 = vsel %vm3724_vm13, %v9379_v47, %v4433_v19 }
 0x446   :  { %v2751_v24 = vsel %vm2695_vm10, %v2686_v21, %v2159_v10  ;;  %v2157_v3 = vpop.permute.xlu0 %2156  ;;  %v4374_v63 = vsel %vm3736_vm1, %v4373_v9, %v4372_v28  ;;  %v4435_v38 = vrot.slane %v9419_v18, 7  ;;  %v4437_v35 = vrot.slane %v9460_v26, 6 }
 0x447   :  { %v2750_v46 = vsel %vm2695_vm10, %v2685_v53, %v2157_v3  ;;  %v3578_v62 = vadd.f32 %v3577_v12, %v3576_v30  ;;  %v9671_v29 = vsel %vm3739_vm2, %v4375_v27, %v4374_v63  ;;  %v4439_v31 = vrot.slane %v9504_v40, 5 }
 0x448   :  { %12695 = vst [vmem:[#allocation183_spill] sm:$0xff] %v9671_v29  ;;  %v9674_v51 = vpop.f32.mrb[18].mxu0  ;;  %5301 = vmatprep.mubr.msk.f32.mxu1 %vm2765_vm11, %v2750_v46  ;;  %v4436_v13 = vsel %vm3727_vm14, %v4435_v38, %v4434_v49  ;;  %v4441_v23 = vrot.slane %v9541_v37, 4  ;;  %v4443_v57 = vrot.slane %v9585_v42, 3  ;;  %v4501_v59 = vsel %vm3721_vm12, %v4500_v16, %v4499_v48 }
 0x449   :  { %v3384_v1 = vsel %vm2305_vm4, %v9674_v51, 0.0  ;;  %v3499_v32 = vmul.f32 %v9674_v51, %v9674_v51  ;;  %v9689_v4 = vpop.f32.mrb[19].mxu0  ;;  %5302 = vmatmul.mubr.msk.f32.gmra.mrb[22].mxu1 %vm2765_vm11, %v2751_v24  ;;  %v1757_v52 = vpop.permute.xlu1 %1756  ;;  %v4438_v21 = vsel %vm3730_vm15, %v4437_v35, %v4436_v13  ;;  %v4502_v33 = vrot.slane %v9379_v47, 1 }
 0x44a   :  { %v3382_v12 = vsel %vm2305_vm4, %v9689_v4, 0.0  ;;  %v3498_v48 = vmul.f32 %v9689_v4, %v9689_v4  ;;  %v2623_v16 = vsel %vm2565_vm8, %v9271_v14, %v1757_v52  ;;  %v1755_v50 = vpop.permute.xlu0 %1754  ;;  %v3802_v53 = vsel %vm3721_vm12, %v9689_v4, %v3801_v17 }
 0x44b   :  { %v3581_v55 = vsel %vm2305_vm4, %v3499_v32, 0.0  ;;  %v3383_v56 = vadd.f32 %v3382_v12, %v3381_v25  ;;  %v2622_v9 = vsel %vm2565_vm8, %v9275_v39, %v1755_v50  ;;  %v3741_v27 = vrot.slane %v9689_v4, 7 }
 0x44c   :  { %v3579_v19 = vsel %vm2305_vm4, %v3498_v48, 0.0  ;;  %v4440_v30 = vsel %vm3733_vm0, %v4439_v31, %v4438_v21  ;;  %v4503_v10 = vsel %vm3724_vm13, %v4502_v33, %v4501_v59  ;;  %v4505_v14 = vrot.slane %v9460_v26, 7 }
 0x44d   :  { %v3580_v28 = vadd.f32 %v3579_v19, %v3578_v62  ;;  %v1961_v49 = vpop.permute.xlu1 %1960  ;;  %v3385_v24 = vadd.f32 %v3384_v1, %v3383_v56  ;;  %v3742_v17 = vsel %vm3721_vm12, %v3741_v27, %v9637_v15  ;;  %v4442_v25 = vsel %vm3736_vm1, %v4441_v23, %v4440_v30 }
 0x44e   :  { %v2688_v39 = vsel %vm2630_vm9, %v2623_v16, %v1961_v49  ;;  %v1959_v3 = vpop.permute.xlu0 %1958  ;;  %v9715_v63 = vsel %vm3739_vm2, %v4443_v57, %v4442_v25  ;;  %v4504_v38 = vsel %vm3727_vm14, %v9419_v18, %v4503_v10  ;;  %v4507_v35 = vrot.slane %v9504_v40, 6 }
 0x44f   :  { %12696 = vst [vmem:[#allocation185_spill] sm:$0xff] %v9715_v63  ;;  %v2687_v46 = vsel %vm2630_vm9, %v2622_v9, %v1959_v3  ;;  %v3582_v62 = vadd.f32 %v3581_v55, %v3580_v28  ;;  %v4506_v31 = vsel %vm3730_vm15, %v4505_v14, %v4504_v38  ;;  %v4509_v13 = vrot.slane %v9541_v37, 5 }
 0x450   :  { %v9723_v59 = vpop.f32.mrb[20].mxu0  ;;  %v4508_v23 = vsel %vm3733_vm0, %v4507_v35, %v4506_v31  ;;  %v4511_v1 = vrot.slane %v9585_v42, 4  ;;  %v4568_v57 = vrot.slane %v9336_v20, 3  ;;  %v4570_v32 = vrot.slane %v9379_v47, 2 }
 0x451   :  { %v3388_v52 = vsel %vm2305_vm4, %v9723_v59, 0.0  ;;  %v3501_v21 = vmul.f32 %v9723_v59, %v9723_v59  ;;  %v9733_v33 = vpop.f32.mrb[21].mxu0  ;;  %v2163_v12 = vpop.permute.xlu1 %2162  ;;  %v4510_v48 = vsel %vm3736_vm1, %v4509_v13, %v4508_v23  ;;  %v4572_v16 = vrot.slane %v9419_v18, 1 }
 0x452   :  { %v3386_v50 = vsel %vm2305_vm4, %v9733_v33, 0.0  ;;  %v3500_v55 = vmul.f32 %v9733_v33, %v9733_v33  ;;  %v2753_v56 = vsel %vm2695_vm10, %v2688_v39, %v2163_v12  ;;  %v2161_v9 = vpop.permute.xlu0 %2160  ;;  %v3803_v27 = vrot.slane %v9733_v33, 7 }
 0x453   :  { %v3585_v19 = vsel %vm2305_vm4, %v3501_v21, 0.0  ;;  %v3387_v30 = vadd.f32 %v3386_v50, %v3385_v24  ;;  %v2752_v10 = vsel %vm2695_vm10, %v2687_v46, %v2161_v9  ;;  %v3743_v14 = vrot.slane %v9733_v33, 6 }
 0x454   :  { %v3583_v28 = vsel %vm2305_vm4, %v3500_v55, 0.0  ;;  %5304 = vmatprep.mubr.msk.f32.mxu1 %vm2765_vm11, %v2752_v10  ;;  %v3804_v49 = vsel %vm3724_vm13, %v3803_v27, %v3802_v53  ;;  %v9750_v25 = vsel %vm3739_vm2, %v4511_v1, %v4510_v48  ;;  %v4569_v39 = vsel %vm3721_vm12, %v4568_v57, %v4567_v0 }
 0x455   :  { %12697 = vst [vmem:[#allocation47_spill] sm:$0xff] %v9750_v25  ;;  %v3584_v3 = vadd.f32 %v3583_v28, %v3582_v62  ;;  %5305 = vmatmul.mubr.msk.f32.gmra.mrb[24].mxu1 %vm2765_vm11, %v2753_v56  ;;  %v1761_v24 = vpop.permute.xlu1 %1760  ;;  %v3389_v38 = vadd.f32 %v3388_v52, %v3387_v30  ;;  %v3744_v35 = vsel %vm3724_vm13, %v3743_v14, %v3742_v17  ;;  %v4575_v23 = vrot.slane %v9504_v40, 7 }
 0x456   :  { %v4571_v46 = vsel %vm3724_vm13, %v4570_v32, %v4569_v39  ;;  %v2625_v31 = vsel %vm2565_vm8, %v9284_v7, %v1761_v24  ;;  %v1759_v53 = vpop.permute.xlu0 %1758  ;;  %v4577_v1 = vrot.slane %v9541_v37, 6  ;;  %v4579_v17 = vrot.slane %v9585_v42, 5 }
 0x457   :  { %v4573_v13 = vsel %vm3727_vm14, %v4572_v16, %v4571_v46  ;;  %v2624_v0 = vsel %vm2565_vm8, %v9296_v2, %v1759_v53  ;;  %v3586_v62 = vadd.f32 %v3585_v19, %v3584_v3  ;;  %v4636_v7 = vrot.slane %v9336_v20, 4 }
 0x458   :  { %v4574_v57 = vsel %vm3730_vm15, %v9460_v26, %v4573_v13  ;;  %v4638_v52 = vrot.slane %v9379_v47, 3  ;;  %v4640_v21 = vrot.slane %v9419_v18, 2  ;;  %v4642_v16 = vrot.slane %v9460_v26, 1 }
 0x459   :  { %v4576_v32 = vsel %vm3733_vm0, %v4575_v23, %v4574_v57  ;;  %v1965_v12 = vpop.permute.xlu1 %1964  ;;  %v4645_v2 = vrot.slane %v9541_v37, 7  ;;  %v4647_v50 = vrot.slane %v9585_v42, 6  ;;  %v4637_v27 = vsel %vm3721_vm12, %v4636_v7, %v4635_v61 }
 0x45a   :  { %v4578_v48 = vsel %vm3736_vm1, %v4577_v1, %v4576_v32  ;;  %v2690_v55 = vsel %vm2630_vm9, %v2625_v31, %v1965_v12  ;;  %v1963_v56 = vpop.permute.xlu0 %1962  ;;  %v3869_v19 = vrot.slane %v9637_v15, 2  ;;  %v4639_v10 = vsel %vm3724_vm13, %v4638_v52, %v4637_v27 }
 0x45b   :  { %v9778_v9 = vsel %vm3739_vm2, %v4579_v17, %v4578_v48  ;;  %v2689_v30 = vsel %vm2630_vm9, %v2624_v0, %v1963_v56  ;;  %v3870_v14 = vrot.slane %v9689_v4, 1  ;;  %v3937_v28 = vrot.slane %v9637_v15, 3 }
 0x45c   :  { %12698 = vst [vmem:[#allocation49_spill] sm:$0xff] %v9778_v9  ;;  %v9788_v39 = vpop.f32.mrb[22].mxu0  ;;  %v4641_v3 = vsel %vm3727_vm14, %v4640_v21, %v4639_v10  ;;  %v3938_v24 = vrot.slane %v9689_v4, 2  ;;  %v3940_v46 = vrot.slane %v9733_v33, 1  ;;  %v4005_v61 = vrot.slane %v9637_v15, 4 }
 0x45d   :  { %v3392_v31 = vsel %vm2305_vm4, %v9788_v39, 0.0  ;;  %v3503_v53 = vmul.f32 %v9788_v39, %v9788_v39  ;;  %v9798_v13 = vpop.f32.mrb[23].mxu0  ;;  %v2167_v23 = vpop.permute.xlu1 %2166  ;;  %v4643_v1 = vsel %vm3730_vm15, %v4642_v16, %v4641_v3  ;;  %v3871_v0 = vsel %vm3721_vm12, %v3870_v14, %v3869_v19 }
 0x45e   :  { %v3390_v57 = vsel %vm2305_vm4, %v9798_v13, 0.0  ;;  %v3502_v17 = vmul.f32 %v9798_v13, %v9798_v13  ;;  %v2755_v32 = vsel %vm2695_vm10, %v2690_v55, %v2167_v23  ;;  %v2165_v7 = vpop.permute.xlu0 %2164  ;;  %v3805_v52 = vrot.slane %v9798_v13, 6 }
 0x45f   :  { %v3589_v21 = vsel %vm2305_vm4, %v3503_v53, 0.0  ;;  %v3391_v12 = vadd.f32 %v3390_v57, %v3389_v38  ;;  %v2754_v48 = vsel %vm2695_vm10, %v2689_v30, %v2165_v7  ;;  %v3745_v16 = vrot.slane %v9798_v13, 5 }
 0x460   :  { %v3587_v56 = vsel %vm2305_vm4, %v3502_v17, 0.0  ;;  %5307 = vmatprep.mubr.msk.f32.mxu1 %vm2765_vm11, %v2754_v48  ;;  %v3806_v27 = vsel %vm3727_vm14, %v3805_v52, %v3804_v49  ;;  %v4644_v19 = vsel %vm3733_vm0, %v9504_v40, %v4643_v1  ;;  %v3872_v55 = vsel %vm3724_vm13, %v9733_v33, %v3871_v0 }
 0x461   :  { %v3588_v10 = vadd.f32 %v3587_v56, %v3586_v62  ;;  %5308 = vmatmul.mubr.msk.f32.gmra.mrb[26].mxu1 %vm2765_vm11, %v2755_v32  ;;  %v1765_v38 = vpop.permute.xlu1 %1764  ;;  %v3393_v14 = vadd.f32 %v3392_v31, %v3391_v12  ;;  %v3746_v30 = vsel %vm3727_vm14, %v3745_v16, %v3744_v35  ;;  %v4646_v3 = vsel %vm3736_vm1, %v4645_v2, %v4644_v19 }
 0x462   :  { %v2627_v53 = vsel %vm2565_vm8, %v9300_v6, %v1765_v38  ;;  %v1763_v23 = vpop.permute.xlu0 %1762  ;;  %v9824_v49 = vsel %vm3739_vm2, %v4647_v50, %v4646_v3  ;;  %v3873_v1 = vrot.slane %v9798_v13, 7  ;;  %v3939_v0 = vsel %vm3721_vm12, %v3938_v24, %v3937_v28 }
 0x463   :  { %12699 = vst [vmem:[#allocation187_spill] sm:$0xff] %v9824_v49  ;;  %v2626_v62 = vsel %vm2565_vm8, %v9308_v54, %v1763_v23  ;;  %v3590_v57 = vadd.f32 %v3589_v21, %v3588_v10  ;;  %v3941_v31 = vsel %vm3724_vm13, %v3940_v46, %v3939_v0  ;;  %v4006_v35 = vrot.slane %v9689_v4, 3 }
 0x464   :  { %v3874_v2 = vsel %vm3727_vm14, %v3873_v1, %v3872_v55  ;;  %v3942_v6 = vsel %vm3727_vm14, %v9798_v13, %v3941_v31  ;;  %v4008_v50 = vrot.slane %v9733_v33, 2  ;;  %v4010_v17 = vrot.slane %v9798_v13, 1 }
 0x465   :  { %v1969_v32 = vpop.permute.xlu1 %1968  ;;  %v4007_v28 = vsel %vm3721_vm12, %v4006_v35, %v4005_v61  ;;  %v4073_v24 = vrot.slane %v9637_v15, 5  ;;  %v4074_v54 = vrot.slane %v9689_v4, 4  ;;  %v4076_v46 = vrot.slane %v9733_v33, 3 }
 0x466   :  { %v2692_v7 = vsel %vm2630_vm9, %v2627_v53, %v1969_v32  ;;  %v1967_v52 = vpop.permute.xlu0 %1966  ;;  %v4009_v21 = vsel %vm3724_vm13, %v4008_v50, %v4007_v28  ;;  %v4078_v12 = vrot.slane %v9798_v13, 2  ;;  %v4141_v48 = vrot.slane %v9637_v15, 6 }
 0x467   :  { %v2691_v16 = vsel %vm2630_vm9, %v2626_v62, %v1967_v52  ;;  %v4011_v56 = vsel %vm3727_vm14, %v4010_v17, %v4009_v21  ;;  %v4075_v61 = vsel %vm3721_vm12, %v4074_v54, %v4073_v24  ;;  %v4142_v19 = vrot.slane %v9689_v4, 5 }
 0x468   :  { %v9849_v55 = vpop.f32.mrb[24].mxu0  ;;  %v4077_v10 = vsel %vm3724_vm13, %v4076_v46, %v4075_v61  ;;  %v4144_v38 = vrot.slane %v9733_v33, 4  ;;  %v4146_v3 = vrot.slane %v9798_v13, 3  ;;  %v4209_v53 = vrot.slane %v9637_v15, 7 }
 0x469   :  { %v3396_v23 = vsel %vm2305_vm4, %v9849_v55, 0.0  ;;  %v3505_v1 = vmul.f32 %v9849_v55, %v9849_v55  ;;  %v3148_v0 = vpop.f32.mrb[25].mxu0  ;;  %v2171_v62 = vpop.permute.xlu1 %2170  ;;  %v4079_v31 = vsel %vm3727_vm14, %v4078_v12, %v4077_v10  ;;  %v4143_v35 = vsel %vm3721_vm12, %v4142_v19, %v4141_v48 }
 0x46a   :  { %v3394_v50 = vsel %vm2305_vm4, %v3148_v0, 0.0  ;;  %v3504_v17 = vmul.f32 %v3148_v0, %v3148_v0  ;;  %v2757_v32 = vsel %vm2695_vm10, %v2692_v7, %v2171_v62  ;;  %v2169_v28 = vpop.permute.xlu0 %2168  ;;  %v3807_v24 = vrot.slane %v3148_v0, 5 }
 0x46b   :  { %v3593_v15 = vsel %vm2305_vm4, %v3505_v1, 0.0  ;;  %v3395_v54 = vadd.f32 %v3394_v50, %v3393_v14  ;;  %v2756_v46 = vsel %vm2695_vm10, %v2691_v16, %v2169_v28  ;;  %v3747_v52 = vrot.slane %v3148_v0, 4 }
 0x46c   :  { %v3591_v21 = vsel %vm2305_vm4, %v3504_v17, 0.0  ;;  %5310 = vmatprep.mubr.msk.f32.mxu1 %vm2765_vm11, %v2756_v46  ;;  %v3808_v12 = vsel %vm3730_vm15, %v3807_v24, %v3806_v27  ;;  %v3875_v48 = vrot.slane %v3148_v0, 6  ;;  %v3943_v61 = vrot.slane %v3148_v0, 7 }
 0x46d   :  { %v3592_v19 = vadd.f32 %v3591_v21, %v3590_v57  ;;  %5311 = vmatmul.mubr.msk.f32.gmra.mrb[28].mxu1 %vm2765_vm11, %v2757_v32  ;;  %v1769_v7 = vpop.permute.xlu1 %1768  ;;  %v3397_v10 = vadd.f32 %v3396_v23, %v3395_v54  ;;  %v3748_v62 = vsel %vm3730_vm15, %v3747_v52, %v3746_v30  ;;  %v9871_v14 = vsel %vm3730_vm15, %v3148_v0, %v4011_v56 }
 0x46e   :  { %v2629_v16 = vsel %vm2565_vm8, %v9312_v34, %v1769_v7  ;;  %v1767_v1 = vpop.permute.xlu0 %1766  ;;  %v3876_v50 = vsel %vm3730_vm15, %v3875_v48, %v3874_v2  ;;  %v3944_v27 = vsel %vm3730_vm15, %v3943_v61, %v3942_v6  ;;  %v4080_v17 = vrot.slane %v3148_v0, 1 }
 0x46f   :  { %v2628_v57 = vsel %vm2565_vm8, %v9318_v8, %v1767_v1  ;;  %v3594_v32 = vadd.f32 %v3593_v15, %v3592_v19  ;;  %v4145_v23 = vsel %vm3724_vm13, %v4144_v38, %v4143_v35  ;;  %v4148_v28 = vrot.slane %v3148_v0, 2 }
 0x470   :  { %v4081_v30 = vsel %vm3730_vm15, %v4080_v17, %v4079_v31  ;;  %v4147_v56 = vsel %vm3727_vm14, %v4146_v3, %v4145_v23  ;;  %v4210_v24 = vrot.slane %v9689_v4, 6  ;;  %v4212_v34 = vrot.slane %v9733_v33, 5 }
 0x471   :  { %v1973_v54 = vpop.permute.xlu1 %1972  ;;  %v4149_v2 = vsel %vm3730_vm15, %v4148_v28, %v4147_v56  ;;  %v4214_v6 = vrot.slane %v9798_v13, 4  ;;  %v4216_v46 = vrot.slane %v3148_v0, 3  ;;  %v4309_v8 = vrot.slane %v9674_v51, 7 }
 0x472   :  { %v2694_v15 = vsel %vm2630_vm9, %v2629_v16, %v1973_v54  ;;  %v1971_v38 = vpop.permute.xlu0 %1970  ;;  %v4211_v35 = vsel %vm3721_vm12, %v4210_v24, %v4209_v53  ;;  %v4311_v31 = vrot.slane %v9723_v59, 6  ;;  %v4313_v3 = vrot.slane %v9788_v39, 5 }
 0x473   :  { %v2693_v4 = vsel %vm2630_vm9, %v2628_v57, %v1971_v38  ;;  %v4213_v33 = vsel %vm3724_vm13, %v4212_v34, %v4211_v35  ;;  %v4310_v52 = vsel %vm3721_vm12, %v4309_v8, %v9622_v60  ;;  %v4315_v13 = vrot.slane %v9849_v55, 4 }
 0x474   :  { %v9896_v0 = vpop.f32.mrb[26].mxu0  ;;  %v4215_v21 = vsel %vm3727_vm14, %v4214_v6, %v4213_v33  ;;  %v4312_v48 = vsel %vm3724_vm13, %v4311_v31, %v4310_v52  ;;  %v4377_v53 = vrot.slane %v9622_v60, 1  ;;  %v4379_v61 = vrot.slane %v9723_v59, 7 }
 0x475   :  { %v3400_v19 = vsel %vm2305_vm4, %v9896_v0, 0.0  ;;  %v3507_v7 = vmul.f32 %v9896_v0, %v9896_v0  ;;  %v3158_v16 = vpop.f32.mrb[27].mxu0  ;;  %v2175_v1 = vpop.permute.xlu1 %2174  ;;  %v4217_v17 = vsel %vm3730_vm15, %v4216_v46, %v4215_v21  ;;  %v4314_v57 = vsel %vm3727_vm14, %v4313_v3, %v4312_v48 }
 0x476   :  { %v3398_v23 = vsel %vm2305_vm4, %v3158_v16, 0.0  ;;  %v3506_v28 = vmul.f32 %v3158_v16, %v3158_v16  ;;  %v2759_v56 = vsel %vm2695_vm10, %v2694_v15, %v2175_v1  ;;  %v2173_v24 = vpop.permute.xlu0 %2172  ;;  %v3809_v34 = vrot.slane %v3158_v16, 4 }
 0x477   :  { %v3597_v54 = vsel %vm2305_vm4, %v3507_v7, 0.0  ;;  %v3399_v6 = vadd.f32 %v3398_v23, %v3397_v10  ;;  %v2758_v8 = vsel %vm2695_vm10, %v2693_v4, %v2173_v24  ;;  %v3749_v38 = vrot.slane %v3158_v16, 3 }
 0x478   :  { %v3595_v35 = vsel %vm2305_vm4, %v3506_v28, 0.0  ;;  %5313 = vmatprep.mubr.msk.f32.mxu1 %vm2765_vm11, %v2758_v8  ;;  %v3810_v46 = vsel %vm3733_vm0, %v3809_v34, %v3808_v12  ;;  %v3877_v31 = vrot.slane %v3158_v16, 5  ;;  %v3945_v3 = vrot.slane %v3158_v16, 6 }
 0x479   :  { %v3596_v33 = vadd.f32 %v3595_v35, %v3594_v32  ;;  %5314 = vmatmul.mubr.msk.f32.gmra.mrb[30].mxu1 %vm2765_vm11, %v2759_v56  ;;  %v3401_v15 = vadd.f32 %v3400_v19, %v3399_v6  ;;  %v3750_v52 = vsel %vm3733_vm0, %v3749_v38, %v3748_v62  ;;  %v4013_v21 = vrot.slane %v3158_v16, 7 }
 0x47a   :  { %v3878_v10 = vsel %vm3733_vm0, %v3877_v31, %v3876_v50  ;;  %v3946_v4 = vsel %vm3733_vm0, %v3945_v3, %v3944_v27  ;;  %v4082_v48 = vsel %vm3733_vm0, %v3158_v16, %v4081_v30  ;;  %v4150_v7 = vrot.slane %v3158_v16, 1 }
 0x47b   :  { %v3598_v1 = vadd.f32 %v3597_v54, %v3596_v33  ;;  %v4014_v12 = vsel %vm3733_vm0, %v4013_v21, %v9871_v14  ;;  %v4218_v23 = vrot.slane %v3158_v16, 2  ;;  %v4316_v32 = vsel %vm3730_vm15, %v4315_v13, %v4314_v57 }
 0x47c   :  { %v4151_v28 = vsel %vm3733_vm0, %v4150_v7, %v4149_v2  ;;  %v4317_v19 = vrot.slane %v9896_v0, 3  ;;  %v4378_v62 = vsel %vm3721_vm12, %v9674_v51, %v4377_v53  ;;  %v4381_v50 = vrot.slane %v9788_v39, 6 }
 0x47d   :  { %v4219_v27 = vsel %vm3733_vm0, %v4218_v23, %v4217_v17  ;;  %v4380_v30 = vsel %vm3724_vm13, %v4379_v61, %v4378_v62  ;;  %v4383_v56 = vrot.slane %v9849_v55, 5  ;;  %v4385_v14 = vrot.slane %v9896_v0, 4 }
 0x47e   :  { %v4318_v16 = vsel %vm3733_vm0, %v4317_v19, %v4316_v32  ;;  %v4382_v13 = vsel %vm3727_vm14, %v4381_v50, %v4380_v30  ;;  %v4445_v2 = vrot.slane %v9622_v60, 2  ;;  %v4446_v57 = vrot.slane %v9674_v51, 1 }
 0x47f   :  { %v4384_v53 = vsel %vm3730_vm15, %v4383_v56, %v4382_v13  ;;  %v4449_v24 = vrot.slane %v9788_v39, 7  ;;  %v4451_v17 = vrot.slane %v9849_v55, 6  ;;  %v4453_v61 = vrot.slane %v9896_v0, 5 }
 0x480   :  { %v9940_v34 = vpop.f32.mrb[28].mxu0  ;;  %v4386_v54 = vsel %vm3733_vm0, %v4385_v14, %v4384_v53  ;;  %v4447_v6 = vsel %vm3721_vm12, %v4446_v57, %v4445_v2  ;;  %v4513_v8 = vrot.slane %v9622_v60, 3  ;;  %v4514_v38 = vrot.slane %v9674_v51, 2 }
 0x481   :  { %v3509_v35 = vmul.f32 %v9940_v34, %v9940_v34  ;;  %v3168_v31 = vpop.f32.mrb[29].mxu0  ;;  %v3404_v3 = vsel %vm2305_vm4, %v9940_v34, 0.0  ;;  %v4319_v33 = vrot.slane %v9940_v34, 2  ;;  %v4387_v21 = vrot.slane %v9940_v34, 3 }
 0x482   :  { %v3402_v7 = vsel %vm2305_vm4, %v3168_v31, 0.0  ;;  %v3508_v23 = vmul.f32 %v3168_v31, %v3168_v31  ;;  %v3811_v32 = vrot.slane %v3168_v31, 3  ;;  %v3751_v19 = vrot.slane %v3168_v31, 2 }
 0x483   :  { %v3403_v62 = vadd.f32 %v3402_v7, %v3401_v15  ;;  %v3601_v50 = vsel %vm2305_vm4, %v3509_v35, 0.0  ;;  %v3879_v30 = vrot.slane %v3168_v31, 4  ;;  %v3947_v56 = vrot.slane %v3168_v31, 5 }
 0x484   :  { %v3599_v14 = vsel %vm2305_vm4, %v3508_v23, 0.0  ;;  %v3812_v13 = vsel %vm3736_vm1, %v3811_v32, %v3810_v46  ;;  %v3752_v2 = vsel %vm3736_vm1, %v3751_v19, %v3750_v52  ;;  %v4015_v57 = vrot.slane %v3168_v31, 6 }
 0x485   :  { %v3405_v53 = vadd.f32 %v3404_v3, %v3403_v62  ;;  %v3600_v44 = vadd.f32 %v3599_v14, %v3598_v1  ;;  %v3880_v49 = vsel %vm3736_vm1, %v3879_v30, %v3878_v10  ;;  %v3948_v9 = vsel %vm3736_vm1, %v3947_v56, %v3946_v4 }
 0x486   :  { %v4016_v25 = vsel %vm3736_vm1, %v4015_v57, %v4014_v12  ;;  %v4083_v15 = vrot.slane %v3168_v31, 7  ;;  %v4152_v35 = vsel %vm3736_vm1, %v3168_v31, %v4151_v28  ;;  %v4220_v7 = vrot.slane %v3168_v31, 1 }
 0x487   :  { %v3602_v63 = vadd.f32 %v3601_v50, %v3600_v44  ;;  %v4320_v23 = vsel %vm3736_vm1, %v4319_v33, %v4318_v16  ;;  %v4388_v46 = vsel %vm3736_vm1, %v4387_v21, %v4386_v54  ;;  %v4448_v52 = vsel %vm3724_vm13, %v9723_v59, %v4447_v6 }
 0x488   :  { %v4084_v1 = vsel %vm3736_vm1, %v4083_v15, %v4082_v48  ;;  %v4221_v10 = vsel %vm3736_vm1, %v4220_v7, %v4219_v27  ;;  %v4450_v4 = vsel %vm3727_vm14, %v4449_v24, %v4448_v52  ;;  %v4455_v12 = vrot.slane %v9940_v34, 4 }
 0x489   :  { %v4452_v3 = vsel %vm3730_vm15, %v4451_v17, %v4450_v4  ;;  %v4515_v28 = vsel %vm3721_vm12, %v4514_v38, %v4513_v8  ;;  %v4516_v44 = vrot.slane %v9723_v59, 1  ;;  %v4519_v6 = vrot.slane %v9849_v55, 7 }
 0x48a   :  { %v4454_v54 = vsel %vm3733_vm0, %v4453_v61, %v4452_v3  ;;  %v4521_v48 = vrot.slane %v9896_v0, 6  ;;  %v4523_v27 = vrot.slane %v9940_v34, 5  ;;  %v4581_v17 = vrot.slane %v9622_v60, 4 }
 0x48b   :  { %v4456_v24 = vsel %vm3736_vm1, %v4455_v12, %v4454_v54  ;;  %v4517_v31 = vsel %vm3724_vm13, %v4516_v44, %v4515_v28  ;;  %v4582_v8 = vrot.slane %v9674_v51, 3  ;;  %v4584_v61 = vrot.slane %v9723_v59, 2 }
 0x48c   :  { %v9981_v38 = vpop.f32.mrb[30].mxu0  ;;  %v4518_v33 = vsel %vm3727_vm14, %v9788_v39, %v4517_v31  ;;  %v4586_v21 = vrot.slane %v9788_v39, 1  ;;  %vm4870_vm9 = vcmask 523264   ;;  %vm4875_vm11 = vcmask 588800  }
 0x48d   :  { %v3511_v19 = vmul.f32 %v9981_v38, %v9981_v38  ;;  %v3178_v62 = vpop.f32.mrb[31].mxu0  ;;  %v3408_v50 = vsel %vm2305_vm4, %v9981_v38, 0.0  ;;  %v4321_v30 = vrot.slane %v9981_v38, 1  ;;  %v4389_v56 = vrot.slane %v9981_v38, 2 }
 0x48e   :  { %v3406_v14 = vsel %vm2305_vm4, %v3178_v62, 0.0  ;;  %v3510_v57 = vmul.f32 %v3178_v62, %v3178_v62  ;;  %v3813_v15 = vrot.slane %v3178_v62, 2  ;;  %v3753_v7 = vrot.slane %v3178_v62, 1 }
 0x48f   :  { %v3407_v52 = vadd.f32 %v3406_v14, %v3405_v53  ;;  %v3605_v4 = vsel %vm2305_vm4, %v3511_v19, 0.0  ;;  %v3881_v12 = vrot.slane %v3178_v62, 3  ;;  %v3949_v3 = vrot.slane %v3178_v62, 4 }
 0x490   :  { %v3603_v28 = vsel %vm2305_vm4, %v3510_v57, 0.0  ;;  %v3814_v44 = vsel %vm3739_vm2, %v3813_v15, %v3812_v13  ;;  %v9999_v54 = vsel %vm3739_vm2, %v3753_v7, %v3752_v2  ;;  %v4017_v31 = vrot.slane %v3178_v62, 5 }
 0x491   :  { %12700 = vst [vmem:[#allocation189_spill] sm:$0xff] %v9999_v54  ;;  %v3409_v16 = vadd.f32 %v3408_v50, %v3407_v52  ;;  %v3604_v32 = vadd.f32 %v3603_v28, %v3602_v63  ;;  %3845 = vrot.lane.b32.xlu1 %v3814_v44, %s5378_s6  ;;  %v10003_v29 = vsel %vm3739_vm2, %v3881_v12, %v3880_v49  ;;  %v4085_v14 = vrot.slane %v3178_v62, 6 }
 0x492   :  { %12701 = vst [vmem:[#allocation52_spill] sm:$0xff] %v10003_v29  ;;  %v10006_v53 = vsel %vm3739_vm2, %v3949_v3, %v3948_v9  ;;  %v10009_v19 = vsel %vm3739_vm2, %v4017_v31, %v4016_v25  ;;  %v4153_v57 = vrot.slane %v3178_v62, 7  ;;  %v10012_v13 = vsel %vm3739_vm2, %v3178_v62, %v4221_v10 }
 0x493   :  { %12702 = vst [vmem:[#allocation55_spill] sm:$0xff] %v10006_v53  ;;  %12703 = vst [vmem:[#allocation191_spill] sm:$0xff] %v10009_v19  ;;  %v3606_v2 = vadd.f32 %v3605_v4, %v3604_v32  ;;  %v10015_v50 = vsel %vm3739_vm2, %v4321_v30, %v4320_v23  ;;  %v10018_v63 = vsel %vm3739_vm2, %v4389_v56, %v4388_v46  ;;  %v4457_v49 = vrot.slane %v9981_v38, 3 }
 0x494   :  { %12704 = vst [vmem:[#allocation192_spill] sm:$0xff] %v10012_v13  ;;  %12705 = vst [vmem:[#allocation132_spill] sm:$0xff] %v10015_v50  ;;  %v10022_v9 = vsel %vm3739_vm2, %v4085_v14, %v4084_v1  ;;  %v10025_v25 = vsel %vm3739_vm2, %v4153_v57, %v4152_v35  ;;  %v4520_v15 = vsel %vm3730_vm15, %v4519_v6, %v4518_v33  ;;  %v4525_v10 = vrot.slane %v9981_v38, 4 }
 0x495   :  { %12706 = vst [vmem:[#allocation8_spill] sm:$0xff] %v10018_v63  ;;  %12707 = vst [vmem:[#allocation128_spill] sm:$0xff] %v10022_v9  ;;  %v10030_v32 = vsel %vm3739_vm2, %v4457_v49, %v4456_v24  ;;  %v4522_v23 = vsel %vm3733_vm0, %v4521_v48, %v4520_v15  ;;  %v4583_v46 = vsel %vm3721_vm12, %v4582_v8, %v4581_v17  ;;  %v4591_v62 = vrot.slane %v9940_v34, 6 }
 0x496   :  { %12708 = vst [vmem:[#allocation7_spill] sm:$0xff] %v10025_v25  ;;  %12709 = vst [vmem:[#allocation235_spill] sm:$0xff] %v10030_v32  ;;  %v4524_v30 = vsel %vm3736_vm1, %v4523_v27, %v4522_v23  ;;  %v4585_v1 = vsel %vm3724_vm13, %v4584_v61, %v4583_v46  ;;  %v4649_v35 = vrot.slane %v9622_v60, 5  ;;  %v4650_v56 = vrot.slane %v9674_v51, 4 }
 0x497   :  { %v10040_v6 = vsel %vm3739_vm2, %v4525_v10, %v4524_v30  ;;  %v4587_v24 = vsel %vm3727_vm14, %v4586_v21, %v4585_v1  ;;  %v4593_v33 = vrot.slane %v9981_v38, 5  ;;  %v4652_v48 = vrot.slane %v9723_v59, 3 }
 0x498   :  { %12710 = vst [vmem:[#allocation237_spill] sm:$0xff] %v10040_v6  ;;  %v10045_v17 = vpop.f32.mrb[0].mxu1  ;;  %v4588_v27 = vsel %vm3730_vm15, %v9849_v55, %v4587_v24  ;;  %v4651_v8 = vsel %vm3721_vm12, %v4650_v56, %v4649_v35  ;;  %v4654_v61 = vrot.slane %v9788_v39, 2  ;;  %v4656_v7 = vrot.slane %v9849_v55, 1 }
 0x499   :  { %v3412_v52 = vsel %vm2305_vm4, %v10045_v17, 0.0  ;;  %v3513_v21 = vmul.f32 %v10045_v17, %v10045_v17  ;;  %v10056_v4 = vpop.f32.mrb[1].mxu1  ;;  %v4391_v12 = vrot.slane %v10045_v17, 1  ;;  %v4659_v3 = vrot.slane %v9940_v34, 7 }
 0x49a   :  { %v3410_v28 = vsel %vm2305_vm4, %v10056_v4, 0.0  ;;  %v3512_v44 = vmul.f32 %v10056_v4, %v10056_v4  ;;  %v3815_v31 = vrot.slane %v10056_v4, 1  ;;  %v3883_v15 = vrot.slane %v10056_v4, 2 }
 0x49b   :  { %v3609_v57 = vsel %vm2305_vm4, %v3513_v21, 0.0  ;;  %v3411_v49 = vadd.f32 %v3410_v28, %v3409_v16  ;;  %v3951_v10 = vrot.slane %v10056_v4, 3  ;;  %v4019_v46 = vrot.slane %v10056_v4, 4 }
 0x49c   :  { %v3607_v23 = vsel %vm2305_vm4, %v3512_v44, 0.0  ;;  %v4087_v30 = vrot.slane %v10056_v4, 5  ;;  %v4155_v1 = vrot.slane %v10056_v4, 6  ;;  %v4223_v24 = vrot.slane %v10056_v4, 7 }
 0x49d   :  { %v3608_v35 = vadd.f32 %v3607_v23, %v3606_v2  ;;  %v3413_v56 = vadd.f32 %v3412_v52, %v3411_v49  ;;  %v12711_v21 = vrot.slane %v9896_v0, 7  ;;  %v4653_v44 = vsel %vm3724_vm13, %v4652_v48, %v4651_v8 }
 0x49e   :  { %v4661_v54 = vrot.slane %v9981_v38, 6  ;;  %v4655_v2 = vsel %vm3727_vm14, %v4654_v61, %v4653_v44  ;;  %v4704_v52 = vrot.slane %v9336_v20, 5  ;;  %v4706_v16 = vrot.slane %v9379_v47, 4 }
 0x49f   :  { %v4590_v28 = vsel %vm3733_vm0, %v12711_v21, %v4588_v27  ;;  %v3610_v6 = vadd.f32 %v3609_v57, %v3608_v35  ;;  %v4657_v23 = vsel %vm3730_vm15, %v4656_v7, %v4655_v2  ;;  %v4708_v27 = vrot.slane %v9419_v18, 3 }
 0x4a0   :  { %v4592_v32 = vsel %vm3736_vm1, %v4591_v62, %v4590_v28  ;;  %v4663_v48 = vrot.slane %v10045_v17, 5  ;;  %v4658_v8 = vsel %vm3733_vm0, %v9896_v0, %v4657_v23  ;;  %v12713_v62 = vrot.slane %v9277_v45, 6 }
 0x4a1   :  { %v10085_v49 = vsel %vm3739_vm2, %v4593_v33, %v4592_v32  ;;  %v4710_v57 = vrot.slane %v9460_v26, 2  ;;  %v4660_v32 = vsel %vm3736_vm1, %v4659_v3, %v4658_v8  ;;  %v4712_v7 = vrot.slane %v9504_v40, 1 }
 0x4a2   :  { %12712 = vst [vmem:[#allocation304_spill] sm:$0xff] %v10085_v49  ;;  %v4705_v61 = vsel %vm3721_vm12, %v4704_v52, %v12713_v62  ;;  %v4715_v35 = vrot.slane %v9585_v42, 7  ;;  %v10102_v21 = vsel %vm3739_vm2, %v4661_v54, %v4660_v32  ;;  %v4785_v44 = vrot.slane %v9622_v60, 7 }
 0x4a3   :  { %v4707_v33 = vsel %vm3724_vm13, %v4706_v16, %v4705_v61  ;;  %12714 = vst [vmem:[#allocation305_spill] sm:$0xff] %v10102_v21  ;;  %v4786_v2 = vrot.slane %v9674_v51, 6  ;;  %v4788_v3 = vrot.slane %v9723_v59, 5  ;;  %v4790_v16 = vrot.slane %v9788_v39, 4 }
 0x4a4   :  { %v4709_v28 = vsel %vm3727_vm14, %v4708_v27, %v4707_v33  ;;  %v10107_v52 = vpop.f32.mrb[2].mxu1 }
 0x4a5   :  { %v4711_v23 = vsel %vm3730_vm15, %v4710_v57, %v4709_v28  ;;  %v3416_v54 = vsel %vm2305_vm4, %v10107_v52, 0.0  ;;  %v3515_v27 = vmul.f32 %v10107_v52, %v10107_v52  ;;  %v3198_v62 = vpop.f32.mrb[3].mxu1  ;;  %v4323_v61 = vrot.slane %v10107_v52, 7 }
 0x4a6   :  { %v10120_v32 = vsel %vm3721_vm12, %v10107_v52, %v4391_v12  ;;  %v3414_v57 = vsel %vm2305_vm4, %v3198_v62, 0.0  ;;  %v3514_v33 = vmul.f32 %v3198_v62, %v3198_v62  ;;  %v3816_v28 = vsel %vm3721_vm12, %v3198_v62, %v3815_v31 }
 0x4a7   :  { %v3884_v14 = vrot.slane %v3198_v62, 1  ;;  %v3613_v8 = vsel %vm2305_vm4, %v3515_v27, 0.0  ;;  %v3415_v21 = vadd.f32 %v3414_v57, %v3413_v56  ;;  %v3952_v49 = vrot.slane %v3198_v62, 2 }
 0x4a8   :  { %v4020_v63 = vrot.slane %v3198_v62, 3  ;;  %v3611_v50 = vsel %vm2305_vm4, %v3514_v33, 0.0  ;;  %v4088_v25 = vrot.slane %v3198_v62, 4  ;;  %v4156_v9 = vrot.slane %v3198_v62, 5 }
 0x4a9   :  { %v3885_v13 = vsel %vm3721_vm12, %v3884_v14, %v3883_v15  ;;  %v3612_v19 = vadd.f32 %v3611_v50, %v3610_v6  ;;  %v3417_v12 = vadd.f32 %v3416_v54, %v3415_v21  ;;  %v3953_v53 = vsel %vm3721_vm12, %v3952_v49, %v3951_v10 }
 0x4aa   :  { %v4021_v29 = vsel %vm3721_vm12, %v4020_v63, %v4019_v46  ;;  %v4089_v31 = vsel %vm3721_vm12, %v4088_v25, %v4087_v30  ;;  %v4157_v5 = vsel %vm3721_vm12, %v4156_v9, %v4155_v1  ;;  %v4224_v27 = vrot.slane %v3198_v62, 6 }
 0x4ab   :  { %v4324_v56 = vsel %vm3721_vm12, %v4323_v61, %v10045_v17  ;;  %v3614_v57 = vadd.f32 %v3613_v8, %v3612_v19  ;;  %v4460_v33 = vrot.slane %v10107_v52, 1  ;;  %v4528_v14 = vrot.slane %v10107_v52, 2 }
 0x4ac   :  { %v4596_v50 = vrot.slane %v10107_v52, 3  ;;  %v4225_v6 = vsel %vm3721_vm12, %v4224_v27, %v4223_v24  ;;  %v3755_v15 = vrot.slane %v3198_v62, 7  ;;  %v4664_v63 = vrot.slane %v10107_v52, 4 }
 0x4ad   :  { %v4713_v25 = vsel %vm3733_vm0, %v4712_v7, %v4711_v23  ;;  %v12715_v9 = vrot.slane %v10045_v17, 2  ;;  %v12716_v46 = vrot.slane %v10045_v17, 3  ;;  %v12717_v30 = vrot.slane %v10045_v17, 4 }
 0x4ae   :  { %v4714_v24 = vsel %vm3736_vm1, %v9541_v37, %v4713_v25  ;;  %v3756_v49 = vsel %vm3721_vm12, %v3755_v15, %v10056_v4  ;;  %v4665_v7 = vsel %vm3721_vm12, %v4664_v63, %v4663_v48  ;;  %v4787_v23 = vsel %vm3721_vm12, %v4786_v2, %v4785_v44 }
 0x4af   :  { %v4461_v10 = vsel %vm3721_vm12, %v4460_v33, %v12715_v9  ;;  %v4529_v19 = vsel %vm3721_vm12, %v4528_v14, %v12716_v46  ;;  %v4597_v1 = vsel %vm3721_vm12, %v4596_v50, %v12717_v30  ;;  %v10154_v21 = vsel %vm3739_vm2, %v4715_v35, %v4714_v24 }
 0x4b0   :  { %12718 = vst [vmem:[#allocation358_spill] sm:$0xff] %v10154_v21  ;;  %v4789_v54 = vsel %vm3724_vm13, %v4788_v3, %v4787_v23  ;;  %v4794_v62 = vrot.slane %v9896_v0, 2  ;;  %v4796_v61 = vrot.slane %v9940_v34, 1  ;;  %v10161_v27 = vpop.f32.mrb[4].mxu1  ;;  %v4717_v4 = vrot.slane %v9622_v60, 6 }
 0x4b1   :  { %v4791_v33 = vsel %vm3727_vm14, %v4790_v16, %v4789_v54  ;;  %v4718_v48 = vrot.slane %v9674_v51, 5  ;;  %v4720_v35 = vrot.slane %v9723_v59, 4  ;;  %v3420_v44 = vsel %vm2305_vm4, %v10161_v27, 0.0  ;;  %v3208_v3 = vpop.f32.mrb[5].mxu1 }
 0x4b2   :  { %v3517_v2 = vmul.f32 %v10161_v27, %v10161_v27  ;;  %v4325_v14 = vrot.slane %v10161_v27, 6  ;;  %v4393_v50 = vrot.slane %v10161_v27, 7  ;;  %v3418_v15 = vsel %vm2305_vm4, %v3208_v3, 0.0 }
 0x4b3   :  { %v3516_v16 = vmul.f32 %v3208_v3, %v3208_v3  ;;  %v3817_v63 = vrot.slane %v3208_v3, 7  ;;  %v3886_v60 = vsel %vm3724_vm13, %v3208_v3, %v3885_v13  ;;  %v3419_v59 = vadd.f32 %v3418_v15, %v3417_v12 }
 0x4b4   :  { %v3617_v51 = vsel %vm2305_vm4, %v3517_v2, 0.0  ;;  %v3954_v25 = vrot.slane %v3208_v3, 1  ;;  %v4022_v9 = vrot.slane %v3208_v3, 2  ;;  %v4090_v24 = vrot.slane %v3208_v3, 3 }
 0x4b5   :  { %v3615_v46 = vsel %vm2305_vm4, %v3516_v16, 0.0  ;;  %v3818_v30 = vsel %vm3724_vm13, %v3817_v63, %v3816_v28  ;;  %v4158_v23 = vrot.slane %v3208_v3, 4  ;;  %v3421_v8 = vadd.f32 %v3420_v44, %v3419_v59 }
 0x4b6   :  { %v3616_v54 = vadd.f32 %v3615_v46, %v3614_v57  ;;  %v3955_v21 = vsel %vm3724_vm13, %v3954_v25, %v3953_v53  ;;  %v4023_v43 = vsel %vm3724_vm13, %v4022_v9, %v4021_v29  ;;  %v4091_v22 = vsel %vm3724_vm13, %v4090_v24, %v4089_v31 }
 0x4b7   :  { %v4159_v13 = vsel %vm3724_vm13, %v4158_v23, %v4157_v5  ;;  %v4226_v2 = vrot.slane %v3208_v3, 5  ;;  %v4326_v12 = vsel %vm3724_vm13, %v4325_v14, %v4324_v56  ;;  %v4394_v16 = vsel %vm3724_vm13, %v4393_v50, %v10120_v32 }
 0x4b8   :  { %v3618_v15 = vadd.f32 %v3617_v51, %v3616_v54  ;;  %v4462_v28 = vsel %vm3724_vm13, %v10161_v27, %v4461_v10  ;;  %v4530_v57 = vrot.slane %v10161_v27, 1  ;;  %v4598_v29 = vrot.slane %v10161_v27, 2 }
 0x4b9   :  { %v4227_v53 = vsel %vm3724_vm13, %v4226_v2, %v4225_v6  ;;  %v3757_v44 = vrot.slane %v3208_v3, 6  ;;  %v4666_v31 = vrot.slane %v10161_v27, 3  ;;  %v12719_v56 = vrot.slane %v9849_v55, 3 }
 0x4ba   :  { %v4531_v5 = vsel %vm3724_vm13, %v4530_v57, %v4529_v19  ;;  %v4719_v32 = vsel %vm3721_vm12, %v4718_v48, %v4717_v4  ;;  %v4722_v50 = vrot.slane %v9788_v39, 3  ;;  %v4599_v10 = vsel %vm3724_vm13, %v4598_v29, %v4597_v1 }
 0x4bb   :  { %v4793_v14 = vsel %vm3730_vm15, %v12719_v56, %v4791_v33  ;;  %v3758_v63 = vsel %vm3724_vm13, %v3757_v44, %v3756_v49  ;;  %v4667_v6 = vsel %vm3724_vm13, %v4666_v31, %v4665_v7  ;;  %v4732_v51 = vrot.slane %v10107_v52, 5 }
 0x4bc   :  { %v4795_v3 = vsel %vm3733_vm0, %v4794_v62, %v4793_v14  ;;  %v4721_v59 = vsel %vm3724_vm13, %v4720_v35, %v4719_v32  ;;  %v4724_v33 = vrot.slane %v9849_v55, 2  ;;  %v10205_v25 = vpop.f32.mrb[6].mxu1  ;;  %v4726_v49 = vrot.slane %v9896_v0, 1 }
 0x4bd   :  { %v4797_v19 = vsel %vm3736_vm1, %v4796_v61, %v4795_v3  ;;  %v4723_v1 = vsel %vm3727_vm14, %v4722_v50, %v4721_v59  ;;  %v4729_v7 = vrot.slane %v9981_v38, 7  ;;  %v3424_v62 = vsel %vm2305_vm4, %v10205_v25, 0.0  ;;  %v3218_v4 = vpop.f32.mrb[7].mxu1 }
 0x4be   :  { %v10209_v39 = vsel %vm3739_vm2, %v9981_v38, %v4797_v19  ;;  %v3519_v61 = vmul.f32 %v10205_v25, %v10205_v25  ;;  %v4327_v55 = vrot.slane %v10205_v25, 5  ;;  %v4395_v48 = vrot.slane %v10205_v25, 6 }
 0x4bf   :  { %v3422_v35 = vsel %vm2305_vm4, %v3218_v4, 0.0  ;;  %v3518_v9 = vmul.f32 %v3218_v4, %v3218_v4  ;;  %v3819_v46 = vrot.slane %v3218_v4, 6  ;;  %v3887_v24 = vrot.slane %v3218_v4, 7 }
 0x4c0   :  { %v3621_v0 = vsel %vm2305_vm4, %v3519_v61, 0.0  ;;  %v3423_v23 = vadd.f32 %v3422_v35, %v3421_v8  ;;  %v3956_v38 = vsel %vm3727_vm14, %v3218_v4, %v3955_v21  ;;  %v4024_v54 = vrot.slane %v3218_v4, 1 }
 0x4c1   :  { %v3619_v2 = vsel %vm2305_vm4, %v3518_v9, 0.0  ;;  %v3820_v57 = vsel %vm3727_vm14, %v3819_v46, %v3818_v30  ;;  %v3888_v29 = vsel %vm3727_vm14, %v3887_v24, %v3886_v60  ;;  %v4092_v44 = vrot.slane %v3218_v4, 2 }
 0x4c2   :  { %v3620_v31 = vadd.f32 %v3619_v2, %v3618_v15  ;;  %v3425_v56 = vadd.f32 %v3424_v62, %v3423_v23  ;;  %v4025_v14 = vsel %vm3727_vm14, %v4024_v54, %v4023_v43  ;;  %v4160_v32 = vrot.slane %v3218_v4, 3 }
 0x4c3   :  { %v4093_v50 = vsel %vm3727_vm14, %v4092_v44, %v4091_v22  ;;  %v4228_v3 = vrot.slane %v3218_v4, 4  ;;  %v4328_v8 = vsel %vm3727_vm14, %v4327_v55, %v4326_v12  ;;  %v4396_v21 = vsel %vm3727_vm14, %v4395_v48, %v4394_v16 }
 0x4c4   :  { %v3622_v19 = vadd.f32 %v3621_v0, %v3620_v31  ;;  %v4161_v59 = vsel %vm3727_vm14, %v4160_v32, %v4159_v13  ;;  %v4463_v30 = vrot.slane %v10205_v25, 7  ;;  %v4532_v60 = vsel %vm3727_vm14, %v10205_v25, %v4531_v5 }
 0x4c5   :  { %v4229_v15 = vsel %vm3727_vm14, %v4228_v3, %v4227_v53  ;;  %v4600_v43 = vrot.slane %v10205_v25, 1  ;;  %v3759_v62 = vrot.slane %v3218_v4, 5  ;;  %v4668_v22 = vrot.slane %v10205_v25, 2 }
 0x4c6   :  { %v4464_v61 = vsel %vm3727_vm14, %v4463_v30, %v4462_v28  ;;  %v12720_v12 = vrot.slane %v10045_v17, 6  ;;  %v4725_v13 = vsel %vm3730_vm15, %v4724_v33, %v4723_v1  ;;  %v4734_v4 = vrot.slane %v10161_v27, 4 }
 0x4c7   :  { %v4601_v55 = vsel %vm3727_vm14, %v4600_v43, %v4599_v10  ;;  %v3760_v48 = vsel %vm3727_vm14, %v3759_v62, %v3758_v63  ;;  %v4669_v5 = vsel %vm3727_vm14, %v4668_v22, %v4667_v6  ;;  %v4727_v53 = vsel %vm3733_vm0, %v4726_v49, %v4725_v13 }
 0x4c8   :  { %v4733_v16 = vsel %vm3721_vm12, %v4732_v51, %v12720_v12  ;;  %v4728_v35 = vsel %vm3736_vm1, %v9940_v34, %v4727_v53  ;;  %v4771_v28 = vrot.slane %v9277_v45, 7  ;;  %v4772_v9 = vrot.slane %v9336_v20, 6  ;;  %v10251_v51 = vpop.f32.mrb[8].mxu1 }
 0x4c9   :  { %v10254_v33 = vsel %vm3739_vm2, %v4729_v7, %v4728_v35  ;;  %v4774_v10 = vrot.slane %v9379_v47, 5  ;;  %v4776_v63 = vrot.slane %v9419_v18, 4  ;;  %v4778_v6 = vrot.slane %v9460_v26, 3  ;;  %v3228_v45 = vpop.f32.mrb[9].mxu1 }
 0x4ca   :  { %v3428_v1 = vsel %vm2305_vm4, %v10251_v51, 0.0  ;;  %v3521_v34 = vmul.f32 %v10251_v51, %v10251_v51  ;;  %v4329_v20 = vrot.slane %v10251_v51, 4  ;;  %v4397_v49 = vrot.slane %v10251_v51, 5 }
 0x4cb   :  { %v3426_v7 = vsel %vm2305_vm4, %v3228_v45, 0.0  ;;  %v3520_v46 = vmul.f32 %v3228_v45, %v3228_v45  ;;  %v3821_v24 = vrot.slane %v3228_v45, 5  ;;  %v3889_v47 = vrot.slane %v3228_v45, 6 }
 0x4cc   :  { %v3625_v18 = vsel %vm2305_vm4, %v3521_v34, 0.0  ;;  %v3427_v0 = vadd.f32 %v3426_v7, %v3425_v56  ;;  %v3957_v26 = vrot.slane %v3228_v45, 7  ;;  %v4026_v23 = vsel %vm3730_vm15, %v3228_v45, %v4025_v14 }
 0x4cd   :  { %v3623_v54 = vsel %vm2305_vm4, %v3520_v46, 0.0  ;;  %v3822_v2 = vsel %vm3730_vm15, %v3821_v24, %v3820_v57  ;;  %v3890_v44 = vsel %vm3730_vm15, %v3889_v47, %v3888_v29  ;;  %v4094_v31 = vrot.slane %v3228_v45, 1 }
 0x4ce   :  { %v3624_v32 = vadd.f32 %v3623_v54, %v3622_v19  ;;  %v3429_v3 = vadd.f32 %v3428_v1, %v3427_v0  ;;  %v3958_v30 = vsel %vm3730_vm15, %v3957_v26, %v3956_v38  ;;  %v4162_v43 = vrot.slane %v3228_v45, 2 }
 0x4cf   :  { %v4095_v62 = vsel %vm3730_vm15, %v4094_v31, %v4093_v50  ;;  %v4230_v22 = vrot.slane %v3228_v45, 3  ;;  %v4330_v56 = vsel %vm3730_vm15, %v4329_v20, %v4328_v8  ;;  %v4398_v12 = vsel %vm3730_vm15, %v4397_v49, %v4396_v21 }
 0x4d0   :  { %v3626_v14 = vadd.f32 %v3625_v18, %v3624_v32  ;;  %v4163_v13 = vsel %vm3730_vm15, %v4162_v43, %v4161_v59  ;;  %v4465_v57 = vrot.slane %v10251_v51, 6  ;;  %v4533_v29 = vrot.slane %v10251_v51, 7 }
 0x4d1   :  { %v4231_v19 = vsel %vm3730_vm15, %v4230_v22, %v4229_v15  ;;  %v4602_v38 = vsel %vm3730_vm15, %v10251_v51, %v4601_v55  ;;  %v3761_v53 = vrot.slane %v3228_v45, 4  ;;  %v4670_v50 = vrot.slane %v10251_v51, 1 }
 0x4d2   :  { %v4466_v35 = vsel %vm3730_vm15, %v4465_v57, %v4464_v61  ;;  %v4534_v8 = vsel %vm3730_vm15, %v4533_v29, %v4532_v60  ;;  %v4735_v21 = vsel %vm3724_vm13, %v4734_v4, %v4733_v16  ;;  %v4773_v59 = vsel %vm3721_vm12, %v4772_v9, %v4771_v28 }
 0x4d3   :  { %v3762_v1 = vsel %vm3730_vm15, %v3761_v53, %v3760_v48  ;;  %v4671_v34 = vsel %vm3730_vm15, %v4670_v50, %v4669_v5  ;;  %v4775_v15 = vsel %vm3724_vm13, %v4774_v10, %v4773_v59  ;;  %v4736_v45 = vrot.slane %v10205_v25, 3 }
 0x4d4   :  { %v4777_v20 = vsel %vm3727_vm14, %v4776_v63, %v4775_v15  ;;  %v10290_v55 = vpop.f32.mrb[10].mxu1  ;;  %v4780_v60 = vrot.slane %v9504_v40, 2  ;;  %v4782_v16 = vrot.slane %v9541_v37, 1 }
 0x4d5   :  { %v4779_v61 = vsel %vm3730_vm15, %v4778_v6, %v4777_v20  ;;  %v3432_v4 = vsel %vm2305_vm4, %v10290_v55, 0.0  ;;  %v3523_v48 = vmul.f32 %v10290_v55, %v10290_v55  ;;  %v3238_v5 = vpop.f32.mrb[11].mxu1  ;;  %v4331_v28 = vrot.slane %v10290_v55, 3 }
 0x4d6   :  { %v4399_v9 = vrot.slane %v10290_v55, 4  ;;  %v3430_v10 = vsel %vm2305_vm4, %v3238_v5, 0.0  ;;  %v3522_v63 = vmul.f32 %v3238_v5, %v3238_v5  ;;  %v3823_v49 = vrot.slane %v3238_v5, 4 }
 0x4d7   :  { %v3891_v6 = vrot.slane %v3238_v5, 5  ;;  %v3629_v40 = vsel %vm2305_vm4, %v3523_v48, 0.0  ;;  %v3431_v7 = vadd.f32 %v3430_v10, %v3429_v3  ;;  %v3959_v37 = vrot.slane %v3238_v5, 6 }
 0x4d8   :  { %v4027_v46 = vrot.slane %v3238_v5, 7  ;;  %v3627_v24 = vsel %vm2305_vm4, %v3522_v63, 0.0  ;;  %v3824_v47 = vsel %vm3733_vm0, %v3823_v49, %v3822_v2  ;;  %v4096_v0 = vsel %vm3733_vm0, %v3238_v5, %v4095_v62 }
 0x4d9   :  { %v3892_v18 = vsel %vm3733_vm0, %v3891_v6, %v3890_v44  ;;  %v3628_v26 = vadd.f32 %v3627_v24, %v3626_v14  ;;  %v3433_v54 = vadd.f32 %v3432_v4, %v3431_v7  ;;  %v3960_v31 = vsel %vm3733_vm0, %v3959_v37, %v3958_v30 }
 0x4da   :  { %v4028_v32 = vsel %vm3733_vm0, %v4027_v46, %v4026_v23  ;;  %v4164_v43 = vrot.slane %v3238_v5, 1  ;;  %v4232_v22 = vrot.slane %v3238_v5, 2  ;;  %v4332_v3 = vsel %vm3733_vm0, %v4331_v28, %v4330_v56 }
 0x4db   :  { %v4400_v57 = vsel %vm3733_vm0, %v4399_v9, %v4398_v12  ;;  %v3630_v29 = vadd.f32 %v3629_v40, %v3628_v26  ;;  %v4467_v53 = vrot.slane %v10290_v55, 5  ;;  %v4535_v2 = vrot.slane %v10290_v55, 6 }
 0x4dc   :  { %v4603_v44 = vrot.slane %v10290_v55, 7  ;;  %v4165_v62 = vsel %vm3733_vm0, %v4164_v43, %v4163_v13  ;;  %v4233_v14 = vsel %vm3733_vm0, %v4232_v22, %v4231_v19  ;;  %v3763_v30 = vrot.slane %v3238_v5, 3 }
 0x4dd   :  { %v4672_v23 = vsel %vm3733_vm0, %v10290_v55, %v4671_v34  ;;  %v4468_v50 = vsel %vm3733_vm0, %v4467_v53, %v4466_v35  ;;  %v4536_v56 = vsel %vm3733_vm0, %v4535_v2, %v4534_v8  ;;  %v4737_v59 = vsel %vm3727_vm14, %v4736_v45, %v4735_v21 }
 0x4de   :  { %v4604_v12 = vsel %vm3733_vm0, %v4603_v44, %v4602_v38  ;;  %v3764_v15 = vsel %vm3733_vm0, %v3763_v30, %v3762_v1  ;;  %v4781_v20 = vsel %vm3733_vm0, %v4780_v60, %v4779_v61  ;;  %v4738_v19 = vrot.slane %v10251_v51, 2 }
 0x4df   :  { %v4783_v13 = vsel %vm3736_vm1, %v4782_v16, %v4781_v20  ;;  %v4799_v20 = vrot.slane %v10045_v17, 7 }
 0x4e0   :  { %v10326_v4 = vpop.f32.mrb[12].mxu1  ;;  %v10331_v34 = vsel %vm3739_vm2, %v9585_v42, %v4783_v13  ;;  %v4800_v13 = vrot.slane %v10107_v52, 6 }
 0x4e1   :  { %v3436_v35 = vsel %vm2305_vm4, %v10326_v4, 0.0  ;;  %v3525_v38 = vmul.f32 %v10326_v4, %v10326_v4  ;;  %v3248_v8 = vpop.f32.mrb[13].mxu1  ;;  %v4333_v21 = vrot.slane %v10326_v4, 2  ;;  %v4401_v1 = vrot.slane %v10326_v4, 3 }
 0x4e2   :  { %v3434_v45 = vsel %vm2305_vm4, %v3248_v8, 0.0  ;;  %v3524_v61 = vmul.f32 %v3248_v8, %v3248_v8  ;;  %v3825_v60 = vrot.slane %v3248_v8, 3  ;;  %v3893_v16 = vrot.slane %v3248_v8, 4 }
 0x4e3   :  { %v3633_v48 = vsel %vm2305_vm4, %v3525_v38, 0.0  ;;  %v3435_v42 = vadd.f32 %v3434_v45, %v3433_v54  ;;  %v3961_v5 = vrot.slane %v3248_v8, 5  ;;  %v4029_v28 = vrot.slane %v3248_v8, 6 }
 0x4e4   :  { %v3631_v9 = vsel %vm2305_vm4, %v3524_v61, 0.0  ;;  %v3826_v10 = vsel %vm3736_vm1, %v3825_v60, %v3824_v47  ;;  %v3894_v63 = vsel %vm3736_vm1, %v3893_v16, %v3892_v18  ;;  %v4097_v49 = vrot.slane %v3248_v8, 7 }
 0x4e5   :  { %v3632_v6 = vadd.f32 %v3631_v9, %v3630_v29  ;;  %v3437_v40 = vadd.f32 %v3436_v35, %v3435_v42  ;;  %v3962_v7 = vsel %vm3736_vm1, %v3961_v5, %v3960_v31  ;;  %v4030_v37 = vsel %vm3736_vm1, %v4029_v28, %v4028_v32 }
 0x4e6   :  { %v4098_v46 = vsel %vm3736_vm1, %v4097_v49, %v4096_v0  ;;  %v4166_v24 = vsel %vm3736_vm1, %v3248_v8, %v4165_v62  ;;  %v4234_v26 = vrot.slane %v3248_v8, 1  ;;  %v4334_v54 = vsel %vm3736_vm1, %v4333_v21, %v4332_v3 }
 0x4e7   :  { %v3634_v43 = vadd.f32 %v3633_v48, %v3632_v6  ;;  %v4402_v22 = vsel %vm3736_vm1, %v4401_v1, %v4400_v57  ;;  %v4469_v47 = vrot.slane %v10326_v4, 4  ;;  %v4537_v18 = vrot.slane %v10326_v4, 5 }
 0x4e8   :  { %v4235_v29 = vsel %vm3736_vm1, %v4234_v26, %v4233_v14  ;;  %v4605_v31 = vrot.slane %v10326_v4, 6  ;;  %v3765_v53 = vrot.slane %v3248_v8, 2  ;;  %v4673_v32 = vrot.slane %v10326_v4, 7 }
 0x4e9   :  { %v4470_v0 = vsel %vm3736_vm1, %v4469_v47, %v4468_v50  ;;  %v4538_v2 = vsel %vm3736_vm1, %v4537_v18, %v4536_v56  ;;  %v4739_v3 = vsel %vm3730_vm15, %v4738_v19, %v4737_v59  ;;  %v4740_v14 = vrot.slane %v10290_v55, 1 }
 0x4ea   :  { %v4606_v44 = vsel %vm3736_vm1, %v4605_v31, %v4604_v12  ;;  %v3766_v57 = vsel %vm3736_vm1, %v3765_v53, %v3764_v15  ;;  %v4674_v62 = vsel %vm3736_vm1, %v4673_v32, %v4672_v23  ;;  %v4801_v18 = vsel %vm3721_vm12, %v4800_v13, %v4799_v20 }
 0x4eb   :  { %v4741_v47 = vsel %vm3733_vm0, %v4740_v14, %v4739_v3 }
 0x4ec   :  { %v10361_v30 = vpop.f32.mrb[14].mxu1 }
 0x4ed   :  { %v3440_v50 = vsel %vm2305_vm4, %v10361_v30, 0.0  ;;  %v3527_v56 = vmul.f32 %v10361_v30, %v10361_v30  ;;  %v3258_v59 = vpop.f32.mrb[15].mxu1  ;;  %v4335_v12 = vrot.slane %v10361_v30, 1  ;;  %v4403_v15 = vrot.slane %v10361_v30, 2 }
 0x4ee   :  { %v3438_v23 = vsel %vm2305_vm4, %v3258_v59, 0.0  ;;  %v3526_v19 = vmul.f32 %v3258_v59, %v3258_v59  ;;  %v3827_v35 = vrot.slane %v3258_v59, 2  ;;  %v3895_v38 = vrot.slane %v3258_v59, 3 }
 0x4ef   :  { %v3637_v17 = vsel %vm2305_vm4, %v3527_v56, 0.0  ;;  %v3439_v8 = vadd.f32 %v3438_v23, %v3437_v40  ;;  %v3963_v52 = vrot.slane %v3258_v59, 4  ;;  %v4031_v21 = vrot.slane %v3258_v59, 5 }
 0x4f0   :  { %v3635_v1 = vsel %vm2305_vm4, %v3526_v19, 0.0  ;;  %v3828_v45 = vsel %vm3739_vm2, %v3827_v35, %v3826_v10  ;;  %v3896_v61 = vsel %vm3739_vm2, %v3895_v38, %v3894_v63  ;;  %v4099_v60 = vrot.slane %v3258_v59, 6 }
 0x4f1   :  { %v3636_v16 = vadd.f32 %v3635_v1, %v3634_v43  ;;  %3847 = vrot.lane.b32.xlu0 %v3828_v45, %s5378_s6  ;;  %v3441_v48 = vadd.f32 %v3440_v50, %v3439_v8  ;;  %v3964_v42 = vsel %vm3739_vm2, %v3963_v52, %v3962_v7  ;;  %v10380_v5 = vsel %vm3739_vm2, %v4031_v21, %v4030_v37 }
 0x4f2   :  { %v10383_v28 = vsel %vm3739_vm2, %v4099_v60, %v4098_v46  ;;  %v4167_v9 = vrot.slane %v3258_v59, 7  ;;  %v10386_v49 = vsel %vm3739_vm2, %v3258_v59, %v4235_v29  ;;  %v10389_v10 = vsel %vm3739_vm2, %v4335_v12, %v4334_v54 }
 0x4f3   :  { %v3638_v63 = vadd.f32 %v3637_v17, %v3636_v16  ;;  %v10392_v6 = vsel %vm3739_vm2, %v4403_v15, %v4402_v22  ;;  %v4471_v40 = vrot.slane %v10361_v30, 3  ;;  %v4539_v7 = vrot.slane %v10361_v30, 4 }
 0x4f4   :  { %v10397_v37 = vsel %vm3739_vm2, %v4167_v9, %v4166_v24  ;;  %v4607_v46 = vrot.slane %v10361_v30, 5  ;;  %v3767_v26 = vrot.slane %v3258_v59, 1  ;;  %v4675_v43 = vrot.slane %v10361_v30, 6 }
 0x4f5   :  { %3911 = vrot.lane.b32.xlu0 %v9612_v36, %s5380_s16  ;;  %v10404_v54 = vsel %vm3739_vm2, %v4471_v40, %v4470_v0  ;;  %v10407_v22 = vsel %vm3739_vm2, %v4539_v7, %v4538_v2  ;;  %v10422_v36 = vsel %vm3736_vm1, %v10326_v4, %v4741_v47  ;;  %v4743_v1 = vrot.slane %v10361_v30, 7 }
 0x4f6   :  { %v10412_v24 = vsel %vm3739_vm2, %v4607_v46, %v4606_v44  ;;  %v10415_v29 = vsel %vm3739_vm2, %v3767_v26, %v3766_v57  ;;  %v10418_v31 = vsel %vm3739_vm2, %v4675_v43, %v4674_v62  ;;  %v4802_v44 = vrot.slane %v10161_v27, 5 }
 0x4f8   :  { %v10424_v53 = vpop.f32.mrb[16].mxu1  ;;  %v4803_v56 = vsel %vm3724_vm13, %v4802_v44, %v4801_v18 }
 0x4f9   :  { %3915 = vrot.lane.b32.xlu0 %v3896_v61, %s5380_s16  ;;  %v10427_v32 = vpop.f32.mrb[17].mxu1  ;;  %v3529_v0 = vmul.f32 %v10424_v53, %v10424_v53  ;;  %v3444_v62 = vsel %vm2305_vm4, %v10424_v53, 0.0  ;;  %v4405_v15 = vrot.slane %v10424_v53, 1  ;;  %v4473_v23 = vrot.slane %v10424_v53, 2 }
 0x4fa   :  { %v3442_v2 = vsel %vm2305_vm4, %v10427_v32, 0.0  ;;  %v3528_v3 = vmul.f32 %v10427_v32, %v10427_v32  ;;  %v3829_v27 = vrot.slane %v10427_v32, 1  ;;  %v3897_v12 = vrot.slane %v10427_v32, 2 }
 0x4fb   :  { %v3443_v57 = vadd.f32 %v3442_v2, %v3441_v48  ;;  %v3641_v50 = vsel %vm2305_vm4, %v3529_v0, 0.0  ;;  %v3965_v19 = vrot.slane %v10427_v32, 3  ;;  %v4101_v35 = vrot.slane %v10427_v32, 5 }
 0x4fc   :  { %v3639_v14 = vsel %vm2305_vm4, %v3528_v3, 0.0  ;;  %v4169_v38 = vrot.slane %v10427_v32, 6  ;;  %v4237_v8 = vrot.slane %v10427_v32, 7  ;;  %v4541_v52 = vrot.slane %v10424_v53, 3 }
 0x4fd   :  { %v3640_v20 = vadd.f32 %v3639_v14, %v3638_v63  ;;  %3979 = vrot.lane.b32.xlu0 %v9615_v58, %s5382_s22  ;;  %v3445_v13 = vadd.f32 %v3444_v62, %v3443_v57  ;;  %v4033_v58 = vrot.slane %v10427_v32, 4  ;;  %v4609_v21 = vrot.slane %v10424_v53, 4 }
 0x4fe   :  { %v4804_v48 = vrot.slane %v10205_v25, 4 }
 0x4ff   :  { %v3642_v59 = vadd.f32 %v3641_v50, %v3640_v20 }
 0x501   :  { %3983 = vrot.lane.b32.xlu0 %v3964_v42, %s5382_s22 }
 0x504   :  { %v10452_v17 = vpop.f32.mrb[18].mxu1 }
 0x505   :  { %v3448_v45 = vsel %vm2305_vm4, %v10452_v17, 0.0  ;;  %v3531_v61 = vmul.f32 %v10452_v17, %v10452_v17  ;;  %4047 = vrot.lane.b32.xlu0 %v9620_v41, %s5384_s7  ;;  %v10464_v60 = vpop.f32.mrb[19].mxu1  ;;  %v10468_v16 = vsel %vm3721_vm12, %v10452_v17, %v4405_v15  ;;  %v4337_v26 = vrot.slane %v10452_v17, 7 }
 0x506   :  { %v3446_v42 = vsel %vm2305_vm4, %v10464_v60, 0.0  ;;  %v3530_v9 = vmul.f32 %v10464_v60, %v10464_v60  ;;  %v3830_v63 = vsel %vm3721_vm12, %v10464_v60, %v3829_v27  ;;  %v3898_v40 = vrot.slane %v10464_v60, 1 }
 0x507   :  { %v3447_v41 = vadd.f32 %v3446_v42, %v3445_v13  ;;  %v3966_v7 = vrot.slane %v10464_v60, 2  ;;  %v4034_v46 = vrot.slane %v10464_v60, 3  ;;  %v4102_v47 = vrot.slane %v10464_v60, 4 }
 0x508   :  { %v3643_v25 = vsel %vm2305_vm4, %v3530_v9, 0.0  ;;  %v3899_v43 = vsel %vm3721_vm12, %v3898_v40, %v3897_v12  ;;  %v4170_v18 = vrot.slane %v10464_v60, 5  ;;  %v3645_v57 = vsel %vm2305_vm4, %v3531_v61, 0.0 }
 0x509   :  { %v3644_v0 = vadd.f32 %v3643_v25, %v3642_v59  ;;  %4051 = vrot.lane.b32.xlu0 %v10380_v5, %s5384_s7  ;;  %v3449_v2 = vadd.f32 %v3448_v45, %v3447_v41  ;;  %v3967_v3 = vsel %vm3721_vm12, %v3966_v7, %v3965_v19  ;;  %v4035_v44 = vsel %vm3721_vm12, %v4034_v46, %v4033_v58  ;;  %v12721_v25 = vld [vmem:[#allocation43_spill] sm:$0xff] }
 0x50a   :  { %v4103_v62 = vsel %vm3721_vm12, %v4102_v47, %v4101_v35  ;;  %v4171_v14 = vsel %vm3721_vm12, %v4170_v18, %v4169_v38  ;;  %v4238_v20 = vrot.slane %v10464_v60, 6  ;;  %v4338_v50 = vsel %vm3721_vm12, %v4337_v26, %v10424_v53 }
 0x50b   :  { %v3646_v13 = vadd.f32 %v3645_v57, %v3644_v0  ;;  %v4474_v59 = vrot.slane %v10452_v17, 1  ;;  %v4542_v5 = vrot.slane %v10452_v17, 2  ;;  %v4610_v12 = vrot.slane %v10452_v17, 3 }
 0x50c   :  { %v4239_v27 = vsel %vm3721_vm12, %v4238_v20, %v4237_v8  ;;  %v10501_v15 = vsel %vm3739_vm2, %v4743_v1, %v10422_v36  ;;  %v4805_v19 = vsel %vm3727_vm14, %v4804_v48, %v4803_v56  ;;  %v4806_v8 = vrot.slane %v10251_v51, 3 }
 0x50d   :  { %4115 = vrot.lane.b32.xlu0 %v9625_v11, %s5385_s0  ;;  %v4475_v58 = vsel %vm3721_vm12, %v4474_v59, %v4473_v23  ;;  %v4543_v35 = vsel %vm3721_vm12, %v4542_v5, %v4541_v52  ;;  %v4611_v38 = vsel %vm3721_vm12, %v4610_v12, %v4609_v21  ;;  %v4814_v12 = vrot.slane %v10452_v17, 6 }
 0x510   :  { %v10509_v45 = vpop.f32.mrb[20].mxu1 }
 0x511   :  { %v3452_v36 = vsel %vm2305_vm4, %v10509_v45, 0.0  ;;  %v3533_v56 = vmul.f32 %v10509_v45, %v10509_v45  ;;  %4119 = vrot.lane.b32.xlu0 %v10383_v28, %s5385_s0  ;;  %v10518_v11 = vpop.f32.mrb[21].mxu1  ;;  %v4339_v23 = vrot.slane %v10509_v45, 6  ;;  %v4407_v52 = vrot.slane %v10509_v45, 7 }
 0x512   :  { %v3450_v21 = vsel %vm2305_vm4, %v10518_v11, 0.0  ;;  %v3532_v51 = vmul.f32 %v10518_v11, %v10518_v11  ;;  %v3831_v1 = vrot.slane %v10518_v11, 7  ;;  %v3900_v61 = vsel %vm3724_vm13, %v10518_v11, %v3899_v43 }
 0x513   :  { %v3649_v48 = vsel %vm2305_vm4, %v3533_v56, 0.0  ;;  %v3451_v28 = vadd.f32 %v3450_v21, %v3449_v2  ;;  %v3968_v42 = vrot.slane %v10518_v11, 1  ;;  %v4036_v9 = vrot.slane %v10518_v11, 2 }
 0x514   :  { %v3647_v40 = vsel %vm2305_vm4, %v3532_v51, 0.0  ;;  %v3832_v41 = vsel %vm3724_vm13, %v3831_v1, %v3830_v63  ;;  %v4104_v7 = vrot.slane %v10518_v11, 3  ;;  %v4172_v46 = vrot.slane %v10518_v11, 4 }
 0x515   :  { %v3648_v26 = vadd.f32 %v3647_v40, %v3646_v13  ;;  %4183 = vrot.lane.b32.xlu0 %v12721_v25, %s5386_s23  ;;  %v3453_v43 = vadd.f32 %v3452_v36, %v3451_v28  ;;  %v3969_v47 = vsel %vm3724_vm13, %v3968_v42, %v3967_v3  ;;  %v4037_v18 = vsel %vm3724_vm13, %v4036_v9, %v4035_v44 }
 0x516   :  { %v4105_v0 = vsel %vm3724_vm13, %v4104_v7, %v4103_v62  ;;  %v4173_v2 = vsel %vm3724_vm13, %v4172_v46, %v4171_v14  ;;  %v4240_v63 = vrot.slane %v10518_v11, 5  ;;  %v4340_v57 = vsel %vm3724_vm13, %v4339_v23, %v4338_v50 }
 0x517   :  { %v3650_v20 = vadd.f32 %v3649_v48, %v3648_v26  ;;  %v4408_v13 = vsel %vm3724_vm13, %v4407_v52, %v10468_v16  ;;  %v4476_v59 = vsel %vm3724_vm13, %v10509_v45, %v4475_v58  ;;  %v4544_v3 = vrot.slane %v10509_v45, 1 }
 0x518   :  { %v4241_v5 = vsel %vm3724_vm13, %v4240_v63, %v4239_v27  ;;  %v4612_v44 = vrot.slane %v10509_v45, 2  ;;  %v4807_v62 = vsel %vm3730_vm15, %v4806_v8, %v4805_v19  ;;  %v4813_v16 = vrot.slane %v10424_v53, 7  ;;  %v12722_v8 = vld [vmem:[#allocation44_spill] sm:$0xff] }
 0x519   :  { %4187 = vrot.lane.b32.xlu0 %v10397_v37, %s5386_s23  ;;  %v4545_v14 = vsel %vm3724_vm13, %v4544_v3, %v4543_v35  ;;  %v4677_v58 = vrot.slane %v10424_v53, 5  ;;  %v3769_v36 = vrot.slane %v10464_v60, 7  ;;  %v4678_v56 = vrot.slane %v10452_v17, 4 }
 0x51a   :  { %v4613_v50 = vsel %vm3724_vm13, %v4612_v44, %v4611_v38  ;;  %v4746_v19 = vrot.slane %v10452_v17, 5  ;;  %v4808_v37 = vrot.slane %v10290_v55, 2 }
 0x51c   :  { %v10559_v27 = vpop.f32.mrb[22].mxu1 }
 0x51d   :  { %v3456_v35 = vsel %vm2305_vm4, %v10559_v27, 0.0  ;;  %v3535_v38 = vmul.f32 %v10559_v27, %v10559_v27  ;;  %4251 = vrot.lane.b32.xlu0 %v12722_v8, %s5387_s24  ;;  %v10571_v23 = vpop.f32.mrb[23].mxu1  ;;  %v4341_v60 = vrot.slane %v10559_v27, 5  ;;  %v4409_v52 = vrot.slane %v10559_v27, 6 }
 0x51e   :  { %v3454_v17 = vsel %vm2305_vm4, %v10571_v23, 0.0  ;;  %v3534_v55 = vmul.f32 %v10571_v23, %v10571_v23  ;;  %v3833_v21 = vrot.slane %v10571_v23, 6  ;;  %v3901_v51 = vrot.slane %v10571_v23, 7 }
 0x51f   :  { %v3653_v1 = vsel %vm2305_vm4, %v3535_v38, 0.0  ;;  %v3455_v48 = vadd.f32 %v3454_v17, %v3453_v43  ;;  %v3970_v28 = vsel %vm3727_vm14, %v10571_v23, %v3969_v47  ;;  %v4038_v42 = vrot.slane %v10571_v23, 1 }
 0x520   :  { %v3651_v9 = vsel %vm2305_vm4, %v3534_v55, 0.0  ;;  %v3834_v40 = vsel %vm3727_vm14, %v3833_v21, %v3832_v41  ;;  %v3902_v7 = vsel %vm3727_vm14, %v3901_v51, %v3900_v61  ;;  %v4106_v46 = vrot.slane %v10571_v23, 2 }
 0x521   :  { %v3652_v26 = vadd.f32 %v3651_v9, %v3650_v20  ;;  %4255 = vrot.lane.b32.xlu0 %v10386_v49, %s5387_s24  ;;  %v3457_v25 = vadd.f32 %v3456_v35, %v3455_v48  ;;  %v4039_v43 = vsel %vm3727_vm14, %v4038_v42, %v4037_v18  ;;  %v4174_v63 = vrot.slane %v10571_v23, 3 }
 0x522   :  { %v4107_v47 = vsel %vm3727_vm14, %v4106_v46, %v4105_v0  ;;  %v4242_v3 = vrot.slane %v10571_v23, 4  ;;  %v4342_v44 = vsel %vm3727_vm14, %v4341_v60, %v4340_v57  ;;  %v4410_v41 = vsel %vm3727_vm14, %v4409_v52, %v4408_v13  ;;  %v12723_v57 = vld [vmem:[#allocation181_spill] sm:$0xff]  ;;  %v12724_v46 = vld [vmem:[#allocation183_spill] sm:$0xff] }
 0x523   :  { %v3654_v61 = vadd.f32 %v3653_v1, %v3652_v26  ;;  %v4175_v38 = vsel %vm3727_vm14, %v4174_v63, %v4173_v2  ;;  %v4477_v20 = vrot.slane %v10559_v27, 7  ;;  %v4745_v49 = vrot.slane %v10424_v53, 6 }
 0x524   :  { %v4243_v35 = vsel %vm3727_vm14, %v4242_v3, %v4241_v5  ;;  %v4546_v18 = vsel %vm3727_vm14, %v10559_v27, %v4545_v14  ;;  %v4614_v0 = vrot.slane %v10559_v27, 1  ;;  %v4815_v8 = vsel %vm3721_vm12, %v4814_v12, %v4813_v16 }
 0x525   :  { %4351 = vrot.lane.b32.xlu0 %v12723_v57, %s5388_s25  ;;  %v4478_v13 = vsel %vm3727_vm14, %v4477_v20, %v4476_v59  ;;  %v3770_v2 = vsel %vm3721_vm12, %v3769_v36, %v10427_v32  ;;  %v4679_v53 = vsel %vm3721_vm12, %v4678_v56, %v4677_v58  ;;  %v4747_v5 = vsel %vm3721_vm12, %v4746_v19, %v4745_v49 }
 0x526   :  { %v4615_v60 = vsel %vm3727_vm14, %v4614_v0, %v4613_v50  ;;  %v4809_v14 = vsel %vm3733_vm0, %v4808_v37, %v4807_v62  ;;  %v4816_v52 = vrot.slane %v10509_v45, 5  ;;  %v3771_v12 = vrot.slane %v10518_v11, 6 }
 0x527   :  { %v4680_v17 = vrot.slane %v10509_v45, 3  ;;  %v4748_v59 = vrot.slane %v10509_v45, 4  ;;  %v4810_v32 = vrot.slane %v10326_v4, 1  ;;  %vm4880_vm12 = vcmask 654336  }
 0x528   :  { %v10615_v16 = vpop.f32.mrb[24].mxu1 }
 0x529   :  { %v3460_v58 = vsel %vm2305_vm4, %v10615_v16, 0.0  ;;  %v3537_v50 = vmul.f32 %v10615_v16, %v10615_v16  ;;  %4355 = vrot.lane.b32.xlu0 %v10389_v10, %s5388_s25  ;;  %v10627_v62 = vpop.f32.mrb[25].mxu1  ;;  %v4343_v36 = vrot.slane %v10615_v16, 4  ;;  %v4411_v11 = vrot.slane %v10615_v16, 5 }
 0x52a   :  { %v3458_v45 = vsel %vm2305_vm4, %v10627_v62, 0.0  ;;  %v3536_v4 = vmul.f32 %v10627_v62, %v10627_v62  ;;  %v3835_v56 = vrot.slane %v10627_v62, 5  ;;  %v3903_v19 = vrot.slane %v10627_v62, 6 }
 0x52b   :  { %v3657_v37 = vsel %vm2305_vm4, %v3537_v50, 0.0  ;;  %v3459_v55 = vadd.f32 %v3458_v45, %v3457_v25  ;;  %v3971_v10 = vrot.slane %v10627_v62, 7  ;;  %v4040_v21 = vsel %vm3730_vm15, %v10627_v62, %v4039_v43 }
 0x52c   :  { %v3655_v51 = vsel %vm2305_vm4, %v3536_v4, 0.0  ;;  %v3836_v1 = vsel %vm3730_vm15, %v3835_v56, %v3834_v40  ;;  %v3904_v48 = vsel %vm3730_vm15, %v3903_v19, %v3902_v7  ;;  %v4108_v42 = vrot.slane %v10627_v62, 1 }
 0x52d   :  { %v3656_v9 = vadd.f32 %v3655_v51, %v3654_v61  ;;  %4419 = vrot.lane.b32.xlu0 %v12724_v46, %s5389_s26  ;;  %v3461_v26 = vadd.f32 %v3460_v58, %v3459_v55  ;;  %v3972_v25 = vsel %vm3730_vm15, %v3971_v10, %v3970_v28  ;;  %v4176_v63 = vrot.slane %v10627_v62, 2 }
 0x52e   :  { %v4109_v43 = vsel %vm3730_vm15, %v4108_v42, %v4107_v47  ;;  %v4244_v3 = vrot.slane %v10627_v62, 3  ;;  %v4344_v40 = vsel %vm3730_vm15, %v4343_v36, %v4342_v44  ;;  %v4412_v7 = vsel %vm3730_vm15, %v4411_v11, %v4410_v41 }
 0x52f   :  { %v3658_v20 = vadd.f32 %v3657_v37, %v3656_v9  ;;  %v4177_v61 = vsel %vm3730_vm15, %v4176_v63, %v4175_v38  ;;  %v4479_v49 = vrot.slane %v10615_v16, 6  ;;  %v4547_v0 = vrot.slane %v10615_v16, 7 }
 0x530   :  { %v4245_v57 = vsel %vm3730_vm15, %v4244_v3, %v4243_v35  ;;  %v4616_v28 = vsel %vm3730_vm15, %v10615_v16, %v4615_v60  ;;  %v4817_v47 = vsel %vm3724_vm13, %v4816_v52, %v4815_v8  ;;  %v3772_v38 = vsel %vm3724_vm13, %v3771_v12, %v3770_v2 }
 0x531   :  { %4423 = vrot.lane.b32.xlu0 %v10392_v6, %s5389_s26  ;;  %v4480_v44 = vsel %vm3730_vm15, %v4479_v49, %v4478_v13  ;;  %v4548_v41 = vsel %vm3730_vm15, %v4547_v0, %v4546_v18  ;;  %v4681_v58 = vsel %vm3724_vm13, %v4680_v17, %v4679_v53  ;;  %v4749_v50 = vsel %vm3724_vm13, %v4748_v59, %v4747_v5 }
 0x532   :  { %v4811_v35 = vsel %vm3736_vm1, %v4810_v32, %v4809_v14  ;;  %v4818_v6 = vrot.slane %v10559_v27, 4  ;;  %v3773_v13 = vrot.slane %v10571_v23, 5  ;;  %v4682_v18 = vrot.slane %v10559_v27, 2 }
 0x533   :  { %v10670_v60 = vsel %vm3739_vm2, %v10361_v30, %v4811_v35  ;;  %v4750_v2 = vrot.slane %v10559_v27, 3  ;;  %v12725_v30 = vld [vmem:[#allocation185_spill] sm:$0xff]  ;;  %vm4885_vm13 = vcmask 719872  }
 0x534   :  { %v10672_v8 = vpop.f32.mrb[26].mxu1  ;;  %v3774_v0 = vsel %vm3727_vm14, %v3773_v13, %v3772_v38  ;;  %v4683_v35 = vsel %vm3727_vm14, %v4682_v18, %v4681_v58 }
 0x535   :  { %v3464_v53 = vsel %vm2305_vm4, %v10672_v8, 0.0  ;;  %v3539_v5 = vmul.f32 %v10672_v8, %v10672_v8  ;;  %4487 = vrot.lane.b32.xlu0 %v12725_v30, %s5390_s27  ;;  %v10684_v14 = vpop.f32.mrb[27].mxu1  ;;  %v4345_v52 = vrot.slane %v10672_v8, 3  ;;  %v4413_v23 = vrot.slane %v10672_v8, 4 }
 0x536   :  { %v3462_v12 = vsel %vm2305_vm4, %v10684_v14, 0.0  ;;  %v3538_v27 = vmul.f32 %v10684_v14, %v10684_v14  ;;  %v3837_v17 = vrot.slane %v10684_v14, 4  ;;  %v3905_v59 = vrot.slane %v10684_v14, 5 }
 0x537   :  { %v3661_v32 = vsel %vm2305_vm4, %v3539_v5, 0.0  ;;  %v3463_v36 = vadd.f32 %v3462_v12, %v3461_v26  ;;  %v3973_v11 = vrot.slane %v10684_v14, 6  ;;  %v4041_v45 = vrot.slane %v10684_v14, 7 }
 0x538   :  { %v3659_v4 = vsel %vm2305_vm4, %v3538_v27, 0.0  ;;  %v3838_v56 = vsel %vm3733_vm0, %v3837_v17, %v3836_v1  ;;  %v3906_v19 = vsel %vm3733_vm0, %v3905_v59, %v3904_v48  ;;  %v4110_v37 = vsel %vm3733_vm0, %v10684_v14, %v4109_v43  ;;  %v12727_v17 = vld [vmem:[#allocation49_spill] sm:$0xff] }
 0x539   :  { %v3660_v55 = vadd.f32 %v3659_v4, %v3658_v20  ;;  %4491 = vrot.lane.b32.xlu0 %v10404_v54, %s5390_s27  ;;  %v3465_v10 = vadd.f32 %v3464_v53, %v3463_v36  ;;  %v3974_v51 = vsel %vm3733_vm0, %v3973_v11, %v3972_v25  ;;  %v4042_v42 = vsel %vm3733_vm0, %v4041_v45, %v4040_v21  ;;  %v12726_v20 = vld [vmem:[#allocation47_spill] sm:$0xff] }
 0x53a   :  { %v4178_v9 = vrot.slane %v10684_v14, 1  ;;  %v4246_v46 = vrot.slane %v10684_v14, 2  ;;  %v4346_v1 = vsel %vm3733_vm0, %v4345_v52, %v4344_v40  ;;  %v4414_v48 = vsel %vm3733_vm0, %v4413_v23, %v4412_v7 }
 0x53b   :  { %v3662_v26 = vadd.f32 %v3661_v32, %v3660_v55  ;;  %v4481_v63 = vrot.slane %v10672_v8, 5  ;;  %v4549_v43 = vrot.slane %v10672_v8, 6  ;;  %v4617_v54 = vrot.slane %v10672_v8, 7 }
 0x53c   :  { %v4179_v3 = vsel %vm3733_vm0, %v4178_v9, %v4177_v61  ;;  %v4247_v25 = vsel %vm3733_vm0, %v4246_v46, %v4245_v57  ;;  %v4819_v21 = vsel %vm3727_vm14, %v4818_v6, %v4817_v47  ;;  %v4751_v61 = vsel %vm3727_vm14, %v4750_v2, %v4749_v50 }
 0x53d   :  { %4555 = vrot.lane.b32.xlu0 %v12726_v20, %s5391_s28  ;;  %v4482_v40 = vsel %vm3733_vm0, %v4481_v63, %v4480_v44  ;;  %v4550_v7 = vsel %vm3733_vm0, %v4549_v43, %v4548_v41  ;;  %v4618_v49 = vsel %vm3733_vm0, %v4617_v54, %v4616_v28  ;;  %v4820_v57 = vrot.slane %v10615_v16, 3 }
 0x53e   :  { %v3775_v47 = vrot.slane %v10627_v62, 4  ;;  %v4684_v6 = vrot.slane %v10615_v16, 1  ;;  %v4752_v44 = vrot.slane %v10615_v16, 2  ;;  %vm4890_vm14 = vcmask 785408  }
 0x540   :  { %v10724_v53 = vpop.f32.mrb[28].mxu1  ;;  %v3776_v43 = vsel %vm3730_vm15, %v3775_v47, %v3774_v0  ;;  %v4685_v20 = vsel %vm3730_vm15, %v4684_v6, %v4683_v35  ;;  %v12728_v47 = vld [vmem:[#allocation187_spill] sm:$0xff] }
 0x541   :  { %v3541_v41 = vmul.f32 %v10724_v53, %v10724_v53  ;;  %4559 = vrot.lane.b32.xlu0 %v10407_v22, %s5391_s28  ;;  %v10734_v28 = vpop.f32.mrb[29].mxu1  ;;  %v3468_v38 = vsel %vm2305_vm4, %v10724_v53, 0.0  ;;  %v4347_v58 = vrot.slane %v10724_v53, 2  ;;  %v4415_v50 = vrot.slane %v10724_v53, 3 }
 0x542   :  { %v3466_v62 = vsel %vm2305_vm4, %v10734_v28, 0.0  ;;  %v3540_v16 = vmul.f32 %v10734_v28, %v10734_v28  ;;  %v3839_v13 = vrot.slane %v10734_v28, 3  ;;  %v3907_v18 = vrot.slane %v10734_v28, 4 }
 0x543   :  { %v3467_v22 = vadd.f32 %v3466_v62, %v3465_v10  ;;  %v3665_v2 = vsel %vm2305_vm4, %v3541_v41, 0.0  ;;  %v3975_v5 = vrot.slane %v10734_v28, 5  ;;  %v4043_v30 = vrot.slane %v10734_v28, 6 }
 0x544   :  { %v3663_v52 = vsel %vm2305_vm4, %v3540_v16, 0.0  ;;  %v3840_v23 = vsel %vm3736_vm1, %v3839_v13, %v3838_v56  ;;  %v3908_v12 = vsel %vm3736_vm1, %v3907_v18, %v3906_v19  ;;  %v4111_v27 = vrot.slane %v10734_v28, 7 }
 0x545   :  { %4623 = vrot.lane.b32.xlu0 %v12727_v17, %s5392_s29  ;;  %v3469_v59 = vadd.f32 %v3468_v38, %v3467_v22  ;;  %v3664_v32 = vadd.f32 %v3663_v52, %v3662_v26  ;;  %v3976_v36 = vsel %vm3736_vm1, %v3975_v5, %v3974_v51  ;;  %v4044_v11 = vsel %vm3736_vm1, %v4043_v30, %v4042_v42 }
 0x546   :  { %v4112_v45 = vsel %vm3736_vm1, %v4111_v27, %v4110_v37  ;;  %v4180_v4 = vsel %vm3736_vm1, %v10734_v28, %v4179_v3  ;;  %v4248_v56 = vrot.slane %v10734_v28, 1  ;;  %v4348_v19 = vsel %vm3736_vm1, %v4347_v58, %v4346_v1 }
 0x547   :  { %v3666_v55 = vadd.f32 %v3665_v2, %v3664_v32  ;;  %v4416_v10 = vsel %vm3736_vm1, %v4415_v50, %v4414_v48  ;;  %v4483_v9 = vrot.slane %v10724_v53, 4  ;;  %v4551_v46 = vrot.slane %v10724_v53, 5 }
 0x548   :  { %v4249_v51 = vsel %vm3736_vm1, %v4248_v56, %v4247_v25  ;;  %v4619_v42 = vrot.slane %v10724_v53, 6  ;;  %v4821_v37 = vsel %vm3730_vm15, %v4820_v57, %v4819_v21  ;;  %v4822_v26 = vrot.slane %v10672_v8, 2 }
 0x549   :  { %4627 = vrot.lane.b32.xlu0 %v10412_v24, %s5392_s29  ;;  %v4484_v1 = vsel %vm3736_vm1, %v4483_v9, %v4482_v40  ;;  %v4552_v63 = vsel %vm3736_vm1, %v4551_v46, %v4550_v7  ;;  %v4824_v48 = vrot.slane %v10724_v53, 1  ;;  %v3777_v25 = vrot.slane %v10684_v14, 3 }
 0x54a   :  { %v4620_v54 = vsel %vm3736_vm1, %v4619_v42, %v4618_v49  ;;  %v4823_v3 = vsel %vm3733_vm0, %v4822_v26, %v4821_v37  ;;  %v4753_v24 = vsel %vm3730_vm15, %v4752_v44, %v4751_v61  ;;  %v3779_v7 = vrot.slane %v10734_v28, 2  ;;  %v12729_v42 = vld [vmem:[#allocation52_spill] sm:$0xff] }
 0x54b   :  { %v4825_v21 = vsel %vm3736_vm1, %v4824_v48, %v4823_v3  ;;  %v3778_v40 = vsel %vm3733_vm0, %v3777_v25, %v3776_v43  ;;  %v4686_v0 = vsel %vm3733_vm0, %v10672_v8, %v4685_v20  ;;  %v4754_v49 = vrot.slane %v10672_v8, 1 }
 0x54c   :  { %v10781_v57 = vpop.f32.mrb[30].mxu1  ;;  %v3780_v37 = vsel %vm3736_vm1, %v3779_v7, %v3778_v40  ;;  %vm4895_vm15 = vcmask 850944  }
 0x54d   :  { %v3543_v14 = vmul.f32 %v10781_v57, %v10781_v57  ;;  %4691 = vrot.lane.b32.xlu0 %v12728_v47, %s5393_s30  ;;  %v3338_v35 = vpop.f32.mrb[31].mxu1  ;;  %v3472_v61 = vsel %vm2305_vm4, %v10781_v57, 0.0  ;;  %v4349_v6 = vrot.slane %v10781_v57, 1  ;;  %v4417_v44 = vrot.slane %v10781_v57, 2 }
 0x54e   :  { %v3470_v41 = vsel %vm2305_vm4, %v3338_v35, 0.0  ;;  %v3542_v28 = vmul.f32 %v3338_v35, %v3338_v35  ;;  %v3841_v38 = vrot.slane %v3338_v35, 2  ;;  %v3909_v8 = vrot.slane %v3338_v35, 3 }
 0x54f   :  { %v3471_v58 = vadd.f32 %v3470_v41, %v3469_v59  ;;  %v3669_v50 = vsel %vm2305_vm4, %v3543_v14, 0.0  ;;  %v3977_v62 = vrot.slane %v3338_v35, 4  ;;  %v4045_v16 = vrot.slane %v3338_v35, 5 }
 0x550   :  { %v3667_v13 = vsel %vm2305_vm4, %v3542_v28, 0.0  ;;  %v3842_v18 = vsel %vm3739_vm2, %v3841_v38, %v3840_v23  ;;  %v3910_v22 = vsel %vm3739_vm2, %v3909_v8, %v3908_v12  ;;  %v4113_v2 = vrot.slane %v3338_v35, 6 }
 0x551   :  { %v3473_v5 = vadd.f32 %v3472_v61, %v3471_v58  ;;  %v3668_v30 = vadd.f32 %v3667_v13, %v3666_v55  ;;  %3849 = vrot.lane.b32.xlu1 %v3842_v18, %s5378_s6  ;;  %v3978_v52 = vsel %vm3739_vm2, %v3977_v62, %v3976_v36  ;;  %v4046_v27 = vsel %vm3739_vm2, %v4045_v16, %v4044_v11  ;;  %v12732_v13 = vld [vmem:[#allocation179_spill] sm:$0xff] }
 0x552   :  { %v10805_v17 = vsel %vm3739_vm2, %v4113_v2, %v4112_v45  ;;  %v4181_v59 = vrot.slane %v3338_v35, 7  ;;  %v10808_v32 = vsel %vm3739_vm2, %v3338_v35, %v4249_v51  ;;  %v10811_v23 = vsel %vm3739_vm2, %v4349_v6, %v4348_v19 }
 0x553   :  { %v3474_v12 = vrot.slane %v3473_v5, 4  ;;  %v3670_v56 = vadd.f32 %v3669_v50, %v3668_v30  ;;  %v10814_v55 = vsel %vm3739_vm2, %v4417_v44, %v4416_v10  ;;  %v4485_v9 = vrot.slane %v10781_v57, 3  ;;  %v12731_v50 = vld [vmem:[#allocation191_spill] sm:$0xff] }
 0x554   :  { %v10818_v36 = vsel %vm3739_vm2, %v4181_v59, %v4180_v4  ;;  %v4553_v11 = vrot.slane %v10781_v57, 4  ;;  %v4621_v45 = vrot.slane %v10781_v57, 5  ;;  %v10824_v46 = vsel %vm3739_vm2, %v10781_v57, %v4825_v21  ;;  %v3681_v59 = vld [vmem:[%s11120_s2] sm:$0x1]  ;;  %s5394_s2 = smov 112  }
 0x555   :  { %v3475_v19 = vadd.f32 %v3474_v12, %v3473_v5  ;;  %v3671_v51 = vrot.slane %v3670_v56, 4  ;;  %3913 = vrot.lane.b32.xlu1 %v12729_v42, %s5380_s16  ;;  %v10829_v10 = vsel %vm3739_vm2, %v4485_v9, %v4484_v1  ;;  %v3781_v48 = vrot.slane %v3338_v35, 1  ;;  %v3844_v35 = vpop.permute.xlu0 %3843  ;;  %v12734_v42 = vld [vmem:[#allocation7_spill] sm:$0xff] }
 0x556   :  { %v10833_v4 = vsel %vm3739_vm2, %v4553_v11, %v4552_v63  ;;  %v10836_v26 = vsel %vm3739_vm2, %v4621_v45, %v4620_v54  ;;  %v4755_v43 = vsel %vm3733_vm0, %v4754_v49, %v4753_v24  ;;  %v4687_v21 = vrot.slane %v10724_v53, 7  ;;  %v12730_v49 = vld [vmem:[#allocation55_spill] sm:$0xff] }
 0x557   :  { %v3476_v3 = vrot.slane %v3475_v19, 2  ;;  %v3672_v25 = vadd.f32 %v3671_v51, %v3670_v56  ;;  %v4756_v20 = vsel %vm3736_vm1, %v10724_v53, %v4755_v43  ;;  %v10843_v1 = vsel %vm3739_vm2, %v3781_v48, %v3780_v37 }
 0x558   :  { %v4688_v63 = vsel %vm3736_vm1, %v4687_v21, %v4686_v0  ;;  %v4689_v0 = vrot.slane %v10781_v57, 6  ;;  %v4757_v38 = vrot.slane %v10781_v57, 7  ;;  %v4839_v18 = vsel %vm2305_vm4, %v12732_v13, %v3844_v35  ;;  %v12738_v35 = vld [vmem:[#allocation235_spill] sm:$0xff] }
 0x559   :  { %v3477_v40 = vadd.f32 %v3476_v3, %v3475_v19  ;;  %v3673_v7 = vrot.slane %v3672_v25, 2  ;;  %3917 = vrot.lane.b32.xlu1 %v3910_v22, %s5380_s16  ;;  %v4911_v2 = vlaneseq  ;;  %v12735_v3 = vld [vmem:[#allocation192_spill] sm:$0xff]  ;;  %vm4900_vm0 = vcmask 916480  }
 0x55a   :  { %v10861_v62 = vsel %vm3739_vm2, %v4689_v0, %v4688_v63  ;;  %v10864_v16 = vsel %vm3739_vm2, %v4757_v38, %v4756_v20 }
 0x55b   :  { %v3478_v54 = vrot.slane %v3477_v40, 1  ;;  %v3674_v14 = vadd.f32 %v3673_v7, %v3672_v25  ;;  %v4912_v5 = vshrl.u32 %v4911_v2, 7  ;;  %v12741_v2 = vld [vmem:[#allocation305_spill] sm:$0xff] }
 0x55d   :  { %v3479_v47 = vadd.f32 %v3478_v54, %v3477_v40  ;;  %v3675_v24 = vrot.slane %v3674_v14, 1  ;;  %3981 = vrot.lane.b32.xlu1 %v12730_v49, %s5382_s22  ;;  %v10876_v56 = vsub.s32 0, %v4912_v5  ;;  %v12736_v40 = vld [vmem:[#allocation132_spill] sm:$0xff] }
 0x55f   :  { %v3676_v61 = vadd.f32 %v3675_v24, %v3674_v14  ;;  %v10849_v6 = vmul.f32 0.001953125, %v3479_v47  ;;  %v12737_v14 = vld [vmem:[#allocation8_spill] sm:$0xff] }
 0x561   :  { %v3678_v53 = vmul.f32 0.001953125, %v3676_v61  ;;  %v3679_v44 = vmul.f32 %v10849_v6, %v10849_v6  ;;  %3985 = vrot.lane.b32.xlu1 %v3978_v52, %s5382_s22  ;;  %v12733_v52 = vld [vmem:[#allocation128_spill] sm:$0xff] }
 0x563   :  { %v3680_v41 = vsub.f32 %v3678_v53, %v3679_v44  ;;  %v3848_v28 = vpop.permute.xlu0 %3847 }
 0x564   :  { %v4841_v8 = vsel %vm2305_vm4, %v10415_v29, %v3848_v28 }
 0x565   :  { %v3682_v58 = vadd.f32 1e-05, %v3680_v41  ;;  %4049 = vrot.lane.b32.xlu1 %v12731_v50, %s5384_s7  ;;  %v12739_v41 = vld [vmem:[#allocation237_spill] sm:$0xff] }
 0x567   :  { %5351 = vrsqrt.f32 %v3682_v58  ;;  %v3912_v22 = vpop.permute.xlu0 %3911 }
 0x568   :  { %v4843_v57 = vsel %vm2435_vm6, %v4839_v18, %v3912_v22  ;;  %v3685_v18 = vld [vmem:[%s11121_s3] sm:$0x1]  ;;  %s5396_s3 = smov [#allocation2]  }
 0x569   :  { %4053 = vrot.lane.b32.xlu1 %v4046_v27, %s5384_s7 }
 0x56b   :  { %v3916_v29 = vpop.permute.xlu0 %3915 }
 0x56c   :  { %v4845_v30 = vsel %vm2435_vm6, %v4841_v8, %v3916_v29  ;;  %v12740_v8 = vld [vmem:[#allocation304_spill] sm:$0xff] }
 0x56d   :  { %4117 = vrot.lane.b32.xlu1 %v12733_v52, %s5385_s0 }
 0x56f   :  { %v3980_v12 = vpop.permute.xlu0 %3979 }
 0x570   :  { %v4847_v9 = vsel %vm2565_vm8, %v4843_v57, %v3980_v12  ;;  %v12742_v57 = vld [vmem:[#allocation358_spill] sm:$0xff] }
 0x571   :  { %v5352_v11 = vpop.eup %5351  ;;  %4121 = vrot.lane.b32.xlu1 %v10805_v17, %s5385_s0 }
 0x572   :  { %v10881_v27 = vmul.f32 %v5352_v11, %v3681_v59 }
 0x573   :  { %v3984_v45 = vpop.permute.xlu0 %3983 }
 0x574   :  { %v10885_v19 = vrot.slane %v10881_v27, %v10876_v56  ;;  %v4849_v51 = vsel %vm2565_vm8, %v4845_v30, %v3984_v45 }
 0x575   :  { %4185 = vrot.lane.b32.xlu1 %v12734_v42, %s5386_s23  ;;  %v12743_v42 = vld [vmem:[#allocation189_spill] sm:$0xff] }
 0x576   :  { %4915 = vrot.lane.b32.xlu0 %v10885_v19, %s5378_s6 }
 0x577   :  { %v4048_v37 = vpop.permute.xlu0 %4047 }
 0x578   :  { %v4851_v48 = vsel %vm2695_vm10, %v4847_v9, %v4048_v37 }
 0x579   :  { %4189 = vrot.lane.b32.xlu1 %v10818_v36, %s5386_s23 }
 0x57a   :  { %4921 = vrot.lane.b32.xlu0 %v10885_v19, %s5382_s22 }
 0x57b   :  { %v4052_v17 = vpop.permute.xlu0 %4051 }
 0x57c   :  { %v4853_v43 = vsel %vm2695_vm10, %v4849_v51, %v4052_v17 }
 0x57d   :  { %4253 = vrot.lane.b32.xlu1 %v12735_v3, %s5387_s24 }
 0x57e   :  { %4924 = vrot.lane.b32.xlu0 %v10885_v19, %s5384_s7 }
 0x57f   :  { %v4116_v25 = vpop.permute.xlu0 %4115 }
 0x580   :  { %v4856_v21 = vsel %vm4855_vm3, %v4851_v48, %v4116_v25 }
 0x581   :  { %4257 = vrot.lane.b32.xlu1 %v10808_v32, %s5387_s24 }
 0x582   :  { %4927 = vrot.lane.b32.xlu0 %v10885_v19, %s5385_s0 }
 0x583   :  { %v4120_v36 = vpop.permute.xlu0 %4119 }
 0x584   :  { %v4858_v20 = vsel %vm4855_vm3, %v4853_v43, %v4120_v36 }
 0x585   :  { %4353 = vrot.lane.b32.xlu1 %v12736_v40, %s5388_s25 }
 0x586   :  { %4930 = vrot.lane.b32.xlu0 %v10885_v19, %s5386_s23 }
 0x587   :  { %v4184_v7 = vpop.permute.xlu0 %4183 }
 0x588   :  { %v4861_v63 = vsel %vm4860_vm5, %v4856_v21, %v4184_v7 }
 0x589   :  { %4357 = vrot.lane.b32.xlu1 %v10811_v23, %s5388_s25 }
 0x58a   :  { %4933 = vrot.lane.b32.xlu0 %v10885_v19, %s5387_s24 }
 0x58b   :  { %v4188_v32 = vpop.permute.xlu0 %4187 }
 0x58c   :  { %v4863_v54 = vsel %vm4860_vm5, %v4858_v20, %v4188_v32 }
 0x58d   :  { %4421 = vrot.lane.b32.xlu1 %v12737_v14, %s5389_s26 }
 0x58e   :  { %4936 = vrot.lane.b32.xlu0 %v10885_v19, %s5388_s25 }
 0x58f   :  { %v4252_v47 = vpop.permute.xlu0 %4251 }
 0x590   :  { %v4866_v24 = vsel %vm4865_vm7, %v4861_v63, %v4252_v47 }
 0x591   :  { %4425 = vrot.lane.b32.xlu1 %v10814_v55, %s5389_s26 }
 0x592   :  { %4939 = vrot.lane.b32.xlu0 %v10885_v19, %s5389_s26 }
 0x593   :  { %v4256_v23 = vpop.permute.xlu0 %4255 }
 0x594   :  { %v4868_v49 = vsel %vm4865_vm7, %v4863_v54, %v4256_v23 }
 0x595   :  { %4489 = vrot.lane.b32.xlu1 %v12738_v35, %s5390_s27 }
 0x596   :  { %4942 = vrot.lane.b32.xlu0 %v10885_v19, %s5390_s27 }
 0x597   :  { %v4352_v61 = vpop.permute.xlu0 %4351 }
 0x598   :  { %v4871_v53 = vsel %vm4870_vm9, %v4866_v24, %v4352_v61 }
 0x599   :  { %4493 = vrot.lane.b32.xlu1 %v10829_v10, %s5390_s27 }
 0x59a   :  { %4945 = vrot.lane.b32.xlu0 %v10885_v19, %s5391_s28 }
 0x59b   :  { %v4356_v55 = vpop.permute.xlu0 %4355 }
 0x59c   :  { %v4873_v44 = vsel %vm4870_vm9, %v4868_v49, %v4356_v55 }
 0x59d   :  { %4557 = vrot.lane.b32.xlu1 %v12739_v41, %s5391_s28 }
 0x59e   :  { %4948 = vrot.lane.b32.xlu0 %v10885_v19, %s5392_s29 }
 0x59f   :  { %v4420_v28 = vpop.permute.xlu0 %4419 }
 0x5a0   :  { %v4876_v0 = vsel %vm4875_vm11, %v4871_v53, %v4420_v28 }
 0x5a1   :  { %4561 = vrot.lane.b32.xlu1 %v10833_v4, %s5391_s28  ;;  %v3686_v4 = vmul.f32 %v10881_v27, %v10849_v6 }
 0x5a2   :  { %4951 = vrot.lane.b32.xlu0 %v10885_v19, %s5393_s30 }
 0x5a3   :  { %v4424_v10 = vpop.permute.xlu0 %4423 }
 0x5a4   :  { %v4878_v38 = vsel %vm4875_vm11, %v4873_v44, %v4424_v10 }
 0x5a5   :  { %4625 = vrot.lane.b32.xlu1 %v12740_v8, %s5392_s29 }
 0x5a6   :  { %4954 = vrot.lane.b32.xlu0 %v10885_v19, %s5394_s2 }
 0x5a7   :  { %v4488_v58 = vpop.permute.xlu0 %4487 }
 0x5a8   :  { %v4881_v50 = vsel %vm4880_vm12, %v4876_v0, %v4488_v58 }
 0x5a9   :  { %4629 = vrot.lane.b32.xlu1 %v10836_v26, %s5392_s29  ;;  %v10967_v26 = vsub.f32 %v3685_v18, %v3686_v4 }
 0x5aa   :  { %4695 = vrot.lane.b32.xlu0 %v10418_v31, %s5393_s30 }
 0x5ab   :  { %v4492_v13 = vpop.permute.xlu0 %4491  ;;  %v10976_v29 = vrot.slane %v10967_v26, %v10876_v56 }
 0x5ac   :  { %v4883_v22 = vsel %vm4880_vm12, %v4878_v38, %v4492_v13 }
 0x5ad   :  { %4693 = vrot.lane.b32.xlu1 %v12741_v2, %s5393_s30 }
 0x5ae   :  { %4957 = vrot.lane.b32.xlu0 %v10885_v19, %s5395_s9 }
 0x5af   :  { %v4556_v31 = vpop.permute.xlu0 %4555 }
 0x5b0   :  { %v4886_v6 = vsel %vm4885_vm13, %v4881_v50, %v4556_v31 }
 0x5b1   :  { %4918 = vrot.lane.b32.xlu1 %v10885_v19, %s5380_s16 }
 0x5b2   :  { %4759 = vrot.lane.b32.xlu0 %v12742_v57, %s5394_s2 }
 0x5b3   :  { %v4560_v5 = vpop.permute.xlu0 %4559 }
 0x5b4   :  { %v4888_v30 = vsel %vm4885_vm13, %v4883_v22, %v4560_v5 }
 0x5b5   :  { %4980 = vrot.lane.b32.xlu1 %v10976_v29, %s5378_s6 }
 0x5b6   :  { %4763 = vrot.lane.b32.xlu0 %v10501_v15, %s5394_s2  ;;  %v3846_v15 = vpop.permute.xlu1 %3845 }
 0x5b7   :  { %v4624_v52 = vpop.permute.xlu0 %4623 }
 0x5b8   :  { %v4891_v59 = vsel %vm4890_vm14, %v4886_v6, %v4624_v52 }
 0x5b9   :  { %4983 = vrot.lane.b32.xlu1 %v10976_v29, %s5380_s16  ;;  %s5065_s16 = sshll.u32 %s5396_s3, 4  ;;  %s5066_s16 = int_to_ptr.vmem [resolvable:$true] %s5065_s16 }
 0x5ba   :  { %5019 = vrot.lane.b32.xlu0 %v10976_v29, %s5394_s2  ;;  %p5358_p1 = scmp.lt.s32.totalorder %s5066_s16, %s5066_s16 }
 0x5bb   :  { %v4628_v12 = vpop.permute.xlu0 %4627 }
 0x5bc   :  { %v10989_v9 = vsel %vm4890_vm14, %v4888_v30, %v4628_v12 }
 0x5bd   :  { %4986 = vrot.lane.b32.xlu1 %v10976_v29, %s5382_s22  ;;  %s5353_s22 = scalar_lea.vmem %s5066_s16, 512 }
 0x5be   :  { %4829 = vrot.lane.b32.xlu0 %v10209_v39, %s5395_s9  ;;  %v4840_v39 = vsel %vm2305_vm4, %v12743_v42, %v3846_v15  ;;  %p5354_p0 = scmp.ne.s32.totalorder %s5066_s16, %s5353_s22  ;;  %p5359_p2 = scmp.lt.s32.totalorder %s5353_s22, %s5353_s22 }
 0x5bf   :  { %v4692_v11 = vpop.permute.xlu0 %4691 }
 0x5c0   :  { %v10996_v45 = vsel %vm4895_vm15, %v4891_v59, %v4692_v11  ;;  %p5360_p3 = por %p5359_p2, %p5358_p1 }
 0x5c1   :  { %4989 = vrot.lane.b32.xlu1 %v10976_v29, %s5384_s7 }
 0x5c2   :  { %4833 = vrot.lane.b32.xlu0 %v10824_v46, %s5395_s9  ;;  %p5361_p4 = pnand %p5360_p3, %p5354_p0 }
 0x5c3   :  { %v3850_v19 = vpop.permute.xlu1 %3849 }
 0x5c4   :  { %v4842_v51 = vsel %vm2305_vm4, %v10843_v1, %v3850_v19 }
 0x5c5   :  { %4992 = vrot.lane.b32.xlu1 %v10976_v29, %s5385_s0 }
 0x5c7   :  { %v3914_v37 = vpop.permute.xlu1 %3913 }
 0x5c8   :  { %v4844_v48 = vsel %vm2435_vm6, %v4840_v39, %v3914_v37 }
 0x5c9   :  { %4995 = vrot.lane.b32.xlu1 %v10976_v29, %s5386_s23 }
 0x5cb   :  { %v3918_v17 = vpop.permute.xlu1 %3917 }
 0x5cc   :  { %v4846_v43 = vsel %vm2435_vm6, %v4842_v51, %v3918_v17 }
 0x5cd   :  { %4998 = vrot.lane.b32.xlu1 %v10976_v29, %s5387_s24 }
 0x5cf   :  { %v3982_v46 = vpop.permute.xlu1 %3981 }
 0x5d0   :  { %v4848_v1 = vsel %vm2565_vm8, %v4844_v48, %v3982_v46 }
 0x5d1   :  { %5001 = vrot.lane.b32.xlu1 %v10976_v29, %s5388_s25 }
 0x5d3   :  { %v3986_v3 = vpop.permute.xlu1 %3985 }
 0x5d4   :  { %v4850_v25 = vsel %vm2565_vm8, %v4846_v43, %v3986_v3 }
 0x5d5   :  { %5004 = vrot.lane.b32.xlu1 %v10976_v29, %s5389_s26 }
 0x5d7   :  { %v4050_v21 = vpop.permute.xlu1 %4049 }
 0x5d8   :  { %v4852_v36 = vsel %vm2695_vm10, %v4848_v1, %v4050_v21 }
 0x5d9   :  { %5007 = vrot.lane.b32.xlu1 %v10976_v29, %s5390_s27 }
 0x5db   :  { %v4054_v20 = vpop.permute.xlu1 %4053 }
 0x5dc   :  { %v4854_v40 = vsel %vm2695_vm10, %v4850_v25, %v4054_v20 }
 0x5dd   :  { %5010 = vrot.lane.b32.xlu1 %v10976_v29, %s5391_s28 }
 0x5df   :  { %v4118_v7 = vpop.permute.xlu1 %4117 }
 0x5e0   :  { %v4857_v63 = vsel %vm4855_vm3, %v4852_v36, %v4118_v7 }
 0x5e1   :  { %5013 = vrot.lane.b32.xlu1 %v10976_v29, %s5392_s29 }
 0x5e3   :  { %v4122_v32 = vpop.permute.xlu1 %4121 }
 0x5e4   :  { %v4859_v54 = vsel %vm4855_vm3, %v4854_v40, %v4122_v32 }
 0x5e5   :  { %4697 = vrot.lane.b32.xlu1 %v10861_v62, %s5393_s30 }
 0x5e7   :  { %v4186_v14 = vpop.permute.xlu1 %4185 }
 0x5e8   :  { %v4862_v47 = vsel %vm4860_vm5, %v4857_v63, %v4186_v14  ;;  %v4916_v44 = vpop.permute.xlu0 %4915 }
 0x5e9   :  { %5016 = vrot.lane.b32.xlu1 %v10976_v29, %s5393_s30  ;;  %v4960_v25 = vsel %vm2305_vm4, %v10881_v27, %v4916_v44 }
 0x5eb   :  { %v4190_v24 = vpop.permute.xlu1 %4189 }
 0x5ec   :  { %v4864_v23 = vsel %vm4860_vm5, %v4859_v54, %v4190_v24  ;;  %v4922_v0 = vpop.permute.xlu0 %4921 }
 0x5ed   :  { %4761 = vrot.lane.b32.xlu1 %v10254_v33, %s5394_s2 }
 0x5ef   :  { %v4254_v49 = vpop.permute.xlu1 %4253 }
 0x5f0   :  { %v4867_v35 = vsel %vm4865_vm7, %v4862_v47, %v4254_v49  ;;  %v4925_v38 = vpop.permute.xlu0 %4924 }
 0x5f1   :  { %4765 = vrot.lane.b32.xlu1 %v10864_v16, %s5394_s2 }
 0x5f3   :  { %v4258_v61 = vpop.permute.xlu1 %4257 }
 0x5f4   :  { %v4869_v62 = vsel %vm4865_vm7, %v4864_v23, %v4258_v61  ;;  %v4928_v4 = vpop.permute.xlu0 %4927 }
 0x5f5   :  { %4827 = vrot.lane.b32.xlu1 %v10331_v34, %s5395_s9 }
 0x5f7   :  { %v4354_v53 = vpop.permute.xlu1 %4353 }
 0x5f8   :  { %v4872_v55 = vsel %vm4870_vm9, %v4867_v35, %v4354_v53  ;;  %v4931_v22 = vpop.permute.xlu0 %4930 }
 0x5f9   :  { %4831 = vrot.lane.b32.xlu1 %v10670_v60, %s5395_s9 }
 0x5fb   :  { %v4358_v33 = vpop.permute.xlu1 %4357 }
 0x5fc   :  { %v4874_v41 = vsel %vm4870_vm9, %v4869_v62, %v4358_v33 }
 0x5fd   :  { %5022 = vrot.lane.b32.xlu1 %v10976_v29, %s5395_s9  ;;  %v4934_v29 = vpop.permute.xlu0 %4933 }
 0x5ff   :  { %v4422_v16 = vpop.permute.xlu1 %4421 }
 0x600   :  { %v4877_v28 = vsel %vm4875_vm11, %v4872_v55, %v4422_v16 }
 0x601   :  { %v4937_v52 = vpop.permute.xlu0 %4936 }
 0x603   :  { %v4426_v10 = vpop.permute.xlu1 %4425 }
 0x604   :  { %v4879_v34 = vsel %vm4875_vm11, %v4874_v41, %v4426_v10 }
 0x605   :  { %v4940_v11 = vpop.permute.xlu0 %4939 }
 0x607   :  { %v4490_v8 = vpop.permute.xlu1 %4489 }
 0x608   :  { %v4882_v58 = vsel %vm4880_vm12, %v4877_v28, %v4490_v8 }
 0x609   :  { %v4943_v51 = vpop.permute.xlu0 %4942 }
 0x60b   :  { %v4494_v50 = vpop.permute.xlu1 %4493 }
 0x60c   :  { %v4884_v60 = vsel %vm4880_vm12, %v4879_v34, %v4494_v50 }
 0x60d   :  { %v4946_v37 = vpop.permute.xlu0 %4945 }
 0x60f   :  { %v4558_v13 = vpop.permute.xlu1 %4557 }
 0x610   :  { %v4887_v18 = vsel %vm4885_vm13, %v4882_v58, %v4558_v13 }
 0x611   :  { %v4949_v17 = vpop.permute.xlu0 %4948 }
 0x613   :  { %v4562_v2 = vpop.permute.xlu1 %4561 }
 0x614   :  { %v4889_v31 = vsel %vm4885_vm13, %v4884_v60, %v4562_v2 }
 0x615   :  { %v4952_v1 = vpop.permute.xlu0 %4951 }
 0x617   :  { %v4626_v6 = vpop.permute.xlu1 %4625 }
 0x618   :  { %v4892_v57 = vsel %vm4890_vm14, %v4887_v18, %v4626_v6 }
 0x619   :  { %v4955_v21 = vpop.permute.xlu0 %4954 }
 0x61b   :  { %v4630_v5 = vpop.permute.xlu1 %4629 }
 0x61c   :  { %v4894_v30 = vsel %vm4890_vm14, %v4889_v31, %v4630_v5 }
 0x61d   :  { %v4696_v63 = vpop.permute.xlu0 %4695 }
 0x61f   :  { %v4694_v59 = vpop.permute.xlu1 %4693 }
 0x620   :  { %v4897_v12 = vsel %vm4895_vm15, %v4892_v57, %v4694_v59 }
 0x621   :  { %v4958_v47 = vpop.permute.xlu0 %4957 }
 0x623   :  { %v4919_v15 = vpop.permute.xlu1 %4918 }
 0x624   :  { %v4961_v20 = vsel %vm2435_vm6, %v4960_v25, %v4919_v15 }
 0x625   :  { %v4962_v40 = vsel %vm2565_vm8, %v4961_v20, %v4922_v0  ;;  %v4760_v35 = vpop.permute.xlu0 %4759 }
 0x626   :  { %v4963_v32 = vsel %vm2695_vm10, %v4962_v40, %v4925_v38 }
 0x627   :  { %v4981_v19 = vpop.permute.xlu1 %4980  ;;  %v4964_v14 = vsel %vm4855_vm3, %v4963_v32, %v4928_v4 }
 0x628   :  { %v4965_v23 = vsel %vm4860_vm5, %v4964_v14, %v4931_v22  ;;  %v5025_v28 = vsel %vm2305_vm4, %v10967_v26, %v4981_v19  ;;  %vm4905_vm4 = vcmask 982016   ;;  %v4898_v19 = vsel %vm4895_vm15, %v10989_v9, %v4696_v63 }
 0x629   :  { %v4966_v49 = vsel %vm4865_vm7, %v4965_v23, %v4934_v29  ;;  %v4764_v55 = vpop.permute.xlu0 %4763 }
 0x62a   :  { %v4967_v61 = vsel %vm4870_vm9, %v4966_v49, %v4937_v52 }
 0x62b   :  { %v4984_v42 = vpop.permute.xlu1 %4983  ;;  %v4968_v53 = vsel %vm4875_vm11, %v4967_v61, %v4940_v11 }
 0x62c   :  { %v4969_v33 = vsel %vm4880_vm12, %v4968_v53, %v4943_v51  ;;  %v5026_v0 = vsel %vm2435_vm6, %v5025_v28, %v4984_v42  ;;  %v4901_v42 = vsel %vm4900_vm0, %v10996_v45, %v4760_v35 }
 0x62d   :  { %v4970_v41 = vsel %vm4885_vm13, %v4969_v33, %v4946_v37  ;;  %v5020_v10 = vpop.permute.xlu0 %5019 }
 0x62e   :  { %v4971_v38 = vsel %vm4890_vm14, %v4970_v41, %v4949_v17 }
 0x62f   :  { %v4987_v39 = vpop.permute.xlu1 %4986  ;;  %v4972_v4 = vsel %vm4895_vm15, %v4971_v38, %v4952_v1 }
 0x630   :  { %v5027_v34 = vsel %vm2565_vm8, %v5026_v0, %v4987_v39  ;;  %v4973_v31 = vsel %vm4900_vm0, %v4972_v4, %v4955_v21  ;;  %v4903_v39 = vsel %vm4900_vm0, %v4898_v19, %v4764_v55 }
 0x631   :  { %v4830_v26 = vpop.permute.xlu0 %4829  ;;  %v4974_v59 = vsel %vm4905_vm4, %v4973_v31, %v4958_v47 }
 0x632   :  { %v5043_v37 = vrot.slane %v4974_v59, %v10876_v56 }
 0x633   :  { %v4990_v48 = vpop.permute.xlu1 %4989 }
 0x634   :  { %v5028_v8 = vsel %vm2695_vm10, %v5027_v34, %v4990_v48 }
 0x637   :  { %v4993_v43 = vpop.permute.xlu1 %4992 }
 0x638   :  { %v5029_v50 = vsel %vm4855_vm3, %v5028_v8, %v4993_v43 }
 0x63b   :  { %v4996_v46 = vpop.permute.xlu1 %4995 }
 0x63c   :  { %v5030_v60 = vsel %vm4860_vm5, %v5029_v50, %v4996_v46 }
 0x63f   :  { %v4999_v3 = vpop.permute.xlu1 %4998 }
 0x640   :  { %v5031_v13 = vsel %vm4865_vm7, %v5030_v60, %v4999_v3 }
 0x643   :  { %v5002_v36 = vpop.permute.xlu1 %5001 }
 0x644   :  { %v5032_v18 = vsel %vm4870_vm9, %v5031_v13, %v5002_v36 }
 0x647   :  { %v5005_v7 = vpop.permute.xlu1 %5004 }
 0x648   :  { %v5033_v2 = vsel %vm4875_vm11, %v5032_v18, %v5005_v7 }
 0x64b   :  { %v5008_v54 = vpop.permute.xlu1 %5007 }
 0x64c   :  { %v5034_v6 = vsel %vm4880_vm12, %v5033_v2, %v5008_v54 }
 0x64f   :  { %v5011_v24 = vpop.permute.xlu1 %5010 }
 0x650   :  { %v5035_v57 = vsel %vm4885_vm13, %v5034_v6, %v5011_v24 }
 0x653   :  { %v5014_v27 = vpop.permute.xlu1 %5013 }
 0x654   :  { %v5036_v52 = vsel %vm4890_vm14, %v5035_v57, %v5014_v27 }
 0x657   :  { %v4698_v62 = vpop.permute.xlu1 %4697 }
 0x658   :  { %v4899_v29 = vsel %vm4895_vm15, %v4894_v30, %v4698_v62  ;;  %v4834_v30 = vpop.permute.xlu0 %4833 }
 0x65b   :  { %v5017_v44 = vpop.permute.xlu1 %5016 }
 0x65c   :  { %v5037_v51 = vsel %vm4895_vm15, %v5036_v52, %v5017_v44 }
 0x65d   :  { %v5038_v9 = vsel %vm4900_vm0, %v5037_v51, %v5020_v10 }
 0x65f   :  { %v4762_v16 = vpop.permute.xlu1 %4761 }
 0x660   :  { %v4902_v5 = vsel %vm4900_vm0, %v4897_v12, %v4762_v16 }
 0x661   :  { %v4907_v12 = vsel %vm4905_vm4, %v4902_v5, %v4830_v26 }
 0x662   :  { %v5045_v1 = vmul.f32 %v5043_v37, %v4907_v12 }
 0x663   :  { %v4766_v58 = vpop.permute.xlu1 %4765 }
 0x664   :  { %v4904_v15 = vsel %vm4900_vm0, %v4899_v29, %v4766_v58 }
 0x665   :  { %v4909_v48 = vsel %vm4905_vm4, %v4904_v15, %v4834_v30 }
 0x666   :  { %v5047_v45 = vmul.f32 %v5043_v37, %v4909_v48 }
 0x667   :  { %v4828_v22 = vpop.permute.xlu1 %4827 }
 0x668   :  { %v4906_v17 = vsel %vm4905_vm4, %v4901_v42, %v4828_v22 }
 0x669   :  { %v5044_v25 = vmul.f32 %v5043_v37, %v4906_v17 }
 0x66b   :  { %v4832_v11 = vpop.permute.xlu1 %4831 }
 0x66c   :  { %v4908_v43 = vsel %vm4905_vm4, %v4903_v39, %v4832_v11 }
 0x66d   :  { %v5046_v21 = vmul.f32 %v5043_v37, %v4908_v43 }
 0x66f   :  { %v5023_v46 = vpop.permute.xlu1 %5022 }
 0x670   :  { %v5039_v3 = vsel %vm4905_vm4, %v5038_v9, %v5023_v46 }
 0x671   :  { %v5051_v36 = vrot.slane %v5039_v3, %v10876_v56 }
 0x673   :  { %v5052_v20 = vadd.f32 %v5051_v36, %v5044_v25  ;;  %v5053_v40 = vadd.f32 %v5051_v36, %v5045_v1  ;;  %v5054_v7 = vadd.f32 %v5051_v36, %v5046_v21  ;;  %v5055_v63 = vadd.f32 %v5051_v36, %v5047_v45 }
 0x675   :  { %5056 = vst [vmem:[#allocation2] sm:$0xff] %v5052_v20  ;;  %5057 = vst [vmem:[#allocation2 + $0x8] sm:$0xff] %v5053_v40 }
 0x676   :  { %5058 = vst [vmem:[#allocation2 + $0x10] sm:$0xff] %v5054_v7  ;;  %5059 = vst [vmem:[#allocation2 + $0x18] sm:$0xff] %v5055_v63 }
 0x677   :  { %5364 = shalt.err (!%p5361_p4)
}
 0x678   :  { %s5365_s11 = scalar_lea.hbm %s11122_s4, 512 }
 0x679   :  { %p5366_p5 = scmp.ne.s32.totalorder %s11122_s4, %s5365_s11  ;;  %p5369_p6 = scmp.lt.u32.totalorder %s5365_s11, %s11122_s4 }
 0x67b   :  { %p5371_p7 = pnand %p5369_p6, %p5366_p5 }
 0x67d   :  { %5374 = shalt.err (!%p5371_p7)
}
 0x67e   :  { %s5397_s18 = smov 128  }
 0x67f   :  { %5071 = dma.vmem_to_hbm [thread:$0]  %s5066_s16, 512, %s11122_s4, [#allocation3], %s5397_s18, %s5397_s18, %s5378_s6  }
 0x680   :  { %5375 = dma.done.wait [#allocation3], 512  }
 0x681   :  { %5376 = vsyncadd [#allocation3], 4294966784 }
 0x682   :  { %5075 = vsyncpa [#allocation3], 1 }

</bundles_post_ra>
